<compile_context>
chip_gen: v7x
topology: tpu7x:2x2x1
jax: 0.10.0
libtpu: 0.0.40
codegen_flags: <defaults>
</compile_context>

<pallas_src>
import functools

import jax
import jax.numpy as jnp
import numpy as np
from jax.experimental import pallas as pl
from jax.experimental.pallas import tpu as pltpu

BT = 8  # batch tile per grid step (one sublane tile)


# ----------------------------------------------------------------------------
# Fused Pallas kernel: conv1 -> pool -> relu -> conv2 -> pool -> relu -> fc1
#                      -> relu -> fc2 -> sigmoid, for one batch tile of BT.
# ----------------------------------------------------------------------------
def _discriminator_kernel(pa_ref, w1_ref, b1_ref, w2_ref, b2_ref,
                          wf1_ref, bf1_ref, wf2_ref, bf2_ref, o_ref, *, bt):
    # conv1 as one MXU GEMM: (24*24*bt, 25) @ (25, 10) + b1.
    c1 = jnp.dot(pa_ref[...], w1_ref[...], preferred_element_type=jnp.float32)
    c1 = c1 + b1_ref[...]                                   # (4608, 10)

    # pool1 (2x2 max) + relu.  Rows are ordered (oh, ow, b); splitting only
    # leading dims keeps the (bt, 10) layout tile intact.
    c1 = c1.reshape(12, 2, 12, 2, bt, 10)
    p1 = jnp.maximum(jnp.maximum(c1[:, 0, :, 0], c1[:, 0, :, 1]),
                     jnp.maximum(c1[:, 1, :, 0], c1[:, 1, :, 1]))
    p1 = jnp.maximum(p1, 0.0)                               # (12, 12, bt, 10)

    # conv2: in-kernel "im2col" = 25 accumulated GEMMs over the 5x5 taps.
    # Each tap window is a pure leading-dim slice of the VMEM-resident pool1.
    acc = b2_ref[...]                                       # (1, 20) broadcasts
    for di in range(5):
        for dj in range(5):
            win = p1[di:di + 8, dj:dj + 8]                  # (8, 8, bt, 10)
            win = win.reshape(8 * 8 * bt, 10)
            acc = acc + jnp.dot(win, w2_ref[di * 5 + dj],
                                preferred_element_type=jnp.float32)
    # TODO(synk): nn.Dropout2d is identity in eval mode (no RNG masking here).

    # pool2 (2x2 max) + relu.  Rows are ordered (y, x, b).
    c2 = acc.reshape(4, 2, 4, 2, bt, 20)
    p2 = jnp.maximum(jnp.maximum(c2[:, 0, :, 0], c2[:, 0, :, 1]),
                     jnp.maximum(c2[:, 1, :, 0], c2[:, 1, :, 1]))
    p2 = jnp.maximum(p2, 0.0)                               # (4, 4, bt, 20)

    # fc1 (+relu): x.view(-1, 320) @ W1^T expressed as a sum of per-position
    # (20 -> 50) GEMMs; the (C,H,W) flatten order lives in the permuted weight.
    h = bf1_ref[...]                                        # (1, 50) broadcasts
    for a in range(4):
        for e in range(4):
            h = h + jnp.dot(p2[a, e], wf1_ref[a * 4 + e],
                            preferred_element_type=jnp.float32)
    h = jnp.maximum(h, 0.0)                                 # (bt, 50)
    # TODO(synk): F.dropout is identity in eval mode.

    # fc2 + sigmoid.
    out = jnp.dot(h, wf2_ref[...], preferred_element_type=jnp.float32)
    out = out + bf2_ref[...]                                # (bt, 1)
    o_ref[...] = 1.0 / (1.0 + jnp.exp(-out))


# ----------------------------------------------------------------------------
# Wrapper: tiny input/weight layout plumbing + one pallas_call.
# ----------------------------------------------------------------------------
def discriminator_forward(x, params):
    w1, b1, w2, b2, wf1, bf1, wf2, bf2 = params
    B = x.shape[0]
    Bp = ((B + BT - 1) // BT) * BT
    G = Bp // BT

    xp = x[:, 0].astype(jnp.float32)                        # (B, 28, 28)
    if Bp != B:
        xp = jnp.pad(xp, ((0, Bp - B), (0, 0), (0, 0)))

    # conv1 im2col (tiny glue, one XLA fusion).  Rows ordered (tile, oh, ow, b),
    # columns (di, dj) to match w1.reshape(10, 25).
    taps = [xp[:, di:di + 24, dj:dj + 24] for di in range(5) for dj in range(5)]
    patches = jnp.stack(taps, axis=-1)                      # (Bp, 24, 24, 25)
    patches = patches.reshape(G, BT, 24, 24, 25).transpose(0, 2, 3, 1, 4)
    patches = patches.reshape(G * 24 * 24 * BT, 25)

    # One-time weight layout plumbing (kernel-friendly orders; f32 throughout).
    w1m = w1.reshape(10, 25).T                              # (25, 10)  [tap, cout]
    w2r = w2.transpose(2, 3, 1, 0).reshape(25, 10, 20)      # [tap, cin, cout]
    wf1r = wf1.reshape(50, 20, 4, 4).transpose(2, 3, 1, 0).reshape(16, 20, 50)
    wf2r = wf2.T                                            # (50, 1)
    b1r, b2r = b1.reshape(1, 10), b2.reshape(1, 20)
    bf1r, bf2r = bf1.reshape(1, 50), bf2.reshape(1, 1)

    out = pl.pallas_call(
        functools.partial(_discriminator_kernel, bt=BT),
        out_shape=jax.ShapeDtypeStruct((Bp, 1), jnp.float32),
        grid=(G,),
        in_specs=[
            pl.BlockSpec((24 * 24 * BT, 25), lambda i: (i, 0)),   # conv1 patches
            pl.BlockSpec((25, 10), lambda i: (0, 0)),             # conv1 W
            pl.BlockSpec((1, 10), lambda i: (0, 0)),              # conv1 b
            pl.BlockSpec((25, 10, 20), lambda i: (0, 0, 0)),      # conv2 W
            pl.BlockSpec((1, 20), lambda i: (0, 0)),              # conv2 b
            pl.BlockSpec((16, 20, 50), lambda i: (0, 0, 0)),      # fc1 W
            pl.BlockSpec((1, 50), lambda i: (0, 0)),              # fc1 b
            pl.BlockSpec((50, 1), lambda i: (0, 0)),              # fc2 W
            pl.BlockSpec((1, 1), lambda i: (0, 0)),               # fc2 b
        ],
        out_specs=pl.BlockSpec((BT, 1), lambda i: (i, 0)),
        compiler_params=pltpu.CompilerParams(
            dimension_semantics=("parallel",),
            vmem_limit_bytes=32 * 1024 * 1024),
    )(patches, w1m, b1r, w2r, b2r, wf1r, bf1r, wf2r, bf2r)
    return out[:B]


def init_params(key):
    """Deterministic PyTorch-default-style init (U(-1/sqrt(fan_in), ...))."""
    ks = jax.random.split(key, 8)

    def u(k, shape, fan_in):
        bound = 1.0 / np.sqrt(fan_in)
        return jax.random.uniform(k, shape, jnp.float32, -bound, bound)

    w1 = u(ks[0], (10, 1, 5, 5), 1 * 5 * 5)
    b1 = u(ks[1], (10,), 1 * 5 * 5)
    w2 = u(ks[2], (20, 10, 5, 5), 10 * 5 * 5)
    b2 = u(ks[3], (20,), 10 * 5 * 5)
    wf1 = u(ks[4], (50, 320), 320)
    bf1 = u(ks[5], (50,), 320)
    wf2 = u(ks[6], (1, 50), 50)
    bf2 = u(ks[7], (1,), 50)
    return (w1, b1, w2, b2, wf1, bf1, wf2, bf2)


if __name__ == "__main__":
    key = jax.random.PRNGKey(0)
    pkey, xkey = jax.random.split(key)
    params = init_params(pkey)
    # fc1(320) implies 1x28x28 (MNIST) inputs; batch=2.
    x = jax.random.normal(xkey, (2, 1, 28, 28), dtype=jnp.float32)

    fwd = jax.jit(discriminator_forward)
    out = fwd(x, params)
    out = jax.block_until_ready(out)

    assert out.shape == (2, 1), out.shape
    assert bool(jnp.all(jnp.isfinite(out)))
    assert bool(jnp.all((out >= 0.0) & (out <= 1.0)))  # sigmoid range
    print("KERNEL_OK")
</pallas_src>

<mosaic_0001>
module attributes {stable_mosaic.version = 11 : i64} {
  func.func @_discriminator_kernel(%arg0: i32, %arg1: memref<4608x25xf32, #tpu.memory_space<vmem>>, %arg2: memref<25x10xf32, #tpu.memory_space<vmem>>, %arg3: memref<1x10xf32, #tpu.memory_space<vmem>>, %arg4: memref<25x10x20xf32, #tpu.memory_space<vmem>>, %arg5: memref<1x20xf32, #tpu.memory_space<vmem>>, %arg6: memref<16x20x50xf32, #tpu.memory_space<vmem>>, %arg7: memref<1x50xf32, #tpu.memory_space<vmem>>, %arg8: memref<50x1xf32, #tpu.memory_space<vmem>>, %arg9: memref<1x1xf32, #tpu.memory_space<vmem>>, %arg10: memref<8x1xf32, #tpu.memory_space<vmem>>) attributes {dimension_semantics = [#tpu.dimension_semantics<parallel>], iteration_bounds = array<i64: 1>, scalar_prefetch = 0 : i64, scratch_operands = 0 : i64, tpu.core_type = #tpu.core_type<tc>, window_params = [{transform_indices = @transform_0, window_bounds = array<i64: 4608, 25>}, {pipeline_mode = #tpu.pipeline_mode<synchronous>, transform_indices = @transform_1, window_bounds = array<i64: 25, 10>}, {pipeline_mode = #tpu.pipeline_mode<synchronous>, transform_indices = @transform_2, window_bounds = array<i64: 1, 10>}, {pipeline_mode = #tpu.pipeline_mode<synchronous>, transform_indices = @transform_3, window_bounds = array<i64: 25, 10, 20>}, {pipeline_mode = #tpu.pipeline_mode<synchronous>, transform_indices = @transform_4, window_bounds = array<i64: 1, 20>}, {pipeline_mode = #tpu.pipeline_mode<synchronous>, transform_indices = @transform_5, window_bounds = array<i64: 16, 20, 50>}, {pipeline_mode = #tpu.pipeline_mode<synchronous>, transform_indices = @transform_6, window_bounds = array<i64: 1, 50>}, {pipeline_mode = #tpu.pipeline_mode<synchronous>, transform_indices = @transform_7, window_bounds = array<i64: 50, 1>}, {pipeline_mode = #tpu.pipeline_mode<synchronous>, transform_indices = @transform_8, window_bounds = array<i64: 1, 1>}, {transform_indices = @transform_9, window_bounds = array<i64: 8, 1>}]} {
    %c0 = arith.constant 0 : index
    %c0_0 = arith.constant 0 : index
    %0 = vector.load %arg1[%c0, %c0_0] : memref<4608x25xf32, #tpu.memory_space<vmem>>, vector<4608x25xf32>
    %c0_1 = arith.constant 0 : index
    %c0_2 = arith.constant 0 : index
    %1 = vector.load %arg2[%c0_1, %c0_2] : memref<25x10xf32, #tpu.memory_space<vmem>>, vector<25x10xf32>
    %cst = arith.constant dense<0.000000e+00> : vector<4608x10xf32>
    %2 = tpu.matmul %0, %1, %cst {dimension_numbers = #tpu.dot_dimension_numbers<[1], [0], [0], [1], [0, 0, 1, 1], [], []>} : vector<4608x25xf32>, vector<25x10xf32>, vector<4608x10xf32> -> vector<4608x10xf32>
    %c0_3 = arith.constant 0 : index
    %c0_4 = arith.constant 0 : index
    %3 = vector.load %arg3[%c0_3, %c0_4] : memref<1x10xf32, #tpu.memory_space<vmem>>, vector<1x10xf32>
    %4 = vector.broadcast %3 : vector<1x10xf32> to vector<4608x10xf32>
    %5 = arith.addf %2, %4 : vector<4608x10xf32>
    %6 = vector.shape_cast %5 : vector<4608x10xf32> to vector<12x2x12x2x8x10xf32>
    %7 = vector.extract_strided_slice %6 {offsets = [0, 0, 0, 0, 0, 0], sizes = [12, 1, 12, 1, 8, 10], strides = [1, 1, 1, 1, 1, 1]} : vector<12x2x12x2x8x10xf32> to vector<12x1x12x1x8x10xf32>
    %8 = vector.shape_cast %7 : vector<12x1x12x1x8x10xf32> to vector<12x12x8x10xf32>
    %9 = vector.extract_strided_slice %6 {offsets = [0, 0, 0, 1, 0, 0], sizes = [12, 1, 12, 1, 8, 10], strides = [1, 1, 1, 1, 1, 1]} : vector<12x2x12x2x8x10xf32> to vector<12x1x12x1x8x10xf32>
    %10 = vector.shape_cast %9 : vector<12x1x12x1x8x10xf32> to vector<12x12x8x10xf32>
    %11 = arith.maximumf %8, %10 : vector<12x12x8x10xf32>
    %12 = vector.extract_strided_slice %6 {offsets = [0, 1, 0, 0, 0, 0], sizes = [12, 1, 12, 1, 8, 10], strides = [1, 1, 1, 1, 1, 1]} : vector<12x2x12x2x8x10xf32> to vector<12x1x12x1x8x10xf32>
    %13 = vector.shape_cast %12 : vector<12x1x12x1x8x10xf32> to vector<12x12x8x10xf32>
    %14 = vector.extract_strided_slice %6 {offsets = [0, 1, 0, 1, 0, 0], sizes = [12, 1, 12, 1, 8, 10], strides = [1, 1, 1, 1, 1, 1]} : vector<12x2x12x2x8x10xf32> to vector<12x1x12x1x8x10xf32>
    %15 = vector.shape_cast %14 : vector<12x1x12x1x8x10xf32> to vector<12x12x8x10xf32>
    %16 = arith.maximumf %13, %15 : vector<12x12x8x10xf32>
    %17 = arith.maximumf %11, %16 : vector<12x12x8x10xf32>
    %cst_5 = arith.constant 0.000000e+00 : f32
    %18 = vector.broadcast %cst_5 : f32 to vector<12x12x8x10xf32>
    %19 = arith.maximumf %17, %18 : vector<12x12x8x10xf32>
    %c0_6 = arith.constant 0 : index
    %c0_7 = arith.constant 0 : index
    %20 = vector.load %arg5[%c0_6, %c0_7] : memref<1x20xf32, #tpu.memory_space<vmem>>, vector<1x20xf32>
    %21 = vector.extract_strided_slice %19 {offsets = [0, 0, 0, 0], sizes = [8, 8, 8, 10], strides = [1, 1, 1, 1]} : vector<12x12x8x10xf32> to vector<8x8x8x10xf32>
    %22 = vector.shape_cast %21 : vector<8x8x8x10xf32> to vector<512x10xf32>
    %c0_8 = arith.constant 0 : index
    %c0_9 = arith.constant 0 : index
    %c0_10 = arith.constant 0 : index
    %23 = vector.load %arg4[%c0_8, %c0_9, %c0_10] : memref<25x10x20xf32, #tpu.memory_space<vmem>>, vector<1x10x20xf32>
    %24 = vector.shape_cast %23 : vector<1x10x20xf32> to vector<10x20xf32>
    %cst_11 = arith.constant dense<0.000000e+00> : vector<512x20xf32>
    %25 = tpu.matmul %22, %24, %cst_11 {dimension_numbers = #tpu.dot_dimension_numbers<[1], [0], [0], [1], [0, 0, 1, 1], [], []>} : vector<512x10xf32>, vector<10x20xf32>, vector<512x20xf32> -> vector<512x20xf32>
    %26 = vector.broadcast %20 : vector<1x20xf32> to vector<512x20xf32>
    %27 = arith.addf %26, %25 : vector<512x20xf32>
    %28 = vector.extract_strided_slice %19 {offsets = [0, 1, 0, 0], sizes = [8, 8, 8, 10], strides = [1, 1, 1, 1]} : vector<12x12x8x10xf32> to vector<8x8x8x10xf32>
    %29 = vector.shape_cast %28 : vector<8x8x8x10xf32> to vector<512x10xf32>
    %c1 = arith.constant 1 : index
    %c0_12 = arith.constant 0 : index
    %c0_13 = arith.constant 0 : index
    %30 = vector.load %arg4[%c1, %c0_12, %c0_13] : memref<25x10x20xf32, #tpu.memory_space<vmem>>, vector<1x10x20xf32>
    %31 = vector.shape_cast %30 : vector<1x10x20xf32> to vector<10x20xf32>
    %cst_14 = arith.constant dense<0.000000e+00> : vector<512x20xf32>
    %32 = tpu.matmul %29, %31, %cst_14 {dimension_numbers = #tpu.dot_dimension_numbers<[1], [0], [0], [1], [0, 0, 1, 1], [], []>} : vector<512x10xf32>, vector<10x20xf32>, vector<512x20xf32> -> vector<512x20xf32>
    %33 = arith.addf %27, %32 : vector<512x20xf32>
    %34 = vector.extract_strided_slice %19 {offsets = [0, 2, 0, 0], sizes = [8, 8, 8, 10], strides = [1, 1, 1, 1]} : vector<12x12x8x10xf32> to vector<8x8x8x10xf32>
    %35 = vector.shape_cast %34 : vector<8x8x8x10xf32> to vector<512x10xf32>
    %c2 = arith.constant 2 : index
    %c0_15 = arith.constant 0 : index
    %c0_16 = arith.constant 0 : index
    %36 = vector.load %arg4[%c2, %c0_15, %c0_16] : memref<25x10x20xf32, #tpu.memory_space<vmem>>, vector<1x10x20xf32>
    %37 = vector.shape_cast %36 : vector<1x10x20xf32> to vector<10x20xf32>
    %cst_17 = arith.constant dense<0.000000e+00> : vector<512x20xf32>
    %38 = tpu.matmul %35, %37, %cst_17 {dimension_numbers = #tpu.dot_dimension_numbers<[1], [0], [0], [1], [0, 0, 1, 1], [], []>} : vector<512x10xf32>, vector<10x20xf32>, vector<512x20xf32> -> vector<512x20xf32>
    %39 = arith.addf %33, %38 : vector<512x20xf32>
    %40 = vector.extract_strided_slice %19 {offsets = [0, 3, 0, 0], sizes = [8, 8, 8, 10], strides = [1, 1, 1, 1]} : vector<12x12x8x10xf32> to vector<8x8x8x10xf32>
    %41 = vector.shape_cast %40 : vector<8x8x8x10xf32> to vector<512x10xf32>
    %c3 = arith.constant 3 : index
    %c0_18 = arith.constant 0 : index
    %c0_19 = arith.constant 0 : index
    %42 = vector.load %arg4[%c3, %c0_18, %c0_19] : memref<25x10x20xf32, #tpu.memory_space<vmem>>, vector<1x10x20xf32>
    %43 = vector.shape_cast %42 : vector<1x10x20xf32> to vector<10x20xf32>
    %cst_20 = arith.constant dense<0.000000e+00> : vector<512x20xf32>
    %44 = tpu.matmul %41, %43, %cst_20 {dimension_numbers = #tpu.dot_dimension_numbers<[1], [0], [0], [1], [0, 0, 1, 1], [], []>} : vector<512x10xf32>, vector<10x20xf32>, vector<512x20xf32> -> vector<512x20xf32>
    %45 = arith.addf %39, %44 : vector<512x20xf32>
    %46 = vector.extract_strided_slice %19 {offsets = [0, 4, 0, 0], sizes = [8, 8, 8, 10], strides = [1, 1, 1, 1]} : vector<12x12x8x10xf32> to vector<8x8x8x10xf32>
    %47 = vector.shape_cast %46 : vector<8x8x8x10xf32> to vector<512x10xf32>
    %c4 = arith.constant 4 : index
    %c0_21 = arith.constant 0 : index
    %c0_22 = arith.constant 0 : index
    %48 = vector.load %arg4[%c4, %c0_21, %c0_22] : memref<25x10x20xf32, #tpu.memory_space<vmem>>, vector<1x10x20xf32>
    %49 = vector.shape_cast %48 : vector<1x10x20xf32> to vector<10x20xf32>
    %cst_23 = arith.constant dense<0.000000e+00> : vector<512x20xf32>
    %50 = tpu.matmul %47, %49, %cst_23 {dimension_numbers = #tpu.dot_dimension_numbers<[1], [0], [0], [1], [0, 0, 1, 1], [], []>} : vector<512x10xf32>, vector<10x20xf32>, vector<512x20xf32> -> vector<512x20xf32>
    %51 = arith.addf %45, %50 : vector<512x20xf32>
    %52 = vector.extract_strided_slice %19 {offsets = [1, 0, 0, 0], sizes = [8, 8, 8, 10], strides = [1, 1, 1, 1]} : vector<12x12x8x10xf32> to vector<8x8x8x10xf32>
    %53 = vector.shape_cast %52 : vector<8x8x8x10xf32> to vector<512x10xf32>
    %c5 = arith.constant 5 : index
    %c0_24 = arith.constant 0 : index
    %c0_25 = arith.constant 0 : index
    %54 = vector.load %arg4[%c5, %c0_24, %c0_25] : memref<25x10x20xf32, #tpu.memory_space<vmem>>, vector<1x10x20xf32>
    %55 = vector.shape_cast %54 : vector<1x10x20xf32> to vector<10x20xf32>
    %cst_26 = arith.constant dense<0.000000e+00> : vector<512x20xf32>
    %56 = tpu.matmul %53, %55, %cst_26 {dimension_numbers = #tpu.dot_dimension_numbers<[1], [0], [0], [1], [0, 0, 1, 1], [], []>} : vector<512x10xf32>, vector<10x20xf32>, vector<512x20xf32> -> vector<512x20xf32>
    %57 = arith.addf %51, %56 : vector<512x20xf32>
    %58 = vector.extract_strided_slice %19 {offsets = [1, 1, 0, 0], sizes = [8, 8, 8, 10], strides = [1, 1, 1, 1]} : vector<12x12x8x10xf32> to vector<8x8x8x10xf32>
    %59 = vector.shape_cast %58 : vector<8x8x8x10xf32> to vector<512x10xf32>
    %c6 = arith.constant 6 : index
    %c0_27 = arith.constant 0 : index
    %c0_28 = arith.constant 0 : index
    %60 = vector.load %arg4[%c6, %c0_27, %c0_28] : memref<25x10x20xf32, #tpu.memory_space<vmem>>, vector<1x10x20xf32>
    %61 = vector.shape_cast %60 : vector<1x10x20xf32> to vector<10x20xf32>
    %cst_29 = arith.constant dense<0.000000e+00> : vector<512x20xf32>
    %62 = tpu.matmul %59, %61, %cst_29 {dimension_numbers = #tpu.dot_dimension_numbers<[1], [0], [0], [1], [0, 0, 1, 1], [], []>} : vector<512x10xf32>, vector<10x20xf32>, vector<512x20xf32> -> vector<512x20xf32>
    %63 = arith.addf %57, %62 : vector<512x20xf32>
    %64 = vector.extract_strided_slice %19 {offsets = [1, 2, 0, 0], sizes = [8, 8, 8, 10], strides = [1, 1, 1, 1]} : vector<12x12x8x10xf32> to vector<8x8x8x10xf32>
    %65 = vector.shape_cast %64 : vector<8x8x8x10xf32> to vector<512x10xf32>
    %c7 = arith.constant 7 : index
    %c0_30 = arith.constant 0 : index
    %c0_31 = arith.constant 0 : index
    %66 = vector.load %arg4[%c7, %c0_30, %c0_31] : memref<25x10x20xf32, #tpu.memory_space<vmem>>, vector<1x10x20xf32>
    %67 = vector.shape_cast %66 : vector<1x10x20xf32> to vector<10x20xf32>
    %cst_32 = arith.constant dense<0.000000e+00> : vector<512x20xf32>
    %68 = tpu.matmul %65, %67, %cst_32 {dimension_numbers = #tpu.dot_dimension_numbers<[1], [0], [0], [1], [0, 0, 1, 1], [], []>} : vector<512x10xf32>, vector<10x20xf32>, vector<512x20xf32> -> vector<512x20xf32>
    %69 = arith.addf %63, %68 : vector<512x20xf32>
    %70 = vector.extract_strided_slice %19 {offsets = [1, 3, 0, 0], sizes = [8, 8, 8, 10], strides = [1, 1, 1, 1]} : vector<12x12x8x10xf32> to vector<8x8x8x10xf32>
    %71 = vector.shape_cast %70 : vector<8x8x8x10xf32> to vector<512x10xf32>
    %c8 = arith.constant 8 : index
    %c0_33 = arith.constant 0 : index
    %c0_34 = arith.constant 0 : index
    %72 = vector.load %arg4[%c8, %c0_33, %c0_34] : memref<25x10x20xf32, #tpu.memory_space<vmem>>, vector<1x10x20xf32>
    %73 = vector.shape_cast %72 : vector<1x10x20xf32> to vector<10x20xf32>
    %cst_35 = arith.constant dense<0.000000e+00> : vector<512x20xf32>
    %74 = tpu.matmul %71, %73, %cst_35 {dimension_numbers = #tpu.dot_dimension_numbers<[1], [0], [0], [1], [0, 0, 1, 1], [], []>} : vector<512x10xf32>, vector<10x20xf32>, vector<512x20xf32> -> vector<512x20xf32>
    %75 = arith.addf %69, %74 : vector<512x20xf32>
    %76 = vector.extract_strided_slice %19 {offsets = [1, 4, 0, 0], sizes = [8, 8, 8, 10], strides = [1, 1, 1, 1]} : vector<12x12x8x10xf32> to vector<8x8x8x10xf32>
    %77 = vector.shape_cast %76 : vector<8x8x8x10xf32> to vector<512x10xf32>
    %c9 = arith.constant 9 : index
    %c0_36 = arith.constant 0 : index
    %c0_37 = arith.constant 0 : index
    %78 = vector.load %arg4[%c9, %c0_36, %c0_37] : memref<25x10x20xf32, #tpu.memory_space<vmem>>, vector<1x10x20xf32>
    %79 = vector.shape_cast %78 : vector<1x10x20xf32> to vector<10x20xf32>
    %cst_38 = arith.constant dense<0.000000e+00> : vector<512x20xf32>
    %80 = tpu.matmul %77, %79, %cst_38 {dimension_numbers = #tpu.dot_dimension_numbers<[1], [0], [0], [1], [0, 0, 1, 1], [], []>} : vector<512x10xf32>, vector<10x20xf32>, vector<512x20xf32> -> vector<512x20xf32>
    %81 = arith.addf %75, %80 : vector<512x20xf32>
    %82 = vector.extract_strided_slice %19 {offsets = [2, 0, 0, 0], sizes = [8, 8, 8, 10], strides = [1, 1, 1, 1]} : vector<12x12x8x10xf32> to vector<8x8x8x10xf32>
    %83 = vector.shape_cast %82 : vector<8x8x8x10xf32> to vector<512x10xf32>
    %c10 = arith.constant 10 : index
    %c0_39 = arith.constant 0 : index
    %c0_40 = arith.constant 0 : index
    %84 = vector.load %arg4[%c10, %c0_39, %c0_40] : memref<25x10x20xf32, #tpu.memory_space<vmem>>, vector<1x10x20xf32>
    %85 = vector.shape_cast %84 : vector<1x10x20xf32> to vector<10x20xf32>
    %cst_41 = arith.constant dense<0.000000e+00> : vector<512x20xf32>
    %86 = tpu.matmul %83, %85, %cst_41 {dimension_numbers = #tpu.dot_dimension_numbers<[1], [0], [0], [1], [0, 0, 1, 1], [], []>} : vector<512x10xf32>, vector<10x20xf32>, vector<512x20xf32> -> vector<512x20xf32>
    %87 = arith.addf %81, %86 : vector<512x20xf32>
    %88 = vector.extract_strided_slice %19 {offsets = [2, 1, 0, 0], sizes = [8, 8, 8, 10], strides = [1, 1, 1, 1]} : vector<12x12x8x10xf32> to vector<8x8x8x10xf32>
    %89 = vector.shape_cast %88 : vector<8x8x8x10xf32> to vector<512x10xf32>
    %c11 = arith.constant 11 : index
    %c0_42 = arith.constant 0 : index
    %c0_43 = arith.constant 0 : index
    %90 = vector.load %arg4[%c11, %c0_42, %c0_43] : memref<25x10x20xf32, #tpu.memory_space<vmem>>, vector<1x10x20xf32>
    %91 = vector.shape_cast %90 : vector<1x10x20xf32> to vector<10x20xf32>
    %cst_44 = arith.constant dense<0.000000e+00> : vector<512x20xf32>
    %92 = tpu.matmul %89, %91, %cst_44 {dimension_numbers = #tpu.dot_dimension_numbers<[1], [0], [0], [1], [0, 0, 1, 1], [], []>} : vector<512x10xf32>, vector<10x20xf32>, vector<512x20xf32> -> vector<512x20xf32>
    %93 = arith.addf %87, %92 : vector<512x20xf32>
    %94 = vector.extract_strided_slice %19 {offsets = [2, 2, 0, 0], sizes = [8, 8, 8, 10], strides = [1, 1, 1, 1]} : vector<12x12x8x10xf32> to vector<8x8x8x10xf32>
    %95 = vector.shape_cast %94 : vector<8x8x8x10xf32> to vector<512x10xf32>
    %c12 = arith.constant 12 : index
    %c0_45 = arith.constant 0 : index
    %c0_46 = arith.constant 0 : index
    %96 = vector.load %arg4[%c12, %c0_45, %c0_46] : memref<25x10x20xf32, #tpu.memory_space<vmem>>, vector<1x10x20xf32>
    %97 = vector.shape_cast %96 : vector<1x10x20xf32> to vector<10x20xf32>
    %cst_47 = arith.constant dense<0.000000e+00> : vector<512x20xf32>
    %98 = tpu.matmul %95, %97, %cst_47 {dimension_numbers = #tpu.dot_dimension_numbers<[1], [0], [0], [1], [0, 0, 1, 1], [], []>} : vector<512x10xf32>, vector<10x20xf32>, vector<512x20xf32> -> vector<512x20xf32>
    %99 = arith.addf %93, %98 : vector<512x20xf32>
    %100 = vector.extract_strided_slice %19 {offsets = [2, 3, 0, 0], sizes = [8, 8, 8, 10], strides = [1, 1, 1, 1]} : vector<12x12x8x10xf32> to vector<8x8x8x10xf32>
    %101 = vector.shape_cast %100 : vector<8x8x8x10xf32> to vector<512x10xf32>
    %c13 = arith.constant 13 : index
    %c0_48 = arith.constant 0 : index
    %c0_49 = arith.constant 0 : index
    %102 = vector.load %arg4[%c13, %c0_48, %c0_49] : memref<25x10x20xf32, #tpu.memory_space<vmem>>, vector<1x10x20xf32>
    %103 = vector.shape_cast %102 : vector<1x10x20xf32> to vector<10x20xf32>
    %cst_50 = arith.constant dense<0.000000e+00> : vector<512x20xf32>
    %104 = tpu.matmul %101, %103, %cst_50 {dimension_numbers = #tpu.dot_dimension_numbers<[1], [0], [0], [1], [0, 0, 1, 1], [], []>} : vector<512x10xf32>, vector<10x20xf32>, vector<512x20xf32> -> vector<512x20xf32>
    %105 = arith.addf %99, %104 : vector<512x20xf32>
    %106 = vector.extract_strided_slice %19 {offsets = [2, 4, 0, 0], sizes = [8, 8, 8, 10], strides = [1, 1, 1, 1]} : vector<12x12x8x10xf32> to vector<8x8x8x10xf32>
    %107 = vector.shape_cast %106 : vector<8x8x8x10xf32> to vector<512x10xf32>
    %c14 = arith.constant 14 : index
    %c0_51 = arith.constant 0 : index
    %c0_52 = arith.constant 0 : index
    %108 = vector.load %arg4[%c14, %c0_51, %c0_52] : memref<25x10x20xf32, #tpu.memory_space<vmem>>, vector<1x10x20xf32>
    %109 = vector.shape_cast %108 : vector<1x10x20xf32> to vector<10x20xf32>
    %cst_53 = arith.constant dense<0.000000e+00> : vector<512x20xf32>
    %110 = tpu.matmul %107, %109, %cst_53 {dimension_numbers = #tpu.dot_dimension_numbers<[1], [0], [0], [1], [0, 0, 1, 1], [], []>} : vector<512x10xf32>, vector<10x20xf32>, vector<512x20xf32> -> vector<512x20xf32>
    %111 = arith.addf %105, %110 : vector<512x20xf32>
    %112 = vector.extract_strided_slice %19 {offsets = [3, 0, 0, 0], sizes = [8, 8, 8, 10], strides = [1, 1, 1, 1]} : vector<12x12x8x10xf32> to vector<8x8x8x10xf32>
    %113 = vector.shape_cast %112 : vector<8x8x8x10xf32> to vector<512x10xf32>
    %c15 = arith.constant 15 : index
    %c0_54 = arith.constant 0 : index
    %c0_55 = arith.constant 0 : index
    %114 = vector.load %arg4[%c15, %c0_54, %c0_55] : memref<25x10x20xf32, #tpu.memory_space<vmem>>, vector<1x10x20xf32>
    %115 = vector.shape_cast %114 : vector<1x10x20xf32> to vector<10x20xf32>
    %cst_56 = arith.constant dense<0.000000e+00> : vector<512x20xf32>
    %116 = tpu.matmul %113, %115, %cst_56 {dimension_numbers = #tpu.dot_dimension_numbers<[1], [0], [0], [1], [0, 0, 1, 1], [], []>} : vector<512x10xf32>, vector<10x20xf32>, vector<512x20xf32> -> vector<512x20xf32>
    %117 = arith.addf %111, %116 : vector<512x20xf32>
    %118 = vector.extract_strided_slice %19 {offsets = [3, 1, 0, 0], sizes = [8, 8, 8, 10], strides = [1, 1, 1, 1]} : vector<12x12x8x10xf32> to vector<8x8x8x10xf32>
    %119 = vector.shape_cast %118 : vector<8x8x8x10xf32> to vector<512x10xf32>
    %c16 = arith.constant 16 : index
    %c0_57 = arith.constant 0 : index
    %c0_58 = arith.constant 0 : index
    %120 = vector.load %arg4[%c16, %c0_57, %c0_58] : memref<25x10x20xf32, #tpu.memory_space<vmem>>, vector<1x10x20xf32>
    %121 = vector.shape_cast %120 : vector<1x10x20xf32> to vector<10x20xf32>
    %cst_59 = arith.constant dense<0.000000e+00> : vector<512x20xf32>
    %122 = tpu.matmul %119, %121, %cst_59 {dimension_numbers = #tpu.dot_dimension_numbers<[1], [0], [0], [1], [0, 0, 1, 1], [], []>} : vector<512x10xf32>, vector<10x20xf32>, vector<512x20xf32> -> vector<512x20xf32>
    %123 = arith.addf %117, %122 : vector<512x20xf32>
    %124 = vector.extract_strided_slice %19 {offsets = [3, 2, 0, 0], sizes = [8, 8, 8, 10], strides = [1, 1, 1, 1]} : vector<12x12x8x10xf32> to vector<8x8x8x10xf32>
    %125 = vector.shape_cast %124 : vector<8x8x8x10xf32> to vector<512x10xf32>
    %c17 = arith.constant 17 : index
    %c0_60 = arith.constant 0 : index
    %c0_61 = arith.constant 0 : index
    %126 = vector.load %arg4[%c17, %c0_60, %c0_61] : memref<25x10x20xf32, #tpu.memory_space<vmem>>, vector<1x10x20xf32>
    %127 = vector.shape_cast %126 : vector<1x10x20xf32> to vector<10x20xf32>
    %cst_62 = arith.constant dense<0.000000e+00> : vector<512x20xf32>
    %128 = tpu.matmul %125, %127, %cst_62 {dimension_numbers = #tpu.dot_dimension_numbers<[1], [0], [0], [1], [0, 0, 1, 1], [], []>} : vector<512x10xf32>, vector<10x20xf32>, vector<512x20xf32> -> vector<512x20xf32>
    %129 = arith.addf %123, %128 : vector<512x20xf32>
    %130 = vector.extract_strided_slice %19 {offsets = [3, 3, 0, 0], sizes = [8, 8, 8, 10], strides = [1, 1, 1, 1]} : vector<12x12x8x10xf32> to vector<8x8x8x10xf32>
    %131 = vector.shape_cast %130 : vector<8x8x8x10xf32> to vector<512x10xf32>
    %c18 = arith.constant 18 : index
    %c0_63 = arith.constant 0 : index
    %c0_64 = arith.constant 0 : index
    %132 = vector.load %arg4[%c18, %c0_63, %c0_64] : memref<25x10x20xf32, #tpu.memory_space<vmem>>, vector<1x10x20xf32>
    %133 = vector.shape_cast %132 : vector<1x10x20xf32> to vector<10x20xf32>
    %cst_65 = arith.constant dense<0.000000e+00> : vector<512x20xf32>
    %134 = tpu.matmul %131, %133, %cst_65 {dimension_numbers = #tpu.dot_dimension_numbers<[1], [0], [0], [1], [0, 0, 1, 1], [], []>} : vector<512x10xf32>, vector<10x20xf32>, vector<512x20xf32> -> vector<512x20xf32>
    %135 = arith.addf %129, %134 : vector<512x20xf32>
    %136 = vector.extract_strided_slice %19 {offsets = [3, 4, 0, 0], sizes = [8, 8, 8, 10], strides = [1, 1, 1, 1]} : vector<12x12x8x10xf32> to vector<8x8x8x10xf32>
    %137 = vector.shape_cast %136 : vector<8x8x8x10xf32> to vector<512x10xf32>
    %c19 = arith.constant 19 : index
    %c0_66 = arith.constant 0 : index
    %c0_67 = arith.constant 0 : index
    %138 = vector.load %arg4[%c19, %c0_66, %c0_67] : memref<25x10x20xf32, #tpu.memory_space<vmem>>, vector<1x10x20xf32>
    %139 = vector.shape_cast %138 : vector<1x10x20xf32> to vector<10x20xf32>
    %cst_68 = arith.constant dense<0.000000e+00> : vector<512x20xf32>
    %140 = tpu.matmul %137, %139, %cst_68 {dimension_numbers = #tpu.dot_dimension_numbers<[1], [0], [0], [1], [0, 0, 1, 1], [], []>} : vector<512x10xf32>, vector<10x20xf32>, vector<512x20xf32> -> vector<512x20xf32>
    %141 = arith.addf %135, %140 : vector<512x20xf32>
    %142 = vector.extract_strided_slice %19 {offsets = [4, 0, 0, 0], sizes = [8, 8, 8, 10], strides = [1, 1, 1, 1]} : vector<12x12x8x10xf32> to vector<8x8x8x10xf32>
    %143 = vector.shape_cast %142 : vector<8x8x8x10xf32> to vector<512x10xf32>
    %c20 = arith.constant 20 : index
    %c0_69 = arith.constant 0 : index
    %c0_70 = arith.constant 0 : index
    %144 = vector.load %arg4[%c20, %c0_69, %c0_70] : memref<25x10x20xf32, #tpu.memory_space<vmem>>, vector<1x10x20xf32>
    %145 = vector.shape_cast %144 : vector<1x10x20xf32> to vector<10x20xf32>
    %cst_71 = arith.constant dense<0.000000e+00> : vector<512x20xf32>
    %146 = tpu.matmul %143, %145, %cst_71 {dimension_numbers = #tpu.dot_dimension_numbers<[1], [0], [0], [1], [0, 0, 1, 1], [], []>} : vector<512x10xf32>, vector<10x20xf32>, vector<512x20xf32> -> vector<512x20xf32>
    %147 = arith.addf %141, %146 : vector<512x20xf32>
    %148 = vector.extract_strided_slice %19 {offsets = [4, 1, 0, 0], sizes = [8, 8, 8, 10], strides = [1, 1, 1, 1]} : vector<12x12x8x10xf32> to vector<8x8x8x10xf32>
    %149 = vector.shape_cast %148 : vector<8x8x8x10xf32> to vector<512x10xf32>
    %c21 = arith.constant 21 : index
    %c0_72 = arith.constant 0 : index
    %c0_73 = arith.constant 0 : index
    %150 = vector.load %arg4[%c21, %c0_72, %c0_73] : memref<25x10x20xf32, #tpu.memory_space<vmem>>, vector<1x10x20xf32>
    %151 = vector.shape_cast %150 : vector<1x10x20xf32> to vector<10x20xf32>
    %cst_74 = arith.constant dense<0.000000e+00> : vector<512x20xf32>
    %152 = tpu.matmul %149, %151, %cst_74 {dimension_numbers = #tpu.dot_dimension_numbers<[1], [0], [0], [1], [0, 0, 1, 1], [], []>} : vector<512x10xf32>, vector<10x20xf32>, vector<512x20xf32> -> vector<512x20xf32>
    %153 = arith.addf %147, %152 : vector<512x20xf32>
    %154 = vector.extract_strided_slice %19 {offsets = [4, 2, 0, 0], sizes = [8, 8, 8, 10], strides = [1, 1, 1, 1]} : vector<12x12x8x10xf32> to vector<8x8x8x10xf32>
    %155 = vector.shape_cast %154 : vector<8x8x8x10xf32> to vector<512x10xf32>
    %c22 = arith.constant 22 : index
    %c0_75 = arith.constant 0 : index
    %c0_76 = arith.constant 0 : index
    %156 = vector.load %arg4[%c22, %c0_75, %c0_76] : memref<25x10x20xf32, #tpu.memory_space<vmem>>, vector<1x10x20xf32>
    %157 = vector.shape_cast %156 : vector<1x10x20xf32> to vector<10x20xf32>
    %cst_77 = arith.constant dense<0.000000e+00> : vector<512x20xf32>
    %158 = tpu.matmul %155, %157, %cst_77 {dimension_numbers = #tpu.dot_dimension_numbers<[1], [0], [0], [1], [0, 0, 1, 1], [], []>} : vector<512x10xf32>, vector<10x20xf32>, vector<512x20xf32> -> vector<512x20xf32>
    %159 = arith.addf %153, %158 : vector<512x20xf32>
    %160 = vector.extract_strided_slice %19 {offsets = [4, 3, 0, 0], sizes = [8, 8, 8, 10], strides = [1, 1, 1, 1]} : vector<12x12x8x10xf32> to vector<8x8x8x10xf32>
    %161 = vector.shape_cast %160 : vector<8x8x8x10xf32> to vector<512x10xf32>
    %c23 = arith.constant 23 : index
    %c0_78 = arith.constant 0 : index
    %c0_79 = arith.constant 0 : index
    %162 = vector.load %arg4[%c23, %c0_78, %c0_79] : memref<25x10x20xf32, #tpu.memory_space<vmem>>, vector<1x10x20xf32>
    %163 = vector.shape_cast %162 : vector<1x10x20xf32> to vector<10x20xf32>
    %cst_80 = arith.constant dense<0.000000e+00> : vector<512x20xf32>
    %164 = tpu.matmul %161, %163, %cst_80 {dimension_numbers = #tpu.dot_dimension_numbers<[1], [0], [0], [1], [0, 0, 1, 1], [], []>} : vector<512x10xf32>, vector<10x20xf32>, vector<512x20xf32> -> vector<512x20xf32>
    %165 = arith.addf %159, %164 : vector<512x20xf32>
    %166 = vector.extract_strided_slice %19 {offsets = [4, 4, 0, 0], sizes = [8, 8, 8, 10], strides = [1, 1, 1, 1]} : vector<12x12x8x10xf32> to vector<8x8x8x10xf32>
    %167 = vector.shape_cast %166 : vector<8x8x8x10xf32> to vector<512x10xf32>
    %c24 = arith.constant 24 : index
    %c0_81 = arith.constant 0 : index
    %c0_82 = arith.constant 0 : index
    %168 = vector.load %arg4[%c24, %c0_81, %c0_82] : memref<25x10x20xf32, #tpu.memory_space<vmem>>, vector<1x10x20xf32>
    %169 = vector.shape_cast %168 : vector<1x10x20xf32> to vector<10x20xf32>
    %cst_83 = arith.constant dense<0.000000e+00> : vector<512x20xf32>
    %170 = tpu.matmul %167, %169, %cst_83 {dimension_numbers = #tpu.dot_dimension_numbers<[1], [0], [0], [1], [0, 0, 1, 1], [], []>} : vector<512x10xf32>, vector<10x20xf32>, vector<512x20xf32> -> vector<512x20xf32>
    %171 = arith.addf %165, %170 : vector<512x20xf32>
    %172 = vector.shape_cast %171 : vector<512x20xf32> to vector<4x2x4x2x8x20xf32>
    %173 = vector.extract_strided_slice %172 {offsets = [0, 0, 0, 0, 0, 0], sizes = [4, 1, 4, 1, 8, 20], strides = [1, 1, 1, 1, 1, 1]} : vector<4x2x4x2x8x20xf32> to vector<4x1x4x1x8x20xf32>
    %174 = vector.shape_cast %173 : vector<4x1x4x1x8x20xf32> to vector<4x4x8x20xf32>
    %175 = vector.extract_strided_slice %172 {offsets = [0, 0, 0, 1, 0, 0], sizes = [4, 1, 4, 1, 8, 20], strides = [1, 1, 1, 1, 1, 1]} : vector<4x2x4x2x8x20xf32> to vector<4x1x4x1x8x20xf32>
    %176 = vector.shape_cast %175 : vector<4x1x4x1x8x20xf32> to vector<4x4x8x20xf32>
    %177 = arith.maximumf %174, %176 : vector<4x4x8x20xf32>
    %178 = vector.extract_strided_slice %172 {offsets = [0, 1, 0, 0, 0, 0], sizes = [4, 1, 4, 1, 8, 20], strides = [1, 1, 1, 1, 1, 1]} : vector<4x2x4x2x8x20xf32> to vector<4x1x4x1x8x20xf32>
    %179 = vector.shape_cast %178 : vector<4x1x4x1x8x20xf32> to vector<4x4x8x20xf32>
    %180 = vector.extract_strided_slice %172 {offsets = [0, 1, 0, 1, 0, 0], sizes = [4, 1, 4, 1, 8, 20], strides = [1, 1, 1, 1, 1, 1]} : vector<4x2x4x2x8x20xf32> to vector<4x1x4x1x8x20xf32>
    %181 = vector.shape_cast %180 : vector<4x1x4x1x8x20xf32> to vector<4x4x8x20xf32>
    %182 = arith.maximumf %179, %181 : vector<4x4x8x20xf32>
    %183 = arith.maximumf %177, %182 : vector<4x4x8x20xf32>
    %cst_84 = arith.constant 0.000000e+00 : f32
    %184 = vector.broadcast %cst_84 : f32 to vector<4x4x8x20xf32>
    %185 = arith.maximumf %183, %184 : vector<4x4x8x20xf32>
    %c0_85 = arith.constant 0 : index
    %c0_86 = arith.constant 0 : index
    %186 = vector.load %arg7[%c0_85, %c0_86] : memref<1x50xf32, #tpu.memory_space<vmem>>, vector<1x50xf32>
    %187 = vector.extract_strided_slice %185 {offsets = [0, 0, 0, 0], sizes = [1, 1, 8, 20], strides = [1, 1, 1, 1]} : vector<4x4x8x20xf32> to vector<1x1x8x20xf32>
    %188 = vector.shape_cast %187 : vector<1x1x8x20xf32> to vector<8x20xf32>
    %c0_87 = arith.constant 0 : index
    %c0_88 = arith.constant 0 : index
    %c0_89 = arith.constant 0 : index
    %189 = vector.load %arg6[%c0_87, %c0_88, %c0_89] : memref<16x20x50xf32, #tpu.memory_space<vmem>>, vector<1x20x50xf32>
    %190 = vector.shape_cast %189 : vector<1x20x50xf32> to vector<20x50xf32>
    %cst_90 = arith.constant dense<0.000000e+00> : vector<8x50xf32>
    %191 = tpu.matmul %188, %190, %cst_90 {dimension_numbers = #tpu.dot_dimension_numbers<[1], [0], [0], [1], [0, 0, 1, 1], [], []>} : vector<8x20xf32>, vector<20x50xf32>, vector<8x50xf32> -> vector<8x50xf32>
    %192 = vector.broadcast %186 : vector<1x50xf32> to vector<8x50xf32>
    %193 = arith.addf %192, %191 : vector<8x50xf32>
    %194 = vector.extract_strided_slice %185 {offsets = [0, 1, 0, 0], sizes = [1, 1, 8, 20], strides = [1, 1, 1, 1]} : vector<4x4x8x20xf32> to vector<1x1x8x20xf32>
    %195 = vector.shape_cast %194 : vector<1x1x8x20xf32> to vector<8x20xf32>
    %c1_91 = arith.constant 1 : index
    %c0_92 = arith.constant 0 : index
    %c0_93 = arith.constant 0 : index
    %196 = vector.load %arg6[%c1_91, %c0_92, %c0_93] : memref<16x20x50xf32, #tpu.memory_space<vmem>>, vector<1x20x50xf32>
    %197 = vector.shape_cast %196 : vector<1x20x50xf32> to vector<20x50xf32>
    %cst_94 = arith.constant dense<0.000000e+00> : vector<8x50xf32>
    %198 = tpu.matmul %195, %197, %cst_94 {dimension_numbers = #tpu.dot_dimension_numbers<[1], [0], [0], [1], [0, 0, 1, 1], [], []>} : vector<8x20xf32>, vector<20x50xf32>, vector<8x50xf32> -> vector<8x50xf32>
    %199 = arith.addf %193, %198 : vector<8x50xf32>
    %200 = vector.extract_strided_slice %185 {offsets = [0, 2, 0, 0], sizes = [1, 1, 8, 20], strides = [1, 1, 1, 1]} : vector<4x4x8x20xf32> to vector<1x1x8x20xf32>
    %201 = vector.shape_cast %200 : vector<1x1x8x20xf32> to vector<8x20xf32>
    %c2_95 = arith.constant 2 : index
    %c0_96 = arith.constant 0 : index
    %c0_97 = arith.constant 0 : index
    %202 = vector.load %arg6[%c2_95, %c0_96, %c0_97] : memref<16x20x50xf32, #tpu.memory_space<vmem>>, vector<1x20x50xf32>
    %203 = vector.shape_cast %202 : vector<1x20x50xf32> to vector<20x50xf32>
    %cst_98 = arith.constant dense<0.000000e+00> : vector<8x50xf32>
    %204 = tpu.matmul %201, %203, %cst_98 {dimension_numbers = #tpu.dot_dimension_numbers<[1], [0], [0], [1], [0, 0, 1, 1], [], []>} : vector<8x20xf32>, vector<20x50xf32>, vector<8x50xf32> -> vector<8x50xf32>
    %205 = arith.addf %199, %204 : vector<8x50xf32>
    %206 = vector.extract_strided_slice %185 {offsets = [0, 3, 0, 0], sizes = [1, 1, 8, 20], strides = [1, 1, 1, 1]} : vector<4x4x8x20xf32> to vector<1x1x8x20xf32>
    %207 = vector.shape_cast %206 : vector<1x1x8x20xf32> to vector<8x20xf32>
    %c3_99 = arith.constant 3 : index
    %c0_100 = arith.constant 0 : index
    %c0_101 = arith.constant 0 : index
    %208 = vector.load %arg6[%c3_99, %c0_100, %c0_101] : memref<16x20x50xf32, #tpu.memory_space<vmem>>, vector<1x20x50xf32>
    %209 = vector.shape_cast %208 : vector<1x20x50xf32> to vector<20x50xf32>
    %cst_102 = arith.constant dense<0.000000e+00> : vector<8x50xf32>
    %210 = tpu.matmul %207, %209, %cst_102 {dimension_numbers = #tpu.dot_dimension_numbers<[1], [0], [0], [1], [0, 0, 1, 1], [], []>} : vector<8x20xf32>, vector<20x50xf32>, vector<8x50xf32> -> vector<8x50xf32>
    %211 = arith.addf %205, %210 : vector<8x50xf32>
    %212 = vector.extract_strided_slice %185 {offsets = [1, 0, 0, 0], sizes = [1, 1, 8, 20], strides = [1, 1, 1, 1]} : vector<4x4x8x20xf32> to vector<1x1x8x20xf32>
    %213 = vector.shape_cast %212 : vector<1x1x8x20xf32> to vector<8x20xf32>
    %c4_103 = arith.constant 4 : index
    %c0_104 = arith.constant 0 : index
    %c0_105 = arith.constant 0 : index
    %214 = vector.load %arg6[%c4_103, %c0_104, %c0_105] : memref<16x20x50xf32, #tpu.memory_space<vmem>>, vector<1x20x50xf32>
    %215 = vector.shape_cast %214 : vector<1x20x50xf32> to vector<20x50xf32>
    %cst_106 = arith.constant dense<0.000000e+00> : vector<8x50xf32>
    %216 = tpu.matmul %213, %215, %cst_106 {dimension_numbers = #tpu.dot_dimension_numbers<[1], [0], [0], [1], [0, 0, 1, 1], [], []>} : vector<8x20xf32>, vector<20x50xf32>, vector<8x50xf32> -> vector<8x50xf32>
    %217 = arith.addf %211, %216 : vector<8x50xf32>
    %218 = vector.extract_strided_slice %185 {offsets = [1, 1, 0, 0], sizes = [1, 1, 8, 20], strides = [1, 1, 1, 1]} : vector<4x4x8x20xf32> to vector<1x1x8x20xf32>
    %219 = vector.shape_cast %218 : vector<1x1x8x20xf32> to vector<8x20xf32>
    %c5_107 = arith.constant 5 : index
    %c0_108 = arith.constant 0 : index
    %c0_109 = arith.constant 0 : index
    %220 = vector.load %arg6[%c5_107, %c0_108, %c0_109] : memref<16x20x50xf32, #tpu.memory_space<vmem>>, vector<1x20x50xf32>
    %221 = vector.shape_cast %220 : vector<1x20x50xf32> to vector<20x50xf32>
    %cst_110 = arith.constant dense<0.000000e+00> : vector<8x50xf32>
    %222 = tpu.matmul %219, %221, %cst_110 {dimension_numbers = #tpu.dot_dimension_numbers<[1], [0], [0], [1], [0, 0, 1, 1], [], []>} : vector<8x20xf32>, vector<20x50xf32>, vector<8x50xf32> -> vector<8x50xf32>
    %223 = arith.addf %217, %222 : vector<8x50xf32>
    %224 = vector.extract_strided_slice %185 {offsets = [1, 2, 0, 0], sizes = [1, 1, 8, 20], strides = [1, 1, 1, 1]} : vector<4x4x8x20xf32> to vector<1x1x8x20xf32>
    %225 = vector.shape_cast %224 : vector<1x1x8x20xf32> to vector<8x20xf32>
    %c6_111 = arith.constant 6 : index
    %c0_112 = arith.constant 0 : index
    %c0_113 = arith.constant 0 : index
    %226 = vector.load %arg6[%c6_111, %c0_112, %c0_113] : memref<16x20x50xf32, #tpu.memory_space<vmem>>, vector<1x20x50xf32>
    %227 = vector.shape_cast %226 : vector<1x20x50xf32> to vector<20x50xf32>
    %cst_114 = arith.constant dense<0.000000e+00> : vector<8x50xf32>
    %228 = tpu.matmul %225, %227, %cst_114 {dimension_numbers = #tpu.dot_dimension_numbers<[1], [0], [0], [1], [0, 0, 1, 1], [], []>} : vector<8x20xf32>, vector<20x50xf32>, vector<8x50xf32> -> vector<8x50xf32>
    %229 = arith.addf %223, %228 : vector<8x50xf32>
    %230 = vector.extract_strided_slice %185 {offsets = [1, 3, 0, 0], sizes = [1, 1, 8, 20], strides = [1, 1, 1, 1]} : vector<4x4x8x20xf32> to vector<1x1x8x20xf32>
    %231 = vector.shape_cast %230 : vector<1x1x8x20xf32> to vector<8x20xf32>
    %c7_115 = arith.constant 7 : index
    %c0_116 = arith.constant 0 : index
    %c0_117 = arith.constant 0 : index
    %232 = vector.load %arg6[%c7_115, %c0_116, %c0_117] : memref<16x20x50xf32, #tpu.memory_space<vmem>>, vector<1x20x50xf32>
    %233 = vector.shape_cast %232 : vector<1x20x50xf32> to vector<20x50xf32>
    %cst_118 = arith.constant dense<0.000000e+00> : vector<8x50xf32>
    %234 = tpu.matmul %231, %233, %cst_118 {dimension_numbers = #tpu.dot_dimension_numbers<[1], [0], [0], [1], [0, 0, 1, 1], [], []>} : vector<8x20xf32>, vector<20x50xf32>, vector<8x50xf32> -> vector<8x50xf32>
    %235 = arith.addf %229, %234 : vector<8x50xf32>
    %236 = vector.extract_strided_slice %185 {offsets = [2, 0, 0, 0], sizes = [1, 1, 8, 20], strides = [1, 1, 1, 1]} : vector<4x4x8x20xf32> to vector<1x1x8x20xf32>
    %237 = vector.shape_cast %236 : vector<1x1x8x20xf32> to vector<8x20xf32>
    %c8_119 = arith.constant 8 : index
    %c0_120 = arith.constant 0 : index
    %c0_121 = arith.constant 0 : index
    %238 = vector.load %arg6[%c8_119, %c0_120, %c0_121] : memref<16x20x50xf32, #tpu.memory_space<vmem>>, vector<1x20x50xf32>
    %239 = vector.shape_cast %238 : vector<1x20x50xf32> to vector<20x50xf32>
    %cst_122 = arith.constant dense<0.000000e+00> : vector<8x50xf32>
    %240 = tpu.matmul %237, %239, %cst_122 {dimension_numbers = #tpu.dot_dimension_numbers<[1], [0], [0], [1], [0, 0, 1, 1], [], []>} : vector<8x20xf32>, vector<20x50xf32>, vector<8x50xf32> -> vector<8x50xf32>
    %241 = arith.addf %235, %240 : vector<8x50xf32>
    %242 = vector.extract_strided_slice %185 {offsets = [2, 1, 0, 0], sizes = [1, 1, 8, 20], strides = [1, 1, 1, 1]} : vector<4x4x8x20xf32> to vector<1x1x8x20xf32>
    %243 = vector.shape_cast %242 : vector<1x1x8x20xf32> to vector<8x20xf32>
    %c9_123 = arith.constant 9 : index
    %c0_124 = arith.constant 0 : index
    %c0_125 = arith.constant 0 : index
    %244 = vector.load %arg6[%c9_123, %c0_124, %c0_125] : memref<16x20x50xf32, #tpu.memory_space<vmem>>, vector<1x20x50xf32>
    %245 = vector.shape_cast %244 : vector<1x20x50xf32> to vector<20x50xf32>
    %cst_126 = arith.constant dense<0.000000e+00> : vector<8x50xf32>
    %246 = tpu.matmul %243, %245, %cst_126 {dimension_numbers = #tpu.dot_dimension_numbers<[1], [0], [0], [1], [0, 0, 1, 1], [], []>} : vector<8x20xf32>, vector<20x50xf32>, vector<8x50xf32> -> vector<8x50xf32>
    %247 = arith.addf %241, %246 : vector<8x50xf32>
    %248 = vector.extract_strided_slice %185 {offsets = [2, 2, 0, 0], sizes = [1, 1, 8, 20], strides = [1, 1, 1, 1]} : vector<4x4x8x20xf32> to vector<1x1x8x20xf32>
    %249 = vector.shape_cast %248 : vector<1x1x8x20xf32> to vector<8x20xf32>
    %c10_127 = arith.constant 10 : index
    %c0_128 = arith.constant 0 : index
    %c0_129 = arith.constant 0 : index
    %250 = vector.load %arg6[%c10_127, %c0_128, %c0_129] : memref<16x20x50xf32, #tpu.memory_space<vmem>>, vector<1x20x50xf32>
    %251 = vector.shape_cast %250 : vector<1x20x50xf32> to vector<20x50xf32>
    %cst_130 = arith.constant dense<0.000000e+00> : vector<8x50xf32>
    %252 = tpu.matmul %249, %251, %cst_130 {dimension_numbers = #tpu.dot_dimension_numbers<[1], [0], [0], [1], [0, 0, 1, 1], [], []>} : vector<8x20xf32>, vector<20x50xf32>, vector<8x50xf32> -> vector<8x50xf32>
    %253 = arith.addf %247, %252 : vector<8x50xf32>
    %254 = vector.extract_strided_slice %185 {offsets = [2, 3, 0, 0], sizes = [1, 1, 8, 20], strides = [1, 1, 1, 1]} : vector<4x4x8x20xf32> to vector<1x1x8x20xf32>
    %255 = vector.shape_cast %254 : vector<1x1x8x20xf32> to vector<8x20xf32>
    %c11_131 = arith.constant 11 : index
    %c0_132 = arith.constant 0 : index
    %c0_133 = arith.constant 0 : index
    %256 = vector.load %arg6[%c11_131, %c0_132, %c0_133] : memref<16x20x50xf32, #tpu.memory_space<vmem>>, vector<1x20x50xf32>
    %257 = vector.shape_cast %256 : vector<1x20x50xf32> to vector<20x50xf32>
    %cst_134 = arith.constant dense<0.000000e+00> : vector<8x50xf32>
    %258 = tpu.matmul %255, %257, %cst_134 {dimension_numbers = #tpu.dot_dimension_numbers<[1], [0], [0], [1], [0, 0, 1, 1], [], []>} : vector<8x20xf32>, vector<20x50xf32>, vector<8x50xf32> -> vector<8x50xf32>
    %259 = arith.addf %253, %258 : vector<8x50xf32>
    %260 = vector.extract_strided_slice %185 {offsets = [3, 0, 0, 0], sizes = [1, 1, 8, 20], strides = [1, 1, 1, 1]} : vector<4x4x8x20xf32> to vector<1x1x8x20xf32>
    %261 = vector.shape_cast %260 : vector<1x1x8x20xf32> to vector<8x20xf32>
    %c12_135 = arith.constant 12 : index
    %c0_136 = arith.constant 0 : index
    %c0_137 = arith.constant 0 : index
    %262 = vector.load %arg6[%c12_135, %c0_136, %c0_137] : memref<16x20x50xf32, #tpu.memory_space<vmem>>, vector<1x20x50xf32>
    %263 = vector.shape_cast %262 : vector<1x20x50xf32> to vector<20x50xf32>
    %cst_138 = arith.constant dense<0.000000e+00> : vector<8x50xf32>
    %264 = tpu.matmul %261, %263, %cst_138 {dimension_numbers = #tpu.dot_dimension_numbers<[1], [0], [0], [1], [0, 0, 1, 1], [], []>} : vector<8x20xf32>, vector<20x50xf32>, vector<8x50xf32> -> vector<8x50xf32>
    %265 = arith.addf %259, %264 : vector<8x50xf32>
    %266 = vector.extract_strided_slice %185 {offsets = [3, 1, 0, 0], sizes = [1, 1, 8, 20], strides = [1, 1, 1, 1]} : vector<4x4x8x20xf32> to vector<1x1x8x20xf32>
    %267 = vector.shape_cast %266 : vector<1x1x8x20xf32> to vector<8x20xf32>
    %c13_139 = arith.constant 13 : index
    %c0_140 = arith.constant 0 : index
    %c0_141 = arith.constant 0 : index
    %268 = vector.load %arg6[%c13_139, %c0_140, %c0_141] : memref<16x20x50xf32, #tpu.memory_space<vmem>>, vector<1x20x50xf32>
    %269 = vector.shape_cast %268 : vector<1x20x50xf32> to vector<20x50xf32>
    %cst_142 = arith.constant dense<0.000000e+00> : vector<8x50xf32>
    %270 = tpu.matmul %267, %269, %cst_142 {dimension_numbers = #tpu.dot_dimension_numbers<[1], [0], [0], [1], [0, 0, 1, 1], [], []>} : vector<8x20xf32>, vector<20x50xf32>, vector<8x50xf32> -> vector<8x50xf32>
    %271 = arith.addf %265, %270 : vector<8x50xf32>
    %272 = vector.extract_strided_slice %185 {offsets = [3, 2, 0, 0], sizes = [1, 1, 8, 20], strides = [1, 1, 1, 1]} : vector<4x4x8x20xf32> to vector<1x1x8x20xf32>
    %273 = vector.shape_cast %272 : vector<1x1x8x20xf32> to vector<8x20xf32>
    %c14_143 = arith.constant 14 : index
    %c0_144 = arith.constant 0 : index
    %c0_145 = arith.constant 0 : index
    %274 = vector.load %arg6[%c14_143, %c0_144, %c0_145] : memref<16x20x50xf32, #tpu.memory_space<vmem>>, vector<1x20x50xf32>
    %275 = vector.shape_cast %274 : vector<1x20x50xf32> to vector<20x50xf32>
    %cst_146 = arith.constant dense<0.000000e+00> : vector<8x50xf32>
    %276 = tpu.matmul %273, %275, %cst_146 {dimension_numbers = #tpu.dot_dimension_numbers<[1], [0], [0], [1], [0, 0, 1, 1], [], []>} : vector<8x20xf32>, vector<20x50xf32>, vector<8x50xf32> -> vector<8x50xf32>
    %277 = arith.addf %271, %276 : vector<8x50xf32>
    %278 = vector.extract_strided_slice %185 {offsets = [3, 3, 0, 0], sizes = [1, 1, 8, 20], strides = [1, 1, 1, 1]} : vector<4x4x8x20xf32> to vector<1x1x8x20xf32>
    %279 = vector.shape_cast %278 : vector<1x1x8x20xf32> to vector<8x20xf32>
    %c15_147 = arith.constant 15 : index
    %c0_148 = arith.constant 0 : index
    %c0_149 = arith.constant 0 : index
    %280 = vector.load %arg6[%c15_147, %c0_148, %c0_149] : memref<16x20x50xf32, #tpu.memory_space<vmem>>, vector<1x20x50xf32>
    %281 = vector.shape_cast %280 : vector<1x20x50xf32> to vector<20x50xf32>
    %cst_150 = arith.constant dense<0.000000e+00> : vector<8x50xf32>
    %282 = tpu.matmul %279, %281, %cst_150 {dimension_numbers = #tpu.dot_dimension_numbers<[1], [0], [0], [1], [0, 0, 1, 1], [], []>} : vector<8x20xf32>, vector<20x50xf32>, vector<8x50xf32> -> vector<8x50xf32>
    %283 = arith.addf %277, %282 : vector<8x50xf32>
    %cst_151 = arith.constant 0.000000e+00 : f32
    %284 = vector.broadcast %cst_151 : f32 to vector<8x50xf32>
    %285 = arith.maximumf %283, %284 : vector<8x50xf32>
    %c0_152 = arith.constant 0 : index
    %c0_153 = arith.constant 0 : index
    %286 = vector.load %arg8[%c0_152, %c0_153] : memref<50x1xf32, #tpu.memory_space<vmem>>, vector<50x1xf32>
    %cst_154 = arith.constant dense<0.000000e+00> : vector<8x1xf32>
    %287 = tpu.matmul %285, %286, %cst_154 {dimension_numbers = #tpu.dot_dimension_numbers<[1], [0], [0], [1], [0, 0, 1, 1], [], []>} : vector<8x50xf32>, vector<50x1xf32>, vector<8x1xf32> -> vector<8x1xf32>
    %c0_155 = arith.constant 0 : index
    %c0_156 = arith.constant 0 : index
    %288 = vector.load %arg9[%c0_155, %c0_156] : memref<1x1xf32, #tpu.memory_space<vmem>>, vector<1x1xf32>
    %289 = vector.broadcast %288 : vector<1x1xf32> to vector<8x1xf32>
    %290 = arith.addf %287, %289 : vector<8x1xf32>
    %cst_157 = arith.constant 0.000000e+00 : f32
    %291 = vector.broadcast %cst_157 : f32 to vector<8x1xf32>
    %292 = arith.subf %291, %290 : vector<8x1xf32>
    %293 = math.exp %292 : vector<8x1xf32>
    %cst_158 = arith.constant 1.000000e+00 : f32
    %294 = vector.broadcast %cst_158 : f32 to vector<8x1xf32>
    %295 = arith.addf %294, %293 : vector<8x1xf32>
    %cst_159 = arith.constant 1.000000e+00 : f32
    %296 = vector.broadcast %cst_159 : f32 to vector<8x1xf32>
    %297 = arith.divf %296, %295 : vector<8x1xf32>
    %c0_160 = arith.constant 0 : index
    %c0_161 = arith.constant 0 : index
    %298 = vector.load %arg10[%c0_160, %c0_161] : memref<8x1xf32, #tpu.memory_space<vmem>>, vector<8x1xf32>
    tpu.vector_store %arg10[%c0_160, %c0_161], %297 {strides = array<i32>} : memref<8x1xf32, #tpu.memory_space<vmem>>, vector<8x1xf32>,
    return
  }
  func.func @transform_0(%arg0: i32) -> (i32, i32) {
    %c0_i32 = arith.constant 0 : i32
    %c0_i32_0 = arith.constant 0 : i32
    return %arg0, %c0_i32 : i32, i32
  }
  func.func @transform_1(%arg0: i32) -> (i32, i32) {
    %c0_i32 = arith.constant 0 : i32
    %c0_i32_0 = arith.constant 0 : i32
    %c0_i32_1 = arith.constant 0 : i32
    return %c0_i32, %c0_i32_0 : i32, i32
  }
  func.func @transform_2(%arg0: i32) -> (i32, i32) {
    %c0_i32 = arith.constant 0 : i32
    %c0_i32_0 = arith.constant 0 : i32
    %c0_i32_1 = arith.constant 0 : i32
    return %c0_i32, %c0_i32_0 : i32, i32
  }
  func.func @transform_3(%arg0: i32) -> (i32, i32, i32) {
    %c0_i32 = arith.constant 0 : i32
    %c0_i32_0 = arith.constant 0 : i32
    %c0_i32_1 = arith.constant 0 : i32
    %c0_i32_2 = arith.constant 0 : i32
    return %c0_i32, %c0_i32_0, %c0_i32_1 : i32, i32, i32
  }
  func.func @transform_4(%arg0: i32) -> (i32, i32) {
    %c0_i32 = arith.constant 0 : i32
    %c0_i32_0 = arith.constant 0 : i32
    %c0_i32_1 = arith.constant 0 : i32
    return %c0_i32, %c0_i32_0 : i32, i32
  }
  func.func @transform_5(%arg0: i32) -> (i32, i32, i32) {
    %c0_i32 = arith.constant 0 : i32
    %c0_i32_0 = arith.constant 0 : i32
    %c0_i32_1 = arith.constant 0 : i32
    %c0_i32_2 = arith.constant 0 : i32
    return %c0_i32, %c0_i32_0, %c0_i32_1 : i32, i32, i32
  }
  func.func @transform_6(%arg0: i32) -> (i32, i32) {
    %c0_i32 = arith.constant 0 : i32
    %c0_i32_0 = arith.constant 0 : i32
    %c0_i32_1 = arith.constant 0 : i32
    return %c0_i32, %c0_i32_0 : i32, i32
  }
  func.func @transform_7(%arg0: i32) -> (i32, i32) {
    %c0_i32 = arith.constant 0 : i32
    %c0_i32_0 = arith.constant 0 : i32
    %c0_i32_1 = arith.constant 0 : i32
    return %c0_i32, %c0_i32_0 : i32, i32
  }
  func.func @transform_8(%arg0: i32) -> (i32, i32) {
    %c0_i32 = arith.constant 0 : i32
    %c0_i32_0 = arith.constant 0 : i32
    %c0_i32_1 = arith.constant 0 : i32
    return %c0_i32, %c0_i32_0 : i32, i32
  }
  func.func @transform_9(%arg0: i32) -> (i32, i32) {
    %c0_i32 = arith.constant 0 : i32
    %c0_i32_0 = arith.constant 0 : i32
    return %arg0, %c0_i32 : i32, i32
  }
}

</mosaic_0001>

<bundles_post_ra>
// kernel: discriminator_forward.1
= control target key start
LH: loop header
LB: loop body
LE: loop exit
PB: predicated region body
PF: predicated region fallthrough
CT: control target
= control target key end

     0   :  { %vm2350_vm0 = vcmask 1040384   ;;  %vm621_vm1 = vcmask 203776   ;;  %vm29194_vm2 = vmmov 1   ;;  %vm6071_vm4 = vcmask 1041408   ;;  %s38222_s1 = inlined_call_operand.vmem [shape: f32[25,10], index: 1, kind: input, shape index: {}]   ;;  %s38223_s0 = inlined_call_operand.vmem [shape: f32[4608,25], index: 0, kind: input, shape index: {}]   ;;  %s38224_s2 = inlined_call_operand.vmem [shape: f32[1,10], index: 2, kind: input, shape index: {}]   ;;  %s38225_s3 = inlined_call_operand.vmem [shape: f32[25,10,20], index: 3, kind: input, shape index: {}]   ;;  %s38226_s5 = inlined_call_operand.vmem [shape: f32[16,20,50], index: 5, kind: input, shape index: {}]   ;;  %s38227_s4 = inlined_call_operand.vmem [shape: f32[1,20], index: 4, kind: input, shape index: {}]   ;;  %s38228_s7 = inlined_call_operand.vmem [shape: f32[50,1], index: 7, kind: input, shape index: {}]   ;;  %s38229_s8 = inlined_call_operand.<no memory space> [shape: f32[1,1], index: 8, kind: input, shape index: {}]   ;;  %s38230_s6 = inlined_call_operand.vmem [shape: f32[1,50], index: 6, kind: input, shape index: {}]   ;;  %s38231_s9 = inlined_call_operand.vmem [shape: f32[8,1], index: 9, kind: output, shape index: {}]  }
   0x1   :  { %v610_v0 = vld [vmem:[%s38222_s1] sm:$0xff]  ;;  %v611_v1 = vld [vmem:[%s38222_s1 + $0x8] sm:$0xff]  ;;  %v612_v2 = vld [vmem:[%s38222_s1 + $0x10] sm:$0xff]  ;;  %vm5878_vm6 = vcmask 80896   ;;  %vm17762_vm7 = vcmask 1043456   ;;  %vm29197_vm8 = vmmov 0  }
   0x2   :  { %v27330_v3 = vpack.c.bf16 %v611_v1, %v610_v0  ;;  %v613_v4 = vld [vmem:[%s38222_s1 + $0x18] sm:$0x1]  ;;  %v34_v5 = vld [vmem:[%s38223_s0] sm:$0xff]  ;;  %vm27335_vm3 = vmpackc.low %vm2350_vm0, %vm29194_vm2  ;;  %vm17758_vm9 = vcmask 162816   ;;  %vm19073_vm10 = vcmask 408576   ;;  %vm19156_vm11 = vcmask 7168  }
   0x3   :  { %v27334_v6 = vpack.c.bf16 %v613_v4, %v612_v2  ;;  %23805 = vmatprep.mubr.msk.f32.mxu0 %vm621_vm1, %v34_v5  ;;  %v35_v7 = vld [vmem:[%s38223_s0 + $0x8] sm:$0xff]  ;;  %v36_v8 = vld [vmem:[%s38223_s0 + $0x10] sm:$0xff]  ;;  %v37_v9 = vld [vmem:[%s38223_s0 + $0x18] sm:$0xff] }
   0x4   :  { %27331 = vmatprep.subr.bf16.mxu0 %v27330_v3  ;;  %v38_v10 = vld [vmem:[%s38223_s0 + $0x20] sm:$0xff]  ;;  %v39_v11 = vld [vmem:[%s38223_s0 + $0x28] sm:$0xff]  ;;  %v40_v12 = vld [vmem:[%s38223_s0 + $0x30] sm:$0xff] }
   0x5   :  { %27333 = vmatpush3.bf16.msra.mxu0 %v27330_v3  ;;  %v41_v13 = vld [vmem:[%s38223_s0 + $0x38] sm:$0xff]  ;;  %v42_v14 = vld [vmem:[%s38223_s0 + $0x40] sm:$0xff]  ;;  %v43_v15 = vld [vmem:[%s38223_s0 + $0x48] sm:$0xff] }
   0x6   :  { %27336 = vmatprep.subr.msk.bf16.mxu0 %vm27335_vm3, %v27334_v6  ;;  %v44_v16 = vld [vmem:[%s38223_s0 + $0x50] sm:$0xff]  ;;  %v45_v17 = vld [vmem:[%s38223_s0 + $0x58] sm:$0xff]  ;;  %v46_v18 = vld [vmem:[%s38223_s0 + $0x60] sm:$0xff] }
   0x7   :  { %v47_v19 = vld [vmem:[%s38223_s0 + $0x68] sm:$0xff]  ;;  %v48_v20 = vld [vmem:[%s38223_s0 + $0x70] sm:$0xff]  ;;  %v49_v21 = vld [vmem:[%s38223_s0 + $0x78] sm:$0xff] }
   0x8   :  { %v50_v22 = vld [vmem:[%s38223_s0 + $0x80] sm:$0xff]  ;;  %v51_v23 = vld [vmem:[%s38223_s0 + $0x88] sm:$0xff]  ;;  %v52_v24 = vld [vmem:[%s38223_s0 + $0x90] sm:$0xff] }
   0x9   :  { %27339 = vmatpush3.bf16.msk.msra.mxu0 %vm27335_vm3, %v27334_v6  ;;  %v53_v25 = vld [vmem:[%s38223_s0 + $0x98] sm:$0xff]  ;;  %v54_v26 = vld [vmem:[%s38223_s0 + $0xa0] sm:$0xff]  ;;  %v55_v27 = vld [vmem:[%s38223_s0 + $0xa8] sm:$0xff] }
   0xa   :  { %v56_v28 = vld [vmem:[%s38223_s0 + $0xb0] sm:$0xff]  ;;  %v57_v29 = vld [vmem:[%s38223_s0 + $0xb8] sm:$0xff]  ;;  %v58_v30 = vld [vmem:[%s38223_s0 + $0xc0] sm:$0xff] }
   0xb   :  { %v59_v31 = vld [vmem:[%s38223_s0 + $0xc8] sm:$0xff]  ;;  %v60_v32 = vld [vmem:[%s38223_s0 + $0xd0] sm:$0xff]  ;;  %v61_v33 = vld [vmem:[%s38223_s0 + $0xd8] sm:$0xff] }
   0xc   :  { %23806 = vmatmul.mubr.msk.f32.vlgmr.msra.gmra.mrb[0].mxu0 %vm621_vm1, %v35_v7  ;;  %v62_v34 = vld [vmem:[%s38223_s0 + $0xe0] sm:$0xff]  ;;  %v63_v35 = vld [vmem:[%s38223_s0 + $0xe8] sm:$0xff]  ;;  %v64_v36 = vld [vmem:[%s38223_s0 + $0xf0] sm:$0xff] }
   0xd   :  { %23808 = vmatprep.mubr.msk.f32.mxu0 %vm621_vm1, %v36_v8  ;;  %v65_v37 = vld [vmem:[%s38223_s0 + $0xf8] sm:$0xff]  ;;  %v66_v38 = vld [vmem:[%s38223_s0 + $0x100] sm:$0xff]  ;;  %v67_v39 = vld [vmem:[%s38223_s0 + $0x108] sm:$0xff] }
   0xe   :  { %v68_v40 = vld [vmem:[%s38223_s0 + $0x110] sm:$0xff]  ;;  %v69_v41 = vld [vmem:[%s38223_s0 + $0x118] sm:$0xff]  ;;  %v70_v42 = vld [vmem:[%s38223_s0 + $0x120] sm:$0xff] }
   0xf   :  { %v71_v43 = vld [vmem:[%s38223_s0 + $0x128] sm:$0xff]  ;;  %v72_v44 = vld [vmem:[%s38223_s0 + $0x130] sm:$0xff]  ;;  %v73_v45 = vld [vmem:[%s38223_s0 + $0x138] sm:$0xff] }
  0x10   :  { %23809 = vmatmul.mubr.msk.f32.gmra.mrb[2].mxu0 %vm621_vm1, %v37_v9  ;;  %v74_v46 = vld [vmem:[%s38223_s0 + $0x140] sm:$0xff]  ;;  %v75_v47 = vld [vmem:[%s38223_s0 + $0x148] sm:$0xff]  ;;  %v76_v48 = vld [vmem:[%s38223_s0 + $0x150] sm:$0xff] }
  0x11   :  { %23811 = vmatprep.mubr.msk.f32.mxu0 %vm621_vm1, %v38_v10  ;;  %v77_v49 = vld [vmem:[%s38223_s0 + $0x158] sm:$0xff]  ;;  %v78_v50 = vld [vmem:[%s38223_s0 + $0x160] sm:$0xff]  ;;  %v79_v51 = vld [vmem:[%s38223_s0 + $0x168] sm:$0xff] }
  0x12   :  { %v80_v52 = vld [vmem:[%s38223_s0 + $0x170] sm:$0xff]  ;;  %v81_v53 = vld [vmem:[%s38223_s0 + $0x178] sm:$0xff]  ;;  %v82_v54 = vld [vmem:[%s38223_s0 + $0x180] sm:$0xff] }
  0x13   :  { %v83_v55 = vld [vmem:[%s38223_s0 + $0x188] sm:$0xff]  ;;  %v84_v56 = vld [vmem:[%s38223_s0 + $0x190] sm:$0xff]  ;;  %v85_v57 = vld [vmem:[%s38223_s0 + $0x198] sm:$0xff] }
  0x14   :  { %23812 = vmatmul.mubr.msk.f32.gmra.mrb[4].mxu0 %vm621_vm1, %v39_v11  ;;  %v86_v58 = vld [vmem:[%s38223_s0 + $0x1a0] sm:$0xff]  ;;  %v87_v59 = vld [vmem:[%s38223_s0 + $0x1a8] sm:$0xff]  ;;  %v88_v60 = vld [vmem:[%s38223_s0 + $0x1b0] sm:$0xff] }
  0x15   :  { %23814 = vmatprep.mubr.msk.f32.mxu0 %vm621_vm1, %v40_v12  ;;  %v89_v61 = vld [vmem:[%s38223_s0 + $0x1b8] sm:$0xff]  ;;  %v90_v62 = vld [vmem:[%s38223_s0 + $0x1c0] sm:$0xff]  ;;  %v91_v63 = vld [vmem:[%s38223_s0 + $0x1c8] sm:$0xff] }
  0x16   :  { %v92_v0 = vld [vmem:[%s38223_s0 + $0x1d0] sm:$0xff]  ;;  %v93_v1 = vld [vmem:[%s38223_s0 + $0x1d8] sm:$0xff]  ;;  %v94_v2 = vld [vmem:[%s38223_s0 + $0x1e0] sm:$0xff] }
  0x17   :  { %v95_v3 = vld [vmem:[%s38223_s0 + $0x1e8] sm:$0xff]  ;;  %v96_v4 = vld [vmem:[%s38223_s0 + $0x1f0] sm:$0xff]  ;;  %v97_v5 = vld [vmem:[%s38223_s0 + $0x1f8] sm:$0xff] }
  0x18   :  { %23815 = vmatmul.mubr.msk.f32.gmra.mrb[6].mxu0 %vm621_vm1, %v41_v13  ;;  %v98_v6 = vld [vmem:[%s38223_s0 + $0x200] sm:$0xff]  ;;  %v99_v7 = vld [vmem:[%s38223_s0 + $0x208] sm:$0xff]  ;;  %v100_v8 = vld [vmem:[%s38223_s0 + $0x210] sm:$0xff] }
  0x19   :  { %23817 = vmatprep.mubr.msk.f32.mxu0 %vm621_vm1, %v42_v14  ;;  %v101_v9 = vld [vmem:[%s38223_s0 + $0x218] sm:$0xff]  ;;  %v102_v10 = vld [vmem:[%s38223_s0 + $0x220] sm:$0xff]  ;;  %v103_v11 = vld [vmem:[%s38223_s0 + $0x228] sm:$0xff] }
  0x1a   :  { %v104_v12 = vld [vmem:[%s38223_s0 + $0x230] sm:$0xff]  ;;  %v105_v13 = vld [vmem:[%s38223_s0 + $0x238] sm:$0xff]  ;;  %v106_v14 = vld [vmem:[%s38223_s0 + $0x240] sm:$0xff] }
  0x1b   :  { %vm31375_vm5 = vmpackc.low %vm6071_vm4, %vm29194_vm2 }
  0x1c   :  { %23818 = vmatmul.mubr.msk.f32.gmra.mrb[8].mxu0 %vm621_vm1, %v43_v15  ;;  %v107_v15 = vld [vmem:[%s38223_s0 + $0x248] sm:$0xff] }
  0x1d   :  { %23820 = vmatprep.mubr.msk.f32.mxu0 %vm621_vm1, %v44_v16  ;;  %v108_v16 = vld [vmem:[%s38223_s0 + $0x250] sm:$0xff] }
  0x20   :  { %23821 = vmatmul.mubr.msk.f32.gmra.mrb[10].mxu0 %vm621_vm1, %v45_v17  ;;  %v109_v17 = vld [vmem:[%s38223_s0 + $0x258] sm:$0xff] }
  0x21   :  { %23823 = vmatprep.mubr.msk.f32.mxu0 %vm621_vm1, %v46_v18  ;;  %v110_v18 = vld [vmem:[%s38223_s0 + $0x260] sm:$0xff] }
  0x24   :  { %23824 = vmatmul.mubr.msk.f32.gmra.mrb[12].mxu0 %vm621_vm1, %v47_v19  ;;  %v111_v19 = vld [vmem:[%s38223_s0 + $0x268] sm:$0xff] }
  0x25   :  { %23826 = vmatprep.mubr.msk.f32.mxu0 %vm621_vm1, %v48_v20  ;;  %v112_v20 = vld [vmem:[%s38223_s0 + $0x270] sm:$0xff] }
  0x28   :  { %23827 = vmatmul.mubr.msk.f32.gmra.mrb[14].mxu0 %vm621_vm1, %v49_v21  ;;  %v113_v21 = vld [vmem:[%s38223_s0 + $0x278] sm:$0xff] }
  0x29   :  { %23829 = vmatprep.mubr.msk.f32.mxu0 %vm621_vm1, %v50_v22  ;;  %v114_v22 = vld [vmem:[%s38223_s0 + $0x280] sm:$0xff] }
  0x2c   :  { %23830 = vmatmul.mubr.msk.f32.gmra.mrb[16].mxu0 %vm621_vm1, %v51_v23  ;;  %v115_v23 = vld [vmem:[%s38223_s0 + $0x288] sm:$0xff] }
  0x2d   :  { %23832 = vmatprep.mubr.msk.f32.mxu0 %vm621_vm1, %v52_v24  ;;  %v116_v24 = vld [vmem:[%s38223_s0 + $0x290] sm:$0xff] }
  0x30   :  { %23833 = vmatmul.mubr.msk.f32.gmra.mrb[18].mxu0 %vm621_vm1, %v53_v25  ;;  %v117_v25 = vld [vmem:[%s38223_s0 + $0x298] sm:$0xff] }
  0x31   :  { %23835 = vmatprep.mubr.msk.f32.mxu0 %vm621_vm1, %v54_v26  ;;  %v118_v26 = vld [vmem:[%s38223_s0 + $0x2a0] sm:$0xff] }
  0x34   :  { %23836 = vmatmul.mubr.msk.f32.gmra.mrb[20].mxu0 %vm621_vm1, %v55_v27  ;;  %v119_v27 = vld [vmem:[%s38223_s0 + $0x2a8] sm:$0xff] }
  0x35   :  { %23838 = vmatprep.mubr.msk.f32.mxu0 %vm621_vm1, %v56_v28  ;;  %v120_v28 = vld [vmem:[%s38223_s0 + $0x2b0] sm:$0xff] }
  0x38   :  { %23839 = vmatmul.mubr.msk.f32.gmra.mrb[22].mxu0 %vm621_vm1, %v57_v29  ;;  %v121_v29 = vld [vmem:[%s38223_s0 + $0x2b8] sm:$0xff] }
  0x39   :  { %23841 = vmatprep.mubr.msk.f32.mxu0 %vm621_vm1, %v58_v30  ;;  %v122_v30 = vld [vmem:[%s38223_s0 + $0x2c0] sm:$0xff] }
  0x3c   :  { %23842 = vmatmul.mubr.msk.f32.gmra.mrb[24].mxu0 %vm621_vm1, %v59_v31  ;;  %v123_v31 = vld [vmem:[%s38223_s0 + $0x2c8] sm:$0xff] }
  0x3d   :  { %23844 = vmatprep.mubr.msk.f32.mxu0 %vm621_vm1, %v60_v32  ;;  %v124_v32 = vld [vmem:[%s38223_s0 + $0x2d0] sm:$0xff] }
  0x40   :  { %23845 = vmatmul.mubr.msk.f32.gmra.mrb[26].mxu0 %vm621_vm1, %v61_v33  ;;  %v125_v33 = vld [vmem:[%s38223_s0 + $0x2d8] sm:$0xff] }
  0x41   :  { %23847 = vmatprep.mubr.msk.f32.mxu0 %vm621_vm1, %v62_v34  ;;  %v126_v34 = vld [vmem:[%s38223_s0 + $0x2e0] sm:$0xff] }
  0x44   :  { %23848 = vmatmul.mubr.msk.f32.gmra.mrb[28].mxu0 %vm621_vm1, %v63_v35  ;;  %v127_v35 = vld [vmem:[%s38223_s0 + $0x2e8] sm:$0xff] }
  0x45   :  { %23850 = vmatprep.mubr.msk.f32.mxu0 %vm621_vm1, %v64_v36  ;;  %v128_v36 = vld [vmem:[%s38223_s0 + $0x2f0] sm:$0xff] }
  0x48   :  { %23851 = vmatmul.mubr.msk.f32.gmra.mrb[30].mxu0 %vm621_vm1, %v65_v37  ;;  %v129_v37 = vld [vmem:[%s38223_s0 + $0x2f8] sm:$0xff] }
  0x49   :  { %23853 = vmatprep.mubr.msk.f32.mxu0 %vm621_vm1, %v66_v38  ;;  %v130_v38 = vld [vmem:[%s38223_s0 + $0x300] sm:$0xff] }
  0x4c   :  { %23854 = vmatmul.mubr.msk.f32.gmra.mrb[32].mxu0 %vm621_vm1, %v67_v39  ;;  %v131_v39 = vld [vmem:[%s38223_s0 + $0x308] sm:$0xff] }
  0x4d   :  { %23856 = vmatprep.mubr.msk.f32.mxu0 %vm621_vm1, %v68_v40  ;;  %v132_v40 = vld [vmem:[%s38223_s0 + $0x310] sm:$0xff] }
  0x50   :  { %23857 = vmatmul.mubr.msk.f32.gmra.mrb[34].mxu0 %vm621_vm1, %v69_v41  ;;  %v133_v41 = vld [vmem:[%s38223_s0 + $0x318] sm:$0xff] }
  0x51   :  { %23859 = vmatprep.mubr.msk.f32.mxu0 %vm621_vm1, %v70_v42  ;;  %v134_v42 = vld [vmem:[%s38223_s0 + $0x320] sm:$0xff] }
  0x54   :  { %23860 = vmatmul.mubr.msk.f32.gmra.mrb[36].mxu0 %vm621_vm1, %v71_v43  ;;  %v135_v43 = vld [vmem:[%s38223_s0 + $0x328] sm:$0xff] }
  0x55   :  { %23862 = vmatprep.mubr.msk.f32.mxu0 %vm621_vm1, %v72_v44  ;;  %v136_v44 = vld [vmem:[%s38223_s0 + $0x330] sm:$0xff] }
  0x58   :  { %23863 = vmatmul.mubr.msk.f32.gmra.mrb[38].mxu0 %vm621_vm1, %v73_v45  ;;  %v137_v45 = vld [vmem:[%s38223_s0 + $0x338] sm:$0xff] }
  0x59   :  { %23865 = vmatprep.mubr.msk.f32.mxu0 %vm621_vm1, %v74_v46  ;;  %v138_v46 = vld [vmem:[%s38223_s0 + $0x340] sm:$0xff] }
  0x5c   :  { %23866 = vmatmul.mubr.msk.f32.gmra.mrb[40].mxu0 %vm621_vm1, %v75_v47  ;;  %v139_v47 = vld [vmem:[%s38223_s0 + $0x348] sm:$0xff] }
  0x5d   :  { %23868 = vmatprep.mubr.msk.f32.mxu0 %vm621_vm1, %v76_v48  ;;  %v140_v48 = vld [vmem:[%s38223_s0 + $0x350] sm:$0xff] }
  0x60   :  { %23869 = vmatmul.mubr.msk.f32.gmra.mrb[42].mxu0 %vm621_vm1, %v77_v49  ;;  %v29691_v49 = vld [vmem:[%s38224_s2] ss:$0 sm:$0xff] }
  0x61   :  { %23871 = vmatprep.mubr.msk.f32.mxu0 %vm621_vm1, %v78_v50  ;;  %v141_v50 = vld [vmem:[%s38223_s0 + $0x358] sm:$0xff] }
  0x64   :  { %23872 = vmatmul.mubr.msk.f32.gmra.mrb[44].mxu0 %vm621_vm1, %v79_v51  ;;  %v142_v51 = vld [vmem:[%s38223_s0 + $0x360] sm:$0xff] }
  0x65   :  { %23874 = vmatprep.mubr.msk.f32.mxu0 %vm621_vm1, %v80_v52 }
  0x68   :  { %23875 = vmatmul.mubr.msk.f32.gmra.mrb[46].mxu0 %vm621_vm1, %v81_v53 }
  0x69   :  { %23877 = vmatprep.mubr.msk.f32.mxu0 %vm621_vm1, %v82_v54 }
  0x6c   :  { %23878 = vmatmul.mubr.msk.f32.gmra.mrb[48].mxu0 %vm621_vm1, %v83_v55 }
  0x6d   :  { %23880 = vmatprep.mubr.msk.f32.mxu0 %vm621_vm1, %v84_v56  ;;  %v143_v56 = vld [vmem:[%s38223_s0 + $0x368] sm:$0xff] }
  0x70   :  { %23881 = vmatmul.mubr.msk.f32.gmra.mrb[50].mxu0 %vm621_vm1, %v85_v57  ;;  %v144_v57 = vld [vmem:[%s38223_s0 + $0x370] sm:$0xff] }
  0x71   :  { %23883 = vmatprep.mubr.msk.f32.mxu0 %vm621_vm1, %v86_v58 }
  0x74   :  { %23884 = vmatmul.mubr.msk.f32.gmra.mrb[52].mxu0 %vm621_vm1, %v87_v59 }
  0x75   :  { %23886 = vmatprep.mubr.msk.f32.mxu0 %vm621_vm1, %v88_v60 }
  0x78   :  { %23887 = vmatmul.mubr.msk.f32.gmra.mrb[54].mxu0 %vm621_vm1, %v89_v61 }
  0x79   :  { %23889 = vmatprep.mubr.msk.f32.mxu0 %vm621_vm1, %v90_v62 }
  0x7c   :  { %23890 = vmatmul.mubr.msk.f32.gmra.mrb[56].mxu0 %vm621_vm1, %v91_v63  ;;  %v145_v63 = vld [vmem:[%s38223_s0 + $0x378] sm:$0xff] }
  0x7d   :  { %23892 = vmatprep.mubr.msk.f32.mxu0 %vm621_vm1, %v92_v0  ;;  %v146_v0 = vld [vmem:[%s38223_s0 + $0x380] sm:$0xff] }
  0x80   :  { %23893 = vmatmul.mubr.msk.f32.gmra.mrb[58].mxu0 %vm621_vm1, %v93_v1 }
  0x81   :  { %23895 = vmatprep.mubr.msk.f32.mxu0 %vm621_vm1, %v94_v2 }
  0x84   :  { %23896 = vmatmul.mubr.msk.f32.gmra.mrb[60].mxu0 %vm621_vm1, %v95_v3 }
  0x85   :  { %23898 = vmatprep.mubr.msk.f32.mxu0 %vm621_vm1, %v96_v4 }
  0x88   :  { %23899 = vmatmul.mubr.msk.f32.gmra.mrb[62].mxu0 %vm621_vm1, %v97_v5 }
  0x89   :  { %23901 = vmatprep.mubr.msk.f32.mxu0 %vm621_vm1, %v98_v6  ;;  %v147_v6 = vld [vmem:[%s38223_s0 + $0x388] sm:$0xff] }
  0x8c   :  { %23902 = vmatmul.mubr.msk.f32.gmra.mrb[64].mxu0 %vm621_vm1, %v99_v7  ;;  %v148_v7 = vld [vmem:[%s38223_s0 + $0x390] sm:$0xff] }
  0x8d   :  { %23904 = vmatprep.mubr.msk.f32.mxu0 %vm621_vm1, %v100_v8 }
  0x90   :  { %23905 = vmatmul.mubr.msk.f32.gmra.mrb[66].mxu0 %vm621_vm1, %v101_v9 }
  0x91   :  { %23907 = vmatprep.mubr.msk.f32.mxu0 %vm621_vm1, %v102_v10 }
  0x94   :  { %23908 = vmatmul.mubr.msk.f32.gmra.mrb[68].mxu0 %vm621_vm1, %v103_v11 }
  0x95   :  { %23910 = vmatprep.mubr.msk.f32.mxu0 %vm621_vm1, %v104_v12 }
  0x98   :  { %23911 = vmatmul.mubr.msk.f32.gmra.mrb[70].mxu0 %vm621_vm1, %v105_v13  ;;  %v149_v13 = vld [vmem:[%s38223_s0 + $0x398] sm:$0xff] }
  0x99   :  { %23913 = vmatprep.mubr.msk.f32.mxu0 %vm621_vm1, %v106_v14  ;;  %v150_v14 = vld [vmem:[%s38223_s0 + $0x3a0] sm:$0xff] }
  0x9c   :  { %23914 = vmatmul.mubr.msk.f32.gmra.mrb[72].mxu0 %vm621_vm1, %v107_v15 }
  0x9d   :  { %23916 = vmatprep.mubr.msk.f32.mxu0 %vm621_vm1, %v108_v16 }
  0xa0   :  { %23917 = vmatmul.mubr.msk.f32.gmra.mrb[74].mxu0 %vm621_vm1, %v109_v17 }
  0xa1   :  { %23919 = vmatprep.mubr.msk.f32.mxu0 %vm621_vm1, %v110_v18 }
  0xa4   :  { %23920 = vmatmul.mubr.msk.f32.gmra.mrb[76].mxu0 %vm621_vm1, %v111_v19 }
  0xa5   :  { %23922 = vmatprep.mubr.msk.f32.mxu0 %vm621_vm1, %v112_v20  ;;  %v151_v20 = vld [vmem:[%s38223_s0 + $0x3a8] sm:$0xff] }
  0xa8   :  { %23923 = vmatmul.mubr.msk.f32.gmra.mrb[78].mxu0 %vm621_vm1, %v113_v21  ;;  %v152_v21 = vld [vmem:[%s38223_s0 + $0x3b0] sm:$0xff] }
  0xa9   :  { %23925 = vmatprep.mubr.msk.f32.mxu0 %vm621_vm1, %v114_v22 }
  0xac   :  { %23926 = vmatmul.mubr.msk.f32.gmra.mrb[80].mxu0 %vm621_vm1, %v115_v23 }
  0xad   :  { %23928 = vmatprep.mubr.msk.f32.mxu0 %vm621_vm1, %v116_v24 }
  0xb0   :  { %23929 = vmatmul.mubr.msk.f32.gmra.mrb[82].mxu0 %vm621_vm1, %v117_v25 }
  0xb1   :  { %23931 = vmatprep.mubr.msk.f32.mxu0 %vm621_vm1, %v118_v26 }
  0xb4   :  { %23932 = vmatmul.mubr.msk.f32.gmra.mrb[84].mxu0 %vm621_vm1, %v119_v27  ;;  %v153_v27 = vld [vmem:[%s38223_s0 + $0x3b8] sm:$0xff] }
  0xb5   :  { %23934 = vmatprep.mubr.msk.f32.mxu0 %vm621_vm1, %v120_v28  ;;  %v154_v28 = vld [vmem:[%s38223_s0 + $0x3c0] sm:$0xff] }
  0xb8   :  { %23935 = vmatmul.mubr.msk.f32.gmra.mrb[86].mxu0 %vm621_vm1, %v121_v29 }
  0xb9   :  { %23937 = vmatprep.mubr.msk.f32.mxu0 %vm621_vm1, %v122_v30 }
  0xbc   :  { %23938 = vmatmul.mubr.msk.f32.gmra.mrb[88].mxu0 %vm621_vm1, %v123_v31 }
  0xbd   :  { %23940 = vmatprep.mubr.msk.f32.mxu0 %vm621_vm1, %v124_v32 }
  0xc0   :  { %23941 = vmatmul.mubr.msk.f32.gmra.mrb[90].mxu0 %vm621_vm1, %v125_v33 }
  0xc1   :  { %23943 = vmatprep.mubr.msk.f32.mxu0 %vm621_vm1, %v126_v34  ;;  %v155_v34 = vld [vmem:[%s38223_s0 + $0x3c8] sm:$0xff] }
  0xc4   :  { %23944 = vmatmul.mubr.msk.f32.gmra.mrb[92].mxu0 %vm621_vm1, %v127_v35  ;;  %v156_v35 = vld [vmem:[%s38223_s0 + $0x3d0] sm:$0xff] }
  0xc5   :  { %23946 = vmatprep.mubr.msk.f32.mxu0 %vm621_vm1, %v128_v36 }
  0xc8   :  { %23947 = vmatmul.mubr.msk.f32.gmra.mrb[94].mxu0 %vm621_vm1, %v129_v37 }
  0xc9   :  { %23949 = vmatprep.mubr.msk.f32.mxu0 %vm621_vm1, %v130_v38 }
  0xcc   :  { %23950 = vmatmul.mubr.msk.f32.gmra.mrb[96].mxu0 %vm621_vm1, %v131_v39 }
  0xcd   :  { %23952 = vmatprep.mubr.msk.f32.mxu0 %vm621_vm1, %v132_v40 }
  0xd0   :  { %23953 = vmatmul.mubr.msk.f32.gmra.mrb[98].mxu0 %vm621_vm1, %v133_v41  ;;  %v157_v41 = vld [vmem:[%s38223_s0 + $0x3d8] sm:$0xff] }
  0xd1   :  { %23955 = vmatprep.mubr.msk.f32.mxu0 %vm621_vm1, %v134_v42  ;;  %v158_v42 = vld [vmem:[%s38223_s0 + $0x3e0] sm:$0xff] }
  0xd4   :  { %23956 = vmatmul.mubr.msk.f32.gmra.mrb[100].mxu0 %vm621_vm1, %v135_v43 }
  0xd5   :  { %23958 = vmatprep.mubr.msk.f32.mxu0 %vm621_vm1, %v136_v44 }
  0xd8   :  { %23959 = vmatmul.mubr.msk.f32.gmra.mrb[102].mxu0 %vm621_vm1, %v137_v45 }
  0xd9   :  { %23961 = vmatprep.mubr.msk.f32.mxu0 %vm621_vm1, %v138_v46 }
  0xdc   :  { %23962 = vmatmul.mubr.msk.f32.gmra.mrb[104].mxu0 %vm621_vm1, %v139_v47 }
  0xdd   :  { %23964 = vmatprep.mubr.msk.f32.mxu0 %vm621_vm1, %v140_v48  ;;  %v159_v48 = vld [vmem:[%s38223_s0 + $0x3e8] sm:$0xff] }
  0xdf   :  { %v23807_v52 = vpop.f32.mrb[0].mxu0 }
  0xe0   :  { %v29701_v53 = vadd.f32 %v23807_v52, %v29691_v49  ;;  %v2420_v54 = vpop.f32.mrb[1].mxu0  ;;  %23965 = vmatmul.mubr.msk.f32.gmra.mrb[106].mxu0 %vm621_vm1, %v141_v50  ;;  %v160_v50 = vld [vmem:[%s38223_s0 + $0x3f0] sm:$0xff] }
  0xe1   :  { %v29705_v55 = vadd.f32 %v29691_v49, %v2420_v54  ;;  %23967 = vmatprep.mubr.msk.f32.mxu0 %vm621_vm1, %v142_v51 }
  0xe3   :  { %v5299_v58 = vmax.f32 %v29705_v55, %v29701_v53  ;;  %v23810_v59 = vpop.f32.mrb[2].mxu0 }
  0xe4   :  { %v29717_v60 = vadd.f32 %v23810_v59, %v29691_v49  ;;  %v2430_v61 = vpop.f32.mrb[3].mxu0  ;;  %23968 = vmatmul.mubr.msk.f32.gmra.mrb[108].mxu0 %vm621_vm1, %v143_v56  ;;  %v161_v59 = vld [vmem:[%s38223_s0 + $0x3f8] sm:$0xff] }
  0xe5   :  { %v29721_v62 = vadd.f32 %v29691_v49, %v2430_v61  ;;  %23970 = vmatprep.mubr.msk.f32.mxu0 %vm621_vm1, %v144_v57  ;;  %v162_v61 = vld [vmem:[%s38223_s0 + $0x400] sm:$0xff] }
  0xe7   :  { %v5300_v1 = vmax.f32 %v29721_v62, %v29717_v60  ;;  %v23813_v2 = vpop.f32.mrb[4].mxu0 }
  0xe8   :  { %v29733_v3 = vadd.f32 %v23813_v2, %v29691_v49  ;;  %v2440_v4 = vpop.f32.mrb[5].mxu0  ;;  %23971 = vmatmul.mubr.msk.f32.gmra.mrb[110].mxu0 %vm621_vm1, %v145_v63 }
  0xe9   :  { %v29737_v5 = vadd.f32 %v29691_v49, %v2440_v4  ;;  %23973 = vmatprep.mubr.msk.f32.mxu0 %vm621_vm1, %v146_v0 }
  0xeb   :  { %v5301_v8 = vmax.f32 %v29737_v5, %v29733_v3  ;;  %v23816_v9 = vpop.f32.mrb[6].mxu0 }
  0xec   :  { %v29749_v10 = vadd.f32 %v23816_v9, %v29691_v49  ;;  %v2450_v11 = vpop.f32.mrb[7].mxu0  ;;  %23974 = vmatmul.mubr.msk.f32.gmra.mrb[112].mxu0 %vm621_vm1, %v147_v6  ;;  %v164_v9 = vld [vmem:[%s38223_s0 + $0x410] sm:$0xff] }
  0xed   :  { %v29753_v12 = vadd.f32 %v29691_v49, %v2450_v11  ;;  %23976 = vmatprep.mubr.msk.f32.mxu0 %vm621_vm1, %v148_v7  ;;  %v163_v7 = vld [vmem:[%s38223_s0 + $0x408] sm:$0xff] }
  0xef   :  { %v5302_v15 = vmax.f32 %v29753_v12, %v29749_v10  ;;  %v23819_v16 = vpop.f32.mrb[8].mxu0 }
  0xf0   :  { %v29765_v17 = vadd.f32 %v23819_v16, %v29691_v49  ;;  %v2460_v18 = vpop.f32.mrb[9].mxu0  ;;  %23977 = vmatmul.mubr.msk.f32.gmra.mrb[114].mxu0 %vm621_vm1, %v149_v13 }
  0xf1   :  { %v29769_v19 = vadd.f32 %v29691_v49, %v2460_v18  ;;  %23979 = vmatprep.mubr.msk.f32.mxu0 %vm621_vm1, %v150_v14 }
  0xf3   :  { %v5303_v22 = vmax.f32 %v29769_v19, %v29765_v17  ;;  %v23822_v23 = vpop.f32.mrb[10].mxu0 }
  0xf4   :  { %v29781_v24 = vadd.f32 %v23822_v23, %v29691_v49  ;;  %v2470_v25 = vpop.f32.mrb[11].mxu0  ;;  %23980 = vmatmul.mubr.msk.f32.gmra.mrb[116].mxu0 %vm621_vm1, %v151_v20  ;;  %v165_v20 = vld [vmem:[%s38223_s0 + $0x418] sm:$0xff] }
  0xf5   :  { %v29785_v26 = vadd.f32 %v29691_v49, %v2470_v25  ;;  %23982 = vmatprep.mubr.msk.f32.mxu0 %vm621_vm1, %v152_v21  ;;  %v166_v21 = vld [vmem:[%s38223_s0 + $0x420] sm:$0xff] }
  0xf7   :  { %v5304_v29 = vmax.f32 %v29785_v26, %v29781_v24  ;;  %v23825_v30 = vpop.f32.mrb[12].mxu0 }
  0xf8   :  { %v29797_v31 = vadd.f32 %v23825_v30, %v29691_v49  ;;  %v2480_v32 = vpop.f32.mrb[13].mxu0  ;;  %23983 = vmatmul.mubr.msk.f32.gmra.mrb[118].mxu0 %vm621_vm1, %v153_v27 }
  0xf9   :  { %v29801_v33 = vadd.f32 %v29691_v49, %v2480_v32  ;;  %23985 = vmatprep.mubr.msk.f32.mxu0 %vm621_vm1, %v154_v28  ;;  %v167_v32 = vld [vmem:[%s38223_s0 + $0x428] sm:$0xff] }
  0xfb   :  { %v5305_v36 = vmax.f32 %v29801_v33, %v29797_v31  ;;  %v23828_v37 = vpop.f32.mrb[14].mxu0 }
  0xfc   :  { %v29813_v38 = vadd.f32 %v23828_v37, %v29691_v49  ;;  %v2490_v39 = vpop.f32.mrb[15].mxu0  ;;  %23986 = vmatmul.mubr.msk.f32.gmra.mrb[120].mxu0 %vm621_vm1, %v155_v34  ;;  %v168_v34 = vld [vmem:[%s38223_s0 + $0x430] sm:$0xff] }
  0xfd   :  { %v29817_v40 = vadd.f32 %v29691_v49, %v2490_v39  ;;  %23988 = vmatprep.mubr.msk.f32.mxu0 %vm621_vm1, %v156_v35 }
  0xff   :  { %v5306_v43 = vmax.f32 %v29817_v40, %v29813_v38  ;;  %v23831_v44 = vpop.f32.mrb[16].mxu0 }
 0x100   :  { %v29829_v45 = vadd.f32 %v23831_v44, %v29691_v49  ;;  %v2500_v46 = vpop.f32.mrb[17].mxu0  ;;  %23989 = vmatmul.mubr.msk.f32.gmra.mrb[122].mxu0 %vm621_vm1, %v157_v41 }
 0x101   :  { %v29833_v47 = vadd.f32 %v29691_v49, %v2500_v46  ;;  %23991 = vmatprep.mubr.msk.f32.mxu0 %vm621_vm1, %v158_v42  ;;  %v169_v46 = vld [vmem:[%s38223_s0 + $0x438] sm:$0xff] }
 0x103   :  { %v5307_v51 = vmax.f32 %v29833_v47, %v29829_v45  ;;  %v23834_v52 = vpop.f32.mrb[18].mxu0 }
 0x104   :  { %v29845_v54 = vadd.f32 %v23834_v52, %v29691_v49  ;;  %v2510_v56 = vpop.f32.mrb[19].mxu0  ;;  %23992 = vmatmul.mubr.msk.f32.gmra.mrb[124].mxu0 %vm621_vm1, %v159_v48  ;;  %v170_v48 = vld [vmem:[%s38223_s0 + $0x440] sm:$0xff] }
 0x105   :  { %v29849_v57 = vadd.f32 %v29691_v49, %v2510_v56  ;;  %23994 = vmatprep.mubr.msk.f32.mxu0 %vm621_vm1, %v160_v50 }
 0x107   :  { %v5308_v63 = vmax.f32 %v29849_v57, %v29845_v54  ;;  %v23837_v0 = vpop.f32.mrb[20].mxu0 }
 0x108   :  { %v29861_v2 = vadd.f32 %v23837_v0, %v29691_v49  ;;  %v2520_v4 = vpop.f32.mrb[21].mxu0  ;;  %23995 = vmatmul.mubr.msk.f32.gmra.mrb[126].mxu0 %vm621_vm1, %v161_v59 }
 0x109   :  { %v29865_v6 = vadd.f32 %v29691_v49, %v2520_v4  ;;  %23997 = vmatprep.mubr.msk.f32.mxu0 %vm621_vm1, %v162_v61  ;;  %v172_v61 = vld [vmem:[%s38223_s0 + $0x450] sm:$0xff] }
 0x10b   :  { %v5309_v11 = vmax.f32 %v29865_v6, %v29861_v2  ;;  %v23840_v13 = vpop.f32.mrb[22].mxu0 }
 0x10c   :  { %v29877_v14 = vadd.f32 %v23840_v13, %v29691_v49  ;;  %v2530_v16 = vpop.f32.mrb[23].mxu0  ;;  %23998 = vmatmul.mubr.msk.f32.gmra.mrb[128].mxu0 %vm621_vm1, %v163_v7  ;;  %v174_v13 = vld [vmem:[%s38223_s0 + $0x460] sm:$0xff] }
 0x10d   :  { %v29881_v18 = vadd.f32 %v29691_v49, %v2530_v16  ;;  %24000 = vmatprep.mubr.msk.f32.mxu0 %vm621_vm1, %v164_v9 }
 0x10f   :  { %v5310_v23 = vmax.f32 %v29881_v18, %v29877_v14  ;;  %v23843_v25 = vpop.f32.mrb[24].mxu0 }
 0x110   :  { %v2546_v27 = vadd.f32 %v23843_v25, %v29691_v49  ;;  %v2540_v28 = vpop.f32.mrb[25].mxu0  ;;  %24001 = vmatmul.mubr.msk.f32.gmra.mrb[130].mxu0 %vm621_vm1, %v165_v20 }
 0x111   :  { %v2541_v30 = vadd.f32 %v29691_v49, %v2540_v28  ;;  %24003 = vmatprep.mubr.msk.f32.mxu0 %vm621_vm1, %v166_v21 }
 0x113   :  { %v5443_v35 = vmax.f32 %v2541_v30, %v2546_v27  ;;  %v23846_v37 = vpop.f32.mrb[26].mxu0  ;;  %v176_v27 = vld [vmem:[%s38223_s0 + $0x470] sm:$0xff] }
 0x114   :  { %v2556_v39 = vadd.f32 %v23846_v37, %v29691_v49  ;;  %v2550_v41 = vpop.f32.mrb[27].mxu0  ;;  %24004 = vmatmul.mubr.msk.f32.gmra.mrb[132].mxu0 %vm621_vm1, %v167_v32 }
 0x115   :  { %v29907_v42 = vmax.f32 %v5299_v58, %v5443_v35  ;;  %v2551_v44 = vadd.f32 %v29691_v49, %v2550_v41  ;;  %24006 = vmatprep.mubr.msk.f32.mxu0 %vm621_vm1, %v168_v34  ;;  %v171_v58 = vld [vmem:[%s38223_s0 + $0x448] sm:$0xff]  ;;  %v178_v35 = vld [vmem:[%s38223_s0 + $0x480] sm:$0xff] }
 0x117   :  { %38620 = vst [vmem:[#allocation3_spill] sm:$0xff] %v29907_v42  ;;  %v5444_v50 = vmax.f32 %v2551_v44, %v2556_v39  ;;  %v23849_v52 = vpop.f32.mrb[28].mxu0 }
 0x118   :  { %v2566_v56 = vadd.f32 %v23849_v52, %v29691_v49  ;;  %v2560_v59 = vpop.f32.mrb[29].mxu0  ;;  %24007 = vmatmul.mubr.msk.f32.gmra.mrb[134].mxu0 %vm621_vm1, %v169_v46  ;;  %v180_v46 = vld [vmem:[%s38223_s0 + $0x490] sm:$0xff] }
 0x119   :  { %v29922_v53 = vmax.f32 %v5300_v1, %v5444_v50  ;;  %v2561_v55 = vadd.f32 %v29691_v49, %v2560_v59  ;;  %24009 = vmatprep.mubr.msk.f32.mxu0 %vm621_vm1, %v170_v48  ;;  %v173_v1 = vld [vmem:[%s38223_s0 + $0x458] sm:$0xff]  ;;  %v182_v59 = vld [vmem:[%s38223_s0 + $0x4a0] sm:$0xff] }
 0x11b   :  { %38621 = vst [vmem:[#allocation4_spill] sm:$0xff] %v29922_v53  ;;  %v5445_v0 = vmax.f32 %v2561_v55, %v2566_v56  ;;  %v23852_v4 = vpop.f32.mrb[30].mxu0 }
 0x11c   :  { %v2576_v7 = vadd.f32 %v23852_v4, %v29691_v49  ;;  %v2570_v9 = vpop.f32.mrb[31].mxu0  ;;  %24010 = vmatmul.mubr.msk.f32.gmra.mrb[136].mxu0 %vm621_vm1, %v171_v58  ;;  %v184_v4 = vld [vmem:[%s38223_s0 + $0x4b0] sm:$0xff] }
 0x11d   :  { %v29937_v60 = vmax.f32 %v5301_v8, %v5445_v0  ;;  %v2571_v62 = vadd.f32 %v29691_v49, %v2570_v9  ;;  %24012 = vmatprep.mubr.msk.f32.mxu0 %vm621_vm1, %v172_v61  ;;  %v175_v8 = vld [vmem:[%s38223_s0 + $0x468] sm:$0xff] }
 0x11f   :  { %38622 = vst [vmem:[#allocation5_spill] sm:$0xff] %v29937_v60  ;;  %v5446_v16 = vmax.f32 %v2571_v62, %v2576_v7  ;;  %v23855_v20 = vpop.f32.mrb[32].mxu0 }
 0x120   :  { %v2586_v21 = vadd.f32 %v23855_v20, %v29691_v49  ;;  %v2580_v25 = vpop.f32.mrb[33].mxu0  ;;  %24013 = vmatmul.mubr.msk.f32.gmra.mrb[138].mxu0 %vm621_vm1, %v173_v1 }
 0x121   :  { %v29952_v3 = vmax.f32 %v5302_v15, %v5446_v16  ;;  %v2581_v5 = vadd.f32 %v29691_v49, %v2580_v25  ;;  %24015 = vmatprep.mubr.msk.f32.mxu0 %vm621_vm1, %v174_v13  ;;  %v177_v15 = vld [vmem:[%s38223_s0 + $0x478] sm:$0xff]  ;;  %v186_v13 = vld [vmem:[%s38223_s0 + $0x4c0] sm:$0xff] }
 0x123   :  { %38623 = vst [vmem:[#allocation6_spill] sm:$0xff] %v29952_v3  ;;  %v5447_v28 = vmax.f32 %v2581_v5, %v2586_v21  ;;  %v23858_v30 = vpop.f32.mrb[34].mxu0  ;;  %v188_v5 = vld [vmem:[%s38223_s0 + $0x4d0] sm:$0xff] }
 0x124   :  { %v2596_v32 = vadd.f32 %v23858_v30, %v29691_v49  ;;  %v2590_v34 = vpop.f32.mrb[35].mxu0  ;;  %24016 = vmatmul.mubr.msk.f32.gmra.mrb[140].mxu0 %vm621_vm1, %v175_v8 }
 0x125   :  { %v29967_v10 = vmax.f32 %v5303_v22, %v5447_v28  ;;  %v2591_v12 = vadd.f32 %v29691_v49, %v2590_v34  ;;  %24018 = vmatprep.mubr.msk.f32.mxu0 %vm621_vm1, %v176_v27  ;;  %v179_v22 = vld [vmem:[%s38223_s0 + $0x488] sm:$0xff] }
 0x127   :  { %38624 = vst [vmem:[#allocation7_spill] sm:$0xff] %v29967_v10  ;;  %v5448_v37 = vmax.f32 %v2591_v12, %v2596_v32  ;;  %v23861_v39 = vpop.f32.mrb[36].mxu0  ;;  %v190_v32 = vld [vmem:[%s38223_s0 + $0x4e0] sm:$0xff] }
 0x128   :  { %v2606_v41 = vadd.f32 %v23861_v39, %v29691_v49  ;;  %v2600_v44 = vpop.f32.mrb[37].mxu0  ;;  %24019 = vmatmul.mubr.msk.f32.gmra.mrb[142].mxu0 %vm621_vm1, %v177_v15 }
 0x129   :  { %v29982_v17 = vmax.f32 %v5304_v29, %v5448_v37  ;;  %v2601_v19 = vadd.f32 %v29691_v49, %v2600_v44  ;;  %24021 = vmatprep.mubr.msk.f32.mxu0 %vm621_vm1, %v178_v35  ;;  %v181_v29 = vld [vmem:[%s38223_s0 + $0x498] sm:$0xff]  ;;  %v191_v35 = vld [vmem:[%s38223_s0 + $0x4e8] sm:$0xff]  ;;  %v192_v37 = vld [vmem:[%s38223_s0 + $0x4f0] sm:$0xff] }
 0x12a   :  { %v193_v44 = vld [vmem:[%s38223_s0 + $0x4f8] sm:$0xff] }
 0x12b   :  { %38625 = vst [vmem:[#allocation8_spill] sm:$0xff] %v29982_v17  ;;  %v5449_v48 = vmax.f32 %v2601_v19, %v2606_v41  ;;  %v23864_v50 = vpop.f32.mrb[38].mxu0  ;;  %v194_v19 = vld [vmem:[%s38223_s0 + $0x500] sm:$0xff] }
 0x12c   :  { %v2616_v52 = vadd.f32 %v23864_v50, %v29691_v49  ;;  %v2610_v56 = vpop.f32.mrb[39].mxu0  ;;  %24022 = vmatmul.mubr.msk.f32.gmra.mrb[144].mxu0 %vm621_vm1, %v179_v22 }
 0x12d   :  { %v29997_v24 = vmax.f32 %v5305_v36, %v5449_v48  ;;  %v2611_v26 = vadd.f32 %v29691_v49, %v2610_v56  ;;  %24024 = vmatprep.mubr.msk.f32.mxu0 %vm621_vm1, %v180_v46  ;;  %v183_v36 = vld [vmem:[%s38223_s0 + $0x4a8] sm:$0xff] }
 0x12e   :  { %v195_v56 = vld [vmem:[%s38223_s0 + $0x508] sm:$0xff] }
 0x12f   :  { %38626 = vst [vmem:[#allocation9_spill] sm:$0xff] %v29997_v24  ;;  %v5450_v55 = vmax.f32 %v2611_v26, %v2616_v52  ;;  %v23867_v58 = vpop.f32.mrb[40].mxu0  ;;  %v196_v26 = vld [vmem:[%s38223_s0 + $0x510] sm:$0xff] }
 0x130   :  { %v2626_v61 = vadd.f32 %v23867_v58, %v29691_v49  ;;  %v2620_v0 = vpop.f32.mrb[41].mxu0  ;;  %24025 = vmatmul.mubr.msk.f32.gmra.mrb[146].mxu0 %vm621_vm1, %v181_v29 }
 0x131   :  { %v30012_v31 = vmax.f32 %v5306_v43, %v5450_v55  ;;  %v2621_v33 = vadd.f32 %v29691_v49, %v2620_v0  ;;  %24027 = vmatprep.mubr.msk.f32.mxu0 %vm621_vm1, %v182_v59  ;;  %v185_v43 = vld [vmem:[%s38223_s0 + $0x4b8] sm:$0xff] }
 0x132   :  { %v197_v0 = vld [vmem:[%s38223_s0 + $0x518] sm:$0xff] }
 0x133   :  { %38627 = vst [vmem:[#allocation10_spill] sm:$0xff] %v30012_v31  ;;  %v5451_v7 = vmax.f32 %v2621_v33, %v2626_v61  ;;  %v23870_v9 = vpop.f32.mrb[42].mxu0  ;;  %v198_v33 = vld [vmem:[%s38223_s0 + $0x520] sm:$0xff] }
 0x134   :  { %v2636_v62 = vadd.f32 %v23870_v9, %v29691_v49  ;;  %v2630_v1 = vpop.f32.mrb[43].mxu0  ;;  %24028 = vmatmul.mubr.msk.f32.gmra.mrb[148].mxu0 %vm621_vm1, %v183_v36  ;;  %v31402_v31 = vld [vmem:[%s38224_s2] ss:$0 sm:$0xff] }
 0x135   :  { %v30027_v38 = vmax.f32 %v5307_v51, %v5451_v7  ;;  %v2631_v40 = vadd.f32 %v29691_v49, %v2630_v1  ;;  %24030 = vmatprep.mubr.msk.f32.mxu0 %vm621_vm1, %v184_v4  ;;  %v187_v51 = vld [vmem:[%s38223_s0 + $0x4c8] sm:$0xff] }
 0x136   :  { %v199_v1 = vld [vmem:[%s38223_s0 + $0x528] sm:$0xff] }
 0x137   :  { %38628 = vst [vmem:[#allocation11_spill] sm:$0xff] %v30027_v38  ;;  %v5452_v16 = vmax.f32 %v2631_v40, %v2636_v62  ;;  %v23873_v20 = vpop.f32.mrb[44].mxu0  ;;  %v200_v40 = vld [vmem:[%s38223_s0 + $0x530] sm:$0xff] }
 0x138   :  { %v2646_v21 = vadd.f32 %v23873_v20, %v29691_v49  ;;  %v2640_v25 = vpop.f32.mrb[45].mxu0  ;;  %24031 = vmatmul.mubr.msk.f32.gmra.mrb[150].mxu0 %vm621_vm1, %v185_v43 }
 0x139   :  { %v30042_v45 = vmax.f32 %v5308_v63, %v5452_v16  ;;  %v2641_v47 = vadd.f32 %v29691_v49, %v2640_v25  ;;  %24033 = vmatprep.mubr.msk.f32.mxu0 %vm621_vm1, %v186_v13  ;;  %v189_v63 = vld [vmem:[%s38223_s0 + $0x4d8] sm:$0xff] }
 0x13a   :  { %v201_v25 = vld [vmem:[%s38223_s0 + $0x538] sm:$0xff] }
 0x13b   :  { %38629 = vst [vmem:[#allocation12_spill] sm:$0xff] %v30042_v45  ;;  %v5453_v8 = vmax.f32 %v2641_v47, %v2646_v21  ;;  %v23876_v27 = vpop.f32.mrb[46].mxu0  ;;  %v202_v47 = vld [vmem:[%s38223_s0 + $0x540] sm:$0xff] }
 0x13c   :  { %v2656_v28 = vadd.f32 %v23876_v27, %v29691_v49  ;;  %v2650_v30 = vpop.f32.mrb[47].mxu0  ;;  %24034 = vmatmul.mubr.msk.f32.gmra.mrb[152].mxu0 %vm621_vm1, %v187_v51 }
 0x13d   :  { %v30057_v54 = vmax.f32 %v5309_v11, %v5453_v8  ;;  %v2651_v57 = vadd.f32 %v29691_v49, %v2650_v30  ;;  %24036 = vmatprep.mubr.msk.f32.mxu0 %vm621_vm1, %v188_v5  ;;  %v203_v30 = vld [vmem:[%s38223_s0 + $0x548] sm:$0xff] }
 0x13f   :  { %38630 = vst [vmem:[#allocation13_spill] sm:$0xff] %v30057_v54  ;;  %v5454_v34 = vmax.f32 %v2651_v57, %v2656_v28  ;;  %v23879_v12 = vpop.f32.mrb[48].mxu0  ;;  %v204_v57 = vld [vmem:[%s38223_s0 + $0x550] sm:$0xff] }
 0x140   :  { %v30068_v15 = vadd.f32 %v23879_v12, %v29691_v49  ;;  %v2660_v2 = vpop.f32.mrb[49].mxu0  ;;  %24037 = vmatmul.mubr.msk.f32.gmra.mrb[154].mxu0 %vm621_vm1, %v189_v63 }
 0x141   :  { %v30074_v6 = vmax.f32 %v5310_v23, %v5454_v34  ;;  %v30077_v11 = vadd.f32 %v29691_v49, %v2660_v2  ;;  %24039 = vmatprep.mubr.msk.f32.mxu0 %vm621_vm1, %v190_v32 }
 0x143   :  { %38631 = vst [vmem:[#allocation14_spill] sm:$0xff] %v30074_v6  ;;  %v5311_v39 = vmax.f32 %v30077_v11, %v30068_v15  ;;  %v23882_v41 = vpop.f32.mrb[50].mxu0 }
 0x144   :  { %v30089_v14 = vadd.f32 %v23882_v41, %v29691_v49  ;;  %v2670_v18 = vpop.f32.mrb[51].mxu0  ;;  %24040 = vmatmul.mubr.msk.f32.gmra.mrb[156].mxu0 %vm621_vm1, %v191_v35  ;;  %v205_v35 = vld [vmem:[%s38223_s0 + $0x558] sm:$0xff] }
 0x145   :  { %v30093_v23 = vadd.f32 %v29691_v49, %v2670_v18  ;;  %24042 = vmatprep.mubr.msk.f32.mxu0 %vm621_vm1, %v192_v37  ;;  %v206_v37 = vld [vmem:[%s38223_s0 + $0x560] sm:$0xff] }
 0x147   :  { %v5312_v22 = vmax.f32 %v30093_v23, %v30089_v14  ;;  %v23885_v46 = vpop.f32.mrb[52].mxu0 }
 0x148   :  { %v30105_v48 = vadd.f32 %v23885_v46, %v29691_v49  ;;  %v2680_v50 = vpop.f32.mrb[53].mxu0  ;;  %24043 = vmatmul.mubr.msk.f32.gmra.mrb[158].mxu0 %vm621_vm1, %v193_v44 }
 0x149   :  { %v30109_v52 = vadd.f32 %v29691_v49, %v2680_v50  ;;  %24045 = vmatprep.mubr.msk.f32.mxu0 %vm621_vm1, %v194_v19  ;;  %v207_v50 = vld [vmem:[%s38223_s0 + $0x568] sm:$0xff] }
 0x14b   :  { %v5313_v29 = vmax.f32 %v30109_v52, %v30105_v48  ;;  %v23888_v59 = vpop.f32.mrb[54].mxu0 }
 0x14c   :  { %v30121_v55 = vadd.f32 %v23888_v59, %v29691_v49  ;;  %v2690_v58 = vpop.f32.mrb[55].mxu0  ;;  %24046 = vmatmul.mubr.msk.f32.gmra.mrb[160].mxu0 %vm621_vm1, %v195_v56  ;;  %v208_v56 = vld [vmem:[%s38223_s0 + $0x570] sm:$0xff] }
 0x14d   :  { %v30125_v61 = vadd.f32 %v29691_v49, %v2690_v58  ;;  %24048 = vmatprep.mubr.msk.f32.mxu0 %vm621_vm1, %v196_v26 }
 0x14f   :  { %v5314_v36 = vmax.f32 %v30125_v61, %v30121_v55  ;;  %v23891_v4 = vpop.f32.mrb[56].mxu0 }
 0x150   :  { %v30137_v7 = vadd.f32 %v23891_v4, %v29691_v49  ;;  %v2700_v9 = vpop.f32.mrb[57].mxu0  ;;  %24049 = vmatmul.mubr.msk.f32.gmra.mrb[162].mxu0 %vm621_vm1, %v197_v0  ;;  %v209_v4 = vld [vmem:[%s38223_s0 + $0x578] sm:$0xff] }
 0x151   :  { %v30141_v62 = vadd.f32 %v29691_v49, %v2700_v9  ;;  %24051 = vmatprep.mubr.msk.f32.mxu0 %vm621_vm1, %v198_v33  ;;  %v210_v9 = vld [vmem:[%s38223_s0 + $0x580] sm:$0xff] }
 0x153   :  { %v5315_v43 = vmax.f32 %v30141_v62, %v30137_v7  ;;  %v23894_v13 = vpop.f32.mrb[58].mxu0 }
 0x154   :  { %v30153_v16 = vadd.f32 %v23894_v13, %v29691_v49  ;;  %v2710_v20 = vpop.f32.mrb[59].mxu0  ;;  %24052 = vmatmul.mubr.msk.f32.gmra.mrb[164].mxu0 %vm621_vm1, %v199_v1 }
 0x155   :  { %v30157_v21 = vadd.f32 %v29691_v49, %v2710_v20  ;;  %24054 = vmatprep.mubr.msk.f32.mxu0 %vm621_vm1, %v200_v40 }
 0x157   :  { %v5316_v51 = vmax.f32 %v30157_v21, %v30153_v16  ;;  %v23897_v5 = vpop.f32.mrb[60].mxu0 }
 0x158   :  { %v30169_v8 = vadd.f32 %v23897_v5, %v29691_v49  ;;  %v2720_v27 = vpop.f32.mrb[61].mxu0  ;;  %24055 = vmatmul.mubr.msk.f32.gmra.mrb[166].mxu0 %vm621_vm1, %v201_v25  ;;  %v212_v5 = vld [vmem:[%s38223_s0 + $0x590] sm:$0xff] }
 0x159   :  { %v30173_v28 = vadd.f32 %v29691_v49, %v2720_v27  ;;  %24057 = vmatprep.mubr.msk.f32.mxu0 %vm621_vm1, %v202_v47  ;;  %v211_v47 = vld [vmem:[%s38223_s0 + $0x588] sm:$0xff] }
 0x15b   :  { %v5317_v63 = vmax.f32 %v30173_v28, %v30169_v8  ;;  %v23900_v32 = vpop.f32.mrb[62].mxu0 }
 0x15c   :  { %v30185_v34 = vadd.f32 %v23900_v32, %v29691_v49  ;;  %v2730_v12 = vpop.f32.mrb[63].mxu0  ;;  %24058 = vmatmul.mubr.msk.f32.gmra.mrb[168].mxu0 %vm621_vm1, %v203_v30 }
 0x15d   :  { %v30189_v2 = vadd.f32 %v29691_v49, %v2730_v12  ;;  %24060 = vmatprep.mubr.msk.f32.mxu0 %vm621_vm1, %v204_v57 }
 0x15f   :  { %v5318_v41 = vmax.f32 %v30189_v2, %v30185_v34  ;;  %v23903_v18 = vpop.f32.mrb[64].mxu0 }
 0x160   :  { %v30201_v44 = vadd.f32 %v23903_v18, %v29691_v49  ;;  %v2740_v19 = vpop.f32.mrb[65].mxu0  ;;  %24061 = vmatmul.mubr.msk.f32.gmra.mrb[170].mxu0 %vm621_vm1, %v205_v35  ;;  %v213_v35 = vld [vmem:[%s38223_s0 + $0x598] sm:$0xff] }
 0x161   :  { %v30205_v46 = vadd.f32 %v29691_v49, %v2740_v19  ;;  %24063 = vmatprep.mubr.msk.f32.mxu0 %vm621_vm1, %v206_v37  ;;  %v214_v37 = vld [vmem:[%s38223_s0 + $0x5a0] sm:$0xff] }
 0x163   :  { %v5319_v26 = vmax.f32 %v30205_v46, %v30201_v44  ;;  %v23906_v59 = vpop.f32.mrb[66].mxu0 }
 0x164   :  { %v30217_v58 = vadd.f32 %v23906_v59, %v29691_v49  ;;  %v2750_v0 = vpop.f32.mrb[67].mxu0  ;;  %24064 = vmatmul.mubr.msk.f32.gmra.mrb[172].mxu0 %vm621_vm1, %v207_v50 }
 0x165   :  { %v30221_v33 = vadd.f32 %v29691_v49, %v2750_v0  ;;  %24066 = vmatprep.mubr.msk.f32.mxu0 %vm621_vm1, %v208_v56  ;;  %v215_v0 = vld [vmem:[%s38223_s0 + $0x5a8] sm:$0xff] }
 0x167   :  { %v5320_v1 = vmax.f32 %v30221_v33, %v30217_v58  ;;  %v23909_v40 = vpop.f32.mrb[68].mxu0 }
 0x168   :  { %v30233_v13 = vadd.f32 %v23909_v40, %v29691_v49  ;;  %v2760_v20 = vpop.f32.mrb[69].mxu0  ;;  %24067 = vmatmul.mubr.msk.f32.gmra.mrb[174].mxu0 %vm621_vm1, %v209_v4  ;;  %v216_v4 = vld [vmem:[%s38223_s0 + $0x5b0] sm:$0xff] }
 0x169   :  { %v30237_v25 = vadd.f32 %v29691_v49, %v2760_v20  ;;  %24069 = vmatprep.mubr.msk.f32.mxu0 %vm621_vm1, %v210_v9 }
 0x16b   :  { %v5321_v27 = vmax.f32 %v30237_v25, %v30233_v13  ;;  %v23912_v30 = vpop.f32.mrb[70].mxu0 }
 0x16c   :  { %v30249_v57 = vadd.f32 %v23912_v30, %v29691_v49  ;;  %v2770_v32 = vpop.f32.mrb[71].mxu0  ;;  %24070 = vmatmul.mubr.msk.f32.gmra.mrb[176].mxu0 %vm621_vm1, %v211_v47 }
 0x16d   :  { %v30253_v12 = vadd.f32 %v29691_v49, %v2770_v32  ;;  %24072 = vmatprep.mubr.msk.f32.mxu0 %vm621_vm1, %v212_v5  ;;  %v217_v32 = vld [vmem:[%s38223_s0 + $0x5b8] sm:$0xff] }
 0x16f   :  { %v5322_v18 = vmax.f32 %v30253_v12, %v30249_v57  ;;  %v23915_v19 = vpop.f32.mrb[72].mxu0 }
 0x170   :  { %v2786_v50 = vadd.f32 %v23915_v19, %v29691_v49  ;;  %v2780_v56 = vpop.f32.mrb[73].mxu0  ;;  %24073 = vmatmul.mubr.msk.f32.gmra.mrb[178].mxu0 %vm621_vm1, %v213_v35  ;;  %v218_v35 = vld [vmem:[%s38223_s0 + $0x5c0] sm:$0xff] }
 0x171   :  { %v2781_v59 = vadd.f32 %v29691_v49, %v2780_v56  ;;  %24075 = vmatprep.mubr.msk.f32.mxu0 %vm621_vm1, %v214_v37 }
 0x173   :  { %v5455_v9 = vmax.f32 %v2781_v59, %v2786_v50  ;;  %v23918_v40 = vpop.f32.mrb[74].mxu0  ;;  %v220_v59 = vld [vmem:[%s38223_s0 + $0x5d0] sm:$0xff] }
 0x174   :  { %v2796_v20 = vadd.f32 %v23918_v40, %v29691_v49  ;;  %v2790_v47 = vpop.f32.mrb[75].mxu0  ;;  %24076 = vmatmul.mubr.msk.f32.gmra.mrb[180].mxu0 %vm621_vm1, %v215_v0 }
 0x175   :  { %v30279_v5 = vmax.f32 %v5311_v39, %v5455_v9  ;;  %v2791_v30 = vadd.f32 %v29691_v49, %v2790_v47  ;;  %24078 = vmatprep.mubr.msk.f32.mxu0 %vm621_vm1, %v216_v4  ;;  %v219_v39 = vld [vmem:[%s38223_s0 + $0x5c8] sm:$0xff] }
 0x177   :  { %38632 = vst [vmem:[#allocation15_spill] sm:$0xff] %v30279_v5  ;;  %v5456_v37 = vmax.f32 %v2791_v30, %v2796_v20  ;;  %v23921_v19 = vpop.f32.mrb[76].mxu0  ;;  %v222_v20 = vld [vmem:[%s38223_s0 + $0x5e0] sm:$0xff]  ;;  %v20209_v5 = vld [vmem:[%s38225_s3 + $0x78] sm:$0x3] }
 0x178   :  { %v2806_v50 = vadd.f32 %v23921_v19, %v29691_v49  ;;  %v2800_v56 = vpop.f32.mrb[77].mxu0  ;;  %24079 = vmatmul.mubr.msk.f32.gmra.mrb[182].mxu0 %vm621_vm1, %v217_v32 }
 0x179   :  { %v30294_v15 = vmax.f32 %v5312_v22, %v5456_v37  ;;  %v2801_v11 = vadd.f32 %v29691_v49, %v2800_v56  ;;  %24081 = vmatprep.mubr.msk.f32.mxu0 %vm621_vm1, %v218_v35  ;;  %v221_v22 = vld [vmem:[%s38223_s0 + $0x5d8] sm:$0xff]  ;;  %v224_v37 = vld [vmem:[%s38223_s0 + $0x5f0] sm:$0xff] }
 0x17b   :  { %38633 = vst [vmem:[#allocation16_spill] sm:$0xff] %v30294_v15  ;;  %v5457_v0 = vmax.f32 %v2801_v11, %v2806_v50  ;;  %v23924_v4 = vpop.f32.mrb[78].mxu0 }
 0x17c   :  { %v2816_v9 = vadd.f32 %v23924_v4, %v29691_v49  ;;  %v2810_v40 = vpop.f32.mrb[79].mxu0  ;;  %24082 = vmatmul.mubr.msk.f32.gmra.mrb[184].mxu0 %vm621_vm1, %v219_v39  ;;  %v226_v39 = vld [vmem:[%s38223_s0 + $0x600] sm:$0xff] }
 0x17d   :  { %v30309_v14 = vmax.f32 %v5313_v29, %v5457_v0  ;;  %v2811_v23 = vadd.f32 %v29691_v49, %v2810_v40  ;;  %24084 = vmatprep.mubr.msk.f32.mxu0 %vm621_vm1, %v220_v59  ;;  %v223_v29 = vld [vmem:[%s38223_s0 + $0x5e8] sm:$0xff]  ;;  %v228_v40 = vld [vmem:[%s38223_s0 + $0x610] sm:$0xff] }
 0x17f   :  { %38634 = vst [vmem:[#allocation17_spill] sm:$0xff] %v30309_v14  ;;  %v5458_v47 = vmax.f32 %v2811_v23, %v2816_v9  ;;  %v23927_v30 = vpop.f32.mrb[80].mxu0 }
 0x180   :  { %v2826_v32 = vadd.f32 %v23927_v30, %v29691_v49  ;;  %v2820_v35 = vpop.f32.mrb[81].mxu0  ;;  %24085 = vmatmul.mubr.msk.f32.gmra.mrb[186].mxu0 %vm621_vm1, %v221_v22  ;;  %v230_v30 = vld [vmem:[%s38223_s0 + $0x620] sm:$0xff] }
 0x181   :  { %v30324_v48 = vmax.f32 %v5314_v36, %v5458_v47  ;;  %v2821_v52 = vadd.f32 %v29691_v49, %v2820_v35  ;;  %24087 = vmatprep.mubr.msk.f32.mxu0 %vm621_vm1, %v222_v20  ;;  %v225_v36 = vld [vmem:[%s38223_s0 + $0x5f8] sm:$0xff] }
 0x183   :  { %v5459_v19 = vmax.f32 %v2821_v52, %v2826_v32  ;;  %v23930_v50 = vpop.f32.mrb[82].mxu0 }
 0x184   :  { %v2836_v56 = vadd.f32 %v23930_v50, %v29691_v49  ;;  %v2830_v11 = vpop.f32.mrb[83].mxu0  ;;  %24088 = vmatmul.mubr.msk.f32.gmra.mrb[188].mxu0 %vm621_vm1, %v223_v29 }
 0x185   :  { %v30339_v55 = vmax.f32 %v5315_v43, %v5459_v19  ;;  %v2831_v61 = vadd.f32 %v29691_v49, %v2830_v11  ;;  %24090 = vmatprep.mubr.msk.f32.mxu0 %vm621_vm1, %v224_v37  ;;  %v227_v43 = vld [vmem:[%s38223_s0 + $0x608] sm:$0xff]  ;;  %v232_v37 = vld [vmem:[%s38223_s0 + $0x630] sm:$0xff] }
 0x187   :  { %v5460_v59 = vmax.f32 %v2831_v61, %v2836_v56  ;;  %v23933_v0 = vpop.f32.mrb[84].mxu0  ;;  %v234_v61 = vld [vmem:[%s38223_s0 + $0x640] sm:$0xff] }
 0x188   :  { %v2846_v4 = vadd.f32 %v23933_v0, %v29691_v49  ;;  %v2840_v9 = vpop.f32.mrb[85].mxu0  ;;  %24091 = vmatmul.mubr.msk.f32.gmra.mrb[190].mxu0 %vm621_vm1, %v225_v36 }
 0x189   :  { %v30354_v7 = vmax.f32 %v5316_v51, %v5460_v59  ;;  %v2841_v62 = vadd.f32 %v29691_v49, %v2840_v9  ;;  %24093 = vmatprep.mubr.msk.f32.mxu0 %vm621_vm1, %v226_v39  ;;  %v229_v51 = vld [vmem:[%s38223_s0 + $0x618] sm:$0xff] }
 0x18b   :  { %v5461_v23 = vmax.f32 %v2841_v62, %v2846_v4  ;;  %v23936_v22 = vpop.f32.mrb[86].mxu0  ;;  %v236_v4 = vld [vmem:[%s38223_s0 + $0x650] sm:$0xff] }
 0x18c   :  { %v2856_v20 = vadd.f32 %v23936_v22, %v29691_v49  ;;  %v2850_v47 = vpop.f32.mrb[87].mxu0  ;;  %24094 = vmatmul.mubr.msk.f32.gmra.mrb[192].mxu0 %vm621_vm1, %v227_v43 }
 0x18d   :  { %v30369_v16 = vmax.f32 %v5317_v63, %v5461_v23  ;;  %v2851_v21 = vadd.f32 %v29691_v49, %v2850_v47  ;;  %24096 = vmatprep.mubr.msk.f32.mxu0 %vm621_vm1, %v228_v40  ;;  %v231_v63 = vld [vmem:[%s38223_s0 + $0x628] sm:$0xff]  ;;  %v238_v23 = vld [vmem:[%s38223_s0 + $0x660] sm:$0xff] }
 0x18f   :  { %v5462_v32 = vmax.f32 %v2851_v21, %v2856_v20  ;;  %v23939_v35 = vpop.f32.mrb[88].mxu0  ;;  %v239_v21 = vld [vmem:[%s38223_s0 + $0x668] sm:$0xff] }
 0x190   :  { %v2866_v52 = vadd.f32 %v23939_v35, %v29691_v49  ;;  %v2860_v29 = vpop.f32.mrb[89].mxu0  ;;  %24097 = vmatmul.mubr.msk.f32.gmra.mrb[194].mxu0 %vm621_vm1, %v229_v51  ;;  %v240_v51 = vld [vmem:[%s38223_s0 + $0x670] sm:$0xff]  ;;  %v241_v35 = vld [vmem:[%s38223_s0 + $0x678] sm:$0xff] }
 0x191   :  { %v30384_v8 = vmax.f32 %v5318_v41, %v5462_v32  ;;  %v2861_v28 = vadd.f32 %v29691_v49, %v2860_v29  ;;  %24099 = vmatprep.mubr.msk.f32.mxu0 %vm621_vm1, %v230_v30  ;;  %v233_v41 = vld [vmem:[%s38223_s0 + $0x638] sm:$0xff] }
 0x193   :  { %v5463_v19 = vmax.f32 %v2861_v28, %v2866_v52  ;;  %v23942_v50 = vpop.f32.mrb[90].mxu0  ;;  %v242_v52 = vld [vmem:[%s38223_s0 + $0x680] sm:$0xff] }
 0x194   :  { %v2876_v56 = vadd.f32 %v23942_v50, %v29691_v49  ;;  %v2870_v11 = vpop.f32.mrb[91].mxu0  ;;  %24100 = vmatmul.mubr.msk.f32.gmra.mrb[196].mxu0 %vm621_vm1, %v231_v63  ;;  %v243_v50 = vld [vmem:[%s38223_s0 + $0x688] sm:$0xff] }
 0x195   :  { %v30399_v34 = vmax.f32 %v5319_v26, %v5463_v19  ;;  %v2871_v2 = vadd.f32 %v29691_v49, %v2870_v11  ;;  %24102 = vmatprep.mubr.msk.f32.mxu0 %vm621_vm1, %v232_v37  ;;  %v235_v26 = vld [vmem:[%s38223_s0 + $0x648] sm:$0xff] }
 0x197   :  { %v5464_v36 = vmax.f32 %v2871_v2, %v2876_v56  ;;  %v23945_v39 = vpop.f32.mrb[92].mxu0  ;;  %v244_v56 = vld [vmem:[%s38223_s0 + $0x690] sm:$0xff] }
 0x198   :  { %v2886_v59 = vadd.f32 %v23945_v39, %v29691_v49  ;;  %v2880_v0 = vpop.f32.mrb[93].mxu0  ;;  %24103 = vmatmul.mubr.msk.f32.gmra.mrb[198].mxu0 %vm621_vm1, %v233_v41  ;;  %v245_v39 = vld [vmem:[%s38223_s0 + $0x698] sm:$0xff] }
 0x199   :  { %v30414_v44 = vmax.f32 %v5320_v1, %v5464_v36  ;;  %v2881_v46 = vadd.f32 %v29691_v49, %v2880_v0  ;;  %24105 = vmatprep.mubr.msk.f32.mxu0 %vm621_vm1, %v234_v61  ;;  %v237_v1 = vld [vmem:[%s38223_s0 + $0x658] sm:$0xff] }
 0x19b   :  { %v5465_v9 = vmax.f32 %v2881_v46, %v2886_v59  ;;  %v23948_v62 = vpop.f32.mrb[94].mxu0  ;;  %v246_v59 = vld [vmem:[%s38223_s0 + $0x6a0] sm:$0xff] }
 0x19c   :  { %v2896_v43 = vadd.f32 %v23948_v62, %v29691_v49  ;;  %v2890_v40 = vpop.f32.mrb[95].mxu0  ;;  %24106 = vmatmul.mubr.msk.f32.gmra.mrb[200].mxu0 %vm621_vm1, %v235_v26  ;;  %v247_v62 = vld [vmem:[%s38223_s0 + $0x6a8] sm:$0xff] }
 0x19d   :  { %v30429_v58 = vmax.f32 %v5321_v27, %v5465_v9  ;;  %v2891_v33 = vadd.f32 %v29691_v49, %v2890_v40  ;;  %24108 = vmatprep.mubr.msk.f32.mxu0 %vm621_vm1, %v236_v4 }
 0x19f   :  { %v5466_v22 = vmax.f32 %v2891_v33, %v2896_v43  ;;  %v23951_v20 = vpop.f32.mrb[96].mxu0  ;;  %v248_v43 = vld [vmem:[%s38223_s0 + $0x6b0] sm:$0xff] }
 0x1a0   :  { %v30440_v47 = vadd.f32 %v23951_v20, %v29691_v49  ;;  %v2900_v13 = vpop.f32.mrb[97].mxu0  ;;  %24109 = vmatmul.mubr.msk.f32.gmra.mrb[202].mxu0 %vm621_vm1, %v237_v1  ;;  %v249_v20 = vld [vmem:[%s38223_s0 + $0x6b8] sm:$0xff] }
 0x1a1   :  { %v30446_v25 = vmax.f32 %v5322_v18, %v5466_v22  ;;  %v30449_v27 = vadd.f32 %v29691_v49, %v2900_v13  ;;  %24111 = vmatprep.mubr.msk.f32.mxu0 %vm621_vm1, %v238_v23  ;;  %v250_v13 = vld [vmem:[%s38223_s0 + $0x6c0] sm:$0xff] }
 0x1a3   :  { %38635 = vst [vmem:[#allocation18_spill] sm:$0xff] %v30446_v25  ;;  %v5323_v30 = vmax.f32 %v30449_v27, %v30440_v47  ;;  %v23954_v32 = vpop.f32.mrb[98].mxu0  ;;  %v312_v25 = vld [vmem:[%s38223_s0 + $0x8b0] sm:$0xff] }
 0x1a4   :  { %v30461_v57 = vadd.f32 %v23954_v32, %v29691_v49  ;;  %v2910_v12 = vpop.f32.mrb[99].mxu0  ;;  %24112 = vmatmul.mubr.msk.f32.gmra.mrb[204].mxu0 %vm621_vm1, %v239_v21  ;;  %v30543_v32 = vld [vmem:[%s38224_s2] ss:$0 sm:$0xff] }
 0x1a5   :  { %v30465_v18 = vadd.f32 %v29691_v49, %v2910_v12  ;;  %24114 = vmatprep.mubr.msk.f32.mxu0 %vm621_vm1, %v240_v51 }
 0x1a7   :  { %v5324_v29 = vmax.f32 %v30465_v18, %v30461_v57  ;;  %v23957_v28 = vpop.f32.mrb[100].mxu0 }
 0x1a8   :  { %v30477_v63 = vadd.f32 %v23957_v28, %v29691_v49  ;;  %v2920_v37 = vpop.f32.mrb[101].mxu0  ;;  %24115 = vmatmul.mubr.msk.f32.gmra.mrb[206].mxu0 %vm621_vm1, %v241_v35  ;;  %v252_v28 = vld [vmem:[%s38223_s0 + $0x6d0] sm:$0xff] }
 0x1a9   :  { %v30481_v19 = vadd.f32 %v29691_v49, %v2920_v37  ;;  %24117 = vmatprep.mubr.msk.f32.mxu0 %vm621_vm1, %v242_v52  ;;  %v251_v52 = vld [vmem:[%s38223_s0 + $0x6c8] sm:$0xff]  ;;  %v264_v37 = vld [vmem:[%s38223_s0 + $0x730] sm:$0xff] }
 0x1ab   :  { %v5325_v11 = vmax.f32 %v30481_v19, %v30477_v63  ;;  %v23960_v2 = vpop.f32.mrb[102].mxu0 }
 0x1ac   :  { %v30493_v41 = vadd.f32 %v23960_v2, %v29691_v49  ;;  %v2930_v61 = vpop.f32.mrb[103].mxu0  ;;  %24118 = vmatmul.mubr.msk.f32.gmra.mrb[208].mxu0 %vm621_vm1, %v243_v50 }
 0x1ad   :  { %v30497_v36 = vadd.f32 %v29691_v49, %v2930_v61  ;;  %24120 = vmatprep.mubr.msk.f32.mxu0 %vm621_vm1, %v244_v56 }
 0x1af   :  { %v23963_v46 = vpop.f32.mrb[104].mxu0  ;;  %v38639_v63 = vmax.f32 %v30497_v36, %v30493_v41 }
 0x1b0   :  { %v30509_v26 = vadd.f32 %v23963_v46, %v29691_v49  ;;  %v2940_v4 = vpop.f32.mrb[105].mxu0  ;;  %24121 = vmatmul.mubr.msk.f32.gmra.mrb[210].mxu0 %vm621_vm1, %v245_v39  ;;  %v253_v39 = vld [vmem:[%s38223_s0 + $0x6d8] sm:$0xff] }
 0x1b1   :  { %v30513_v9 = vadd.f32 %v29691_v49, %v2940_v4  ;;  %24123 = vmatprep.mubr.msk.f32.mxu0 %vm621_vm1, %v246_v59  ;;  %v254_v59 = vld [vmem:[%s38223_s0 + $0x6e0] sm:$0xff] }
 0x1b3   :  { %v23966_v33 = vpop.f32.mrb[106].mxu0  ;;  %v38640_v41 = vmax.f32 %v30513_v9, %v30509_v26 }
 0x1b4   :  { %v30525_v1 = vadd.f32 %v23966_v33, %v29691_v49  ;;  %v2950_v23 = vpop.f32.mrb[107].mxu0  ;;  %24124 = vmatmul.mubr.msk.f32.gmra.mrb[212].mxu0 %vm621_vm1, %v247_v62 }
 0x1b5   :  { %v30529_v22 = vadd.f32 %v29691_v49, %v2950_v23  ;;  %24126 = vmatprep.mubr.msk.f32.mxu0 %vm621_vm1, %v248_v43  ;;  %v255_v23 = vld [vmem:[%s38223_s0 + $0x6e8] sm:$0xff] }
 0x1b7   :  { %v23969_v51 = vpop.f32.mrb[108].mxu0  ;;  %v38641_v26 = vmax.f32 %v30529_v22, %v30525_v1 }
 0x1b8   :  { %v30546_v49 = vadd.f32 %v30543_v32, %v23969_v51  ;;  %v2960_v12 = vpop.f32.mrb[109].mxu0  ;;  %24127 = vmatmul.mubr.msk.f32.gmra.mrb[214].mxu0 %vm621_vm1, %v249_v20  ;;  %v256_v20 = vld [vmem:[%s38223_s0 + $0x6f0] sm:$0xff] }
 0x1b9   :  { %v30550_v35 = vadd.f32 %v30543_v32, %v2960_v12  ;;  %24129 = vmatprep.mubr.msk.f32.mxu0 %vm621_vm1, %v250_v13 }
 0x1bb   :  { %v23972_v50 = vpop.f32.mrb[110].mxu0  ;;  %v38642_v1 = vmax.f32 %v30550_v35, %v30546_v49 }
 0x1bc   :  { %v30562_v56 = vadd.f32 %v30543_v32, %v23972_v50  ;;  %v2970_v2 = vpop.f32.mrb[111].mxu0  ;;  %24130 = vmatmul.mubr.msk.f32.gmra.mrb[216].mxu0 %vm621_vm1, %v251_v52  ;;  %v257_v50 = vld [vmem:[%s38223_s0 + $0x6f8] sm:$0xff] }
 0x1bd   :  { %v30566_v61 = vadd.f32 %v30543_v32, %v2970_v2  ;;  %24132 = vmatprep.mubr.msk.f32.mxu0 %vm621_vm1, %v252_v28  ;;  %v258_v2 = vld [vmem:[%s38223_s0 + $0x700] sm:$0xff] }
 0x1bf   :  { %v23975_v4 = vpop.f32.mrb[112].mxu0  ;;  %v38643_v49 = vmax.f32 %v30566_v61, %v30562_v56 }
 0x1c0   :  { %v30578_v62 = vadd.f32 %v30543_v32, %v23975_v4  ;;  %v2980_v43 = vpop.f32.mrb[113].mxu0  ;;  %24133 = vmatmul.mubr.msk.f32.gmra.mrb[218].mxu0 %vm621_vm1, %v253_v39 }
 0x1c1   :  { %v30582_v33 = vadd.f32 %v30543_v32, %v2980_v43  ;;  %24135 = vmatprep.mubr.msk.f32.mxu0 %vm621_vm1, %v254_v59 }
 0x1c3   :  { %v23978_v51 = vpop.f32.mrb[114].mxu0  ;;  %v38644_v56 = vmax.f32 %v30582_v33, %v30578_v62 }
 0x1c4   :  { %v30594_v12 = vadd.f32 %v30543_v32, %v23978_v51  ;;  %v2990_v52 = vpop.f32.mrb[115].mxu0  ;;  %24136 = vmatmul.mubr.msk.f32.gmra.mrb[220].mxu0 %vm621_vm1, %v255_v23  ;;  %v260_v51 = vld [vmem:[%s38223_s0 + $0x710] sm:$0xff] }
 0x1c5   :  { %v30598_v28 = vadd.f32 %v30543_v32, %v2990_v52  ;;  %24138 = vmatprep.mubr.msk.f32.mxu0 %vm621_vm1, %v256_v20  ;;  %v259_v20 = vld [vmem:[%s38223_s0 + $0x708] sm:$0xff]  ;;  %v262_v52 = vld [vmem:[%s38223_s0 + $0x720] sm:$0xff] }
 0x1c7   :  { %v23981_v59 = vpop.f32.mrb[116].mxu0  ;;  %v38645_v62 = vmax.f32 %v30598_v28, %v30594_v12 }
 0x1c8   :  { %v30610_v4 = vadd.f32 %v30543_v32, %v23981_v59  ;;  %v3000_v43 = vpop.f32.mrb[117].mxu0  ;;  %24139 = vmatmul.mubr.msk.f32.gmra.mrb[222].mxu0 %vm621_vm1, %v257_v50 }
 0x1c9   :  { %v30614_v23 = vadd.f32 %v30543_v32, %v3000_v43  ;;  %24141 = vmatprep.mubr.msk.f32.mxu0 %vm621_vm1, %v258_v2  ;;  %v261_v43 = vld [vmem:[%s38223_s0 + $0x718] sm:$0xff] }
 0x1cb   :  { %v23984_v59 = vpop.f32.mrb[118].mxu0  ;;  %v38646_v12 = vmax.f32 %v30614_v23, %v30610_v4 }
 0x1cc   :  { %v30626_v39 = vadd.f32 %v30543_v32, %v23984_v59  ;;  %v3010_v50 = vpop.f32.mrb[119].mxu0  ;;  %24142 = vmatmul.mubr.msk.f32.gmra.mrb[224].mxu0 %vm621_vm1, %v259_v20 }
 0x1cd   :  { %v30630_v2 = vadd.f32 %v30543_v32, %v3010_v50  ;;  %24144 = vmatprep.mubr.msk.f32.mxu0 %vm621_vm1, %v260_v51  ;;  %v263_v51 = vld [vmem:[%s38223_s0 + $0x728] sm:$0xff] }
 0x1cf   :  { %v23987_v13 = vpop.f32.mrb[120].mxu0  ;;  %v38647_v23 = vmax.f32 %v30630_v2, %v30626_v39 }
 0x1d0   :  { %v3026_v46 = vadd.f32 %v30543_v32, %v23987_v13  ;;  %v3020_v20 = vpop.f32.mrb[121].mxu0  ;;  %24145 = vmatmul.mubr.msk.f32.gmra.mrb[226].mxu0 %vm621_vm1, %v261_v43 }
 0x1d1   :  { %v3021_v50 = vadd.f32 %v30543_v32, %v3020_v20  ;;  %24147 = vmatprep.mubr.msk.f32.mxu0 %vm621_vm1, %v262_v52  ;;  %v265_v20 = vld [vmem:[%s38223_s0 + $0x738] sm:$0xff] }
 0x1d3   :  { %v5467_v21 = vmax.f32 %v3021_v50, %v3026_v46  ;;  %v23990_v59 = vpop.f32.mrb[122].mxu0  ;;  %v266_v46 = vld [vmem:[%s38223_s0 + $0x740] sm:$0xff] }
 0x1d4   :  { %v3036_v40 = vadd.f32 %v30543_v32, %v23990_v59  ;;  %v3030_v13 = vpop.f32.mrb[123].mxu0  ;;  %24148 = vmatmul.mubr.msk.f32.gmra.mrb[228].mxu0 %vm621_vm1, %v263_v51 }
 0x1d5   :  { %v30656_v43 = vmax.f32 %v5323_v30, %v5467_v21  ;;  %v3031_v52 = vadd.f32 %v30543_v32, %v3030_v13  ;;  %24150 = vmatprep.mubr.msk.f32.mxu0 %vm621_vm1, %v264_v37  ;;  %v267_v30 = vld [vmem:[%s38223_s0 + $0x748] sm:$0xff] }
 0x1d7   :  { %38636 = vst [vmem:[#allocation19_spill] sm:$0xff] %v30656_v43  ;;  %v5468_v59 = vmax.f32 %v3031_v52, %v3036_v40  ;;  %v23993_v50 = vpop.f32.mrb[124].mxu0  ;;  %v268_v40 = vld [vmem:[%s38223_s0 + $0x750] sm:$0xff]  ;;  %v313_v43 = vld [vmem:[%s38223_s0 + $0x8b8] sm:$0xff] }
 0x1d8   :  { %v3046_v51 = vadd.f32 %v30543_v32, %v23993_v50  ;;  %v3040_v0 = vpop.f32.mrb[125].mxu0  ;;  %24151 = vmatmul.mubr.msk.f32.gmra.mrb[230].mxu0 %vm621_vm1, %v265_v20 }
 0x1d9   :  { %v30671_v47 = vmax.f32 %v5324_v29, %v5468_v59  ;;  %v3041_v27 = vadd.f32 %v30543_v32, %v3040_v0  ;;  %24153 = vmatprep.mubr.msk.f32.mxu0 %vm621_vm1, %v266_v46  ;;  %v269_v29 = vld [vmem:[%s38223_s0 + $0x758] sm:$0xff]  ;;  %v270_v0 = vld [vmem:[%s38223_s0 + $0x760] sm:$0xff] }
 0x1db   :  { %38637 = vst [vmem:[#allocation20_spill] sm:$0xff] %v30671_v47  ;;  %v5469_v21 = vmax.f32 %v3041_v27, %v3046_v51  ;;  %v23996_v37 = vpop.f32.mrb[126].mxu0  ;;  %v271_v51 = vld [vmem:[%s38223_s0 + $0x768] sm:$0xff]  ;;  %v272_v27 = vld [vmem:[%s38223_s0 + $0x770] sm:$0xff] }
 0x1dc   :  { %v3056_v13 = vadd.f32 %v30543_v32, %v23996_v37  ;;  %v3050_v52 = vpop.f32.mrb[127].mxu0  ;;  %24154 = vmatmul.mubr.msk.f32.gmra.mrb[232].mxu0 %vm621_vm1, %v267_v30 }
 0x1dd   :  { %v30686_v57 = vmax.f32 %v5325_v11, %v5469_v21  ;;  %v3051_v18 = vadd.f32 %v30543_v32, %v3050_v52  ;;  %24156 = vmatprep.mubr.msk.f32.mxu0 %vm621_vm1, %v268_v40  ;;  %v273_v52 = vld [vmem:[%s38223_s0 + $0x778] sm:$0xff] }
 0x1df   :  { %38638 = vst [vmem:[#allocation21_spill] sm:$0xff] %v30686_v57  ;;  %v5470_v20 = vmax.f32 %v3051_v18, %v3056_v13  ;;  %v23999_v46 = vpop.f32.mrb[128].mxu0  ;;  %v274_v18 = vld [vmem:[%s38223_s0 + $0x780] sm:$0xff] }
 0x1e0   :  { %v3066_v59 = vadd.f32 %v30543_v32, %v23999_v46  ;;  %v3060_v50 = vpop.f32.mrb[129].mxu0  ;;  %24157 = vmatmul.mubr.msk.f32.gmra.mrb[234].mxu0 %vm621_vm1, %v269_v29 }
 0x1e1   :  { %v30701_v19 = vmax.f32 %v38639_v63, %v5470_v20  ;;  %v3061_v11 = vadd.f32 %v30543_v32, %v3060_v50  ;;  %24159 = vmatprep.mubr.msk.f32.mxu0 %vm621_vm1, %v270_v0  ;;  %v275_v50 = vld [vmem:[%s38223_s0 + $0x788] sm:$0xff]  ;;  %v276_v63 = vld [vmem:[%s38223_s0 + $0x790] sm:$0xff] }
 0x1e3   :  { %v5471_v30 = vmax.f32 %v3061_v11, %v3066_v59  ;;  %v24002_v40 = vpop.f32.mrb[130].mxu0 }
 0x1e4   :  { %v3076_v21 = vadd.f32 %v30543_v32, %v24002_v40  ;;  %v3070_v37 = vpop.f32.mrb[131].mxu0  ;;  %24160 = vmatmul.mubr.msk.f32.gmra.mrb[236].mxu0 %vm621_vm1, %v271_v51 }
 0x1e5   :  { %v30716_v36 = vmax.f32 %v38640_v41, %v5471_v30  ;;  %v3071_v13 = vadd.f32 %v30543_v32, %v3070_v37  ;;  %24162 = vmatprep.mubr.msk.f32.mxu0 %vm621_vm1, %v272_v27  ;;  %v278_v37 = vld [vmem:[%s38223_s0 + $0x7a0] sm:$0xff] }
 0x1e7   :  { %v5472_v29 = vmax.f32 %v3071_v13, %v3076_v21  ;;  %v24005_v0 = vpop.f32.mrb[132].mxu0  ;;  %v277_v21 = vld [vmem:[%s38223_s0 + $0x798] sm:$0xff] }
 0x1e8   :  { %v3086_v20 = vadd.f32 %v30543_v32, %v24005_v0  ;;  %v3080_v46 = vpop.f32.mrb[133].mxu0  ;;  %24163 = vmatmul.mubr.msk.f32.gmra.mrb[238].mxu0 %vm621_vm1, %v273_v52  ;;  %v279_v0 = vld [vmem:[%s38223_s0 + $0x7a8] sm:$0xff] }
 0x1e9   :  { %v30731_v9 = vmax.f32 %v38641_v26, %v5472_v29  ;;  %v3081_v59 = vadd.f32 %v30543_v32, %v3080_v46  ;;  %24165 = vmatprep.mubr.msk.f32.mxu0 %vm621_vm1, %v274_v18 }
 0x1eb   :  { %v5473_v11 = vmax.f32 %v3081_v59, %v3086_v20  ;;  %v24008_v51 = vpop.f32.mrb[134].mxu0  ;;  %v280_v20 = vld [vmem:[%s38223_s0 + $0x7b0] sm:$0xff] }
 0x1ec   :  { %v3096_v27 = vadd.f32 %v30543_v32, %v24008_v51  ;;  %v3090_v30 = vpop.f32.mrb[135].mxu0  ;;  %24166 = vmatmul.mubr.msk.f32.gmra.mrb[240].mxu0 %vm621_vm1, %v275_v50  ;;  %v282_v51 = vld [vmem:[%s38223_s0 + $0x7c0] sm:$0xff] }
 0x1ed   :  { %v30746_v22 = vmax.f32 %v38642_v1, %v5473_v11  ;;  %v3091_v40 = vadd.f32 %v30543_v32, %v3090_v30  ;;  %24168 = vmatprep.mubr.msk.f32.mxu0 %vm621_vm1, %v276_v63  ;;  %v281_v11 = vld [vmem:[%s38223_s0 + $0x7b8] sm:$0xff] }
 0x1ef   :  { %v5474_v41 = vmax.f32 %v3091_v40, %v3096_v27  ;;  %v24011_v13 = vpop.f32.mrb[136].mxu0 }
 0x1f0   :  { %v3106_v52 = vadd.f32 %v30543_v32, %v24011_v13  ;;  %v3100_v18 = vpop.f32.mrb[137].mxu0  ;;  %24169 = vmatmul.mubr.msk.f32.gmra.mrb[242].mxu0 %vm621_vm1, %v277_v21 }
 0x1f1   :  { %v30761_v35 = vmax.f32 %v38643_v49, %v5474_v41  ;;  %v3101_v29 = vadd.f32 %v30543_v32, %v3100_v18  ;;  %24171 = vmatprep.mubr.msk.f32.mxu0 %vm621_vm1, %v278_v37  ;;  %v283_v37 = vld [vmem:[%s38223_s0 + $0x7c8] sm:$0xff]  ;;  %v284_v41 = vld [vmem:[%s38223_s0 + $0x7d0] sm:$0xff] }
 0x1f3   :  { %v5475_v46 = vmax.f32 %v3101_v29, %v3106_v52  ;;  %v24014_v26 = vpop.f32.mrb[138].mxu0 }
 0x1f4   :  { %v3116_v59 = vadd.f32 %v30543_v32, %v24014_v26  ;;  %v3110_v50 = vpop.f32.mrb[139].mxu0  ;;  %24172 = vmatmul.mubr.msk.f32.gmra.mrb[244].mxu0 %vm621_vm1, %v279_v0  ;;  %v285_v0 = vld [vmem:[%s38223_s0 + $0x7d8] sm:$0xff] }
 0x1f5   :  { %v30776_v61 = vmax.f32 %v38644_v56, %v5475_v46  ;;  %v3111_v63 = vadd.f32 %v30543_v32, %v3110_v50  ;;  %24174 = vmatprep.mubr.msk.f32.mxu0 %vm621_vm1, %v280_v20  ;;  %v286_v20 = vld [vmem:[%s38223_s0 + $0x7e0] sm:$0xff] }
 0x1f7   :  { %v5476_v27 = vmax.f32 %v3111_v63, %v3116_v59  ;;  %v24017_v30 = vpop.f32.mrb[140].mxu0  ;;  %v287_v63 = vld [vmem:[%s38223_s0 + $0x7e8] sm:$0xff] }
 0x1f8   :  { %v3126_v1 = vadd.f32 %v30543_v32, %v24017_v30  ;;  %v3120_v40 = vpop.f32.mrb[141].mxu0  ;;  %24175 = vmatmul.mubr.msk.f32.gmra.mrb[246].mxu0 %vm621_vm1, %v281_v11  ;;  %v288_v11 = vld [vmem:[%s38223_s0 + $0x7f0] sm:$0xff] }
 0x1f9   :  { %v30791_v33 = vmax.f32 %v38645_v62, %v5476_v27  ;;  %v3121_v21 = vadd.f32 %v30543_v32, %v3120_v40  ;;  %24177 = vmatprep.mubr.msk.f32.mxu0 %vm621_vm1, %v282_v51  ;;  %v290_v40 = vld [vmem:[%s38223_s0 + $0x800] sm:$0xff] }
 0x1fb   :  { %v5477_v13 = vmax.f32 %v3121_v21, %v3126_v1  ;;  %v24020_v52 = vpop.f32.mrb[142].mxu0  ;;  %v289_v1 = vld [vmem:[%s38223_s0 + $0x7f8] sm:$0xff] }
 0x1fc   :  { %v3136_v18 = vadd.f32 %v30543_v32, %v24020_v52  ;;  %v3130_v49 = vpop.f32.mrb[143].mxu0  ;;  %24178 = vmatmul.mubr.msk.f32.gmra.mrb[248].mxu0 %vm621_vm1, %v283_v37  ;;  %v291_v52 = vld [vmem:[%s38223_s0 + $0x808] sm:$0xff] }
 0x1fd   :  { %v30806_v28 = vmax.f32 %v38646_v12, %v5477_v13  ;;  %v3131_v29 = vadd.f32 %v30543_v32, %v3130_v49  ;;  %24180 = vmatprep.mubr.msk.f32.mxu0 %vm621_vm1, %v284_v41 }
 0x1ff   :  { %v5478_v46 = vmax.f32 %v3131_v29, %v3136_v18  ;;  %v24023_v26 = vpop.f32.mrb[144].mxu0  ;;  %v292_v18 = vld [vmem:[%s38223_s0 + $0x810] sm:$0xff] }
 0x200   :  { %v30817_v59 = vadd.f32 %v30543_v32, %v24023_v26  ;;  %v3140_v4 = vpop.f32.mrb[145].mxu0  ;;  %24181 = vmatmul.mubr.msk.f32.gmra.mrb[250].mxu0 %vm621_vm1, %v285_v0  ;;  %v294_v26 = vld [vmem:[%s38223_s0 + $0x820] sm:$0xff] }
 0x201   :  { %v30823_v50 = vmax.f32 %v38647_v23, %v5478_v46  ;;  %v30826_v56 = vadd.f32 %v30543_v32, %v3140_v4  ;;  %24183 = vmatprep.mubr.msk.f32.mxu0 %vm621_vm1, %v286_v20  ;;  %v293_v46 = vld [vmem:[%s38223_s0 + $0x818] sm:$0xff] }
 0x203   :  { %38648 = vst [vmem:[#allocation22_spill] sm:$0xff] %v30823_v50  ;;  %v24026_v27 = vpop.f32.mrb[146].mxu0 }
 0x204   :  { %v30838_v39 = vadd.f32 %v30543_v32, %v24026_v27  ;;  %v3150_v2 = vpop.f32.mrb[147].mxu0  ;;  %24184 = vmatmul.mubr.msk.f32.gmra.mrb[252].mxu0 %vm621_vm1, %v287_v63 }
 0x205   :  { %v30842_v30 = vadd.f32 %v30543_v32, %v3150_v2  ;;  %24186 = vmatprep.mubr.msk.f32.mxu0 %vm621_vm1, %v288_v11  ;;  %v295_v2 = vld [vmem:[%s38223_s0 + $0x828] sm:$0xff] }
 0x207   :  { %v24029_v21 = vpop.f32.mrb[148].mxu0 }
 0x208   :  { %v30854_v37 = vadd.f32 %v30543_v32, %v24029_v21  ;;  %v3160_v41 = vpop.f32.mrb[149].mxu0  ;;  %24187 = vmatmul.mubr.msk.f32.gmra.mrb[254].mxu0 %vm621_vm1, %v289_v1  ;;  %v296_v1 = vld [vmem:[%s38223_s0 + $0x830] sm:$0xff] }
 0x209   :  { %v30858_v13 = vadd.f32 %v30543_v32, %v3160_v41  ;;  %24189 = vmatprep.mubr.msk.f32.mxu0 %vm621_vm1, %v290_v40 }
 0x20b   :  { %v24032_v12 = vpop.f32.mrb[150].mxu0 }
 0x20c   :  { %v30870_v29 = vadd.f32 %v30543_v32, %v24032_v12  ;;  %v3170_v0 = vpop.f32.mrb[151].mxu0  ;;  %24190 = vmatmul.mubr.msk.f32.gmra.mrb[0].mxu0 %vm621_vm1, %v291_v52  ;;  %v297_v12 = vld [vmem:[%s38223_s0 + $0x838] sm:$0xff] }
 0x20d   :  { %v30874_v20 = vadd.f32 %v30543_v32, %v3170_v0  ;;  %24192 = vmatprep.mubr.msk.f32.mxu0 %vm621_vm1, %v292_v18  ;;  %v298_v0 = vld [vmem:[%s38223_s0 + $0x840] sm:$0xff] }
 0x20f   :  { %v24035_v23 = vpop.f32.mrb[152].mxu0 }
 0x210   :  { %v30886_v63 = vadd.f32 %v30543_v32, %v24035_v23  ;;  %v3180_v11 = vpop.f32.mrb[153].mxu0  ;;  %24193 = vmatmul.mubr.msk.f32.gmra.mrb[2].mxu0 %vm621_vm1, %v293_v46 }
 0x211   :  { %v30890_v27 = vadd.f32 %v30543_v32, %v3180_v11  ;;  %24195 = vmatprep.mubr.msk.f32.mxu0 %vm621_vm1, %v294_v26 }
 0x213   :  { %v24038_v21 = vpop.f32.mrb[154].mxu0 }
 0x214   :  { %v30902_v41 = vadd.f32 %v30543_v32, %v24038_v21  ;;  %v3190_v52 = vpop.f32.mrb[155].mxu0  ;;  %24196 = vmatmul.mubr.msk.f32.gmra.mrb[4].mxu0 %vm621_vm1, %v295_v2  ;;  %v300_v21 = vld [vmem:[%s38223_s0 + $0x850] sm:$0xff] }
 0x215   :  { %v30906_v18 = vadd.f32 %v30543_v32, %v3190_v52  ;;  %24198 = vmatprep.mubr.msk.f32.mxu0 %vm621_vm1, %v296_v1  ;;  %v299_v1 = vld [vmem:[%s38223_s0 + $0x848] sm:$0xff]  ;;  %v302_v52 = vld [vmem:[%s38223_s0 + $0x860] sm:$0xff] }
 0x217   :  { %v24041_v26 = vpop.f32.mrb[156].mxu0 }
 0x218   :  { %v30918_v23 = vadd.f32 %v30543_v32, %v24041_v26  ;;  %v3200_v11 = vpop.f32.mrb[157].mxu0  ;;  %24199 = vmatmul.mubr.msk.f32.gmra.mrb[6].mxu0 %vm621_vm1, %v297_v12 }
 0x219   :  { %v30922_v2 = vadd.f32 %v30543_v32, %v3200_v11  ;;  %24201 = vmatprep.mubr.msk.f32.mxu0 %vm621_vm1, %v298_v0  ;;  %v301_v11 = vld [vmem:[%s38223_s0 + $0x858] sm:$0xff] }
 0x21b   :  { %v24044_v26 = vpop.f32.mrb[158].mxu0 }
 0x21c   :  { %v30934_v46 = vadd.f32 %v30543_v32, %v24044_v26  ;;  %v3210_v12 = vpop.f32.mrb[159].mxu0  ;;  %24202 = vmatmul.mubr.msk.f32.gmra.mrb[8].mxu0 %vm621_vm1, %v299_v1  ;;  %v304_v26 = vld [vmem:[%s38223_s0 + $0x870] sm:$0xff] }
 0x21d   :  { %v30938_v0 = vadd.f32 %v30543_v32, %v3210_v12  ;;  %24204 = vmatprep.mubr.msk.f32.mxu0 %vm621_vm1, %v300_v21  ;;  %v303_v12 = vld [vmem:[%s38223_s0 + $0x868] sm:$0xff] }
 0x21f   :  { %v24047_v40 = vpop.f32.mrb[160].mxu0 }
 0x220   :  { %v30950_v4 = vadd.f32 %v30543_v32, %v24047_v40  ;;  %v3220_v1 = vpop.f32.mrb[161].mxu0  ;;  %24205 = vmatmul.mubr.msk.f32.gmra.mrb[10].mxu0 %vm621_vm1, %v301_v11  ;;  %v306_v40 = vld [vmem:[%s38223_s0 + $0x880] sm:$0xff] }
 0x221   :  { %v30954_v21 = vadd.f32 %v30543_v32, %v3220_v1  ;;  %24207 = vmatprep.mubr.msk.f32.mxu0 %vm621_vm1, %v302_v52  ;;  %v305_v1 = vld [vmem:[%s38223_s0 + $0x878] sm:$0xff] }
 0x223   :  { %v24050_v49 = vpop.f32.mrb[162].mxu0 }
 0x224   :  { %v30966_v62 = vadd.f32 %v30543_v32, %v24050_v49  ;;  %v3230_v11 = vpop.f32.mrb[163].mxu0  ;;  %24208 = vmatmul.mubr.msk.f32.gmra.mrb[12].mxu0 %vm621_vm1, %v303_v12  ;;  %v308_v49 = vld [vmem:[%s38223_s0 + $0x890] sm:$0xff] }
 0x225   :  { %v30970_v52 = vadd.f32 %v30543_v32, %v3230_v11  ;;  %24210 = vmatprep.mubr.msk.f32.mxu0 %vm621_vm1, %v304_v26  ;;  %v307_v11 = vld [vmem:[%s38223_s0 + $0x888] sm:$0xff] }
 0x227   :  { %v24053_v51 = vpop.f32.mrb[164].mxu0 }
 0x228   :  { %v30982_v6 = vadd.f32 %v30543_v32, %v24053_v51  ;;  %v3240_v12 = vpop.f32.mrb[165].mxu0  ;;  %24211 = vmatmul.mubr.msk.f32.gmra.mrb[14].mxu0 %vm621_vm1, %v305_v1  ;;  %v310_v51 = vld [vmem:[%s38223_s0 + $0x8a0] sm:$0xff] }
 0x229   :  { %v30986_v26 = vadd.f32 %v30543_v32, %v3240_v12  ;;  %24213 = vmatprep.mubr.msk.f32.mxu0 %vm621_vm1, %v306_v40  ;;  %v309_v12 = vld [vmem:[%s38223_s0 + $0x898] sm:$0xff] }
 0x22b   :  { %v24056_v54 = vpop.f32.mrb[166].mxu0 }
 0x22c   :  { %v30998_v45 = vadd.f32 %v30543_v32, %v24056_v54  ;;  %v3250_v1 = vpop.f32.mrb[167].mxu0  ;;  %24214 = vmatmul.mubr.msk.f32.gmra.mrb[16].mxu0 %vm621_vm1, %v307_v11 }
 0x22d   :  { %v31002_v40 = vadd.f32 %v30543_v32, %v3250_v1  ;;  %24216 = vmatprep.mubr.msk.f32.mxu0 %vm621_vm1, %v308_v49  ;;  %v311_v49 = vld [vmem:[%s38223_s0 + $0x8a8] sm:$0xff] }
 0x22f   :  { %v24059_v38 = vpop.f32.mrb[168].mxu0 }
 0x230   :  { %v3266_v50 = vadd.f32 %v30543_v32, %v24059_v38  ;;  %v3260_v11 = vpop.f32.mrb[169].mxu0  ;;  %24217 = vmatmul.mubr.msk.f32.gmra.mrb[18].mxu0 %vm621_vm1, %v309_v12  ;;  %v38649_v12 = vmax.f32 %v30826_v56, %v30817_v59  ;;  %v315_v56 = vld [vmem:[%s38223_s0 + $0x8c8] sm:$0xff] }
 0x231   :  { %v3261_v1 = vadd.f32 %v30543_v32, %v3260_v11  ;;  %24219 = vmatprep.mubr.msk.f32.mxu0 %vm621_vm1, %v310_v51 }
 0x233   :  { %v5479_v57 = vmax.f32 %v3261_v1, %v3266_v50  ;;  %v24062_v54 = vpop.f32.mrb[170].mxu0  ;;  %v314_v50 = vld [vmem:[%s38223_s0 + $0x8c0] sm:$0xff] }
 0x234   :  { %v3276_v47 = vadd.f32 %v30543_v32, %v24062_v54  ;;  %v3270_v38 = vpop.f32.mrb[171].mxu0  ;;  %24220 = vmatmul.mubr.msk.f32.gmra.mrb[20].mxu0 %vm621_vm1, %v311_v49 }
 0x235   :  { %v31028_v11 = vmax.f32 %v38649_v12, %v5479_v57  ;;  %v3271_v51 = vadd.f32 %v30543_v32, %v3270_v38  ;;  %24222 = vmatprep.mubr.msk.f32.mxu0 %vm621_vm1, %v312_v25  ;;  %v38651_v57 = vmax.f32 %v30842_v30, %v30838_v39 }
 0x237   :  { %38650 = vst [vmem:[#allocation23_spill] sm:$0xff] %v31028_v11  ;;  %v5480_v54 = vmax.f32 %v3271_v51, %v3276_v47  ;;  %v24065_v1 = vpop.f32.mrb[172].mxu0  ;;  %v316_v47 = vld [vmem:[%s38223_s0 + $0x8d0] sm:$0xff] }
 0x238   :  { %v3286_v49 = vadd.f32 %v30543_v32, %v24065_v1  ;;  %v3280_v14 = vpop.f32.mrb[173].mxu0  ;;  %24223 = vmatmul.mubr.msk.f32.gmra.mrb[22].mxu0 %vm621_vm1, %v313_v43 }
 0x239   :  { %v31043_v59 = vmax.f32 %v38651_v57, %v5480_v54  ;;  %v3281_v25 = vadd.f32 %v30543_v32, %v3280_v14  ;;  %24225 = vmatprep.mubr.msk.f32.mxu0 %vm621_vm1, %v314_v50  ;;  %v38653_v14 = vmax.f32 %v30858_v13, %v30854_v37  ;;  %v317_v50 = vld [vmem:[%s38223_s0 + $0x8d8] sm:$0xff]  ;;  %v318_v54 = vld [vmem:[%s38223_s0 + $0x8e0] sm:$0xff]  ;;  %v38655_v37 = vmax.f32 %v30874_v20, %v30870_v29 }
 0x23a   :  { %v38656_v29 = vmax.f32 %v30890_v27, %v30886_v63  ;;  %v38657_v63 = vmax.f32 %v30906_v18, %v30902_v41  ;;  %v38658_v41 = vmax.f32 %v30922_v2, %v30918_v23  ;;  %v38659_v23 = vmax.f32 %v30938_v0, %v30934_v46 }
 0x23b   :  { %38652 = vst [vmem:[#allocation24_spill] sm:$0xff] %v31043_v59  ;;  %v5481_v38 = vmax.f32 %v3281_v25, %v3286_v49  ;;  %v24068_v12 = vpop.f32.mrb[174].mxu0  ;;  %v38660_v46 = vmax.f32 %v30954_v21, %v30950_v4  ;;  %v38661_v4 = vmax.f32 %v30970_v52, %v30966_v62  ;;  %v38662_v62 = vmax.f32 %v30986_v26, %v30982_v6 }
 0x23c   :  { %v3296_v43 = vadd.f32 %v30543_v32, %v24068_v12  ;;  %v3290_v51 = vpop.f32.mrb[175].mxu0  ;;  %24226 = vmatmul.mubr.msk.f32.gmra.mrb[24].mxu0 %vm621_vm1, %v315_v56  ;;  %v38663_v26 = vmax.f32 %v31002_v40, %v30998_v45 }
 0x23d   :  { %v31058_v39 = vmax.f32 %v38653_v14, %v5481_v38  ;;  %v3291_v30 = vadd.f32 %v30543_v32, %v3290_v51  ;;  %24228 = vmatprep.mubr.msk.f32.mxu0 %vm621_vm1, %v316_v47  ;;  %v319_v47 = vld [vmem:[%s38223_s0 + $0x8e8] sm:$0xff]  ;;  %v320_v38 = vld [vmem:[%s38223_s0 + $0x8f0] sm:$0xff] }
 0x23f   :  { %38654 = vst [vmem:[#allocation25_spill] sm:$0xff] %v31058_v39  ;;  %v5482_v1 = vmax.f32 %v3291_v30, %v3296_v43  ;;  %v24071_v49 = vpop.f32.mrb[176].mxu0 }
 0x240   :  { %v3306_v57 = vadd.f32 %v30543_v32, %v24071_v49  ;;  %v3300_v25 = vpop.f32.mrb[177].mxu0  ;;  %24229 = vmatmul.mubr.msk.f32.gmra.mrb[26].mxu0 %vm621_vm1, %v317_v50  ;;  %v321_v50 = vld [vmem:[%s38223_s0 + $0x8f8] sm:$0xff] }
 0x241   :  { %v31073_v13 = vmax.f32 %v38655_v37, %v5482_v1  ;;  %v3301_v56 = vadd.f32 %v30543_v32, %v3300_v25  ;;  %24231 = vmatprep.mubr.msk.f32.mxu0 %vm621_vm1, %v318_v54  ;;  %v322_v54 = vld [vmem:[%s38223_s0 + $0x900] sm:$0xff] }
 0x243   :  { %v5483_v12 = vmax.f32 %v3301_v56, %v3306_v57  ;;  %v24074_v43 = vpop.f32.mrb[178].mxu0  ;;  %v323_v56 = vld [vmem:[%s38223_s0 + $0x908] sm:$0xff] }
 0x244   :  { %v3316_v51 = vadd.f32 %v30543_v32, %v24074_v43  ;;  %v3310_v14 = vpop.f32.mrb[179].mxu0  ;;  %24232 = vmatmul.mubr.msk.f32.gmra.mrb[28].mxu0 %vm621_vm1, %v319_v47  ;;  %v324_v47 = vld [vmem:[%s38223_s0 + $0x910] sm:$0xff] }
 0x245   :  { %v31088_v20 = vmax.f32 %v38656_v29, %v5483_v12  ;;  %v3311_v30 = vadd.f32 %v30543_v32, %v3310_v14  ;;  %24234 = vmatprep.mubr.msk.f32.mxu0 %vm621_vm1, %v320_v38  ;;  %v325_v29 = vld [vmem:[%s38223_s0 + $0x918] sm:$0xff] }
 0x247   :  { %v5484_v1 = vmax.f32 %v3311_v30, %v3316_v51  ;;  %v24077_v49 = vpop.f32.mrb[180].mxu0  ;;  %v326_v30 = vld [vmem:[%s38223_s0 + $0x920] sm:$0xff] }
 0x248   :  { %v3326_v57 = vadd.f32 %v30543_v32, %v24077_v49  ;;  %v3320_v25 = vpop.f32.mrb[181].mxu0  ;;  %24235 = vmatmul.mubr.msk.f32.gmra.mrb[30].mxu0 %vm621_vm1, %v321_v50 }
 0x249   :  { %v31103_v27 = vmax.f32 %v38657_v63, %v5484_v1  ;;  %v3321_v37 = vadd.f32 %v30543_v32, %v3320_v25  ;;  %24237 = vmatprep.mubr.msk.f32.mxu0 %vm621_vm1, %v322_v54  ;;  %v327_v25 = vld [vmem:[%s38223_s0 + $0x928] sm:$0xff]  ;;  %v328_v63 = vld [vmem:[%s38223_s0 + $0x930] sm:$0xff] }
 0x24b   :  { %v5485_v38 = vmax.f32 %v3321_v37, %v3326_v57  ;;  %v24080_v12 = vpop.f32.mrb[182].mxu0 }
 0x24c   :  { %v3336_v43 = vadd.f32 %v30543_v32, %v24080_v12  ;;  %v3330_v51 = vpop.f32.mrb[183].mxu0  ;;  %24238 = vmatmul.mubr.msk.f32.gmra.mrb[32].mxu0 %vm621_vm1, %v323_v56 }
 0x24d   :  { %v31118_v18 = vmax.f32 %v38658_v41, %v5485_v38  ;;  %v3331_v14 = vadd.f32 %v30543_v32, %v3330_v51  ;;  %24240 = vmatprep.mubr.msk.f32.mxu0 %vm621_vm1, %v324_v47  ;;  %v330_v51 = vld [vmem:[%s38223_s0 + $0x940] sm:$0xff] }
 0x24f   :  { %v5486_v50 = vmax.f32 %v3331_v14, %v3336_v43  ;;  %v24083_v54 = vpop.f32.mrb[184].mxu0  ;;  %v329_v43 = vld [vmem:[%s38223_s0 + $0x938] sm:$0xff] }
 0x250   :  { %v3346_v1 = vadd.f32 %v30543_v32, %v24083_v54  ;;  %v3340_v49 = vpop.f32.mrb[185].mxu0  ;;  %24241 = vmatmul.mubr.msk.f32.gmra.mrb[34].mxu0 %vm621_vm1, %v325_v29  ;;  %v331_v54 = vld [vmem:[%s38223_s0 + $0x948] sm:$0xff] }
 0x251   :  { %v31133_v2 = vmax.f32 %v38659_v23, %v5486_v50  ;;  %v3341_v57 = vadd.f32 %v30543_v32, %v3340_v49  ;;  %24243 = vmatprep.mubr.msk.f32.mxu0 %vm621_vm1, %v326_v30 }
 0x253   :  { %v5487_v37 = vmax.f32 %v3341_v57, %v3346_v1  ;;  %v24086_v56 = vpop.f32.mrb[186].mxu0  ;;  %v332_v1 = vld [vmem:[%s38223_s0 + $0x950] sm:$0xff] }
 0x254   :  { %v3356_v47 = vadd.f32 %v30543_v32, %v24086_v56  ;;  %v3350_v38 = vpop.f32.mrb[187].mxu0  ;;  %24244 = vmatmul.mubr.msk.f32.gmra.mrb[36].mxu0 %vm621_vm1, %v327_v25  ;;  %v334_v56 = vld [vmem:[%s38223_s0 + $0x960] sm:$0xff] }
 0x255   :  { %v31148_v0 = vmax.f32 %v38660_v46, %v5487_v37  ;;  %v3351_v12 = vadd.f32 %v30543_v32, %v3350_v38  ;;  %24246 = vmatprep.mubr.msk.f32.mxu0 %vm621_vm1, %v328_v63  ;;  %v333_v37 = vld [vmem:[%s38223_s0 + $0x958] sm:$0xff] }
 0x257   :  { %v5488_v41 = vmax.f32 %v3351_v12, %v3356_v47  ;;  %v24089_v14 = vpop.f32.mrb[188].mxu0 }
 0x258   :  { %v3366_v29 = vadd.f32 %v30543_v32, %v24089_v14  ;;  %v3360_v30 = vpop.f32.mrb[189].mxu0  ;;  %24247 = vmatmul.mubr.msk.f32.gmra.mrb[38].mxu0 %vm621_vm1, %v329_v43 }
 0x259   :  { %v31163_v21 = vmax.f32 %v38661_v4, %v5488_v41  ;;  %v3361_v50 = vadd.f32 %v30543_v32, %v3360_v30  ;;  %24249 = vmatprep.mubr.msk.f32.mxu0 %vm621_vm1, %v330_v51  ;;  %v335_v51 = vld [vmem:[%s38223_s0 + $0x968] sm:$0xff]  ;;  %v336_v41 = vld [vmem:[%s38223_s0 + $0x970] sm:$0xff]  ;;  %v337_v4 = vld [vmem:[%s38223_s0 + $0x978] sm:$0xff] }
 0x25b   :  { %v5489_v49 = vmax.f32 %v3361_v50, %v3366_v29  ;;  %v24092_v23 = vpop.f32.mrb[190].mxu0  ;;  %v338_v50 = vld [vmem:[%s38223_s0 + $0x980] sm:$0xff] }
 0x25c   :  { %v3376_v57 = vadd.f32 %v30543_v32, %v24092_v23  ;;  %v3370_v25 = vpop.f32.mrb[191].mxu0  ;;  %24250 = vmatmul.mubr.msk.f32.gmra.mrb[40].mxu0 %vm621_vm1, %v331_v54 }
 0x25d   :  { %v31178_v52 = vmax.f32 %v38662_v62, %v5489_v49  ;;  %v3371_v63 = vadd.f32 %v30543_v32, %v3370_v25  ;;  %24252 = vmatprep.mubr.msk.f32.mxu0 %vm621_vm1, %v332_v1  ;;  %v339_v25 = vld [vmem:[%s38223_s0 + $0x988] sm:$0xff]  ;;  %v340_v62 = vld [vmem:[%s38223_s0 + $0x990] sm:$0xff] }
 0x25f   :  { %v5490_v47 = vmax.f32 %v3371_v63, %v3376_v57  ;;  %v24095_v38 = vpop.f32.mrb[192].mxu0 }
 0x260   :  { %v31189_v46 = vadd.f32 %v30543_v32, %v24095_v38  ;;  %v3380_v6 = vpop.f32.mrb[193].mxu0  ;;  %24253 = vmatmul.mubr.msk.f32.gmra.mrb[42].mxu0 %vm621_vm1, %v333_v37 }
 0x261   :  { %v31195_v12 = vmax.f32 %v38663_v26, %v5490_v47  ;;  %v31198_v43 = vadd.f32 %v30543_v32, %v3380_v6  ;;  %24255 = vmatprep.mubr.msk.f32.mxu0 %vm621_vm1, %v334_v56  ;;  %v341_v6 = vld [vmem:[%s38223_s0 + $0x998] sm:$0xff]  ;;  %v342_v26 = vld [vmem:[%s38223_s0 + $0x9a0] sm:$0xff] }
 0x263   :  { %38664 = vst [vmem:[#allocation26_spill] sm:$0xff] %v31195_v12  ;;  %v24098_v29 = vpop.f32.mrb[194].mxu0 }
 0x264   :  { %v31210_v45 = vadd.f32 %v30543_v32, %v24098_v29  ;;  %v3390_v40 = vpop.f32.mrb[195].mxu0  ;;  %24256 = vmatmul.mubr.msk.f32.gmra.mrb[44].mxu0 %vm621_vm1, %v335_v51 }
 0x265   :  { %v31214_v30 = vadd.f32 %v30543_v32, %v3390_v40  ;;  %24258 = vmatprep.mubr.msk.f32.mxu0 %vm621_vm1, %v336_v41 }
 0x267   :  { %v24101_v1 = vpop.f32.mrb[196].mxu0 }
 0x268   :  { %v31226_v49 = vadd.f32 %v30543_v32, %v24101_v1  ;;  %v3400_v23 = vpop.f32.mrb[197].mxu0  ;;  %24259 = vmatmul.mubr.msk.f32.gmra.mrb[46].mxu0 %vm621_vm1, %v337_v4  ;;  %v344_v1 = vld [vmem:[%s38223_s0 + $0x9b0] sm:$0xff] }
 0x269   :  { %v31230_v57 = vadd.f32 %v30543_v32, %v3400_v23  ;;  %24261 = vmatprep.mubr.msk.f32.mxu0 %vm621_vm1, %v338_v50  ;;  %v343_v50 = vld [vmem:[%s38223_s0 + $0x9a8] sm:$0xff] }
 0x26b   :  { %v24104_v37 = vpop.f32.mrb[198].mxu0 }
 0x26c   :  { %v31242_v56 = vadd.f32 %v30543_v32, %v24104_v37  ;;  %v3410_v47 = vpop.f32.mrb[199].mxu0  ;;  %24262 = vmatmul.mubr.msk.f32.gmra.mrb[48].mxu0 %vm621_vm1, %v339_v25 }
 0x26d   :  { %v31246_v38 = vadd.f32 %v30543_v32, %v3410_v47  ;;  %24264 = vmatprep.mubr.msk.f32.mxu0 %vm621_vm1, %v340_v62 }
 0x26f   :  { %v24107_v41 = vpop.f32.mrb[200].mxu0 }
 0x270   :  { %v31258_v29 = vadd.f32 %v30543_v32, %v24107_v41  ;;  %v3420_v40 = vpop.f32.mrb[201].mxu0  ;;  %24265 = vmatmul.mubr.msk.f32.gmra.mrb[50].mxu0 %vm621_vm1, %v341_v6  ;;  %v345_v6 = vld [vmem:[%s38223_s0 + $0x9b8] sm:$0xff]  ;;  %v348_v41 = vld [vmem:[%s38223_s0 + $0x9d0] sm:$0xff] }
 0x271   :  { %v31262_v4 = vadd.f32 %v30543_v32, %v3420_v40  ;;  %24267 = vmatprep.mubr.msk.f32.mxu0 %vm621_vm1, %v342_v26  ;;  %v346_v26 = vld [vmem:[%s38223_s0 + $0x9c0] sm:$0xff] }
 0x273   :  { %v24110_v25 = vpop.f32.mrb[202].mxu0 }
 0x274   :  { %v31274_v62 = vadd.f32 %v30543_v32, %v24110_v25  ;;  %v3430_v37 = vpop.f32.mrb[203].mxu0  ;;  %24268 = vmatmul.mubr.msk.f32.gmra.mrb[52].mxu0 %vm621_vm1, %v343_v50 }
 0x275   :  { %v31278_v47 = vadd.f32 %v30543_v32, %v3430_v37  ;;  %24270 = vmatprep.mubr.msk.f32.mxu0 %vm621_vm1, %v344_v1  ;;  %v347_v37 = vld [vmem:[%s38223_s0 + $0x9c8] sm:$0xff] }
 0x277   :  { %v24113_v40 = vpop.f32.mrb[204].mxu0 }
 0x278   :  { %v31290_v25 = vadd.f32 %v30543_v32, %v24113_v40  ;;  %v3440_v50 = vpop.f32.mrb[205].mxu0  ;;  %24271 = vmatmul.mubr.msk.f32.gmra.mrb[54].mxu0 %vm621_vm1, %v345_v6  ;;  %v350_v40 = vld [vmem:[%s38223_s0 + $0x9e0] sm:$0xff] }
 0x279   :  { %v31294_v1 = vadd.f32 %v30543_v32, %v3440_v50  ;;  %24273 = vmatprep.mubr.msk.f32.mxu0 %vm621_vm1, %v346_v26  ;;  %v349_v50 = vld [vmem:[%s38223_s0 + $0x9d8] sm:$0xff] }
 0x27b   :  { %v24116_v23 = vpop.f32.mrb[206].mxu0 }
 0x27c   :  { %v31306_v51 = vadd.f32 %v30543_v32, %v24116_v23  ;;  %v3450_v6 = vpop.f32.mrb[207].mxu0  ;;  %24274 = vmatmul.mubr.msk.f32.gmra.mrb[56].mxu0 %vm621_vm1, %v347_v37  ;;  %v352_v23 = vld [vmem:[%s38223_s0 + $0x9f0] sm:$0xff] }
 0x27d   :  { %v31310_v26 = vadd.f32 %v30543_v32, %v3450_v6  ;;  %24276 = vmatprep.mubr.msk.f32.mxu0 %vm621_vm1, %v348_v41  ;;  %v351_v6 = vld [vmem:[%s38223_s0 + $0x9e8] sm:$0xff] }
 0x27f   :  { %v24119_v63 = vpop.f32.mrb[208].mxu0 }
 0x280   :  { %v31322_v54 = vadd.f32 %v30543_v32, %v24119_v63  ;;  %v3460_v37 = vpop.f32.mrb[209].mxu0  ;;  %24277 = vmatmul.mubr.msk.f32.gmra.mrb[58].mxu0 %vm621_vm1, %v349_v50  ;;  %v354_v63 = vld [vmem:[%s38223_s0 + $0xa00] sm:$0xff] }
 0x281   :  { %v31326_v41 = vadd.f32 %v30543_v32, %v3460_v37  ;;  %24279 = vmatprep.mubr.msk.f32.mxu0 %vm621_vm1, %v350_v40  ;;  %v353_v37 = vld [vmem:[%s38223_s0 + $0x9f8] sm:$0xff] }
 0x283   :  { %v24122_v14 = vpop.f32.mrb[210].mxu0 }
 0x284   :  { %v31338_v12 = vadd.f32 %v30543_v32, %v24122_v14  ;;  %v3470_v50 = vpop.f32.mrb[211].mxu0  ;;  %24280 = vmatmul.mubr.msk.f32.gmra.mrb[60].mxu0 %vm621_vm1, %v351_v6  ;;  %v356_v14 = vld [vmem:[%s38223_s0 + $0xa10] sm:$0xff] }
 0x285   :  { %v31342_v40 = vadd.f32 %v30543_v32, %v3470_v50  ;;  %24282 = vmatprep.mubr.msk.f32.mxu0 %vm621_vm1, %v352_v23  ;;  %v355_v50 = vld [vmem:[%s38223_s0 + $0xa08] sm:$0xff] }
 0x287   :  { %v24125_v39 = vpop.f32.mrb[212].mxu0 }
 0x288   :  { %v31354_v59 = vadd.f32 %v30543_v32, %v24125_v39  ;;  %v3480_v6 = vpop.f32.mrb[213].mxu0  ;;  %24283 = vmatmul.mubr.msk.f32.gmra.mrb[62].mxu0 %vm621_vm1, %v353_v37  ;;  %v357_v39 = vld [vmem:[%s38223_s0 + $0xa18] sm:$0xff] }
 0x289   :  { %v31358_v23 = vadd.f32 %v30543_v32, %v3480_v6  ;;  %24285 = vmatprep.mubr.msk.f32.mxu0 %vm621_vm1, %v354_v63  ;;  %v38665_v63 = vmov 0 }
 0x28a   :  { %v38666_v63 = vsel %vm31375_vm5, 4294967295, %v38665_v63 }
 0x28b   :  { %v24128_v11 = vpop.f32.mrb[214].mxu0  ;;  %38667 = vst [vmem:[#allocation27_spill] sm:$0xff] %v38666_v63 }
 0x28c   :  { %v31370_v37 = vadd.f32 %v30543_v32, %v24128_v11  ;;  %v3490_v6 = vpop.f32.mrb[215].mxu0  ;;  %24286 = vmatmul.mubr.msk.f32.gmra.mrb[64].mxu0 %vm621_vm1, %v355_v50  ;;  %v358_v11 = vld [vmem:[%s38223_s0 + $0xa20] sm:$0xff]  ;;  %v20208_v50 = vld [vmem:[%s38225_s3 + $0x70] sm:$0xff] }
 0x28d   :  { %v31380_v15 = vadd.f32 %v30543_v32, %v3490_v6  ;;  %24288 = vmatprep.mubr.msk.f32.mxu0 %vm621_vm1, %v356_v14  ;;  %v31397_v6 = vpack.c.bf16 %v20209_v5, %v20208_v50  ;;  %v359_v32 = vld [vmem:[%s38223_s0 + $0xa28] sm:$0xff]  ;;  %v360_v5 = vld [vmem:[%s38223_s0 + $0xa30] sm:$0xff] }
 0x28f   :  { %v24131_v14 = vpop.f32.mrb[216].mxu0  ;;  %38668 = vst [vmem:[#allocation28_spill] sm:$0xff] %v31397_v6  ;;  %27547 = vmatprep.subr.msk.bf16.mxu1 %vm31375_vm5, %v31397_v6 }
 0x290   :  { %v3506_v24 = vadd.f32 %v31402_v31, %v24131_v14  ;;  %v3500_v17 = vpop.f32.mrb[217].mxu0  ;;  %24289 = vmatmul.mubr.msk.f32.gmra.mrb[66].mxu0 %vm621_vm1, %v357_v39  ;;  %27548 = vmatpush3.bf16.msk.msra.mxu1 %vm31375_vm5, %v31397_v6  ;;  %v38669_v14 = vmax.f32 %v31198_v43, %v31189_v46  ;;  %v361_v6 = vld [vmem:[%s38223_s0 + $0xa38] sm:$0xff]  ;;  %v38671_v46 = vmax.f32 %v31214_v30, %v31210_v45 }
 0x291   :  { %v3501_v10 = vadd.f32 %v31402_v31, %v3500_v17  ;;  %24291 = vmatprep.mubr.msk.f32.mxu0 %vm621_vm1, %v358_v11 }
 0x293   :  { %v5491_v39 = vmax.f32 %v3501_v10, %v3506_v24  ;;  %v24134_v17 = vpop.f32.mrb[218].mxu0  ;;  %v362_v10 = vld [vmem:[%s38223_s0 + $0xa40] sm:$0xff] }
 0x294   :  { %v3516_v11 = vadd.f32 %v31402_v31, %v24134_v17  ;;  %v3510_v50 = vpop.f32.mrb[219].mxu0  ;;  %24292 = vmatmul.mubr.msk.f32.gmra.mrb[68].mxu0 %vm621_vm1, %v359_v32 }
 0x295   :  { %v31425_v3 = vmax.f32 %v38669_v14, %v5491_v39  ;;  %v3511_v60 = vadd.f32 %v31402_v31, %v3510_v50  ;;  %24294 = vmatprep.mubr.msk.f32.mxu0 %vm621_vm1, %v360_v5  ;;  %v363_v39 = vld [vmem:[%s38223_s0 + $0xa48] sm:$0xff] }
 0x297   :  { %38670 = vst [vmem:[#allocation29_spill] sm:$0xff] %v31425_v3  ;;  %v5492_v24 = vmax.f32 %v3511_v60, %v3516_v11  ;;  %v24137_v17 = vpop.f32.mrb[220].mxu0  ;;  %v364_v60 = vld [vmem:[%s38223_s0 + $0xa50] sm:$0xff] }
 0x298   :  { %v3526_v32 = vadd.f32 %v31402_v31, %v24137_v17  ;;  %v3520_v53 = vpop.f32.mrb[221].mxu0  ;;  %24295 = vmatmul.mubr.msk.f32.gmra.mrb[70].mxu0 %vm621_vm1, %v361_v6 }
 0x299   :  { %v31440_v43 = vmax.f32 %v38671_v46, %v5492_v24  ;;  %v3521_v5 = vadd.f32 %v31402_v31, %v3520_v53  ;;  %24297 = vmatprep.mubr.msk.f32.mxu0 %vm621_vm1, %v362_v10  ;;  %v38673_v53 = vmax.f32 %v31230_v57, %v31226_v49  ;;  %v365_v10 = vld [vmem:[%s38223_s0 + $0xa58] sm:$0xff]  ;;  %v366_v24 = vld [vmem:[%s38223_s0 + $0xa60] sm:$0xff]  ;;  %v38675_v49 = vmax.f32 %v31246_v38, %v31242_v56 }
 0x29a   :  { %v38677_v56 = vmax.f32 %v31262_v4, %v31258_v29  ;;  %v38679_v29 = vmax.f32 %v31278_v47, %v31274_v62  ;;  %v38681_v62 = vmax.f32 %v31294_v1, %v31290_v25  ;;  %v38683_v25 = vmax.f32 %v31310_v26, %v31306_v51 }
 0x29b   :  { %38672 = vst [vmem:[#allocation30_spill] sm:$0xff] %v31440_v43  ;;  %v5493_v11 = vmax.f32 %v3521_v5, %v3526_v32  ;;  %v24140_v50 = vpop.f32.mrb[222].mxu0  ;;  %v38685_v51 = vmax.f32 %v31326_v41, %v31322_v54  ;;  %v38687_v54 = vmax.f32 %v31342_v40, %v31338_v12  ;;  %v38689_v12 = vmax.f32 %v31358_v23, %v31354_v59 }
 0x29c   :  { %v3536_v6 = vadd.f32 %v31402_v31, %v24140_v50  ;;  %v3530_v14 = vpop.f32.mrb[223].mxu0  ;;  %24298 = vmatmul.mubr.msk.f32.gmra.mrb[72].mxu0 %vm621_vm1, %v363_v39  ;;  %v38691_v23 = vmax.f32 %v31380_v15, %v31370_v37 }
 0x29d   :  { %v31455_v45 = vmax.f32 %v38673_v53, %v5493_v11  ;;  %v3531_v30 = vadd.f32 %v31402_v31, %v3530_v14  ;;  %24300 = vmatprep.mubr.msk.f32.mxu0 %vm621_vm1, %v364_v60  ;;  %v367_v60 = vld [vmem:[%s38223_s0 + $0xa68] sm:$0xff]  ;;  %v368_v11 = vld [vmem:[%s38223_s0 + $0xa70] sm:$0xff] }
 0x29f   :  { %38674 = vst [vmem:[#allocation31_spill] sm:$0xff] %v31455_v45  ;;  %v5494_v17 = vmax.f32 %v3531_v30, %v3536_v6  ;;  %v24143_v32 = vpop.f32.mrb[224].mxu0 }
 0x2a0   :  { %v3546_v46 = vadd.f32 %v31402_v31, %v24143_v32  ;;  %v3540_v5 = vpop.f32.mrb[225].mxu0  ;;  %24301 = vmatmul.mubr.msk.f32.gmra.mrb[74].mxu0 %vm621_vm1, %v365_v10  ;;  %v369_v10 = vld [vmem:[%s38223_s0 + $0xa78] sm:$0xff] }
 0x2a1   :  { %v31470_v57 = vmax.f32 %v38675_v49, %v5494_v17  ;;  %v3541_v39 = vadd.f32 %v31402_v31, %v3540_v5  ;;  %24303 = vmatprep.mubr.msk.f32.mxu0 %vm621_vm1, %v366_v24  ;;  %v370_v24 = vld [vmem:[%s38223_s0 + $0xa80] sm:$0xff] }
 0x2a3   :  { %38676 = vst [vmem:[#allocation32_spill] sm:$0xff] %v31470_v57  ;;  %v5495_v50 = vmax.f32 %v3541_v39, %v3546_v46  ;;  %v24146_v6 = vpop.f32.mrb[226].mxu0  ;;  %v371_v39 = vld [vmem:[%s38223_s0 + $0xa88] sm:$0xff] }
 0x2a4   :  { %v3556_v14 = vadd.f32 %v31402_v31, %v24146_v6  ;;  %v3550_v53 = vpop.f32.mrb[227].mxu0  ;;  %24304 = vmatmul.mubr.msk.f32.gmra.mrb[76].mxu0 %vm621_vm1, %v367_v60  ;;  %v372_v60 = vld [vmem:[%s38223_s0 + $0xa90] sm:$0xff] }
 0x2a5   :  { %v31485_v38 = vmax.f32 %v38677_v56, %v5495_v50  ;;  %v3551_v30 = vadd.f32 %v31402_v31, %v3550_v53  ;;  %24306 = vmatprep.mubr.msk.f32.mxu0 %vm621_vm1, %v368_v11  ;;  %v373_v56 = vld [vmem:[%s38223_s0 + $0xa98] sm:$0xff] }
 0x2a7   :  { %38678 = vst [vmem:[#allocation33_spill] sm:$0xff] %v31485_v38  ;;  %v5496_v17 = vmax.f32 %v3551_v30, %v3556_v14  ;;  %v24149_v32 = vpop.f32.mrb[228].mxu0  ;;  %v374_v30 = vld [vmem:[%s38223_s0 + $0xaa0] sm:$0xff] }
 0x2a8   :  { %v3566_v46 = vadd.f32 %v31402_v31, %v24149_v32  ;;  %v3560_v5 = vpop.f32.mrb[229].mxu0  ;;  %24307 = vmatmul.mubr.msk.f32.gmra.mrb[78].mxu0 %vm621_vm1, %v369_v10 }
 0x2a9   :  { %v31500_v4 = vmax.f32 %v38679_v29, %v5496_v17  ;;  %v3561_v49 = vadd.f32 %v31402_v31, %v3560_v5  ;;  %24309 = vmatprep.mubr.msk.f32.mxu0 %vm621_vm1, %v370_v24  ;;  %v375_v5 = vld [vmem:[%s38223_s0 + $0xaa8] sm:$0xff]  ;;  %v376_v29 = vld [vmem:[%s38223_s0 + $0xab0] sm:$0xff] }
 0x2ab   :  { %38680 = vst [vmem:[#allocation34_spill] sm:$0xff] %v31500_v4  ;;  %v5497_v11 = vmax.f32 %v3561_v49, %v3566_v46  ;;  %v24152_v50 = vpop.f32.mrb[230].mxu0  ;;  %v409_v4 = vld [vmem:[%s38223_s0 + $0xbb8] sm:$0xff] }
 0x2ac   :  { %v3576_v6 = vadd.f32 %v31402_v31, %v24152_v50  ;;  %v3570_v14 = vpop.f32.mrb[231].mxu0  ;;  %24310 = vmatmul.mubr.msk.f32.gmra.mrb[80].mxu0 %vm621_vm1, %v371_v39 }
 0x2ad   :  { %v31515_v47 = vmax.f32 %v38681_v62, %v5497_v11  ;;  %v3571_v53 = vadd.f32 %v31402_v31, %v3570_v14  ;;  %24312 = vmatprep.mubr.msk.f32.mxu0 %vm621_vm1, %v372_v60  ;;  %v378_v14 = vld [vmem:[%s38223_s0 + $0xac0] sm:$0xff] }
 0x2af   :  { %38682 = vst [vmem:[#allocation35_spill] sm:$0xff] %v31515_v47  ;;  %v5498_v10 = vmax.f32 %v3571_v53, %v3576_v6  ;;  %v24155_v24 = vpop.f32.mrb[232].mxu0  ;;  %v377_v6 = vld [vmem:[%s38223_s0 + $0xab8] sm:$0xff] }
 0x2b0   :  { %v3586_v17 = vadd.f32 %v31402_v31, %v24155_v24  ;;  %v3580_v32 = vpop.f32.mrb[233].mxu0  ;;  %24313 = vmatmul.mubr.msk.f32.gmra.mrb[82].mxu0 %vm621_vm1, %v373_v56  ;;  %v379_v24 = vld [vmem:[%s38223_s0 + $0xac8] sm:$0xff] }
 0x2b1   :  { %v31530_v1 = vmax.f32 %v38683_v25, %v5498_v10  ;;  %v3581_v46 = vadd.f32 %v31402_v31, %v3580_v32  ;;  %24315 = vmatprep.mubr.msk.f32.mxu0 %vm621_vm1, %v374_v30 }
 0x2b3   :  { %38684 = vst [vmem:[#allocation36_spill] sm:$0xff] %v31530_v1  ;;  %v5499_v49 = vmax.f32 %v3581_v46, %v3586_v17  ;;  %v24158_v39 = vpop.f32.mrb[234].mxu0  ;;  %v380_v17 = vld [vmem:[%s38223_s0 + $0xad0] sm:$0xff] }
 0x2b4   :  { %v3596_v60 = vadd.f32 %v31402_v31, %v24158_v39  ;;  %v3590_v11 = vpop.f32.mrb[235].mxu0  ;;  %24316 = vmatmul.mubr.msk.f32.gmra.mrb[84].mxu0 %vm621_vm1, %v375_v5  ;;  %v382_v39 = vld [vmem:[%s38223_s0 + $0xae0] sm:$0xff] }
 0x2b5   :  { %v31545_v26 = vmax.f32 %v38685_v51, %v5499_v49  ;;  %v3591_v50 = vadd.f32 %v31402_v31, %v3590_v11  ;;  %24318 = vmatprep.mubr.msk.f32.mxu0 %vm621_vm1, %v376_v29  ;;  %v381_v49 = vld [vmem:[%s38223_s0 + $0xad8] sm:$0xff] }
 0x2b7   :  { %38686 = vst [vmem:[#allocation37_spill] sm:$0xff] %v31545_v26  ;;  %v5500_v62 = vmax.f32 %v3591_v50, %v3596_v60  ;;  %v24161_v53 = vpop.f32.mrb[236].mxu0  ;;  %v408_v26 = vld [vmem:[%s38223_s0 + $0xbb0] sm:$0xff] }
 0x2b8   :  { %v3606_v56 = vadd.f32 %v31402_v31, %v24161_v53  ;;  %v3600_v30 = vpop.f32.mrb[237].mxu0  ;;  %24319 = vmatmul.mubr.msk.f32.gmra.mrb[86].mxu0 %vm621_vm1, %v377_v6 }
 0x2b9   :  { %v31560_v41 = vmax.f32 %v38687_v54, %v5500_v62  ;;  %v3601_v10 = vadd.f32 %v31402_v31, %v3600_v30  ;;  %24321 = vmatprep.mubr.msk.f32.mxu0 %vm621_vm1, %v378_v14  ;;  %v383_v14 = vld [vmem:[%s38223_s0 + $0xae8] sm:$0xff]  ;;  %v384_v62 = vld [vmem:[%s38223_s0 + $0xaf0] sm:$0xff]  ;;  %v385_v54 = vld [vmem:[%s38223_s0 + $0xaf8] sm:$0xff] }
 0x2bb   :  { %38688 = vst [vmem:[#allocation38_spill] sm:$0xff] %v31560_v41  ;;  %v5501_v32 = vmax.f32 %v3601_v10, %v3606_v56  ;;  %v24164_v25 = vpop.f32.mrb[238].mxu0  ;;  %v386_v10 = vld [vmem:[%s38223_s0 + $0xb00] sm:$0xff] }
 0x2bc   :  { %v3616_v46 = vadd.f32 %v31402_v31, %v24164_v25  ;;  %v3610_v5 = vpop.f32.mrb[239].mxu0  ;;  %24322 = vmatmul.mubr.msk.f32.gmra.mrb[88].mxu0 %vm621_vm1, %v379_v24 }
 0x2bd   :  { %v31575_v40 = vmax.f32 %v38689_v12, %v5501_v32  ;;  %v3611_v29 = vadd.f32 %v31402_v31, %v3610_v5  ;;  %24324 = vmatprep.mubr.msk.f32.mxu0 %vm621_vm1, %v380_v17  ;;  %v387_v5 = vld [vmem:[%s38223_s0 + $0xb08] sm:$0xff]  ;;  %v388_v12 = vld [vmem:[%s38223_s0 + $0xb10] sm:$0xff] }
 0x2bf   :  { %38690 = vst [vmem:[#allocation39_spill] sm:$0xff] %v31575_v40  ;;  %v5502_v60 = vmax.f32 %v3611_v29, %v3616_v46  ;;  %v24167_v11 = vpop.f32.mrb[240].mxu0 }
 0x2c0   :  { %v31586_v51 = vadd.f32 %v31402_v31, %v24167_v11  ;;  %v3620_v59 = vpop.f32.mrb[241].mxu0  ;;  %24325 = vmatmul.mubr.msk.f32.gmra.mrb[90].mxu0 %vm621_vm1, %v381_v49 }
 0x2c1   :  { %v31592_v50 = vmax.f32 %v38691_v23, %v5502_v60  ;;  %v31595_v6 = vadd.f32 %v31402_v31, %v3620_v59  ;;  %24327 = vmatprep.mubr.msk.f32.mxu0 %vm621_vm1, %v382_v39  ;;  %v389_v59 = vld [vmem:[%s38223_s0 + $0xb18] sm:$0xff]  ;;  %v390_v23 = vld [vmem:[%s38223_s0 + $0xb20] sm:$0xff] }
 0x2c3   :  { %38692 = vst [vmem:[#allocation40_spill] sm:$0xff] %v31592_v50  ;;  %v24170_v56 = vpop.f32.mrb[242].mxu0 }
 0x2c4   :  { %v31607_v15 = vadd.f32 %v31402_v31, %v24170_v56  ;;  %v3630_v37 = vpop.f32.mrb[243].mxu0  ;;  %24328 = vmatmul.mubr.msk.f32.gmra.mrb[92].mxu0 %vm621_vm1, %v383_v14 }
 0x2c5   :  { %v31611_v30 = vadd.f32 %v31402_v31, %v3630_v37  ;;  %24330 = vmatprep.mubr.msk.f32.mxu0 %vm621_vm1, %v384_v62 }
 0x2c7   :  { %v24173_v17 = vpop.f32.mrb[244].mxu0 }
 0x2c8   :  { %v31623_v32 = vadd.f32 %v31402_v31, %v24173_v17  ;;  %v3640_v25 = vpop.f32.mrb[245].mxu0  ;;  %24331 = vmatmul.mubr.msk.f32.gmra.mrb[94].mxu0 %vm621_vm1, %v385_v54  ;;  %v392_v17 = vld [vmem:[%s38223_s0 + $0xb30] sm:$0xff] }
 0x2c9   :  { %v31627_v46 = vadd.f32 %v31402_v31, %v3640_v25  ;;  %24333 = vmatprep.mubr.msk.f32.mxu0 %vm621_vm1, %v386_v10  ;;  %v391_v10 = vld [vmem:[%s38223_s0 + $0xb28] sm:$0xff] }
 0x2cb   :  { %v24176_v49 = vpop.f32.mrb[246].mxu0 }
 0x2cc   :  { %v31639_v39 = vadd.f32 %v31402_v31, %v24176_v49  ;;  %v3650_v60 = vpop.f32.mrb[247].mxu0  ;;  %24334 = vmatmul.mubr.msk.f32.gmra.mrb[96].mxu0 %vm621_vm1, %v387_v5 }
 0x2cd   :  { %v31643_v11 = vadd.f32 %v31402_v31, %v3650_v60  ;;  %24336 = vmatprep.mubr.msk.f32.mxu0 %vm621_vm1, %v388_v12 }
 0x2cf   :  { %v24179_v62 = vpop.f32.mrb[248].mxu0 }
 0x2d0   :  { %v31655_v56 = vadd.f32 %v31402_v31, %v24179_v62  ;;  %v3660_v37 = vpop.f32.mrb[249].mxu0  ;;  %24337 = vmatmul.mubr.msk.f32.gmra.mrb[98].mxu0 %vm621_vm1, %v389_v59  ;;  %v393_v59 = vld [vmem:[%s38223_s0 + $0xb38] sm:$0xff]  ;;  %v396_v62 = vld [vmem:[%s38223_s0 + $0xb50] sm:$0xff] }
 0x2d1   :  { %v31659_v54 = vadd.f32 %v31402_v31, %v3660_v37  ;;  %24339 = vmatprep.mubr.msk.f32.mxu0 %vm621_vm1, %v390_v23  ;;  %v394_v23 = vld [vmem:[%s38223_s0 + $0xb40] sm:$0xff] }
 0x2d3   :  { %v24182_v5 = vpop.f32.mrb[250].mxu0 }
 0x2d4   :  { %v31671_v12 = vadd.f32 %v31402_v31, %v24182_v5  ;;  %v3670_v49 = vpop.f32.mrb[251].mxu0  ;;  %24340 = vmatmul.mubr.msk.f32.gmra.mrb[100].mxu0 %vm621_vm1, %v391_v10 }
 0x2d5   :  { %v31675_v60 = vadd.f32 %v31402_v31, %v3670_v49  ;;  %24342 = vmatprep.mubr.msk.f32.mxu0 %vm621_vm1, %v392_v17  ;;  %v395_v49 = vld [vmem:[%s38223_s0 + $0xb48] sm:$0xff] }
 0x2d7   :  { %v24185_v37 = vpop.f32.mrb[252].mxu0 }
 0x2d8   :  { %v31687_v5 = vadd.f32 %v31402_v31, %v24185_v37  ;;  %v3680_v10 = vpop.f32.mrb[253].mxu0  ;;  %24343 = vmatmul.mubr.msk.f32.gmra.mrb[102].mxu0 %vm621_vm1, %v393_v59  ;;  %v398_v37 = vld [vmem:[%s38223_s0 + $0xb60] sm:$0xff] }
 0x2d9   :  { %v31691_v17 = vadd.f32 %v31402_v31, %v3680_v10  ;;  %24345 = vmatprep.mubr.msk.f32.mxu0 %vm621_vm1, %v394_v23  ;;  %v397_v10 = vld [vmem:[%s38223_s0 + $0xb58] sm:$0xff] }
 0x2db   :  { %v24188_v25 = vpop.f32.mrb[254].mxu0 }
 0x2dc   :  { %v31703_v14 = vadd.f32 %v31402_v31, %v24188_v25  ;;  %v3690_v59 = vpop.f32.mrb[255].mxu0  ;;  %24346 = vmatmul.mubr.msk.f32.gmra.mrb[104].mxu0 %vm621_vm1, %v395_v49  ;;  %v400_v25 = vld [vmem:[%s38223_s0 + $0xb70] sm:$0xff] }
 0x2dd   :  { %v31707_v23 = vadd.f32 %v31402_v31, %v3690_v59  ;;  %24348 = vmatprep.mubr.msk.f32.mxu0 %vm621_vm1, %v396_v62  ;;  %v399_v59 = vld [vmem:[%s38223_s0 + $0xb68] sm:$0xff] }
 0x2df   :  { %v24191_v29 = vpop.f32.mrb[0].mxu0 }
 0x2e0   :  { %v31719_v24 = vadd.f32 %v31402_v31, %v24191_v29  ;;  %v3700_v49 = vpop.f32.mrb[1].mxu0  ;;  %24349 = vmatmul.mubr.msk.f32.gmra.mrb[106].mxu0 %vm621_vm1, %v397_v10  ;;  %v402_v29 = vld [vmem:[%s38223_s0 + $0xb80] sm:$0xff] }
 0x2e1   :  { %v31723_v62 = vadd.f32 %v31402_v31, %v3700_v49  ;;  %24351 = vmatprep.mubr.msk.f32.mxu0 %vm621_vm1, %v398_v37  ;;  %v401_v49 = vld [vmem:[%s38223_s0 + $0xb78] sm:$0xff] }
 0x2e3   :  { %v24194_v53 = vpop.f32.mrb[2].mxu0 }
 0x2e4   :  { %v31735_v50 = vadd.f32 %v31402_v31, %v24194_v53  ;;  %v3710_v10 = vpop.f32.mrb[3].mxu0  ;;  %24352 = vmatmul.mubr.msk.f32.gmra.mrb[108].mxu0 %vm621_vm1, %v399_v59  ;;  %v404_v53 = vld [vmem:[%s38223_s0 + $0xb90] sm:$0xff] }
 0x2e5   :  { %v31739_v37 = vadd.f32 %v31402_v31, %v3710_v10  ;;  %24354 = vmatprep.mubr.msk.f32.mxu0 %vm621_vm1, %v400_v25  ;;  %v403_v10 = vld [vmem:[%s38223_s0 + $0xb88] sm:$0xff] }
 0x2e7   :  { %v24197_v45 = vpop.f32.mrb[4].mxu0 }
 0x2e8   :  { %v31751_v43 = vadd.f32 %v31402_v31, %v24197_v45  ;;  %v3720_v59 = vpop.f32.mrb[5].mxu0  ;;  %24355 = vmatmul.mubr.msk.f32.gmra.mrb[110].mxu0 %vm621_vm1, %v401_v49  ;;  %v406_v45 = vld [vmem:[%s38223_s0 + $0xba0] sm:$0xff] }
 0x2e9   :  { %v31755_v25 = vadd.f32 %v31402_v31, %v3720_v59  ;;  %24357 = vmatprep.mubr.msk.f32.mxu0 %vm621_vm1, %v402_v29  ;;  %v405_v59 = vld [vmem:[%s38223_s0 + $0xb98] sm:$0xff] }
 0x2eb   :  { %v24200_v3 = vpop.f32.mrb[6].mxu0 }
 0x2ec   :  { %v31767_v42 = vadd.f32 %v31402_v31, %v24200_v3  ;;  %v3730_v49 = vpop.f32.mrb[7].mxu0  ;;  %24358 = vmatmul.mubr.msk.f32.gmra.mrb[112].mxu0 %vm621_vm1, %v403_v10 }
 0x2ed   :  { %v31771_v29 = vadd.f32 %v31402_v31, %v3730_v49  ;;  %24360 = vmatprep.mubr.msk.f32.mxu0 %vm621_vm1, %v404_v53  ;;  %v407_v53 = vld [vmem:[%s38223_s0 + $0xba8] sm:$0xff] }
 0x2ef   :  { %v24203_v40 = vpop.f32.mrb[8].mxu0 }
 0x2f0   :  { %v3746_v41 = vadd.f32 %v31402_v31, %v24203_v40  ;;  %v3740_v10 = vpop.f32.mrb[9].mxu0  ;;  %24361 = vmatmul.mubr.msk.f32.gmra.mrb[114].mxu0 %vm621_vm1, %v405_v59  ;;  %v38693_v59 = vmax.f32 %v31595_v6, %v31586_v51  ;;  %v411_v6 = vld [vmem:[%s38223_s0 + $0xbc8] sm:$0xff] }
 0x2f1   :  { %v3741_v49 = vadd.f32 %v31402_v31, %v3740_v10  ;;  %24363 = vmatprep.mubr.msk.f32.mxu0 %vm621_vm1, %v406_v45 }
 0x2f3   :  { %v5503_v1 = vmax.f32 %v3741_v49, %v3746_v41  ;;  %v24206_v3 = vpop.f32.mrb[10].mxu0  ;;  %v410_v41 = vld [vmem:[%s38223_s0 + $0xbc0] sm:$0xff] }
 0x2f4   :  { %v3756_v47 = vadd.f32 %v31402_v31, %v24206_v3  ;;  %v3750_v40 = vpop.f32.mrb[11].mxu0  ;;  %24364 = vmatmul.mubr.msk.f32.gmra.mrb[116].mxu0 %vm621_vm1, %v407_v53 }
 0x2f5   :  { %v31797_v10 = vmax.f32 %v38693_v59, %v5503_v1  ;;  %v3751_v45 = vadd.f32 %v31402_v31, %v3750_v40  ;;  %24366 = vmatprep.mubr.msk.f32.mxu0 %vm621_vm1, %v408_v26  ;;  %v38695_v1 = vmax.f32 %v31611_v30, %v31607_v15 }
 0x2f7   :  { %38694 = vst [vmem:[#allocation41_spill] sm:$0xff] %v31797_v10  ;;  %v5504_v3 = vmax.f32 %v3751_v45, %v3756_v47  ;;  %v24209_v49 = vpop.f32.mrb[12].mxu0  ;;  %v412_v47 = vld [vmem:[%s38223_s0 + $0xbd0] sm:$0xff] }
 0x2f8   :  { %v3766_v53 = vadd.f32 %v31402_v31, %v24209_v49  ;;  %v3760_v38 = vpop.f32.mrb[13].mxu0  ;;  %24367 = vmatmul.mubr.msk.f32.gmra.mrb[118].mxu0 %vm621_vm1, %v409_v4 }
 0x2f9   :  { %v31812_v51 = vmax.f32 %v38695_v1, %v5504_v3  ;;  %v3761_v26 = vadd.f32 %v31402_v31, %v3760_v38  ;;  %24369 = vmatprep.mubr.msk.f32.mxu0 %vm621_vm1, %v410_v41  ;;  %v38697_v38 = vmax.f32 %v31627_v46, %v31623_v32  ;;  %v413_v41 = vld [vmem:[%s38223_s0 + $0xbd8] sm:$0xff]  ;;  %v414_v3 = vld [vmem:[%s38223_s0 + $0xbe0] sm:$0xff]  ;;  %v38699_v32 = vmax.f32 %v31643_v11, %v31639_v39 }
 0x2fa   :  { %v38701_v39 = vmax.f32 %v31659_v54, %v31655_v56  ;;  %v38703_v56 = vmax.f32 %v31675_v60, %v31671_v12  ;;  %v38705_v12 = vmax.f32 %v31691_v17, %v31687_v5 }
 0x2fb   :  { %38696 = vst [vmem:[#allocation42_spill] sm:$0xff] %v31812_v51  ;;  %v5505_v40 = vmax.f32 %v3761_v26, %v3766_v53  ;;  %v24212_v59 = vpop.f32.mrb[14].mxu0 }
 0x2fc   :  { %v3776_v4 = vadd.f32 %v31402_v31, %v24212_v59  ;;  %v3770_v45 = vpop.f32.mrb[15].mxu0  ;;  %24370 = vmatmul.mubr.msk.f32.gmra.mrb[120].mxu0 %vm621_vm1, %v411_v6 }
 0x2fd   :  { %v31827_v15 = vmax.f32 %v38697_v38, %v5505_v40  ;;  %v3771_v30 = vadd.f32 %v31402_v31, %v3770_v45  ;;  %24372 = vmatprep.mubr.msk.f32.mxu0 %vm621_vm1, %v412_v47  ;;  %v415_v47 = vld [vmem:[%s38223_s0 + $0xbe8] sm:$0xff]  ;;  %v416_v40 = vld [vmem:[%s38223_s0 + $0xbf0] sm:$0xff] }
 0x2ff   :  { %38698 = vst [vmem:[#allocation43_spill] sm:$0xff] %v31827_v15  ;;  %v5506_v49 = vmax.f32 %v3771_v30, %v3776_v4  ;;  %v24215_v53 = vpop.f32.mrb[16].mxu0 }
 0x300   :  { %v3786_v1 = vadd.f32 %v31402_v31, %v24215_v53  ;;  %v3780_v26 = vpop.f32.mrb[17].mxu0  ;;  %24373 = vmatmul.mubr.msk.f32.gmra.mrb[122].mxu0 %vm621_vm1, %v413_v41  ;;  %v417_v41 = vld [vmem:[%s38223_s0 + $0xbf8] sm:$0xff] }
 0x301   :  { %v31842_v46 = vmax.f32 %v38699_v32, %v5506_v49  ;;  %v3781_v6 = vadd.f32 %v31402_v31, %v3780_v26  ;;  %24375 = vmatprep.mubr.msk.f32.mxu0 %vm621_vm1, %v414_v3  ;;  %v418_v3 = vld [vmem:[%s38223_s0 + $0xc00] sm:$0xff] }
 0x303   :  { %38700 = vst [vmem:[#allocation44_spill] sm:$0xff] %v31842_v46  ;;  %v5507_v59 = vmax.f32 %v3781_v6, %v3786_v1  ;;  %v24218_v4 = vpop.f32.mrb[18].mxu0  ;;  %v419_v6 = vld [vmem:[%s38223_s0 + $0xc08] sm:$0xff] }
 0x304   :  { %v3796_v45 = vadd.f32 %v31402_v31, %v24218_v4  ;;  %v3790_v38 = vpop.f32.mrb[19].mxu0  ;;  %24376 = vmatmul.mubr.msk.f32.gmra.mrb[124].mxu0 %vm621_vm1, %v415_v47  ;;  %v420_v47 = vld [vmem:[%s38223_s0 + $0xc10] sm:$0xff] }
 0x305   :  { %v31857_v11 = vmax.f32 %v38701_v39, %v5507_v59  ;;  %v3791_v30 = vadd.f32 %v31402_v31, %v3790_v38  ;;  %24378 = vmatprep.mubr.msk.f32.mxu0 %vm621_vm1, %v416_v40  ;;  %v421_v39 = vld [vmem:[%s38223_s0 + $0xc18] sm:$0xff] }
 0x307   :  { %38702 = vst [vmem:[#allocation45_spill] sm:$0xff] %v31857_v11  ;;  %v5508_v49 = vmax.f32 %v3791_v30, %v3796_v45  ;;  %v24221_v53 = vpop.f32.mrb[20].mxu0  ;;  %v422_v30 = vld [vmem:[%s38223_s0 + $0xc20] sm:$0xff]  ;;  %v457_v11 = vld [vmem:[%s38223_s0 + $0xd38] sm:$0xff] }
 0x308   :  { %v3806_v1 = vadd.f32 %v31402_v31, %v24221_v53  ;;  %v3800_v26 = vpop.f32.mrb[21].mxu0  ;;  %24379 = vmatmul.mubr.msk.f32.gmra.mrb[126].mxu0 %vm621_vm1, %v417_v41  ;;  %v38707_v53 = vmax.f32 %v31707_v23, %v31703_v14 }
 0x309   :  { %v31872_v54 = vmax.f32 %v38703_v56, %v5508_v49  ;;  %v3801_v32 = vadd.f32 %v31402_v31, %v3800_v26  ;;  %24381 = vmatprep.mubr.msk.f32.mxu0 %vm621_vm1, %v418_v3  ;;  %v423_v56 = vld [vmem:[%s38223_s0 + $0xc28] sm:$0xff] }
 0x30b   :  { %38704 = vst [vmem:[#allocation46_spill] sm:$0xff] %v31872_v54  ;;  %v5509_v40 = vmax.f32 %v3801_v32, %v3806_v1  ;;  %v24224_v59 = vpop.f32.mrb[22].mxu0  ;;  %v424_v32 = vld [vmem:[%s38223_s0 + $0xc30] sm:$0xff] }
 0x30c   :  { %v3816_v4 = vadd.f32 %v31402_v31, %v24224_v59  ;;  %v3810_v45 = vpop.f32.mrb[23].mxu0  ;;  %24382 = vmatmul.mubr.msk.f32.gmra.mrb[128].mxu0 %vm621_vm1, %v419_v6  ;;  %v38709_v59 = vmax.f32 %v31723_v62, %v31719_v24 }
 0x30d   :  { %v5653_v60 = vmax.f32 %v38705_v12, %v5509_v40  ;;  %v3811_v38 = vadd.f32 %v31402_v31, %v3810_v45  ;;  %24384 = vmatprep.mubr.msk.f32.mxu0 %vm621_vm1, %v420_v47  ;;  %v425_v12 = vld [vmem:[%s38223_s0 + $0xc38] sm:$0xff] }
 0x30f   :  { %v31895_v41 = vmax.f32 %v5653_v60, 0.0  ;;  %v5510_v3 = vmax.f32 %v3811_v38, %v3816_v4  ;;  %v24227_v49 = vpop.f32.mrb[24].mxu0  ;;  %v426_v60 = vld [vmem:[%s38223_s0 + $0xc40] sm:$0xff] }
 0x310   :  { %v3826_v5 = vadd.f32 %v31402_v31, %v24227_v49  ;;  %v3820_v17 = vpop.f32.mrb[25].mxu0  ;;  %24385 = vmatmul.mubr.msk.f32.gmra.mrb[130].mxu0 %vm621_vm1, %v421_v39 }
 0x311   :  { %38706 = vst [vmem:[#allocation47_spill] sm:$0xff] %v31895_v41  ;;  %v5654_v1 = vmax.f32 %v38707_v53, %v5510_v3  ;;  %v3821_v26 = vadd.f32 %v31402_v31, %v3820_v17  ;;  %25427 = vmatprep.mubr.msk.f32.mxu1 %vm5878_vm6, %v31895_v41  ;;  %24387 = vmatprep.mubr.msk.f32.mxu0 %vm621_vm1, %v422_v30  ;;  %v427_v17 = vld [vmem:[%s38223_s0 + $0xc48] sm:$0xff]  ;;  %v428_v53 = vld [vmem:[%s38223_s0 + $0xc50] sm:$0xff] }
 0x312   :  { %v38711_v3 = vmax.f32 %v31739_v37, %v31735_v50 }
 0x313   :  { %v31912_v6 = vmax.f32 %v5654_v1, 0.0  ;;  %v5511_v47 = vmax.f32 %v3821_v26, %v3826_v5  ;;  %v24230_v14 = vpop.f32.mrb[26].mxu0 }
 0x314   :  { %v3836_v23 = vadd.f32 %v31402_v31, %v24230_v14  ;;  %v3830_v40 = vpop.f32.mrb[27].mxu0  ;;  %24388 = vmatmul.mubr.msk.f32.gmra.mrb[132].mxu0 %vm621_vm1, %v423_v56 }
 0x315   :  { %38708 = vst [vmem:[#allocation48_spill] sm:$0xff] %v31912_v6  ;;  %v5655_v4 = vmax.f32 %v38709_v59, %v5511_v47  ;;  %v3831_v45 = vadd.f32 %v31402_v31, %v3830_v40  ;;  %25428 = vmatmul.mubr.msk.f32.vlgmr.msra.gmra.mrb[0].mxu1 %vm5878_vm6, %v31912_v6  ;;  %24390 = vmatprep.mubr.msk.f32.mxu0 %vm621_vm1, %v424_v32  ;;  %v430_v40 = vld [vmem:[%s38223_s0 + $0xc60] sm:$0xff]  ;;  %v456_v6 = vld [vmem:[%s38223_s0 + $0xd30] sm:$0xff] }
 0x316   :  { %v38713_v32 = vmax.f32 %v31755_v25, %v31751_v43 }
 0x317   :  { %v31929_v38 = vmax.f32 %v5655_v4, 0.0  ;;  %v5512_v39 = vmax.f32 %v3831_v45, %v3836_v23  ;;  %v24233_v24 = vpop.f32.mrb[28].mxu0  ;;  %v429_v23 = vld [vmem:[%s38223_s0 + $0xc58] sm:$0xff]  ;;  %v38715_v45 = vmax.f32 %v31771_v29, %v31767_v42 }
 0x318   :  { %v3846_v62 = vadd.f32 %v31402_v31, %v24233_v24  ;;  %v3840_v30 = vpop.f32.mrb[29].mxu0  ;;  %24391 = vmatmul.mubr.msk.f32.gmra.mrb[134].mxu0 %vm621_vm1, %v425_v12  ;;  %v432_v24 = vld [vmem:[%s38223_s0 + $0xc70] sm:$0xff] }
 0x319   :  { %38710 = vst [vmem:[#allocation49_spill] sm:$0xff] %v31929_v38  ;;  %v5656_v49 = vmax.f32 %v38711_v3, %v5512_v39  ;;  %v3841_v5 = vadd.f32 %v31402_v31, %v3840_v30  ;;  %25430 = vmatprep.mubr.msk.f32.mxu1 %vm5878_vm6, %v31929_v38  ;;  %24393 = vmatprep.mubr.msk.f32.mxu0 %vm621_vm1, %v426_v60  ;;  %v431_v39 = vld [vmem:[%s38223_s0 + $0xc68] sm:$0xff] }
 0x31b   :  { %v31946_v1 = vmax.f32 %v5656_v49, 0.0  ;;  %v5513_v26 = vmax.f32 %v3841_v5, %v3846_v62  ;;  %v24236_v50 = vpop.f32.mrb[30].mxu0  ;;  %v433_v49 = vld [vmem:[%s38223_s0 + $0xc78] sm:$0xff]  ;;  %v434_v5 = vld [vmem:[%s38223_s0 + $0xc80] sm:$0xff] }
 0x31c   :  { %v3856_v37 = vadd.f32 %v31402_v31, %v24236_v50  ;;  %v3850_v56 = vpop.f32.mrb[31].mxu0  ;;  %24394 = vmatmul.mubr.msk.f32.gmra.mrb[136].mxu0 %vm621_vm1, %v427_v17 }
 0x31d   :  { %38712 = vst [vmem:[#allocation50_spill] sm:$0xff] %v31946_v1  ;;  %v31953_v47 = vmax.f32 %v38713_v32, %v5513_v26  ;;  %v3851_v14 = vadd.f32 %v31402_v31, %v3850_v56  ;;  %25431 = vmatmul.mubr.msk.f32.gmra.mrb[2].mxu1 %vm5878_vm6, %v31946_v1  ;;  %24396 = vmatprep.mubr.msk.f32.mxu0 %vm621_vm1, %v428_v53  ;;  %v435_v56 = vld [vmem:[%s38223_s0 + $0xc88] sm:$0xff]  ;;  %v436_v32 = vld [vmem:[%s38223_s0 + $0xc90] sm:$0xff] }
 0x31f   :  { %38714 = vst [vmem:[#allocation51_spill] sm:$0xff] %v31953_v47  ;;  %v5514_v59 = vmax.f32 %v3851_v14, %v3856_v37  ;;  %v24239_v4 = vpop.f32.mrb[32].mxu0 }
 0x320   :  { %v31966_v43 = vadd.f32 %v31402_v31, %v24239_v4  ;;  %v3860_v25 = vpop.f32.mrb[33].mxu0  ;;  %24397 = vmatmul.mubr.msk.f32.gmra.mrb[138].mxu0 %vm621_vm1, %v429_v23 }
 0x321   :  { %v31972_v12 = vmax.f32 %v38715_v45, %v5514_v59  ;;  %v31975_v60 = vadd.f32 %v31402_v31, %v3860_v25  ;;  %24399 = vmatprep.mubr.msk.f32.mxu0 %vm621_vm1, %v430_v40  ;;  %v437_v25 = vld [vmem:[%s38223_s0 + $0xc98] sm:$0xff]  ;;  %v438_v45 = vld [vmem:[%s38223_s0 + $0xca0] sm:$0xff] }
 0x323   :  { %38716 = vst [vmem:[#allocation52_spill] sm:$0xff] %v31972_v12  ;;  %v24242_v30 = vpop.f32.mrb[34].mxu0 }
 0x324   :  { %v31987_v42 = vadd.f32 %v31402_v31, %v24242_v30  ;;  %v3870_v29 = vpop.f32.mrb[35].mxu0  ;;  %24400 = vmatmul.mubr.msk.f32.gmra.mrb[140].mxu0 %vm621_vm1, %v431_v39 }
 0x325   :  { %v31991_v3 = vadd.f32 %v31402_v31, %v3870_v29  ;;  %24402 = vmatprep.mubr.msk.f32.mxu0 %vm621_vm1, %v432_v24 }
 0x327   :  { %v24245_v53 = vpop.f32.mrb[36].mxu0 }
 0x328   :  { %v32003_v26 = vadd.f32 %v31402_v31, %v24245_v53  ;;  %v3880_v50 = vpop.f32.mrb[37].mxu0  ;;  %24403 = vmatmul.mubr.msk.f32.gmra.mrb[142].mxu0 %vm621_vm1, %v433_v49  ;;  %v440_v53 = vld [vmem:[%s38223_s0 + $0xcb0] sm:$0xff] }
 0x329   :  { %v32007_v37 = vadd.f32 %v31402_v31, %v3880_v50  ;;  %24405 = vmatprep.mubr.msk.f32.mxu0 %vm621_vm1, %v434_v5  ;;  %v439_v5 = vld [vmem:[%s38223_s0 + $0xca8] sm:$0xff] }
 0x32b   :  { %v24248_v23 = vpop.f32.mrb[38].mxu0 }
 0x32c   :  { %v32019_v40 = vadd.f32 %v31402_v31, %v24248_v23  ;;  %v3890_v59 = vpop.f32.mrb[39].mxu0  ;;  %24406 = vmatmul.mubr.msk.f32.gmra.mrb[144].mxu0 %vm621_vm1, %v435_v56 }
 0x32d   :  { %v32023_v4 = vadd.f32 %v31402_v31, %v3890_v59  ;;  %24408 = vmatprep.mubr.msk.f32.mxu0 %vm621_vm1, %v436_v32 }
 0x32f   :  { %v24251_v24 = vpop.f32.mrb[40].mxu0 }
 0x330   :  { %v32035_v30 = vadd.f32 %v31402_v31, %v24251_v24  ;;  %v3900_v29 = vpop.f32.mrb[41].mxu0  ;;  %24409 = vmatmul.mubr.msk.f32.gmra.mrb[146].mxu0 %vm621_vm1, %v437_v25  ;;  %v441_v25 = vld [vmem:[%s38223_s0 + $0xcb8] sm:$0xff]  ;;  %v444_v24 = vld [vmem:[%s38223_s0 + $0xcd0] sm:$0xff] }
 0x331   :  { %v32039_v49 = vadd.f32 %v31402_v31, %v3900_v29  ;;  %24411 = vmatprep.mubr.msk.f32.mxu0 %vm621_vm1, %v438_v45  ;;  %v442_v45 = vld [vmem:[%s38223_s0 + $0xcc0] sm:$0xff] }
 0x333   :  { %v24254_v56 = vpop.f32.mrb[42].mxu0 }
 0x334   :  { %v32051_v32 = vadd.f32 %v31402_v31, %v24254_v56  ;;  %v3910_v23 = vpop.f32.mrb[43].mxu0  ;;  %24412 = vmatmul.mubr.msk.f32.gmra.mrb[148].mxu0 %vm621_vm1, %v439_v5 }
 0x335   :  { %v32055_v59 = vadd.f32 %v31402_v31, %v3910_v23  ;;  %24414 = vmatprep.mubr.msk.f32.mxu0 %vm621_vm1, %v440_v53  ;;  %v443_v23 = vld [vmem:[%s38223_s0 + $0xcc8] sm:$0xff] }
 0x337   :  { %v24257_v29 = vpop.f32.mrb[44].mxu0 }
 0x338   :  { %v32067_v56 = vadd.f32 %v31402_v31, %v24257_v29  ;;  %v3920_v5 = vpop.f32.mrb[45].mxu0  ;;  %24415 = vmatmul.mubr.msk.f32.gmra.mrb[150].mxu0 %vm621_vm1, %v441_v25  ;;  %v446_v29 = vld [vmem:[%s38223_s0 + $0xce0] sm:$0xff] }
 0x339   :  { %v32071_v53 = vadd.f32 %v31402_v31, %v3920_v5  ;;  %24417 = vmatprep.mubr.msk.f32.mxu0 %vm621_vm1, %v442_v45  ;;  %v445_v5 = vld [vmem:[%s38223_s0 + $0xcd8] sm:$0xff] }
 0x33b   :  { %v24260_v50 = vpop.f32.mrb[46].mxu0 }
 0x33c   :  { %v32083_v39 = vadd.f32 %v31402_v31, %v24260_v50  ;;  %v3930_v25 = vpop.f32.mrb[47].mxu0  ;;  %24418 = vmatmul.mubr.msk.f32.gmra.mrb[152].mxu0 %vm621_vm1, %v443_v23  ;;  %v448_v50 = vld [vmem:[%s38223_s0 + $0xcf0] sm:$0xff] }
 0x33d   :  { %v32087_v45 = vadd.f32 %v31402_v31, %v3930_v25  ;;  %24420 = vmatprep.mubr.msk.f32.mxu0 %vm621_vm1, %v444_v24  ;;  %v447_v25 = vld [vmem:[%s38223_s0 + $0xce8] sm:$0xff] }
 0x33f   :  { %v24263_v14 = vpop.f32.mrb[48].mxu0 }
 0x340   :  { %v32099_v17 = vadd.f32 %v31402_v31, %v24263_v14  ;;  %v3940_v23 = vpop.f32.mrb[49].mxu0  ;;  %24421 = vmatmul.mubr.msk.f32.gmra.mrb[154].mxu0 %vm621_vm1, %v445_v5  ;;  %v450_v14 = vld [vmem:[%s38223_s0 + $0xd00] sm:$0xff] }
 0x341   :  { %v32103_v24 = vadd.f32 %v31402_v31, %v3940_v23  ;;  %24423 = vmatprep.mubr.msk.f32.mxu0 %vm621_vm1, %v446_v29  ;;  %v449_v23 = vld [vmem:[%s38223_s0 + $0xcf8] sm:$0xff] }
 0x343   :  { %v24266_v62 = vpop.f32.mrb[50].mxu0 }
 0x344   :  { %v32115_v12 = vadd.f32 %v31402_v31, %v24266_v62  ;;  %v3950_v5 = vpop.f32.mrb[51].mxu0  ;;  %24424 = vmatmul.mubr.msk.f32.gmra.mrb[156].mxu0 %vm621_vm1, %v447_v25  ;;  %v452_v62 = vld [vmem:[%s38223_s0 + $0xd10] sm:$0xff] }
 0x345   :  { %v32119_v29 = vadd.f32 %v31402_v31, %v3950_v5  ;;  %24426 = vmatprep.mubr.msk.f32.mxu0 %vm621_vm1, %v448_v50  ;;  %v451_v5 = vld [vmem:[%s38223_s0 + $0xd08] sm:$0xff] }
 0x347   :  { %v24269_v15 = vpop.f32.mrb[52].mxu0 }
 0x348   :  { %v32131_v51 = vadd.f32 %v31402_v31, %v24269_v15  ;;  %v3960_v25 = vpop.f32.mrb[53].mxu0  ;;  %24427 = vmatmul.mubr.msk.f32.gmra.mrb[158].mxu0 %vm621_vm1, %v449_v23  ;;  %v454_v15 = vld [vmem:[%s38223_s0 + $0xd20] sm:$0xff] }
 0x349   :  { %v32135_v50 = vadd.f32 %v31402_v31, %v3960_v25  ;;  %24429 = vmatprep.mubr.msk.f32.mxu0 %vm621_vm1, %v450_v14  ;;  %v453_v25 = vld [vmem:[%s38223_s0 + $0xd18] sm:$0xff] }
 0x34b   :  { %v24272_v10 = vpop.f32.mrb[54].mxu0 }
 0x34c   :  { %v32147_v47 = vadd.f32 %v31402_v31, %v24272_v10  ;;  %v3970_v23 = vpop.f32.mrb[55].mxu0  ;;  %24430 = vmatmul.mubr.msk.f32.gmra.mrb[160].mxu0 %vm621_vm1, %v451_v5 }
 0x34d   :  { %v32151_v14 = vadd.f32 %v31402_v31, %v3970_v23  ;;  %24432 = vmatprep.mubr.msk.f32.mxu0 %vm621_vm1, %v452_v62  ;;  %v455_v62 = vld [vmem:[%s38223_s0 + $0xd28] sm:$0xff] }
 0x34f   :  { %v24275_v1 = vpop.f32.mrb[56].mxu0 }
 0x350   :  { %v3986_v38 = vadd.f32 %v31402_v31, %v24275_v1  ;;  %v3980_v5 = vpop.f32.mrb[57].mxu0  ;;  %24433 = vmatmul.mubr.msk.f32.gmra.mrb[162].mxu0 %vm621_vm1, %v453_v25  ;;  %v38717_v25 = vmax.f32 %v31975_v60, %v31966_v43  ;;  %v459_v60 = vld [vmem:[%s38223_s0 + $0xd48] sm:$0xff] }
 0x351   :  { %v3981_v23 = vadd.f32 %v31402_v31, %v3980_v5  ;;  %24435 = vmatprep.mubr.msk.f32.mxu0 %vm621_vm1, %v454_v15 }
 0x353   :  { %v5515_v41 = vmax.f32 %v3981_v23, %v3986_v38  ;;  %v24278_v10 = vpop.f32.mrb[58].mxu0  ;;  %v458_v38 = vld [vmem:[%s38223_s0 + $0xd40] sm:$0xff] }
 0x354   :  { %v3996_v54 = vadd.f32 %v31402_v31, %v24278_v10  ;;  %v3990_v1 = vpop.f32.mrb[59].mxu0  ;;  %24436 = vmatmul.mubr.msk.f32.gmra.mrb[164].mxu0 %vm621_vm1, %v455_v62 }
 0x355   :  { %v32177_v5 = vmax.f32 %v38717_v25, %v5515_v41  ;;  %v3991_v15 = vadd.f32 %v31402_v31, %v3990_v1  ;;  %24438 = vmatprep.mubr.msk.f32.mxu0 %vm621_vm1, %v456_v6  ;;  %v38719_v41 = vmax.f32 %v31991_v3, %v31987_v42 }
 0x357   :  { %38718 = vst [vmem:[#allocation53_spill] sm:$0xff] %v32177_v5  ;;  %v5516_v10 = vmax.f32 %v3991_v15, %v3996_v54  ;;  %v24281_v23 = vpop.f32.mrb[60].mxu0  ;;  %v460_v54 = vld [vmem:[%s38223_s0 + $0xd50] sm:$0xff] }
 0x358   :  { %v4006_v62 = vadd.f32 %v31402_v31, %v24281_v23  ;;  %v4000_v46 = vpop.f32.mrb[61].mxu0  ;;  %24439 = vmatmul.mubr.msk.f32.gmra.mrb[166].mxu0 %vm621_vm1, %v457_v11  ;;  %v500_v5 = vld [vmem:[%s38223_s0 + $0xe90] sm:$0xff] }
 0x359   :  { %v32192_v43 = vmax.f32 %v38719_v41, %v5516_v10  ;;  %v4001_v6 = vadd.f32 %v31402_v31, %v4000_v46  ;;  %24441 = vmatprep.mubr.msk.f32.mxu0 %vm621_vm1, %v458_v38  ;;  %v38721_v46 = vmax.f32 %v32007_v37, %v32003_v26  ;;  %v461_v38 = vld [vmem:[%s38223_s0 + $0xd58] sm:$0xff]  ;;  %v462_v10 = vld [vmem:[%s38223_s0 + $0xd60] sm:$0xff]  ;;  %v38723_v37 = vmax.f32 %v32023_v4, %v32019_v40 }
 0x35b   :  { %38720 = vst [vmem:[#allocation54_spill] sm:$0xff] %v32192_v43  ;;  %v5517_v1 = vmax.f32 %v4001_v6, %v4006_v62  ;;  %v24284_v25 = vpop.f32.mrb[62].mxu0 }
 0x35c   :  { %v4016_v11 = vadd.f32 %v31402_v31, %v24284_v25  ;;  %v4010_v15 = vpop.f32.mrb[63].mxu0  ;;  %24442 = vmatmul.mubr.msk.f32.gmra.mrb[168].mxu0 %vm621_vm1, %v459_v60  ;;  %v464_v25 = vld [vmem:[%s38223_s0 + $0xd70] sm:$0xff] }
 0x35d   :  { %v5661_v42 = vmax.f32 %v38721_v46, %v5517_v1  ;;  %v4011_v3 = vadd.f32 %v31402_v31, %v4010_v15  ;;  %24444 = vmatprep.mubr.msk.f32.mxu0 %vm621_vm1, %v460_v54  ;;  %v463_v1 = vld [vmem:[%s38223_s0 + $0xd68] sm:$0xff] }
 0x35f   :  { %v32215_v23 = vmax.f32 %v5661_v42, 0.0  ;;  %v5518_v62 = vmax.f32 %v4011_v3, %v4016_v11  ;;  %v24287_v41 = vpop.f32.mrb[64].mxu0  ;;  %v38725_v42 = vmax.f32 %v32039_v49, %v32035_v30 }
 0x360   :  { %v4026_v6 = vadd.f32 %v31402_v31, %v24287_v41  ;;  %v4020_v26 = vpop.f32.mrb[65].mxu0  ;;  %24445 = vmatmul.mubr.msk.f32.gmra.mrb[170].mxu0 %vm621_vm1, %v461_v38 }
 0x361   :  { %38722 = vst [vmem:[#allocation55_spill] sm:$0xff] %v32215_v23  ;;  %v5662_v60 = vmax.f32 %v38723_v37, %v5518_v62  ;;  %v4021_v54 = vadd.f32 %v31402_v31, %v4020_v26  ;;  %25433 = vmatprep.mubr.msk.f32.mxu1 %vm5878_vm6, %v32215_v23  ;;  %24447 = vmatprep.mubr.msk.f32.mxu0 %vm621_vm1, %v462_v10  ;;  %v32237_v31 = vld [vmem:[%s38224_s2] ss:$0 sm:$0xff]  ;;  %v465_v10 = vld [vmem:[%s38223_s0 + $0xd78] sm:$0xff] }
 0x362   :  { %v466_v62 = vld [vmem:[%s38223_s0 + $0xd80] sm:$0xff]  ;;  %v38727_v37 = vmax.f32 %v32055_v59, %v32051_v32 }
 0x363   :  { %v32232_v11 = vmax.f32 %v5662_v60, 0.0  ;;  %v5519_v15 = vmax.f32 %v4021_v54, %v4026_v6  ;;  %v24290_v40 = vpop.f32.mrb[66].mxu0  ;;  %v498_v23 = vld [vmem:[%s38223_s0 + $0xe80] sm:$0xff] }
 0x364   :  { %v4036_v4 = vadd.f32 %v32237_v31, %v24290_v40  ;;  %v4030_v46 = vpop.f32.mrb[67].mxu0  ;;  %24448 = vmatmul.mubr.msk.f32.gmra.mrb[172].mxu0 %vm621_vm1, %v463_v1  ;;  %v467_v1 = vld [vmem:[%s38223_s0 + $0xd88] sm:$0xff] }
 0x365   :  { %38724 = vst [vmem:[#allocation56_spill] sm:$0xff] %v32232_v11  ;;  %v5663_v3 = vmax.f32 %v38725_v42, %v5519_v15  ;;  %v4031_v38 = vadd.f32 %v32237_v31, %v4030_v46  ;;  %25434 = vmatmul.mubr.msk.f32.gmra.mrb[4].mxu1 %vm5878_vm6, %v32232_v11  ;;  %24450 = vmatprep.mubr.msk.f32.mxu0 %vm621_vm1, %v464_v25  ;;  %v468_v25 = vld [vmem:[%s38223_s0 + $0xd90] sm:$0xff] }
 0x366   :  { %v38729_v46 = vmax.f32 %v32071_v53, %v32067_v56 }
 0x367   :  { %v32254_v41 = vmax.f32 %v5663_v3, 0.0  ;;  %v5520_v6 = vmax.f32 %v4031_v38, %v4036_v4  ;;  %v24293_v30 = vpop.f32.mrb[68].mxu0  ;;  %v469_v38 = vld [vmem:[%s38223_s0 + $0xd98] sm:$0xff] }
 0x368   :  { %v4046_v49 = vadd.f32 %v32237_v31, %v24293_v30  ;;  %v4040_v26 = vpop.f32.mrb[69].mxu0  ;;  %24451 = vmatmul.mubr.msk.f32.gmra.mrb[174].mxu0 %vm621_vm1, %v465_v10  ;;  %v470_v10 = vld [vmem:[%s38223_s0 + $0xda0] sm:$0xff] }
 0x369   :  { %38726 = vst [vmem:[#allocation57_spill] sm:$0xff] %v32254_v41  ;;  %v5664_v60 = vmax.f32 %v38727_v37, %v5520_v6  ;;  %v4041_v54 = vadd.f32 %v32237_v31, %v4040_v26  ;;  %25436 = vmatprep.mubr.msk.f32.mxu1 %vm5878_vm6, %v32254_v41  ;;  %24453 = vmatprep.mubr.msk.f32.mxu0 %vm621_vm1, %v466_v62 }
 0x36b   :  { %v32271_v15 = vmax.f32 %v5664_v60, 0.0  ;;  %v5521_v40 = vmax.f32 %v4041_v54, %v4046_v49  ;;  %v24296_v32 = vpop.f32.mrb[70].mxu0  ;;  %v38731_v49 = vmax.f32 %v32087_v45, %v32083_v39  ;;  %v471_v60 = vld [vmem:[%s38223_s0 + $0xda8] sm:$0xff]  ;;  %v472_v54 = vld [vmem:[%s38223_s0 + $0xdb0] sm:$0xff] }
 0x36c   :  { %v4056_v59 = vadd.f32 %v32237_v31, %v24296_v32  ;;  %v4050_v4 = vpop.f32.mrb[71].mxu0  ;;  %24454 = vmatmul.mubr.msk.f32.gmra.mrb[176].mxu0 %vm621_vm1, %v467_v1  ;;  %v38733_v32 = vmax.f32 %v32103_v24, %v32099_v17 }
 0x36d   :  { %38728 = vst [vmem:[#allocation58_spill] sm:$0xff] %v32271_v15  ;;  %v5665_v42 = vmax.f32 %v38729_v46, %v5521_v40  ;;  %v4051_v3 = vadd.f32 %v32237_v31, %v4050_v4  ;;  %25437 = vmatmul.mubr.msk.f32.gmra.mrb[6].mxu1 %vm5878_vm6, %v32271_v15  ;;  %24456 = vmatprep.mubr.msk.f32.mxu0 %vm621_vm1, %v468_v25  ;;  %v473_v46 = vld [vmem:[%s38223_s0 + $0xdb8] sm:$0xff] }
 0x36f   :  { %v32288_v62 = vmax.f32 %v5665_v42, 0.0  ;;  %v5522_v6 = vmax.f32 %v4051_v3, %v4056_v59  ;;  %v24299_v56 = vpop.f32.mrb[72].mxu0  ;;  %v474_v42 = vld [vmem:[%s38223_s0 + $0xdc0] sm:$0xff] }
 0x370   :  { %v4066_v53 = vadd.f32 %v32237_v31, %v24299_v56  ;;  %v4060_v30 = vpop.f32.mrb[73].mxu0  ;;  %24457 = vmatmul.mubr.msk.f32.gmra.mrb[178].mxu0 %vm621_vm1, %v469_v38 }
 0x371   :  { %38730 = vst [vmem:[#allocation59_spill] sm:$0xff] %v32288_v62  ;;  %v5666_v26 = vmax.f32 %v38731_v49, %v5522_v6  ;;  %v4061_v37 = vadd.f32 %v32237_v31, %v4060_v30  ;;  %25439 = vmatprep.mubr.msk.f32.mxu1 %vm5878_vm6, %v32288_v62  ;;  %24459 = vmatprep.mubr.msk.f32.mxu0 %vm621_vm1, %v470_v10  ;;  %v475_v30 = vld [vmem:[%s38223_s0 + $0xdc8] sm:$0xff]  ;;  %v476_v49 = vld [vmem:[%s38223_s0 + $0xdd0] sm:$0xff] }
 0x372   :  { %v38735_v6 = vmax.f32 %v32119_v29, %v32115_v12 }
 0x373   :  { %v32305_v1 = vmax.f32 %v5666_v26, 0.0  ;;  %v5523_v25 = vmax.f32 %v4061_v37, %v4066_v53  ;;  %v24302_v39 = vpop.f32.mrb[74].mxu0 }
 0x374   :  { %v4076_v45 = vadd.f32 %v32237_v31, %v24302_v39  ;;  %v4070_v40 = vpop.f32.mrb[75].mxu0  ;;  %24460 = vmatmul.mubr.msk.f32.gmra.mrb[180].mxu0 %vm621_vm1, %v471_v60  ;;  %v477_v39 = vld [vmem:[%s38223_s0 + $0xdd8] sm:$0xff] }
 0x375   :  { %38732 = vst [vmem:[#allocation60_spill] sm:$0xff] %v32305_v1  ;;  %v5667_v59 = vmax.f32 %v38733_v32, %v5523_v25  ;;  %v4071_v4 = vadd.f32 %v32237_v31, %v4070_v40  ;;  %25440 = vmatmul.mubr.msk.f32.gmra.mrb[8].mxu1 %vm5878_vm6, %v32305_v1  ;;  %24462 = vmatprep.mubr.msk.f32.mxu0 %vm621_vm1, %v472_v54  ;;  %v478_v40 = vld [vmem:[%s38223_s0 + $0xde0] sm:$0xff]  ;;  %v504_v1 = vld [vmem:[%s38223_s0 + $0xeb0] sm:$0xff] }
 0x376   :  { %v38737_v54 = vmax.f32 %v32135_v50, %v32131_v51 }
 0x377   :  { %v32322_v3 = vmax.f32 %v5667_v59, 0.0  ;;  %v5524_v38 = vmax.f32 %v4071_v4, %v4076_v45  ;;  %v24305_v17 = vpop.f32.mrb[76].mxu0  ;;  %v479_v4 = vld [vmem:[%s38223_s0 + $0xde8] sm:$0xff] }
 0x378   :  { %v4086_v24 = vadd.f32 %v32237_v31, %v24305_v17  ;;  %v4080_v10 = vpop.f32.mrb[77].mxu0  ;;  %24463 = vmatmul.mubr.msk.f32.gmra.mrb[182].mxu0 %vm621_vm1, %v473_v46  ;;  %v480_v17 = vld [vmem:[%s38223_s0 + $0xdf0] sm:$0xff] }
 0x379   :  { %38734 = vst [vmem:[#allocation61_spill] sm:$0xff] %v32322_v3  ;;  %v5668_v56 = vmax.f32 %v38735_v6, %v5524_v38  ;;  %v4081_v53 = vadd.f32 %v32237_v31, %v4080_v10  ;;  %25442 = vmatprep.mubr.msk.f32.mxu1 %vm5878_vm6, %v32322_v3  ;;  %24465 = vmatprep.mubr.msk.f32.mxu0 %vm621_vm1, %v474_v42  ;;  %v496_v10 = vld [vmem:[%s38223_s0 + $0xe70] sm:$0xff] }
 0x37a   :  { %v38739_v42 = vmax.f32 %v32151_v14, %v32147_v47  ;;  %v481_v47 = vld [vmem:[%s38223_s0 + $0xdf8] sm:$0xff]  ;;  %v482_v14 = vld [vmem:[%s38223_s0 + $0xe00] sm:$0xff] }
 0x37b   :  { %v32339_v26 = vmax.f32 %v5668_v56, 0.0  ;;  %v5525_v37 = vmax.f32 %v4081_v53, %v4086_v24  ;;  %v24308_v12 = vpop.f32.mrb[78].mxu0 }
 0x37c   :  { %v4090_v29 = vpop.f32.mrb[79].mxu0  ;;  %24466 = vmatmul.mubr.msk.f32.gmra.mrb[184].mxu0 %vm621_vm1, %v475_v30  ;;  %v4096_v60 = vadd.f32 %v32237_v31, %v24308_v12 }
 0x37d   :  { %38736 = vst [vmem:[#allocation62_spill] sm:$0xff] %v32339_v26  ;;  %v32346_v25 = vmax.f32 %v38737_v54, %v5525_v37  ;;  %25443 = vmatmul.mubr.msk.f32.gmra.mrb[10].mxu1 %vm5878_vm6, %v32339_v26  ;;  %24468 = vmatprep.mubr.msk.f32.mxu0 %vm621_vm1, %v476_v49  ;;  %v4091_v45 = vadd.f32 %v32237_v31, %v4090_v29  ;;  %v484_v54 = vld [vmem:[%s38223_s0 + $0xe10] sm:$0xff] }
 0x37f   :  { %38738 = vst [vmem:[#allocation63_spill] sm:$0xff] %v32346_v25  ;;  %v24311_v32 = vpop.f32.mrb[80].mxu0  ;;  %v5526_v59 = vmax.f32 %v4091_v45, %v4096_v60  ;;  %v483_v60 = vld [vmem:[%s38223_s0 + $0xe08] sm:$0xff]  ;;  %v494_v45 = vld [vmem:[%s38223_s0 + $0xe60] sm:$0xff] }
 0x380   :  { %v4100_v51 = vpop.f32.mrb[81].mxu0  ;;  %24469 = vmatmul.mubr.msk.f32.gmra.mrb[186].mxu0 %vm621_vm1, %v477_v39  ;;  %v32360_v50 = vadd.f32 %v32237_v31, %v24311_v32  ;;  %v20276_v32 = vld [vmem:[%s38225_s3 + $0x88] sm:$0x3] }
 0x381   :  { %24471 = vmatprep.mubr.msk.f32.mxu0 %vm621_vm1, %v478_v40  ;;  %v32367_v46 = vadd.f32 %v32237_v31, %v4100_v51  ;;  %v32372_v38 = vmax.f32 %v38739_v42, %v5526_v59  ;;  %v20275_v40 = vld [vmem:[%s38225_s3 + $0x80] sm:$0xff] }
 0x383   :  { %38740 = vst [vmem:[#allocation64_spill] sm:$0xff] %v32372_v38  ;;  %v24314_v24 = vpop.f32.mrb[82].mxu0 }
 0x384   :  { %v32380_v6 = vadd.f32 %v32237_v31, %v24314_v24  ;;  %v4110_v56 = vpop.f32.mrb[83].mxu0  ;;  %24472 = vmatmul.mubr.msk.f32.gmra.mrb[188].mxu0 %vm621_vm1, %v479_v4  ;;  %v27388_v4 = vpack.c.bf16 %v20276_v32, %v20275_v40  ;;  %v486_v24 = vld [vmem:[%s38223_s0 + $0xe20] sm:$0xff]  ;;  %v492_v40 = vld [vmem:[%s38223_s0 + $0xe50] sm:$0xff] }
 0x385   :  { %v32384_v53 = vadd.f32 %v32237_v31, %v4110_v56  ;;  %24474 = vmatprep.mubr.msk.f32.mxu0 %vm621_vm1, %v480_v17  ;;  %v485_v17 = vld [vmem:[%s38223_s0 + $0xe18] sm:$0xff] }
 0x386   :  { %27390 = vmatprep.subr.msk.bf16.mxu1 %vm31375_vm5, %v27388_v4 }
 0x387   :  { %v24317_v30 = vpop.f32.mrb[84].mxu0  ;;  %27393 = vmatpush3.bf16.msk.msra.mxu1 %vm31375_vm5, %v27388_v4 }
 0x388   :  { %v32396_v37 = vadd.f32 %v32237_v31, %v24317_v30  ;;  %v4120_v12 = vpop.f32.mrb[85].mxu0  ;;  %24475 = vmatmul.mubr.msk.f32.gmra.mrb[190].mxu0 %vm621_vm1, %v481_v47 }
 0x389   :  { %v32400_v29 = vadd.f32 %v32237_v31, %v4120_v12  ;;  %24477 = vmatprep.mubr.msk.f32.mxu0 %vm621_vm1, %v482_v14 }
 0x38b   :  { %v24320_v39 = vpop.f32.mrb[86].mxu0 }
 0x38c   :  { %v32418_v59 = vadd.f32 %v32237_v31, %v24320_v39  ;;  %v4130_v51 = vpop.f32.mrb[87].mxu0  ;;  %24478 = vmatmul.mubr.msk.f32.gmra.mrb[192].mxu0 %vm621_vm1, %v483_v60  ;;  %v487_v60 = vld [vmem:[%s38223_s0 + $0xe28] sm:$0xff] }
 0x38d   :  { %v32422_v42 = vadd.f32 %v32237_v31, %v4130_v51  ;;  %24480 = vmatprep.mubr.msk.f32.mxu0 %vm621_vm1, %v484_v54  ;;  %v488_v54 = vld [vmem:[%s38223_s0 + $0xe30] sm:$0xff] }
 0x38f   :  { %v24323_v56 = vpop.f32.mrb[88].mxu0 }
 0x390   :  { %v32438_v14 = vadd.f32 %v32237_v31, %v24323_v56  ;;  %v4140_v30 = vpop.f32.mrb[89].mxu0  ;;  %24481 = vmatmul.mubr.msk.f32.gmra.mrb[194].mxu0 %vm621_vm1, %v485_v17  ;;  %v489_v17 = vld [vmem:[%s38223_s0 + $0xe38] sm:$0xff] }
 0x391   :  { %v32442_v12 = vadd.f32 %v32237_v31, %v4140_v30  ;;  %24483 = vmatprep.mubr.msk.f32.mxu0 %vm621_vm1, %v486_v24  ;;  %v490_v24 = vld [vmem:[%s38223_s0 + $0xe40] sm:$0xff] }
 0x393   :  { %v24326_v39 = vpop.f32.mrb[90].mxu0 }
 0x394   :  { %v32454_v32 = vadd.f32 %v32237_v31, %v24326_v39  ;;  %v4150_v51 = vpop.f32.mrb[91].mxu0  ;;  %24484 = vmatmul.mubr.msk.f32.gmra.mrb[196].mxu0 %vm621_vm1, %v487_v60 }
 0x395   :  { %v32458_v4 = vadd.f32 %v32237_v31, %v4150_v51  ;;  %24486 = vmatprep.mubr.msk.f32.mxu0 %vm621_vm1, %v488_v54  ;;  %v491_v51 = vld [vmem:[%s38223_s0 + $0xe48] sm:$0xff] }
 0x397   :  { %v24329_v56 = vpop.f32.mrb[92].mxu0 }
 0x398   :  { %v32470_v39 = vadd.f32 %v32237_v31, %v24329_v56  ;;  %v4160_v60 = vpop.f32.mrb[93].mxu0  ;;  %24487 = vmatmul.mubr.msk.f32.gmra.mrb[198].mxu0 %vm621_vm1, %v489_v17 }
 0x399   :  { %v32474_v54 = vadd.f32 %v32237_v31, %v4160_v60  ;;  %24489 = vmatprep.mubr.msk.f32.mxu0 %vm621_vm1, %v490_v24  ;;  %v493_v60 = vld [vmem:[%s38223_s0 + $0xe58] sm:$0xff] }
 0x39b   :  { %v24332_v30 = vpop.f32.mrb[94].mxu0 }
 0x39c   :  { %v32486_v47 = vadd.f32 %v32237_v31, %v24332_v30  ;;  %v4170_v17 = vpop.f32.mrb[95].mxu0  ;;  %24490 = vmatmul.mubr.msk.f32.gmra.mrb[200].mxu0 %vm621_vm1, %v491_v51 }
 0x39d   :  { %v32490_v24 = vadd.f32 %v32237_v31, %v4170_v17  ;;  %24492 = vmatprep.mubr.msk.f32.mxu0 %vm621_vm1, %v492_v40  ;;  %v495_v17 = vld [vmem:[%s38223_s0 + $0xe68] sm:$0xff] }
 0x39f   :  { %v24335_v56 = vpop.f32.mrb[96].mxu0 }
 0x3a0   :  { %v32502_v49 = vadd.f32 %v32237_v31, %v24335_v56  ;;  %v4180_v51 = vpop.f32.mrb[97].mxu0  ;;  %24493 = vmatmul.mubr.msk.f32.gmra.mrb[202].mxu0 %vm621_vm1, %v493_v60 }
 0x3a1   :  { %v32506_v40 = vadd.f32 %v32237_v31, %v4180_v51  ;;  %24495 = vmatprep.mubr.msk.f32.mxu0 %vm621_vm1, %v494_v45  ;;  %v497_v51 = vld [vmem:[%s38223_s0 + $0xe78] sm:$0xff] }
 0x3a3   :  { %v24338_v30 = vpop.f32.mrb[98].mxu0 }
 0x3a4   :  { %v32518_v38 = vadd.f32 %v32237_v31, %v24338_v30  ;;  %v4190_v60 = vpop.f32.mrb[99].mxu0  ;;  %24496 = vmatmul.mubr.msk.f32.gmra.mrb[204].mxu0 %vm621_vm1, %v495_v17 }
 0x3a5   :  { %v32522_v45 = vadd.f32 %v32237_v31, %v4190_v60  ;;  %24498 = vmatprep.mubr.msk.f32.mxu0 %vm621_vm1, %v496_v10  ;;  %v499_v60 = vld [vmem:[%s38223_s0 + $0xe88] sm:$0xff] }
 0x3a7   :  { %v24341_v56 = vpop.f32.mrb[100].mxu0 }
 0x3a8   :  { %v32534_v43 = vadd.f32 %v32237_v31, %v24341_v56  ;;  %v4200_v17 = vpop.f32.mrb[101].mxu0  ;;  %24499 = vmatmul.mubr.msk.f32.gmra.mrb[206].mxu0 %vm621_vm1, %v497_v51  ;;  %v502_v56 = vld [vmem:[%s38223_s0 + $0xea0] sm:$0xff] }
 0x3a9   :  { %v32538_v10 = vadd.f32 %v32237_v31, %v4200_v17  ;;  %24501 = vmatprep.mubr.msk.f32.mxu0 %vm621_vm1, %v498_v23  ;;  %v501_v23 = vld [vmem:[%s38223_s0 + $0xe98] sm:$0xff] }
 0x3ab   :  { %v24344_v30 = vpop.f32.mrb[102].mxu0 }
 0x3ac   :  { %v4210_v25 = vpop.f32.mrb[103].mxu0  ;;  %24502 = vmatmul.mubr.msk.f32.gmra.mrb[208].mxu0 %vm621_vm1, %v499_v60  ;;  %v32551_v51 = vadd.f32 %v32237_v31, %v24344_v30 }
 0x3ad   :  { %24504 = vmatprep.mubr.msk.f32.mxu0 %vm621_vm1, %v500_v5  ;;  %v32558_v17 = vadd.f32 %v32237_v31, %v4210_v25  ;;  %v503_v25 = vld [vmem:[%s38223_s0 + $0xea8] sm:$0xff] }
 0x3af   :  { %v24347_v26 = vpop.f32.mrb[104].mxu0 }
 0x3b0   :  { %v4220_v3 = vpop.f32.mrb[105].mxu0  ;;  %24505 = vmatmul.mubr.msk.f32.gmra.mrb[210].mxu0 %vm621_vm1, %v501_v23  ;;  %v4226_v5 = vadd.f32 %v32237_v31, %v24347_v26 }
 0x3b1   :  { %24507 = vmatprep.mubr.msk.f32.mxu0 %vm621_vm1, %v502_v56  ;;  %v4221_v30 = vadd.f32 %v32237_v31, %v4220_v3  ;;  %v505_v56 = vld [vmem:[%s38223_s0 + $0xeb8] sm:$0xff]  ;;  %v38741_v3 = vmax.f32 %v32367_v46, %v32360_v50  ;;  %v508_v46 = vld [vmem:[%s38223_s0 + $0xed0] sm:$0xff] }
 0x3b3   :  { %v24350_v62 = vpop.f32.mrb[106].mxu0  ;;  %v5527_v15 = vmax.f32 %v4221_v30, %v4226_v5 }
 0x3b4   :  { %v4236_v60 = vadd.f32 %v32237_v31, %v24350_v62  ;;  %v4230_v41 = vpop.f32.mrb[107].mxu0  ;;  %24508 = vmatmul.mubr.msk.f32.gmra.mrb[212].mxu0 %vm621_vm1, %v503_v25  ;;  %v506_v62 = vld [vmem:[%s38223_s0 + $0xec0] sm:$0xff] }
 0x3b5   :  { %v4231_v26 = vadd.f32 %v32237_v31, %v4230_v41  ;;  %24510 = vmatprep.mubr.msk.f32.mxu0 %vm621_vm1, %v504_v1  ;;  %v32585_v23 = vmax.f32 %v38741_v3, %v5527_v15  ;;  %v38743_v1 = vmax.f32 %v32384_v53, %v32380_v6  ;;  %v507_v15 = vld [vmem:[%s38223_s0 + $0xec8] sm:$0xff]  ;;  %v38745_v6 = vmax.f32 %v32400_v29, %v32396_v37 }
 0x3b6   :  { %v38747_v29 = vmax.f32 %v32422_v42, %v32418_v59  ;;  %v5876_v42 = vld [vmem:[%s38225_s3] sm:$0xff] }
 0x3b7   :  { %38742 = vst [vmem:[#allocation65_spill] sm:$0xff] %v32585_v23  ;;  %v5528_v5 = vmax.f32 %v4231_v26, %v4236_v60  ;;  %v24353_v30 = vpop.f32.mrb[108].mxu0 }
 0x3b8   :  { %v4246_v25 = vadd.f32 %v32237_v31, %v24353_v30  ;;  %v4240_v41 = vpop.f32.mrb[109].mxu0  ;;  %24511 = vmatmul.mubr.msk.f32.gmra.mrb[214].mxu0 %vm621_vm1, %v505_v56  ;;  %v510_v30 = vld [vmem:[%s38223_s0 + $0xee0] sm:$0xff] }
 0x3b9   :  { %v32595_v11 = vmax.f32 %v38743_v1, %v5528_v5  ;;  %v4241_v50 = vadd.f32 %v32237_v31, %v4240_v41  ;;  %24513 = vmatprep.mubr.msk.f32.mxu0 %vm621_vm1, %v506_v62  ;;  %v509_v5 = vld [vmem:[%s38223_s0 + $0xed8] sm:$0xff] }
 0x3bb   :  { %38744 = vst [vmem:[#allocation66_spill] sm:$0xff] %v32595_v11  ;;  %v5529_v60 = vmax.f32 %v4241_v50, %v4246_v25  ;;  %v24356_v26 = vpop.f32.mrb[110].mxu0 }
 0x3bc   :  { %v4256_v56 = vadd.f32 %v32237_v31, %v24356_v26  ;;  %v4250_v3 = vpop.f32.mrb[111].mxu0  ;;  %24514 = vmatmul.mubr.msk.f32.gmra.mrb[216].mxu0 %vm621_vm1, %v507_v15  ;;  %v512_v26 = vld [vmem:[%s38223_s0 + $0xef0] sm:$0xff] }
 0x3bd   :  { %v5673_v53 = vmax.f32 %v38745_v6, %v5529_v60  ;;  %v4251_v62 = vadd.f32 %v32237_v31, %v4250_v3  ;;  %24516 = vmatprep.mubr.msk.f32.mxu0 %vm621_vm1, %v508_v46  ;;  %v511_v60 = vld [vmem:[%s38223_s0 + $0xee8] sm:$0xff] }
 0x3be   :  { %v5877_v6 = vld [vmem:[%s38225_s3 + $0x8] sm:$0x3] }
 0x3bf   :  { %v32618_v25 = vmax.f32 %v5673_v53, 0.0  ;;  %v5530_v41 = vmax.f32 %v4251_v62, %v4256_v56  ;;  %v24359_v1 = vpop.f32.mrb[112].mxu0  ;;  %v20342_v53 = vld [vmem:[%s38225_s3 + $0x90] sm:$0xff] }
 0x3c0   :  { %v4266_v50 = vadd.f32 %v32237_v31, %v24359_v1  ;;  %v4260_v37 = vpop.f32.mrb[113].mxu0  ;;  %24517 = vmatmul.mubr.msk.f32.gmra.mrb[218].mxu0 %vm621_vm1, %v509_v5  ;;  %v38749_v1 = vmax.f32 %v32442_v12, %v32438_v14 }
 0x3c1   :  { %38746 = vst [vmem:[#allocation67_spill] sm:$0xff] %v32618_v25  ;;  %v5674_v15 = vmax.f32 %v38747_v29, %v5530_v41  ;;  %v4261_v46 = vadd.f32 %v32237_v31, %v4260_v37  ;;  %25445 = vmatprep.mubr.msk.f32.mxu1 %vm5878_vm6, %v32618_v25  ;;  %24519 = vmatprep.mubr.msk.f32.mxu0 %vm621_vm1, %v510_v30  ;;  %v20343_v41 = vld [vmem:[%s38225_s3 + $0x98] sm:$0x3] }
 0x3c2   :  { %v27340_v30 = vpack.c.bf16 %v5877_v6, %v5876_v42  ;;  %v513_v29 = vld [vmem:[%s38223_s0 + $0xef8] sm:$0xff] }
 0x3c3   :  { %v32635_v56 = vmax.f32 %v5674_v15, 0.0  ;;  %v5531_v3 = vmax.f32 %v4261_v46, %v4266_v50  ;;  %v24362_v59 = vpop.f32.mrb[114].mxu0  ;;  %v32661_v15 = vpack.c.bf16 %v20343_v41, %v20342_v53  ;;  %v514_v46 = vld [vmem:[%s38223_s0 + $0xf00] sm:$0xff]  ;;  %v515_v53 = vld [vmem:[%s38223_s0 + $0xf08] sm:$0xff] }
 0x3c4   :  { %v4276_v62 = vadd.f32 %v32237_v31, %v24362_v59  ;;  %v4270_v5 = vpop.f32.mrb[115].mxu0  ;;  %24520 = vmatmul.mubr.msk.f32.gmra.mrb[220].mxu0 %vm621_vm1, %v511_v60  ;;  %27342 = vmatprep.subr.msk.bf16.mxu0 %vm31375_vm5, %v27340_v30  ;;  %v38751_v59 = vmax.f32 %v32458_v4, %v32454_v32 }
 0x3c5   :  { %38748 = vst [vmem:[#allocation68_spill] sm:$0xff] %v32635_v56  ;;  %v5675_v50 = vmax.f32 %v38749_v1, %v5531_v3  ;;  %v4271_v37 = vadd.f32 %v32237_v31, %v4270_v5  ;;  %25446 = vmatmul.mubr.msk.f32.gmra.mrb[12].mxu1 %vm5878_vm6, %v32635_v56  ;;  %24522 = vmatprep.mubr.msk.f32.mxu0 %vm621_vm1, %v512_v26  ;;  %v553_v56 = vld [vmem:[%s38223_s0 + $0x1038] sm:$0xff] }
 0x3c6   :  { %27345 = vmatpush3.bf16.msk.msra.mxu0 %vm31375_vm5, %v27340_v30  ;;  %27396 = vmatprep.subr.msk.bf16.mxu1 %vm31375_vm5, %v32661_v15  ;;  %v38753_v1 = vmax.f32 %v32474_v54, %v32470_v39 }
 0x3c7   :  { %v32668_v14 = vmax.f32 %v5675_v50, 0.0  ;;  %v5532_v12 = vmax.f32 %v4271_v37, %v4276_v62  ;;  %v24365_v60 = vpop.f32.mrb[116].mxu0  ;;  %v516_v62 = vld [vmem:[%s38223_s0 + $0xf10] sm:$0xff] }
 0x3c8   :  { %v4286_v26 = vadd.f32 %v32237_v31, %v24365_v60  ;;  %v4280_v3 = vpop.f32.mrb[117].mxu0  ;;  %24523 = vmatmul.mubr.msk.f32.gmra.mrb[222].mxu0 %vm621_vm1, %v513_v29  ;;  %v517_v29 = vld [vmem:[%s38223_s0 + $0xf18] sm:$0xff] }
 0x3c9   :  { %38750 = vst [vmem:[#allocation69_spill] sm:$0xff] %v32668_v14  ;;  %v5676_v42 = vmax.f32 %v38751_v59, %v5532_v12  ;;  %v4281_v6 = vadd.f32 %v32237_v31, %v4280_v3  ;;  %25448 = vmatprep.mubr.msk.f32.mxu1 %vm5878_vm6, %v32668_v14  ;;  %24525 = vmatprep.mubr.msk.f32.mxu0 %vm621_vm1, %v514_v46  ;;  %v518_v46 = vld [vmem:[%s38223_s0 + $0xf20] sm:$0xff] }
 0x3ca   :  { %v38755_v3 = vmax.f32 %v32490_v24, %v32486_v47 }
 0x3cb   :  { %v32690_v5 = vmax.f32 %v5676_v42, 0.0  ;;  %v5533_v30 = vmax.f32 %v4281_v6, %v4286_v26  ;;  %v24368_v32 = vpop.f32.mrb[118].mxu0  ;;  %v519_v6 = vld [vmem:[%s38223_s0 + $0xf28] sm:$0xff] }
 0x3cc   :  { %v4296_v4 = vadd.f32 %v32237_v31, %v24368_v32  ;;  %v4290_v41 = vpop.f32.mrb[119].mxu0  ;;  %24526 = vmatmul.mubr.msk.f32.gmra.mrb[224].mxu0 %vm621_vm1, %v515_v53  ;;  %v520_v53 = vld [vmem:[%s38223_s0 + $0xf30] sm:$0xff] }
 0x3cd   :  { %38752 = vst [vmem:[#allocation70_spill] sm:$0xff] %v32690_v5  ;;  %v5677_v50 = vmax.f32 %v38753_v1, %v5533_v30  ;;  %v4291_v37 = vadd.f32 %v32237_v31, %v4290_v41  ;;  %25449 = vmatmul.mubr.msk.f32.gmra.mrb[14].mxu1 %vm5878_vm6, %v32690_v5  ;;  %24528 = vmatprep.mubr.msk.f32.mxu0 %vm621_vm1, %v516_v62 }
 0x3cf   :  { %v32707_v12 = vmax.f32 %v5677_v50, 0.0  ;;  %v5534_v60 = vmax.f32 %v4291_v37, %v4296_v4  ;;  %v24371_v39 = vpop.f32.mrb[120].mxu0  ;;  %v38757_v4 = vmax.f32 %v32506_v40, %v32502_v49  ;;  %v521_v50 = vld [vmem:[%s38223_s0 + $0xf38] sm:$0xff]  ;;  %v522_v37 = vld [vmem:[%s38223_s0 + $0xf40] sm:$0xff] }
 0x3d0   :  { %v4306_v54 = vadd.f32 %v32237_v31, %v24371_v39  ;;  %v4300_v26 = vpop.f32.mrb[121].mxu0  ;;  %24529 = vmatmul.mubr.msk.f32.gmra.mrb[226].mxu0 %vm621_vm1, %v517_v29  ;;  %v38759_v39 = vmax.f32 %v32522_v45, %v32518_v38 }
 0x3d1   :  { %38754 = vst [vmem:[#allocation71_spill] sm:$0xff] %v32707_v12  ;;  %v5678_v59 = vmax.f32 %v38755_v3, %v5534_v60  ;;  %v4301_v42 = vadd.f32 %v32237_v31, %v4300_v26  ;;  %25451 = vmatprep.mubr.msk.f32.mxu1 %vm5878_vm6, %v32707_v12  ;;  %24531 = vmatprep.mubr.msk.f32.mxu0 %vm621_vm1, %v518_v46  ;;  %v523_v3 = vld [vmem:[%s38223_s0 + $0xf48] sm:$0xff]  ;;  %v552_v12 = vld [vmem:[%s38223_s0 + $0x1030] sm:$0xff] }
 0x3d3   :  { %v32724_v62 = vmax.f32 %v5678_v59, 0.0  ;;  %v5535_v30 = vmax.f32 %v4301_v42, %v4306_v54  ;;  %v24374_v47 = vpop.f32.mrb[122].mxu0  ;;  %v524_v59 = vld [vmem:[%s38223_s0 + $0xf50] sm:$0xff] }
 0x3d4   :  { %v4316_v24 = vadd.f32 %v32237_v31, %v24374_v47  ;;  %v4310_v32 = vpop.f32.mrb[123].mxu0  ;;  %24532 = vmatmul.mubr.msk.f32.gmra.mrb[228].mxu0 %vm621_vm1, %v519_v6 }
 0x3d5   :  { %38756 = vst [vmem:[#allocation72_spill] sm:$0xff] %v32724_v62  ;;  %v5679_v41 = vmax.f32 %v38757_v4, %v5535_v30  ;;  %v4311_v1 = vadd.f32 %v32237_v31, %v4310_v32  ;;  %25452 = vmatmul.mubr.msk.f32.gmra.mrb[16].mxu1 %vm5878_vm6, %v32724_v62  ;;  %24534 = vmatprep.mubr.msk.f32.mxu0 %vm621_vm1, %v520_v53  ;;  %v526_v4 = vld [vmem:[%s38223_s0 + $0xf60] sm:$0xff] }
 0x3d6   :  { %v38761_v30 = vmax.f32 %v32538_v10, %v32534_v43 }
 0x3d7   :  { %v32741_v29 = vmax.f32 %v5679_v41, 0.0  ;;  %v5536_v46 = vmax.f32 %v4311_v1, %v4316_v24  ;;  %v24377_v49 = vpop.f32.mrb[124].mxu0  ;;  %v525_v24 = vld [vmem:[%s38223_s0 + $0xf58] sm:$0xff] }
 0x3d8   :  { %v4326_v40 = vadd.f32 %v32237_v31, %v24377_v49  ;;  %v4320_v60 = vpop.f32.mrb[125].mxu0  ;;  %24535 = vmatmul.mubr.msk.f32.gmra.mrb[230].mxu0 %vm621_vm1, %v521_v50  ;;  %v527_v50 = vld [vmem:[%s38223_s0 + $0xf68] sm:$0xff] }
 0x3d9   :  { %38758 = vst [vmem:[#allocation73_spill] sm:$0xff] %v32741_v29  ;;  %v5680_v54 = vmax.f32 %v38759_v39, %v5536_v46  ;;  %v4321_v26 = vadd.f32 %v32237_v31, %v4320_v60  ;;  %25454 = vmatprep.mubr.msk.f32.mxu1 %vm5878_vm6, %v32741_v29  ;;  %24537 = vmatprep.mubr.msk.f32.mxu0 %vm621_vm1, %v522_v37 }
 0x3da   :  { %v38763_v46 = vmax.f32 %v32558_v17, %v32551_v51  ;;  %v529_v51 = vld [vmem:[%s38223_s0 + $0xf78] sm:$0xff]  ;;  %v530_v17 = vld [vmem:[%s38223_s0 + $0xf80] sm:$0xff] }
 0x3db   :  { %v32758_v42 = vmax.f32 %v5680_v54, 0.0  ;;  %v5537_v6 = vmax.f32 %v4321_v26, %v4326_v40  ;;  %v24380_v38 = vpop.f32.mrb[126].mxu0  ;;  %v528_v40 = vld [vmem:[%s38223_s0 + $0xf70] sm:$0xff] }
 0x3dc   :  { %v4330_v45 = vpop.f32.mrb[127].mxu0  ;;  %24538 = vmatmul.mubr.msk.f32.gmra.mrb[232].mxu0 %vm621_vm1, %v523_v3  ;;  %v4336_v53 = vadd.f32 %v32237_v31, %v24380_v38 }
 0x3dd   :  { %38760 = vst [vmem:[#allocation74_spill] sm:$0xff] %v32758_v42  ;;  %v32765_v47 = vmax.f32 %v38761_v30, %v5537_v6  ;;  %25455 = vmatmul.mubr.msk.f32.gmra.mrb[18].mxu1 %vm5878_vm6, %v32758_v42  ;;  %24540 = vmatprep.mubr.msk.f32.mxu0 %vm621_vm1, %v524_v59  ;;  %v4331_v32 = vadd.f32 %v32237_v31, %v4330_v45  ;;  %v531_v30 = vld [vmem:[%s38223_s0 + $0xf88] sm:$0xff] }
 0x3df   :  { %38762 = vst [vmem:[#allocation75_spill] sm:$0xff] %v32765_v47  ;;  %v24383_v41 = vpop.f32.mrb[128].mxu0  ;;  %v5538_v1 = vmax.f32 %v4331_v32, %v4336_v53 }
 0x3e0   :  { %v4340_v43 = vpop.f32.mrb[129].mxu0  ;;  %24541 = vmatmul.mubr.msk.f32.gmra.mrb[234].mxu0 %vm621_vm1, %v525_v24  ;;  %v32779_v10 = vadd.f32 %v32237_v31, %v24383_v41  ;;  %v532_v24 = vld [vmem:[%s38223_s0 + $0xf90] sm:$0xff] }
 0x3e1   :  { %24543 = vmatprep.mubr.msk.f32.mxu0 %vm621_vm1, %v526_v4  ;;  %v32786_v37 = vadd.f32 %v32237_v31, %v4340_v43  ;;  %v32791_v49 = vmax.f32 %v38763_v46, %v5538_v1  ;;  %v534_v46 = vld [vmem:[%s38223_s0 + $0xfa0] sm:$0xff] }
 0x3e3   :  { %38764 = vst [vmem:[#allocation76_spill] sm:$0xff] %v32791_v49  ;;  %v24386_v60 = vpop.f32.mrb[130].mxu0 }
 0x3e4   :  { %v32799_v54 = vadd.f32 %v32237_v31, %v24386_v60  ;;  %v4350_v26 = vpop.f32.mrb[131].mxu0  ;;  %24544 = vmatmul.mubr.msk.f32.gmra.mrb[236].mxu0 %vm621_vm1, %v527_v50  ;;  %v533_v50 = vld [vmem:[%s38223_s0 + $0xf98] sm:$0xff] }
 0x3e5   :  { %v32803_v3 = vadd.f32 %v32237_v31, %v4350_v26  ;;  %24546 = vmatprep.mubr.msk.f32.mxu0 %vm621_vm1, %v528_v40 }
 0x3e7   :  { %v24389_v6 = vpop.f32.mrb[132].mxu0 }
 0x3e8   :  { %v32815_v38 = vadd.f32 %v32237_v31, %v24389_v6  ;;  %v4360_v45 = vpop.f32.mrb[133].mxu0  ;;  %24547 = vmatmul.mubr.msk.f32.gmra.mrb[238].mxu0 %vm621_vm1, %v529_v51  ;;  %v535_v6 = vld [vmem:[%s38223_s0 + $0xfa8] sm:$0xff] }
 0x3e9   :  { %v32819_v53 = vadd.f32 %v32237_v31, %v4360_v45  ;;  %24549 = vmatprep.mubr.msk.f32.mxu0 %vm621_vm1, %v530_v17  ;;  %v536_v45 = vld [vmem:[%s38223_s0 + $0xfb0] sm:$0xff] }
 0x3eb   :  { %v24392_v4 = vpop.f32.mrb[134].mxu0 }
 0x3ec   :  { %v32831_v41 = vadd.f32 %v32237_v31, %v24392_v4  ;;  %v4370_v1 = vpop.f32.mrb[135].mxu0  ;;  %24550 = vmatmul.mubr.msk.f32.gmra.mrb[240].mxu0 %vm621_vm1, %v531_v30 }
 0x3ed   :  { %v32835_v43 = vadd.f32 %v32237_v31, %v4370_v1  ;;  %24552 = vmatprep.mubr.msk.f32.mxu0 %vm621_vm1, %v532_v24 }
 0x3ef   :  { %v24395_v60 = vpop.f32.mrb[136].mxu0 }
 0x3f0   :  { %v32847_v26 = vadd.f32 %v32237_v31, %v24395_v60  ;;  %v4380_v51 = vpop.f32.mrb[137].mxu0  ;;  %24553 = vmatmul.mubr.msk.f32.gmra.mrb[242].mxu0 %vm621_vm1, %v533_v50  ;;  %v538_v60 = vld [vmem:[%s38223_s0 + $0xfc0] sm:$0xff] }
 0x3f1   :  { %v32851_v17 = vadd.f32 %v32237_v31, %v4380_v51  ;;  %24555 = vmatprep.mubr.msk.f32.mxu0 %vm621_vm1, %v534_v46  ;;  %v537_v46 = vld [vmem:[%s38223_s0 + $0xfb8] sm:$0xff]  ;;  %v540_v51 = vld [vmem:[%s38223_s0 + $0xfd0] sm:$0xff] }
 0x3f3   :  { %v24398_v24 = vpop.f32.mrb[138].mxu0 }
 0x3f4   :  { %v32863_v4 = vadd.f32 %v32237_v31, %v24398_v24  ;;  %v4390_v1 = vpop.f32.mrb[139].mxu0  ;;  %24556 = vmatmul.mubr.msk.f32.gmra.mrb[244].mxu0 %vm621_vm1, %v535_v6 }
 0x3f5   :  { %v32867_v50 = vadd.f32 %v32237_v31, %v4390_v1  ;;  %24558 = vmatprep.mubr.msk.f32.mxu0 %vm621_vm1, %v536_v45  ;;  %v539_v1 = vld [vmem:[%s38223_s0 + $0xfc8] sm:$0xff] }
 0x3f7   :  { %v24401_v24 = vpop.f32.mrb[140].mxu0 }
 0x3f8   :  { %v32879_v30 = vadd.f32 %v32237_v31, %v24401_v24  ;;  %v4400_v6 = vpop.f32.mrb[141].mxu0  ;;  %24559 = vmatmul.mubr.msk.f32.gmra.mrb[246].mxu0 %vm621_vm1, %v537_v46  ;;  %v542_v24 = vld [vmem:[%s38223_s0 + $0xfe0] sm:$0xff] }
 0x3f9   :  { %v32883_v45 = vadd.f32 %v32237_v31, %v4400_v6  ;;  %24561 = vmatprep.mubr.msk.f32.mxu0 %vm621_vm1, %v538_v60  ;;  %v541_v6 = vld [vmem:[%s38223_s0 + $0xfd8] sm:$0xff] }
 0x3fb   :  { %v24404_v40 = vpop.f32.mrb[142].mxu0 }
 0x3fc   :  { %v32895_v32 = vadd.f32 %v32237_v31, %v24404_v40  ;;  %v4410_v46 = vpop.f32.mrb[143].mxu0  ;;  %24562 = vmatmul.mubr.msk.f32.gmra.mrb[248].mxu0 %vm621_vm1, %v539_v1  ;;  %v544_v40 = vld [vmem:[%s38223_s0 + $0xff0] sm:$0xff] }
 0x3fd   :  { %v32899_v60 = vadd.f32 %v32237_v31, %v4410_v46  ;;  %24564 = vmatprep.mubr.msk.f32.mxu0 %vm621_vm1, %v540_v51  ;;  %v543_v46 = vld [vmem:[%s38223_s0 + $0xfe8] sm:$0xff] }
 0x3ff   :  { %v24407_v59 = vpop.f32.mrb[144].mxu0 }
 0x400   :  { %v32911_v39 = vadd.f32 %v32237_v31, %v24407_v59  ;;  %v4420_v1 = vpop.f32.mrb[145].mxu0  ;;  %24565 = vmatmul.mubr.msk.f32.gmra.mrb[250].mxu0 %vm621_vm1, %v541_v6  ;;  %v546_v59 = vld [vmem:[%s38223_s0 + $0x1000] sm:$0xff] }
 0x401   :  { %v32915_v51 = vadd.f32 %v32237_v31, %v4420_v1  ;;  %24567 = vmatprep.mubr.msk.f32.mxu0 %vm621_vm1, %v542_v24  ;;  %v545_v1 = vld [vmem:[%s38223_s0 + $0xff8] sm:$0xff] }
 0x403   :  { %v24410_v49 = vpop.f32.mrb[146].mxu0 }
 0x404   :  { %v32927_v25 = vadd.f32 %v32237_v31, %v24410_v49  ;;  %v4430_v6 = vpop.f32.mrb[147].mxu0  ;;  %24568 = vmatmul.mubr.msk.f32.gmra.mrb[252].mxu0 %vm621_vm1, %v543_v46  ;;  %v548_v49 = vld [vmem:[%s38223_s0 + $0x1010] sm:$0xff] }
 0x405   :  { %v32931_v24 = vadd.f32 %v32237_v31, %v4430_v6  ;;  %24570 = vmatprep.mubr.msk.f32.mxu0 %vm621_vm1, %v544_v40  ;;  %v547_v6 = vld [vmem:[%s38223_s0 + $0x1008] sm:$0xff] }
 0x407   :  { %v24413_v11 = vpop.f32.mrb[148].mxu0 }
 0x408   :  { %v32943_v23 = vadd.f32 %v32237_v31, %v24413_v11  ;;  %v4440_v46 = vpop.f32.mrb[149].mxu0  ;;  %24571 = vmatmul.mubr.msk.f32.gmra.mrb[254].mxu0 %vm621_vm1, %v545_v1  ;;  %v550_v11 = vld [vmem:[%s38223_s0 + $0x1020] sm:$0xff] }
 0x409   :  { %v32947_v40 = vadd.f32 %v32237_v31, %v4440_v46  ;;  %24573 = vmatprep.mubr.msk.f32.mxu0 %vm621_vm1, %v546_v59  ;;  %v549_v46 = vld [vmem:[%s38223_s0 + $0x1018] sm:$0xff] }
 0x40b   :  { %v24416_v47 = vpop.f32.mrb[150].mxu0 }
 0x40c   :  { %v32959_v42 = vadd.f32 %v32237_v31, %v24416_v47  ;;  %v4450_v1 = vpop.f32.mrb[151].mxu0  ;;  %24574 = vmatmul.mubr.msk.f32.gmra.mrb[0].mxu0 %vm621_vm1, %v547_v6 }
 0x40d   :  { %v32963_v59 = vadd.f32 %v32237_v31, %v4450_v1  ;;  %24576 = vmatprep.mubr.msk.f32.mxu0 %vm621_vm1, %v548_v49  ;;  %v551_v49 = vld [vmem:[%s38223_s0 + $0x1028] sm:$0xff] }
 0x40f   :  { %v24419_v29 = vpop.f32.mrb[152].mxu0 }
 0x410   :  { %v4466_v62 = vadd.f32 %v32237_v31, %v24419_v29  ;;  %v4460_v6 = vpop.f32.mrb[153].mxu0  ;;  %24577 = vmatmul.mubr.msk.f32.gmra.mrb[2].mxu0 %vm621_vm1, %v549_v46  ;;  %v38765_v46 = vmax.f32 %v32786_v37, %v32779_v10  ;;  %v555_v37 = vld [vmem:[%s38223_s0 + $0x1048] sm:$0xff] }
 0x411   :  { %v4461_v1 = vadd.f32 %v32237_v31, %v4460_v6  ;;  %24579 = vmatprep.mubr.msk.f32.mxu0 %vm621_vm1, %v550_v11 }
 0x413   :  { %v5539_v5 = vmax.f32 %v4461_v1, %v4466_v62  ;;  %v24422_v47 = vpop.f32.mrb[154].mxu0  ;;  %v554_v62 = vld [vmem:[%s38223_s0 + $0x1040] sm:$0xff] }
 0x414   :  { %v4476_v14 = vadd.f32 %v32237_v31, %v24422_v47  ;;  %v4470_v29 = vpop.f32.mrb[155].mxu0  ;;  %24580 = vmatmul.mubr.msk.f32.gmra.mrb[4].mxu0 %vm621_vm1, %v551_v49 }
 0x415   :  { %v32989_v6 = vmax.f32 %v38765_v46, %v5539_v5  ;;  %v4471_v11 = vadd.f32 %v32237_v31, %v4470_v29  ;;  %24582 = vmatprep.mubr.msk.f32.mxu0 %vm621_vm1, %v552_v12  ;;  %v38767_v5 = vmax.f32 %v32803_v3, %v32799_v54 }
 0x417   :  { %38766 = vst [vmem:[#allocation77_spill] sm:$0xff] %v32989_v6  ;;  %v5540_v47 = vmax.f32 %v4471_v11, %v4476_v14  ;;  %v24425_v1 = vpop.f32.mrb[156].mxu0  ;;  %v556_v14 = vld [vmem:[%s38223_s0 + $0x1050] sm:$0xff] }
 0x418   :  { %v4486_v49 = vadd.f32 %v32237_v31, %v24425_v1  ;;  %v4480_v57 = vpop.f32.mrb[157].mxu0  ;;  %24583 = vmatmul.mubr.msk.f32.gmra.mrb[6].mxu0 %vm621_vm1, %v553_v56  ;;  %v38851_v6 = vld [vmem:[#allocation9_spill] sm:$0xff] }
 0x419   :  { %v33004_v10 = vmax.f32 %v38767_v5, %v5540_v47  ;;  %v4481_v12 = vadd.f32 %v32237_v31, %v4480_v57  ;;  %24585 = vmatprep.mubr.msk.f32.mxu0 %vm621_vm1, %v554_v62  ;;  %v38769_v57 = vmax.f32 %v32819_v53, %v32815_v38  ;;  %v557_v62 = vld [vmem:[%s38223_s0 + $0x1058] sm:$0xff]  ;;  %v558_v47 = vld [vmem:[%s38223_s0 + $0x1060] sm:$0xff]  ;;  %v38771_v53 = vmax.f32 %v32835_v43, %v32831_v41 }
 0x41b   :  { %38768 = vst [vmem:[#allocation78_spill] sm:$0xff] %v33004_v10  ;;  %v5541_v29 = vmax.f32 %v4481_v12, %v4486_v49  ;;  %v24428_v46 = vpop.f32.mrb[158].mxu0  ;;  %v38850_v10 = vld [vmem:[#allocation58_spill] sm:$0xff] }
 0x41c   :  { %v4496_v56 = vadd.f32 %v32237_v31, %v24428_v46  ;;  %v4490_v11 = vpop.f32.mrb[159].mxu0  ;;  %24586 = vmatmul.mubr.msk.f32.gmra.mrb[8].mxu0 %vm621_vm1, %v555_v37  ;;  %v560_v46 = vld [vmem:[%s38223_s0 + $0x1070] sm:$0xff] }
 0x41d   :  { %v5685_v54 = vmax.f32 %v38769_v57, %v5541_v29  ;;  %v4491_v3 = vadd.f32 %v32237_v31, %v4490_v11  ;;  %24588 = vmatprep.mubr.msk.f32.mxu0 %vm621_vm1, %v556_v14  ;;  %v559_v29 = vld [vmem:[%s38223_s0 + $0x1068] sm:$0xff] }
 0x41f   :  { %v33027_v1 = vmax.f32 %v5685_v54, 0.0  ;;  %v5542_v49 = vmax.f32 %v4491_v3, %v4496_v56  ;;  %v24431_v5 = vpop.f32.mrb[160].mxu0  ;;  %v38773_v54 = vmax.f32 %v32851_v17, %v32847_v26 }
 0x420   :  { %v4506_v12 = vadd.f32 %v32237_v31, %v24431_v5  ;;  %v4500_v38 = vpop.f32.mrb[161].mxu0  ;;  %24589 = vmatmul.mubr.msk.f32.gmra.mrb[10].mxu0 %vm621_vm1, %v557_v62 }
 0x421   :  { %38770 = vst [vmem:[#allocation79_spill] sm:$0xff] %v33027_v1  ;;  %v5686_v37 = vmax.f32 %v38771_v53, %v5542_v49  ;;  %v4501_v14 = vadd.f32 %v32237_v31, %v4500_v38  ;;  %25457 = vmatprep.mubr.msk.f32.mxu1 %vm5878_vm6, %v33027_v1  ;;  %24591 = vmatprep.mubr.msk.f32.mxu0 %vm621_vm1, %v558_v47  ;;  %v561_v47 = vld [vmem:[%s38223_s0 + $0x1078] sm:$0xff]  ;;  %v562_v49 = vld [vmem:[%s38223_s0 + $0x1080] sm:$0xff] }
 0x422   :  { %v38775_v53 = vmax.f32 %v32867_v50, %v32863_v4 }
 0x423   :  { %v33044_v56 = vmax.f32 %v5686_v37, 0.0  ;;  %v5543_v11 = vmax.f32 %v4501_v14, %v4506_v12  ;;  %v24434_v41 = vpop.f32.mrb[162].mxu0 }
 0x424   :  { %v4516_v43 = vadd.f32 %v32237_v31, %v24434_v41  ;;  %v4510_v57 = vpop.f32.mrb[163].mxu0  ;;  %24592 = vmatmul.mubr.msk.f32.gmra.mrb[12].mxu0 %vm621_vm1, %v559_v29  ;;  %v563_v29 = vld [vmem:[%s38223_s0 + $0x1088] sm:$0xff] }
 0x425   :  { %38772 = vst [vmem:[#allocation80_spill] sm:$0xff] %v33044_v56  ;;  %v5687_v3 = vmax.f32 %v38773_v54, %v5543_v11  ;;  %v4511_v62 = vadd.f32 %v32237_v31, %v4510_v57  ;;  %25458 = vmatmul.mubr.msk.f32.gmra.mrb[20].mxu1 %vm5878_vm6, %v33044_v56  ;;  %24594 = vmatprep.mubr.msk.f32.mxu0 %vm621_vm1, %v560_v46  ;;  %v33066_v31 = vld [vmem:[%s38224_s2] ss:$0 sm:$0xff]  ;;  %v564_v46 = vld [vmem:[%s38223_s0 + $0x1090] sm:$0xff] }
 0x426   :  { %v38777_v57 = vmax.f32 %v32883_v45, %v32879_v30 }
 0x427   :  { %v33061_v5 = vmax.f32 %v5687_v3, 0.0  ;;  %v5544_v12 = vmax.f32 %v4511_v62, %v4516_v43  ;;  %v24437_v26 = vpop.f32.mrb[164].mxu0  ;;  %v565_v62 = vld [vmem:[%s38223_s0 + $0x1098] sm:$0xff] }
 0x428   :  { %v4526_v17 = vadd.f32 %v33066_v31, %v24437_v26  ;;  %v4520_v38 = vpop.f32.mrb[165].mxu0  ;;  %24595 = vmatmul.mubr.msk.f32.gmra.mrb[14].mxu0 %vm621_vm1, %v561_v47  ;;  %v566_v47 = vld [vmem:[%s38223_s0 + $0x10a0] sm:$0xff] }
 0x429   :  { %38774 = vst [vmem:[#allocation81_spill] sm:$0xff] %v33061_v5  ;;  %v5688_v37 = vmax.f32 %v38775_v53, %v5544_v12  ;;  %v4521_v14 = vadd.f32 %v33066_v31, %v4520_v38  ;;  %25460 = vmatprep.mubr.msk.f32.mxu1 %vm5878_vm6, %v33061_v5  ;;  %24597 = vmatprep.mubr.msk.f32.mxu0 %vm621_vm1, %v562_v49 }
 0x42b   :  { %v33083_v11 = vmax.f32 %v5688_v37, 0.0  ;;  %v5545_v41 = vmax.f32 %v4521_v14, %v4526_v17  ;;  %v24440_v4 = vpop.f32.mrb[166].mxu0  ;;  %v38779_v17 = vmax.f32 %v32899_v60, %v32895_v32  ;;  %v567_v37 = vld [vmem:[%s38223_s0 + $0x10a8] sm:$0xff]  ;;  %v568_v14 = vld [vmem:[%s38223_s0 + $0x10b0] sm:$0xff] }
 0x42c   :  { %v4536_v50 = vadd.f32 %v33066_v31, %v24440_v4  ;;  %v4530_v43 = vpop.f32.mrb[167].mxu0  ;;  %24598 = vmatmul.mubr.msk.f32.gmra.mrb[16].mxu0 %vm621_vm1, %v563_v29  ;;  %v38781_v4 = vmax.f32 %v32915_v51, %v32911_v39 }
 0x42d   :  { %38776 = vst [vmem:[#allocation82_spill] sm:$0xff] %v33083_v11  ;;  %v5689_v54 = vmax.f32 %v38777_v57, %v5545_v41  ;;  %v4531_v3 = vadd.f32 %v33066_v31, %v4530_v43  ;;  %25461 = vmatmul.mubr.msk.f32.gmra.mrb[22].mxu1 %vm5878_vm6, %v33083_v11  ;;  %24600 = vmatprep.mubr.msk.f32.mxu0 %vm621_vm1, %v564_v46  ;;  %v569_v57 = vld [vmem:[%s38223_s0 + $0x10b8] sm:$0xff] }
 0x42f   :  { %v33100_v49 = vmax.f32 %v5689_v54, 0.0  ;;  %v5546_v12 = vmax.f32 %v4531_v3, %v4536_v50  ;;  %v24443_v30 = vpop.f32.mrb[168].mxu0  ;;  %v570_v54 = vld [vmem:[%s38223_s0 + $0x10c0] sm:$0xff] }
 0x430   :  { %v4546_v45 = vadd.f32 %v33066_v31, %v24443_v30  ;;  %v4540_v26 = vpop.f32.mrb[169].mxu0  ;;  %24601 = vmatmul.mubr.msk.f32.gmra.mrb[18].mxu0 %vm621_vm1, %v565_v62 }
 0x431   :  { %38778 = vst [vmem:[#allocation83_spill] sm:$0xff] %v33100_v49  ;;  %v5690_v38 = vmax.f32 %v38779_v17, %v5546_v12  ;;  %v4541_v53 = vadd.f32 %v33066_v31, %v4540_v26  ;;  %25463 = vmatprep.mubr.msk.f32.mxu1 %vm5878_vm6, %v33100_v49  ;;  %24603 = vmatprep.mubr.msk.f32.mxu0 %vm621_vm1, %v566_v47  ;;  %v571_v26 = vld [vmem:[%s38223_s0 + $0x10c8] sm:$0xff]  ;;  %v572_v17 = vld [vmem:[%s38223_s0 + $0x10d0] sm:$0xff] }
 0x432   :  { %v38783_v12 = vmax.f32 %v32931_v24, %v32927_v25  ;;  %v33154_v24 = vmax.f32 %v30324_v48, 0.0  ;;  %v573_v48 = vld [vmem:[%s38223_s0 + $0x10d8] sm:$0xff] }
 0x433   :  { %v33117_v29 = vmax.f32 %v5690_v38, 0.0  ;;  %v5547_v46 = vmax.f32 %v4541_v53, %v4546_v45  ;;  %v24446_v32 = vpop.f32.mrb[170].mxu0 }
 0x434   :  { %v4556_v60 = vadd.f32 %v33066_v31, %v24446_v32  ;;  %v4550_v41 = vpop.f32.mrb[171].mxu0  ;;  %24604 = vmatmul.mubr.msk.f32.gmra.mrb[20].mxu0 %vm621_vm1, %v567_v37  ;;  %38785 = vst [vmem:[#allocation87_spill] sm:$0xff] %v33154_v24 }
 0x435   :  { %38780 = vst [vmem:[#allocation84_spill] sm:$0xff] %v33117_v29  ;;  %v5691_v50 = vmax.f32 %v38781_v4, %v5547_v46  ;;  %v4551_v43 = vadd.f32 %v33066_v31, %v4550_v41  ;;  %25464 = vmatmul.mubr.msk.f32.gmra.mrb[24].mxu1 %vm5878_vm6, %v33117_v29  ;;  %24606 = vmatprep.mubr.msk.f32.mxu0 %vm621_vm1, %v568_v14  ;;  %v33179_v4 = vmax.f32 %v30354_v7, 0.0 }
 0x436   :  { %v38786_v46 = vmax.f32 %v32947_v40, %v32943_v23  ;;  %v574_v23 = vld [vmem:[%s38223_s0 + $0x10e0] sm:$0xff]  ;;  %v33176_v40 = vmax.f32 %v30339_v55, 0.0  ;;  %v575_v55 = vld [vmem:[%s38223_s0 + $0x10e8] sm:$0xff] }
 0x437   :  { %v33134_v3 = vmax.f32 %v5691_v50, 0.0  ;;  %v5548_v62 = vmax.f32 %v4551_v43, %v4556_v60  ;;  %v24449_v39 = vpop.f32.mrb[172].mxu0  ;;  %v20409_v50 = vld [vmem:[%s38225_s3 + $0xa0] sm:$0xff]  ;;  %v20410_v43 = vld [vmem:[%s38225_s3 + $0xa8] sm:$0x3] }
 0x438   :  { %v4566_v51 = vadd.f32 %v33066_v31, %v24449_v39  ;;  %v4560_v47 = vpop.f32.mrb[173].mxu0  ;;  %24607 = vmatmul.mubr.msk.f32.gmra.mrb[22].mxu0 %vm621_vm1, %v569_v57  ;;  %v38787_v57 = vmax.f32 %v32963_v59, %v32959_v42  ;;  %v33199_v7 = vpack.c.bf16 %v20410_v43, %v20409_v50  ;;  %v576_v42 = vld [vmem:[%s38223_s0 + $0x10f0] sm:$0xff]  ;;  %v33210_v59 = vmax.f32 %v30369_v16, 0.0  ;;  %v578_v16 = vld [vmem:[%s38223_s0 + $0x1100] sm:$0xff]  ;;  %v595_v50 = vld [vmem:[%s38223_s0 + $0x1188] sm:$0xff] }
 0x439   :  { %38782 = vst [vmem:[#allocation85_spill] sm:$0xff] %v33134_v3  ;;  %v5692_v30 = vmax.f32 %v38783_v12, %v5548_v62  ;;  %v4561_v45 = vadd.f32 %v33066_v31, %v4560_v47  ;;  %25466 = vmatprep.mubr.msk.f32.mxu1 %vm5878_vm6, %v33134_v3  ;;  %24609 = vmatprep.mubr.msk.f32.mxu0 %vm621_vm1, %v570_v54  ;;  %v33216_v62 = vmax.f32 %v30384_v8, 0.0  ;;  %v33231_v8 = vmax.f32 %v30399_v34, 0.0  ;;  %v580_v34 = vld [vmem:[%s38223_s0 + $0x1110] sm:$0xff]  ;;  %v581_v12 = vld [vmem:[%s38223_s0 + $0x1118] sm:$0xff] }
 0x43a   :  { %38789 = vst [vmem:[#allocation89_spill] sm:$0xff] %v33210_v59  ;;  %v33234_v39 = vmax.f32 %v30414_v44, 0.0  ;;  %v33249_v44 = vmax.f32 %v30429_v58, 0.0  ;;  %v33252_v47 = vmax.f32 %v30701_v19, 0.0  ;;  %v582_v58 = vld [vmem:[%s38223_s0 + $0x1120] sm:$0xff]  ;;  %v33267_v19 = vmax.f32 %v30716_v36, 0.0 }
 0x43b   :  { %v33151_v38 = vmax.f32 %v5692_v30, 0.0  ;;  %v5549_v53 = vmax.f32 %v4561_v45, %v4566_v51  ;;  %v24452_v25 = vpop.f32.mrb[174].mxu0  ;;  %38790 = vst [vmem:[#allocation90_spill] sm:$0xff] %v33216_v62  ;;  %38791 = vst [vmem:[#allocation91_spill] sm:$0xff] %v33231_v8  ;;  %v579_v51 = vld [vmem:[%s38223_s0 + $0x1108] sm:$0xff]  ;;  %v33270_v30 = vmax.f32 %v30731_v9, 0.0 }
 0x43c   :  { %v4576_v37 = vadd.f32 %v33066_v31, %v24452_v25  ;;  %v4570_v14 = vpop.f32.mrb[175].mxu0  ;;  %24610 = vmatmul.mubr.msk.f32.gmra.mrb[24].mxu0 %vm621_vm1, %v571_v26  ;;  %38792 = vst [vmem:[#allocation92_spill] sm:$0xff] %v33234_v39  ;;  %38793 = vst [vmem:[#allocation93_spill] sm:$0xff] %v33249_v44  ;;  %v583_v45 = vld [vmem:[%s38223_s0 + $0x1128] sm:$0xff]  ;;  %v584_v36 = vld [vmem:[%s38223_s0 + $0x1130] sm:$0xff]  ;;  %v33285_v9 = vmax.f32 %v30746_v22, 0.0 }
 0x43d   :  { %38784 = vst [vmem:[#allocation86_spill] sm:$0xff] %v33151_v38  ;;  %v33161_v32 = vmax.f32 %v38786_v46, %v5549_v53  ;;  %v4571_v60 = vadd.f32 %v33066_v31, %v4570_v14  ;;  %25467 = vmatmul.mubr.msk.f32.gmra.mrb[26].mxu1 %vm5878_vm6, %v33151_v38  ;;  %24612 = vmatprep.mubr.msk.f32.mxu0 %vm621_vm1, %v572_v17  ;;  %38794 = vst [vmem:[#allocation94_spill] sm:$0xff] %v33252_v47  ;;  %v33288_v26 = vmax.f32 %v30761_v35, 0.0  ;;  %v585_v17 = vld [vmem:[%s38223_s0 + $0x1138] sm:$0xff]  ;;  %v586_v22 = vld [vmem:[%s38223_s0 + $0x1140] sm:$0xff] }
 0x43e   :  { %25473 = vmatprep.mubr.msk.f32.mxu1 %vm5878_vm6, %v33154_v24  ;;  %38795 = vst [vmem:[#allocation95_spill] sm:$0xff] %v33267_v19  ;;  %38796 = vst [vmem:[#allocation96_spill] sm:$0xff] %v33270_v30  ;;  %v33303_v35 = vmax.f32 %v30776_v61, 0.0  ;;  %v33306_v53 = vmax.f32 %v30791_v33, 0.0  ;;  %v587_v25 = vld [vmem:[%s38223_s0 + $0x1148] sm:$0xff]  ;;  %v588_v61 = vld [vmem:[%s38223_s0 + $0x1150] sm:$0xff] }
 0x43f   :  { %v5550_v41 = vmax.f32 %v4571_v60, %v4576_v37  ;;  %38797 = vst [vmem:[#allocation97_spill] sm:$0xff] %v33285_v9  ;;  %38798 = vst [vmem:[#allocation98_spill] sm:$0xff] %v33288_v26  ;;  %v33321_v33 = vmax.f32 %v30806_v28, 0.0  ;;  %v33324_v37 = vmax.f32 %v31073_v13, 0.0  ;;  %v589_v14 = vld [vmem:[%s38223_s0 + $0x1158] sm:$0xff]  ;;  %v590_v28 = vld [vmem:[%s38223_s0 + $0x1160] sm:$0xff] }
 0x440   :  { %24613 = vmatmul.mubr.msk.f32.gmra.mrb[26].mxu0 %vm621_vm1, %v573_v48  ;;  %38799 = vst [vmem:[#allocation99_spill] sm:$0xff] %v33303_v35  ;;  %38800 = vst [vmem:[#allocation100_spill] sm:$0xff] %v33306_v53  ;;  %v33339_v13 = vmax.f32 %v31088_v20, 0.0  ;;  %v33342_v46 = vmax.f32 %v31103_v27, 0.0  ;;  %v591_v60 = vld [vmem:[%s38223_s0 + $0x1168] sm:$0xff]  ;;  %v592_v20 = vld [vmem:[%s38223_s0 + $0x1170] sm:$0xff] }
 0x441   :  { %v33191_v54 = vmax.f32 %v38787_v57, %v5550_v41  ;;  %25474 = vmatmul.mubr.msk.f32.vlgmr.msra.gmra.mrb[28].mxu1 %vm5878_vm6, %v33176_v40  ;;  %24615 = vmatprep.mubr.msk.f32.mxu0 %vm621_vm1, %v574_v23  ;;  %38801 = vst [vmem:[#allocation101_spill] sm:$0xff] %v33321_v33  ;;  %38802 = vst [vmem:[#allocation102_spill] sm:$0xff] %v33324_v37  ;;  %v33357_v27 = vmax.f32 %v31118_v18, 0.0  ;;  %v33360_v48 = vmax.f32 %v31133_v2, 0.0  ;;  %v593_v23 = vld [vmem:[%s38223_s0 + $0x1178] sm:$0xff]  ;;  %v594_v18 = vld [vmem:[%s38223_s0 + $0x1180] sm:$0xff] }
 0x442   :  { %27399 = vmatpush3.bf16.msk.msra.mxu1 %vm31375_vm5, %v32661_v15  ;;  %25476 = vmatprep.mubr.msk.f32.mxu1 %vm5878_vm6, %v33179_v4  ;;  %v577_v15 = vld [vmem:[%s38223_s0 + $0x10f8] sm:$0xff]  ;;  %38803 = vst [vmem:[#allocation103_spill] sm:$0xff] %v33339_v13  ;;  %38804 = vst [vmem:[#allocation104_spill] sm:$0xff] %v33342_v46  ;;  %v33375_v2 = vmax.f32 %v31148_v0, 0.0  ;;  %v33378_v41 = vmax.f32 %v31163_v21, 0.0  ;;  %v596_v0 = vld [vmem:[%s38223_s0 + $0x1190] sm:$0xff] }
 0x443   :  { %38788 = vst [vmem:[#allocation88_spill] sm:$0xff] %v33191_v54  ;;  %27402 = vmatprep.subr.msk.bf16.mxu1 %vm31375_vm5, %v33199_v7  ;;  %38805 = vst [vmem:[#allocation105_spill] sm:$0xff] %v33357_v27  ;;  %v33393_v21 = vmax.f32 %v31178_v52, 0.0  ;;  %v38810_v43 = vld [vmem:[#allocation32_spill] sm:$0xff]  ;;  %v598_v52 = vld [vmem:[%s38223_s0 + $0x11a0] sm:$0xff] }
 0x444   :  { %24616 = vmatmul.mubr.msk.f32.gmra.mrb[28].mxu0 %vm621_vm1, %v575_v55  ;;  %38806 = vst [vmem:[#allocation106_spill] sm:$0xff] %v33360_v48  ;;  %38807 = vst [vmem:[#allocation107_spill] sm:$0xff] %v33375_v2  ;;  %v33396_v57 = vmax.f32 %v38810_v43, 0.0  ;;  %v597_v55 = vld [vmem:[%s38223_s0 + $0x1198] sm:$0xff] }
 0x445   :  { %25477 = vmatmul.mubr.msk.f32.gmra.mrb[30].mxu1 %vm5878_vm6, %v33210_v59  ;;  %24618 = vmatprep.mubr.msk.f32.mxu0 %vm621_vm1, %v576_v42  ;;  %38808 = vst [vmem:[#allocation108_spill] sm:$0xff] %v33378_v41  ;;  %38809 = vst [vmem:[#allocation109_spill] sm:$0xff] %v33393_v21  ;;  %v38812_v42 = vld [vmem:[#allocation33_spill] sm:$0xff]  ;;  %v38854_v54 = vld [vmem:[#allocation10_spill] sm:$0xff] }
 0x446   :  { %25479 = vmatprep.mubr.msk.f32.mxu1 %vm5878_vm6, %v33216_v62  ;;  %38811 = vst [vmem:[#allocation32_spill] sm:$0xff] %v33396_v57 }
 0x448   :  { %24619 = vmatmul.mubr.msk.f32.gmra.mrb[30].mxu0 %vm621_vm1, %v577_v15  ;;  %v33411_v15 = vmax.f32 %v38812_v42, 0.0  ;;  %v38828_v42 = vld [vmem:[#allocation45_spill] sm:$0xff] }
 0x449   :  { %25480 = vmatmul.mubr.msk.f32.gmra.mrb[32].mxu1 %vm5878_vm6, %v33231_v8  ;;  %24621 = vmatprep.mubr.msk.f32.mxu0 %vm621_vm1, %v578_v16  ;;  %v38814_v16 = vld [vmem:[#allocation34_spill] sm:$0xff] }
 0x44a   :  { %25482 = vmatprep.mubr.msk.f32.mxu1 %vm5878_vm6, %v33234_v39  ;;  %38813 = vst [vmem:[#allocation33_spill] sm:$0xff] %v33411_v15 }
 0x44c   :  { %24622 = vmatmul.mubr.msk.f32.gmra.mrb[32].mxu0 %vm621_vm1, %v579_v51  ;;  %v33414_v51 = vmax.f32 %v38814_v16, 0.0  ;;  %v33483_v16 = vmax.f32 %v38828_v42, 0.0 }
 0x44d   :  { %25483 = vmatmul.mubr.msk.f32.gmra.mrb[34].mxu1 %vm5878_vm6, %v33249_v44  ;;  %24624 = vmatprep.mubr.msk.f32.mxu0 %vm621_vm1, %v580_v34  ;;  %v599_v34 = vld [vmem:[%s38223_s0 + $0x11a8] sm:$0xff] }
 0x44e   :  { %25485 = vmatprep.mubr.msk.f32.mxu1 %vm5878_vm6, %v33252_v47  ;;  %38815 = vst [vmem:[#allocation34_spill] sm:$0xff] %v33414_v51  ;;  %38829 = vst [vmem:[#allocation45_spill] sm:$0xff] %v33483_v16 }
 0x450   :  { %24625 = vmatmul.mubr.msk.f32.gmra.mrb[34].mxu0 %vm621_vm1, %v581_v12  ;;  %v600_v12 = vld [vmem:[%s38223_s0 + $0x11b0] sm:$0xff] }
 0x451   :  { %25486 = vmatmul.mubr.msk.f32.gmra.mrb[36].mxu1 %vm5878_vm6, %v33267_v19  ;;  %24627 = vmatprep.mubr.msk.f32.mxu0 %vm621_vm1, %v582_v58  ;;  %v38816_v58 = vld [vmem:[#allocation35_spill] sm:$0xff] }
 0x452   :  { %25488 = vmatprep.mubr.msk.f32.mxu1 %vm5878_vm6, %v33270_v30 }
 0x454   :  { %24628 = vmatmul.mubr.msk.f32.gmra.mrb[36].mxu0 %vm621_vm1, %v583_v45  ;;  %v33429_v45 = vmax.f32 %v38816_v58, 0.0  ;;  %v607_v58 = vld [vmem:[%s38223_s0 + $0x11e8] sm:$0xff] }
 0x455   :  { %25489 = vmatmul.mubr.msk.f32.gmra.mrb[38].mxu1 %vm5878_vm6, %v33285_v9  ;;  %24630 = vmatprep.mubr.msk.f32.mxu0 %vm621_vm1, %v584_v36  ;;  %v38818_v36 = vld [vmem:[#allocation36_spill] sm:$0xff] }
 0x456   :  { %25491 = vmatprep.mubr.msk.f32.mxu1 %vm5878_vm6, %v33288_v26  ;;  %38817 = vst [vmem:[#allocation35_spill] sm:$0xff] %v33429_v45 }
 0x458   :  { %24631 = vmatmul.mubr.msk.f32.gmra.mrb[38].mxu0 %vm621_vm1, %v585_v17  ;;  %v33432_v17 = vmax.f32 %v38818_v36, 0.0  ;;  %v608_v36 = vld [vmem:[%s38223_s0 + $0x11f0] sm:$0xff] }
 0x459   :  { %25492 = vmatmul.mubr.msk.f32.gmra.mrb[40].mxu1 %vm5878_vm6, %v33303_v35  ;;  %24633 = vmatprep.mubr.msk.f32.mxu0 %vm621_vm1, %v586_v22  ;;  %v601_v22 = vld [vmem:[%s38223_s0 + $0x11b8] sm:$0xff] }
 0x45a   :  { %25494 = vmatprep.mubr.msk.f32.mxu1 %vm5878_vm6, %v33306_v53  ;;  %38819 = vst [vmem:[#allocation36_spill] sm:$0xff] %v33432_v17 }
 0x45c   :  { %24634 = vmatmul.mubr.msk.f32.gmra.mrb[40].mxu0 %vm621_vm1, %v587_v25  ;;  %v602_v25 = vld [vmem:[%s38223_s0 + $0x11c0] sm:$0xff] }
 0x45d   :  { %25495 = vmatmul.mubr.msk.f32.gmra.mrb[42].mxu1 %vm5878_vm6, %v33321_v33  ;;  %24636 = vmatprep.mubr.msk.f32.mxu0 %vm621_vm1, %v588_v61  ;;  %v38820_v61 = vld [vmem:[#allocation37_spill] sm:$0xff] }
 0x45e   :  { %25497 = vmatprep.mubr.msk.f32.mxu1 %vm5878_vm6, %v33324_v37 }
 0x460   :  { %24637 = vmatmul.mubr.msk.f32.gmra.mrb[42].mxu0 %vm621_vm1, %v589_v14  ;;  %v33447_v14 = vmax.f32 %v38820_v61, 0.0  ;;  %v19806_v61 = vld [vmem:[%s38225_s3 + $0x10] sm:$0xff] }
 0x461   :  { %25498 = vmatmul.mubr.msk.f32.gmra.mrb[44].mxu1 %vm5878_vm6, %v33339_v13  ;;  %24639 = vmatprep.mubr.msk.f32.mxu0 %vm621_vm1, %v590_v28  ;;  %v38822_v28 = vld [vmem:[#allocation38_spill] sm:$0xff] }
 0x462   :  { %25500 = vmatprep.mubr.msk.f32.mxu1 %vm5878_vm6, %v33342_v46  ;;  %38821 = vst [vmem:[#allocation37_spill] sm:$0xff] %v33447_v14 }
 0x464   :  { %24640 = vmatmul.mubr.msk.f32.gmra.mrb[44].mxu0 %vm621_vm1, %v591_v60  ;;  %v33450_v60 = vmax.f32 %v38822_v28, 0.0  ;;  %v19807_v28 = vld [vmem:[%s38225_s3 + $0x18] sm:$0x3] }
 0x465   :  { %25501 = vmatmul.mubr.msk.f32.gmra.mrb[46].mxu1 %vm5878_vm6, %v33357_v27  ;;  %24642 = vmatprep.mubr.msk.f32.mxu0 %vm621_vm1, %v592_v20  ;;  %v603_v20 = vld [vmem:[%s38223_s0 + $0x11c8] sm:$0xff] }
 0x466   :  { %25503 = vmatprep.mubr.msk.f32.mxu1 %vm5878_vm6, %v33360_v48  ;;  %38823 = vst [vmem:[#allocation38_spill] sm:$0xff] %v33450_v60 }
 0x468   :  { %24643 = vmatmul.mubr.msk.f32.gmra.mrb[46].mxu0 %vm621_vm1, %v593_v23  ;;  %v604_v23 = vld [vmem:[%s38223_s0 + $0x11d0] sm:$0xff] }
 0x469   :  { %25504 = vmatmul.mubr.msk.f32.gmra.mrb[48].mxu1 %vm5878_vm6, %v33375_v2  ;;  %24645 = vmatprep.mubr.msk.f32.mxu0 %vm621_vm1, %v594_v18  ;;  %v38824_v18 = vld [vmem:[#allocation39_spill] sm:$0xff] }
 0x46a   :  { %25506 = vmatprep.mubr.msk.f32.mxu1 %vm5878_vm6, %v33378_v41 }
 0x46c   :  { %24646 = vmatmul.mubr.msk.f32.gmra.mrb[48].mxu0 %vm621_vm1, %v595_v50  ;;  %v33465_v50 = vmax.f32 %v38824_v18, 0.0  ;;  %v38834_v18 = vld [vmem:[#allocation3_spill] sm:$0xff] }
 0x46d   :  { %25507 = vmatmul.mubr.msk.f32.gmra.mrb[50].mxu1 %vm5878_vm6, %v33393_v21  ;;  %24648 = vmatprep.mubr.msk.f32.mxu0 %vm621_vm1, %v596_v0  ;;  %v38826_v0 = vld [vmem:[#allocation44_spill] sm:$0xff] }
 0x46e   :  { %25509 = vmatprep.mubr.msk.f32.mxu1 %vm5878_vm6, %v33396_v57  ;;  %38825 = vst [vmem:[#allocation39_spill] sm:$0xff] %v33465_v50  ;;  %v33468_v43 = vmax.f32 %v38826_v0, 0.0  ;;  %v5731_v0 = vmax.f32 %v38834_v18, 0.0 }
 0x470   :  { %24649 = vmatmul.mubr.msk.f32.gmra.mrb[50].mxu0 %vm621_vm1, %v597_v55  ;;  %38827 = vst [vmem:[#allocation44_spill] sm:$0xff] %v33468_v43  ;;  %v605_v55 = vld [vmem:[%s38223_s0 + $0x11d8] sm:$0xff] }
 0x471   :  { %25510 = vmatmul.mubr.msk.f32.gmra.mrb[52].mxu1 %vm5878_vm6, %v33411_v15  ;;  %24651 = vmatprep.mubr.msk.f32.mxu0 %vm621_vm1, %v598_v52  ;;  %v606_v52 = vld [vmem:[%s38223_s0 + $0x11e0] sm:$0xff] }
 0x472   :  { %25512 = vmatprep.mubr.msk.f32.mxu1 %vm5878_vm6, %v33414_v51 }
 0x474   :  { %24652 = vmatmul.mubr.msk.f32.gmra.mrb[52].mxu0 %vm621_vm1, %v599_v34  ;;  %v38830_v34 = vld [vmem:[#allocation46_spill] sm:$0xff] }
 0x475   :  { %25513 = vmatmul.mubr.msk.f32.gmra.mrb[54].mxu1 %vm5878_vm6, %v33429_v45  ;;  %24654 = vmatprep.mubr.msk.f32.mxu0 %vm621_vm1, %v600_v12  ;;  %v33486_v12 = vmax.f32 %v38830_v34, 0.0  ;;  %v38837_v34 = vld [vmem:[#allocation50_spill] sm:$0xff] }
 0x476   :  { %25515 = vmatprep.mubr.msk.f32.mxu1 %vm5878_vm6, %v33432_v17 }
 0x477   :  { %38831 = vst [vmem:[#allocation46_spill] sm:$0xff] %v33486_v12  ;;  %v39230_v63 = vld [vmem:[#allocation44_spill] sm:$0xff] }
 0x478   :  { %24655 = vmatmul.mubr.msk.f32.gmra.mrb[54].mxu0 %vm621_vm1, %v601_v22  ;;  %v38832_v22 = vld [vmem:[#allocation47_spill] sm:$0xff] }
 0x479   :  { %25516 = vmatmul.mubr.msk.f32.gmra.mrb[56].mxu1 %vm5878_vm6, %v33447_v14  ;;  %24657 = vmatprep.mubr.msk.f32.mxu0 %vm621_vm1, %v602_v25  ;;  %v609_v25 = vld [vmem:[%s38223_s0 + $0x11f8] sm:$0xff] }
 0x47a   :  { %25518 = vmatprep.mubr.msk.f32.mxu1 %vm5878_vm6, %v33450_v60 }
 0x47c   :  { %24658 = vmatmul.mubr.msk.f32.gmra.mrb[56].mxu0 %vm621_vm1, %v603_v20  ;;  %v38833_v20 = vld [vmem:[#allocation48_spill] sm:$0xff] }
 0x47d   :  { %25519 = vmatmul.mubr.msk.f32.gmra.mrb[58].mxu1 %vm5878_vm6, %v33465_v50  ;;  %24660 = vmatprep.mubr.msk.f32.mxu0 %vm621_vm1, %v604_v23  ;;  %v27346_v23 = vpack.c.bf16 %v19807_v28, %v19806_v61  ;;  %v38840_v61 = vld [vmem:[#allocation5_spill] sm:$0xff] }
 0x47e   :  { %25521 = vmatprep.mubr.msk.f32.mxu1 %vm5878_vm6, %v33468_v43  ;;  %v33529_v28 = vmax.f32 %v38840_v61, 0.0 }
 0x47f   :  { %27348 = vmatprep.subr.msk.bf16.mxu0 %vm31375_vm5, %v27346_v23 }
 0x480   :  { %24661 = vmatmul.mubr.msk.f32.gmra.mrb[58].mxu0 %vm621_vm1, %v605_v55  ;;  %v38835_v55 = vld [vmem:[#allocation49_spill] sm:$0xff] }
 0x481   :  { %25522 = vmatmul.mubr.msk.f32.gmra.mrb[60].mxu1 %vm5878_vm6, %v33483_v16  ;;  %24663 = vmatprep.mubr.msk.f32.mxu0 %vm621_vm1, %v606_v52  ;;  %v38836_v52 = vld [vmem:[#allocation4_spill] sm:$0xff] }
 0x482   :  { %25524 = vmatprep.mubr.msk.f32.mxu1 %vm5878_vm6, %v33486_v12  ;;  %v38278_v42 = vmax.f32 %v38836_v52, 0.0  ;;  %v38864_v52 = vld [vmem:[#allocation63_spill] sm:$0xff] }
 0x484   :  { %24664 = vmatmul.mubr.msk.f32.gmra.mrb[60].mxu0 %vm621_vm1, %v607_v58  ;;  %v38838_v58 = vld [vmem:[#allocation51_spill] sm:$0xff] }
 0x485   :  { %25525 = vmatmul.mubr.msk.f32.gmra.mrb[62].mxu1 %vm5878_vm6, %v38832_v22  ;;  %24666 = vmatprep.mubr.msk.f32.mxu0 %vm621_vm1, %v608_v36  ;;  %v33526_v36 = vmax.f32 %v38838_v58, 0.0  ;;  %38841 = vst [vmem:[#allocation51_spill] sm:$0xff] %v33529_v28  ;;  %v38845_v58 = vld [vmem:[#allocation7_spill] sm:$0xff] }
 0x486   :  { %25527 = vmatprep.mubr.msk.f32.mxu1 %vm5878_vm6, %v38833_v20  ;;  %v33546_v61 = vmax.f32 %v38845_v58, 0.0  ;;  %v38853_v58 = vld [vmem:[#allocation59_spill] sm:$0xff] }
 0x487   :  { %38839 = vst [vmem:[#allocation3_spill] sm:$0xff] %v33526_v36 }
 0x488   :  { %24667 = vmatmul.mubr.msk.f32.gmra.mrb[62].mxu0 %vm621_vm1, %v609_v25  ;;  %v38842_v25 = vld [vmem:[#allocation6_spill] sm:$0xff] }
 0x489   :  { %24673 = vmatprep.mubr.msk.f32.mxu0 %vm5878_vm6, %v5731_v0  ;;  %25528 = vmatmul.mubr.msk.f32.gmra.mrb[0].mxu1 %vm5878_vm6, %v38835_v55  ;;  %v33539_v18 = vmax.f32 %v38842_v25, 0.0  ;;  %v38844_v0 = vld [vmem:[#allocation56_spill] sm:$0xff]  ;;  %38846 = vst [vmem:[#allocation6_spill] sm:$0xff] %v33546_v61  ;;  %v33590_v55 = vmax.f32 %v38864_v52, 0.0  ;;  %v38867_v52 = vld [vmem:[#allocation69_spill] sm:$0xff] }
 0x48a   :  { %25530 = vmatprep.mubr.msk.f32.mxu1 %vm5878_vm6, %v38837_v34  ;;  %v38848_v25 = vld [vmem:[#allocation8_spill] sm:$0xff] }
 0x48b   :  { %38843 = vst [vmem:[#allocation5_spill] sm:$0xff] %v33539_v18  ;;  %v33555_v1 = vmax.f32 %v38848_v25, 0.0  ;;  %v38856_v25 = vld [vmem:[#allocation60_spill] sm:$0xff] }
 0x48c   :  { %24674 = vmatmul.mubr.msk.f32.vlgmr.msra.gmra.mrb[64].mxu0 %vm5878_vm6, %v38278_v42  ;;  %v38847_v42 = vld [vmem:[#allocation57_spill] sm:$0xff] }
 0x48d   :  { %24676 = vmatprep.mubr.msk.f32.mxu0 %vm5878_vm6, %v33529_v28  ;;  %25531 = vmatmul.mubr.msk.f32.gmra.mrb[2].mxu1 %vm5878_vm6, %v33526_v36  ;;  %38849 = vst [vmem:[#allocation7_spill] sm:$0xff] %v33555_v1  ;;  %v38862_v36 = vld [vmem:[#allocation17_spill] sm:$0xff] }
 0x48e   :  { %25533 = vmatprep.mubr.msk.f32.mxu1 %vm5878_vm6, %v38844_v0  ;;  %27351 = vmatpush3.bf16.msk.msra.mxu0 %vm31375_vm5, %v27346_v23  ;;  %v33560_v23 = vmax.f32 %v38851_v6, 0.0  ;;  %v38858_v6 = vld [vmem:[#allocation61_spill] sm:$0xff]  ;;  %v33587_v34 = vmax.f32 %v38862_v36, 0.0  ;;  %38865 = vst [vmem:[#allocation17_spill] sm:$0xff] %v33590_v55  ;;  %v38868_v36 = vld [vmem:[#allocation70_spill] sm:$0xff] }
 0x490   :  { %24677 = vmatmul.mubr.msk.f32.gmra.mrb[66].mxu0 %vm5878_vm6, %v33539_v18  ;;  %38852 = vst [vmem:[#allocation8_spill] sm:$0xff] %v33560_v23  ;;  %v38857_v18 = vld [vmem:[#allocation15_spill] sm:$0xff] }
 0x491   :  { %24679 = vmatprep.mubr.msk.f32.mxu0 %vm5878_vm6, %v33546_v61  ;;  %25534 = vmatmul.mubr.msk.f32.gmra.mrb[4].mxu1 %vm5878_vm6, %v38847_v42  ;;  %v33569_v61 = vmax.f32 %v38854_v54, 0.0  ;;  %v38294_v28 = vmax.f32 %v38857_v18, 0.0  ;;  %v38861_v54 = vld [vmem:[#allocation62_spill] sm:$0xff]  ;;  %v38870_v18 = vld [vmem:[#allocation72_spill] sm:$0xff] }
 0x492   :  { %25536 = vmatprep.mubr.msk.f32.mxu1 %vm5878_vm6, %v38850_v10 }
 0x493   :  { %38855 = vst [vmem:[#allocation9_spill] sm:$0xff] %v33569_v61 }
 0x494   :  { %24680 = vmatmul.mubr.msk.f32.gmra.mrb[68].mxu0 %vm5878_vm6, %v33555_v1 }
 0x495   :  { %24682 = vmatprep.mubr.msk.f32.mxu0 %vm5878_vm6, %v33560_v23  ;;  %25537 = vmatmul.mubr.msk.f32.gmra.mrb[6].mxu1 %vm5878_vm6, %v38853_v58  ;;  %v38859_v23 = vld [vmem:[#allocation16_spill] sm:$0xff] }
 0x496   :  { %25539 = vmatprep.mubr.msk.f32.mxu1 %vm5878_vm6, %v38856_v25  ;;  %v33582_v1 = vmax.f32 %v38859_v23, 0.0  ;;  %38863 = vst [vmem:[#allocation16_spill] sm:$0xff] %v33587_v34  ;;  %v38866_v23 = vld [vmem:[#allocation68_spill] sm:$0xff] }
 0x498   :  { %24683 = vmatmul.mubr.msk.f32.gmra.mrb[70].mxu0 %vm5878_vm6, %v33569_v61  ;;  %38860 = vst [vmem:[#allocation10_spill] sm:$0xff] %v33582_v1  ;;  %v38877_v61 = vld [vmem:[#allocation21_spill] sm:$0xff] }
 0x499   :  { %24685 = vmatprep.mubr.msk.f32.mxu0 %vm5878_vm6, %v38294_v28  ;;  %25540 = vmatmul.mubr.msk.f32.gmra.mrb[8].mxu1 %vm5878_vm6, %v38858_v6  ;;  %v38869_v28 = vld [vmem:[#allocation71_spill] sm:$0xff]  ;;  %v38876_v6 = vld [vmem:[#allocation74_spill] sm:$0xff] }
 0x49a   :  { %25542 = vmatprep.mubr.msk.f32.mxu1 %vm5878_vm6, %v38861_v54  ;;  %v38874_v54 = vld [vmem:[#allocation20_spill] sm:$0xff] }
 0x49c   :  { %24686 = vmatmul.mubr.msk.f32.gmra.mrb[72].mxu0 %vm5878_vm6, %v33582_v1  ;;  %v33626_v1 = vmax.f32 %v38874_v54, 0.0 }
 0x49d   :  { %24688 = vmatprep.mubr.msk.f32.mxu0 %vm5878_vm6, %v33587_v34  ;;  %25543 = vmatmul.mubr.msk.f32.gmra.mrb[10].mxu1 %vm5878_vm6, %v33590_v55  ;;  %v38873_v55 = vld [vmem:[#allocation73_spill] sm:$0xff] }
 0x49e   :  { %25545 = vmatprep.mubr.msk.f32.mxu1 %vm5878_vm6, %v38866_v23 }
 0x4a0   :  { %24689 = vmatmul.mubr.msk.f32.gmra.mrb[74].mxu0 %vm5878_vm6, %v33154_v24  ;;  %v38871_v24 = vld [vmem:[#allocation19_spill] sm:$0xff] }
 0x4a1   :  { %24691 = vmatprep.mubr.msk.f32.mxu0 %vm5878_vm6, %v33176_v40  ;;  %25546 = vmatmul.mubr.msk.f32.gmra.mrb[12].mxu1 %vm5878_vm6, %v38867_v52  ;;  %v33617_v34 = vmax.f32 %v38871_v24, 0.0  ;;  %38875 = vst [vmem:[#allocation19_spill] sm:$0xff] %v33626_v1  ;;  %v38879_v24 = vld [vmem:[#allocation75_spill] sm:$0xff] }
 0x4a2   :  { %25548 = vmatprep.mubr.msk.f32.mxu1 %vm5878_vm6, %v38868_v36 }
 0x4a3   :  { %38872 = vst [vmem:[#allocation63_spill] sm:$0xff] %v33617_v34 }
 0x4a4   :  { %24692 = vmatmul.mubr.msk.f32.gmra.mrb[76].mxu0 %vm5878_vm6, %v33179_v4 }
 0x4a5   :  { %24694 = vmatprep.mubr.msk.f32.mxu0 %vm5878_vm6, %v33210_v59  ;;  %25549 = vmatmul.mubr.msk.f32.gmra.mrb[14].mxu1 %vm5878_vm6, %v38869_v28  ;;  %v33634_v28 = vmax.f32 %v38879_v24, 0.0  ;;  %v38883_v24 = vld [vmem:[#allocation24_spill] sm:$0xff] }
 0x4a6   :  { %25551 = vmatprep.mubr.msk.f32.mxu1 %vm5878_vm6, %v38870_v18  ;;  %v33631_v18 = vmax.f32 %v38877_v61, 0.0  ;;  %v38881_v61 = vld [vmem:[#allocation23_spill] sm:$0xff] }
 0x4a7   :  { %38880 = vst [vmem:[#allocation21_spill] sm:$0xff] %v33634_v28  ;;  %v33661_v54 = vmax.f32 %v38881_v61, 0.0  ;;  %v33678_v61 = vmax.f32 %v33161_v32, 0.0  ;;  %v20476_v32 = vld [vmem:[%s38225_s3 + $0xb0] sm:$0xff] }
 0x4a8   :  { %24695 = vmatmul.mubr.msk.f32.gmra.mrb[78].mxu0 %vm5878_vm6, %v33216_v62  ;;  %38878 = vst [vmem:[#allocation20_spill] sm:$0xff] %v33631_v18 }
 0x4a9   :  { %24697 = vmatprep.mubr.msk.f32.mxu0 %vm5878_vm6, %v33617_v34  ;;  %25552 = vmatmul.mubr.msk.f32.gmra.mrb[16].mxu1 %vm5878_vm6, %v38873_v55  ;;  %38882 = vst [vmem:[#allocation75_spill] sm:$0xff] %v33661_v54  ;;  %v38885_v34 = vld [vmem:[#allocation25_spill] sm:$0xff] }
 0x4aa   :  { %25554 = vmatprep.mubr.msk.f32.mxu1 %vm5878_vm6, %v38876_v6  ;;  %38887 = vst [vmem:[#allocation25_spill] sm:$0xff] %v33678_v61  ;;  %v38908_v6 = vld [vmem:[#allocation26_spill] sm:$0xff] }
 0x4ac   :  { %24698 = vmatmul.mubr.msk.f32.gmra.mrb[80].mxu0 %vm5878_vm6, %v33626_v1  ;;  %v33919_v1 = vmax.f32 %v38908_v6, 0.0 }
 0x4ad   :  { %24700 = vmatprep.mubr.msk.f32.mxu0 %vm5878_vm6, %v33631_v18  ;;  %25555 = vmatmul.mubr.msk.f32.gmra.mrb[18].mxu1 %vm5878_vm6, %v33634_v28  ;;  %v38904_v18 = vld [vmem:[#allocation53_spill] sm:$0xff] }
 0x4ae   :  { %25557 = vmatprep.mubr.msk.f32.mxu1 %vm5878_vm6, %v33044_v56  ;;  %v33670_v56 = vmax.f32 %v38883_v24, 0.0  ;;  %v33901_v28 = vmax.f32 %v38904_v18, 0.0  ;;  %38909 = vst [vmem:[#allocation26_spill] sm:$0xff] %v33919_v1 }
 0x4b0   :  { %24701 = vmatmul.mubr.msk.f32.gmra.mrb[82].mxu0 %vm5878_vm6, %v33252_v47  ;;  %38884 = vst [vmem:[#allocation23_spill] sm:$0xff] %v33670_v56  ;;  %38905 = vst [vmem:[#allocation53_spill] sm:$0xff] %v33901_v28 }
 0x4b1   :  { %24703 = vmatprep.mubr.msk.f32.mxu0 %vm5878_vm6, %v33267_v19  ;;  %25558 = vmatmul.mubr.msk.f32.gmra.mrb[20].mxu1 %vm5878_vm6, %v33061_v5 }
 0x4b2   :  { %25560 = vmatprep.mubr.msk.f32.mxu1 %vm5878_vm6, %v33083_v11 }
 0x4b4   :  { %24704 = vmatmul.mubr.msk.f32.gmra.mrb[84].mxu0 %vm5878_vm6, %v33270_v30 }
 0x4b5   :  { %24706 = vmatprep.mubr.msk.f32.mxu0 %vm5878_vm6, %v33285_v9  ;;  %25561 = vmatmul.mubr.msk.f32.gmra.mrb[22].mxu1 %vm5878_vm6, %v33100_v49 }
 0x4b6   :  { %25563 = vmatprep.mubr.msk.f32.mxu1 %vm5878_vm6, %v33117_v29  ;;  %v33675_v29 = vmax.f32 %v38885_v34, 0.0  ;;  %v20477_v34 = vld [vmem:[%s38225_s3 + $0xb8] sm:$0x3] }
 0x4b7   :  { %v33700_v24 = vpack.c.bf16 %v20477_v34, %v20476_v32  ;;  %v38891_v34 = vld [vmem:[#allocation30_spill] sm:$0xff] }
 0x4b8   :  { %24707 = vmatmul.mubr.msk.f32.gmra.mrb[86].mxu0 %vm5878_vm6, %v33288_v26  ;;  %38886 = vst [vmem:[#allocation24_spill] sm:$0xff] %v33675_v29 }
 0x4b9   :  { %24709 = vmatprep.mubr.msk.f32.mxu0 %vm5878_vm6, %v33661_v54  ;;  %25564 = vmatmul.mubr.msk.f32.gmra.mrb[24].mxu1 %vm5878_vm6, %v33134_v3  ;;  %38888 = vst [vmem:[#allocation110_spill] sm:$0xff] %v33700_v24  ;;  %v33728_v54 = vmax.f32 %v38891_v34, 0.0  ;;  %v24455_v34 = vpop.f32.mrb[176].mxu0  ;;  %v38896_v3 = vld [vmem:[#allocation41_spill] sm:$0xff] }
 0x4ba   :  { %25566 = vmatprep.mubr.msk.f32.mxu1 %vm5878_vm6, %v33151_v38 }
 0x4bb   :  { %38892 = vst [vmem:[#allocation30_spill] sm:$0xff] %v33728_v54 }
 0x4bc   :  { %24710 = vmatmul.mubr.msk.f32.gmra.mrb[88].mxu0 %vm5878_vm6, %v33670_v56 }
 0x4bd   :  { %24712 = vmatprep.mubr.msk.f32.mxu0 %vm5878_vm6, %v33675_v29  ;;  %25567 = vmatmul.mubr.msk.f32.gmra.mrb[26].mxu1 %vm5878_vm6, %v33678_v61 }
 0x4be   :  { %25573 = vmatprep.mubr.msk.f32.mxu1 %vm5878_vm6, %v33176_v40 }
 0x4c0   :  { %24713 = vmatmul.mubr.msk.f32.gmra.mrb[90].mxu0 %vm5878_vm6, %v33324_v37 }
 0x4c1   :  { %24715 = vmatprep.mubr.msk.f32.mxu0 %vm5878_vm6, %v33339_v13  ;;  %25574 = vmatmul.mubr.msk.f32.vlgmr.msra.gmra.mrb[28].mxu1 %vm5878_vm6, %v33179_v4 }
 0x4c2   :  { %27405 = vmatpush3.bf16.msk.msra.mxu1 %vm31375_vm5, %v33199_v7  ;;  %25576 = vmatprep.mubr.msk.f32.mxu1 %vm5878_vm6, %v33210_v59  ;;  %v38889_v7 = vld [vmem:[#allocation29_spill] sm:$0xff] }
 0x4c3   :  { %27408 = vmatprep.subr.msk.bf16.mxu1 %vm31375_vm5, %v33700_v24  ;;  %v33719_v32 = vmax.f32 %v38889_v7, 0.0  ;;  %v38893_v24 = vld [vmem:[#allocation31_spill] sm:$0xff]  ;;  %v38895_v7 = vld [vmem:[#allocation18_spill] sm:$0xff] }
 0x4c4   :  { %24716 = vmatmul.mubr.msk.f32.gmra.mrb[92].mxu0 %vm5878_vm6, %v33342_v46  ;;  %v33733_v37 = vmax.f32 %v38893_v24, 0.0  ;;  %v38328_v29 = vmax.f32 %v38895_v7, 0.0  ;;  %v4580_v24 = vpop.f32.mrb[177].mxu0 }
 0x4c5   :  { %24718 = vmatprep.mubr.msk.f32.mxu0 %vm5878_vm6, %v33357_v27  ;;  %25577 = vmatmul.mubr.msk.f32.gmra.mrb[30].mxu1 %vm5878_vm6, %v33216_v62  ;;  %38890 = vst [vmem:[#allocation29_spill] sm:$0xff] %v33719_v32 }
 0x4c6   :  { %25579 = vmatprep.mubr.msk.f32.mxu1 %vm5878_vm6, %v33231_v8  ;;  %38894 = vst [vmem:[#allocation31_spill] sm:$0xff] %v33733_v37 }
 0x4c8   :  { %24719 = vmatmul.mubr.msk.f32.gmra.mrb[94].mxu0 %vm5878_vm6, %v33360_v48 }
 0x4c9   :  { %24721 = vmatprep.mubr.msk.f32.mxu0 %vm5878_vm6, %v33719_v32  ;;  %25580 = vmatmul.mubr.msk.f32.gmra.mrb[32].mxu1 %vm5878_vm6, %v33234_v39  ;;  %v33749_v39 = vadd.f32 %v33066_v31, %v4580_v24  ;;  %v24458_v32 = vpop.f32.mrb[178].mxu0 }
 0x4ca   :  { %25582 = vmatprep.mubr.msk.f32.mxu1 %vm5878_vm6, %v33249_v44  ;;  %v33746_v44 = vadd.f32 %v33066_v31, %v24455_v34  ;;  %v4590_v7 = vpop.f32.mrb[179].mxu0 }
 0x4cb   :  { %v33763_v24 = vadd.f32 %v33066_v31, %v4590_v7 }
 0x4cc   :  { %24722 = vmatmul.mubr.msk.f32.gmra.mrb[96].mxu0 %vm5878_vm6, %v33728_v54 }
 0x4cd   :  { %24724 = vmatprep.mubr.msk.f32.mxu0 %vm5878_vm6, %v33733_v37  ;;  %25583 = vmatmul.mubr.msk.f32.gmra.mrb[34].mxu1 %vm5878_vm6, %v38328_v29  ;;  %v33754_v37 = vadd.f32 %v33066_v31, %v24458_v32  ;;  %v24461_v29 = vpop.f32.mrb[180].mxu0 }
 0x4ce   :  { %25585 = vmatprep.mubr.msk.f32.mxu1 %vm5878_vm6, %v33267_v19  ;;  %v33768_v32 = vadd.f32 %v33066_v31, %v24461_v29 }
 0x4d0   :  { %24725 = vmatmul.mubr.msk.f32.gmra.mrb[98].mxu0 %vm5878_vm6, %v33396_v57  ;;  %v4600_v57 = vpop.f32.mrb[181].mxu0 }
 0x4d1   :  { %24727 = vmatprep.mubr.msk.f32.mxu0 %vm5878_vm6, %v33411_v15  ;;  %25586 = vmatmul.mubr.msk.f32.gmra.mrb[36].mxu1 %vm5878_vm6, %v33270_v30  ;;  %v33773_v61 = vadd.f32 %v33066_v31, %v4600_v57  ;;  %v24464_v38 = vpop.f32.mrb[182].mxu0  ;;  %v38900_v30 = vld [vmem:[#allocation43_spill] sm:$0xff] }
 0x4d2   :  { %25588 = vmatprep.mubr.msk.f32.mxu1 %vm5878_vm6, %v33285_v9  ;;  %v33778_v7 = vadd.f32 %v33066_v31, %v24464_v38  ;;  %v4610_v34 = vpop.f32.mrb[183].mxu0  ;;  %v33795_v9 = vmax.f32 %v38896_v3, 0.0  ;;  %v33825_v19 = vmax.f32 %v38900_v30, 0.0 }
 0x4d3   :  { %v33787_v57 = vadd.f32 %v33066_v31, %v4610_v34  ;;  %v24467_v54 = vpop.f32.mrb[184].mxu0 }
 0x4d4   :  { %24728 = vmatmul.mubr.msk.f32.gmra.mrb[100].mxu0 %vm5878_vm6, %v33414_v51  ;;  %v33792_v38 = vadd.f32 %v33066_v31, %v24467_v54  ;;  %v4620_v56 = vpop.f32.mrb[185].mxu0  ;;  %38897 = vst [vmem:[#allocation41_spill] sm:$0xff] %v33795_v9  ;;  %38901 = vst [vmem:[#allocation43_spill] sm:$0xff] %v33825_v19 }
 0x4d5   :  { %24730 = vmatprep.mubr.msk.f32.mxu0 %vm5878_vm6, %v33429_v45  ;;  %25589 = vmatmul.mubr.msk.f32.gmra.mrb[38].mxu1 %vm5878_vm6, %v33288_v26  ;;  %v33800_v49 = vadd.f32 %v33066_v31, %v4620_v56  ;;  %v24470_v29 = vpop.f32.mrb[186].mxu0  ;;  %v38898_v26 = vld [vmem:[#allocation42_spill] sm:$0xff] }
 0x4d6   :  { %25591 = vmatprep.mubr.msk.f32.mxu1 %vm5878_vm6, %v33303_v35  ;;  %v33805_v34 = vadd.f32 %v33066_v31, %v24470_v29  ;;  %v4630_v35 = vpop.f32.mrb[187].mxu0  ;;  %v33817_v11 = vmax.f32 %v38898_v26, 0.0 }
 0x4d7   :  { %v33814_v56 = vadd.f32 %v33066_v31, %v4630_v35  ;;  %v24473_v54 = vpop.f32.mrb[188].mxu0 }
 0x4d8   :  { %24731 = vmatmul.mubr.msk.f32.gmra.mrb[102].mxu0 %vm5878_vm6, %v33432_v17  ;;  %38899 = vst [vmem:[#allocation42_spill] sm:$0xff] %v33817_v11  ;;  %v33822_v29 = vadd.f32 %v33066_v31, %v24473_v54 }
 0x4d9   :  { %24733 = vmatprep.mubr.msk.f32.mxu0 %vm5878_vm6, %v33795_v9  ;;  %25592 = vmatmul.mubr.msk.f32.gmra.mrb[40].mxu1 %vm5878_vm6, %v33306_v53  ;;  %v4640_v9 = vpop.f32.mrb[189].mxu0  ;;  %v38902_v53 = vld [vmem:[#allocation22_spill] sm:$0xff] }
 0x4da   :  { %25594 = vmatprep.mubr.msk.f32.mxu1 %vm5878_vm6, %v33321_v33  ;;  %v33828_v5 = vmax.f32 %v38902_v53, 0.0  ;;  %v33833_v3 = vadd.f32 %v33066_v31, %v4640_v9  ;;  %v24476_v26 = vpop.f32.mrb[190].mxu0 }
 0x4db   :  { %v33838_v54 = vadd.f32 %v33066_v31, %v24476_v26  ;;  %v4650_v33 = vpop.f32.mrb[191].mxu0 }
 0x4dc   :  { %38903 = vst [vmem:[#allocation22_spill] sm:$0xff] %v33828_v5  ;;  %24734 = vmatmul.mubr.msk.f32.gmra.mrb[104].mxu0 %vm5878_vm6, %v33817_v11  ;;  %v33847_v9 = vadd.f32 %v33066_v31, %v4650_v33  ;;  %v24479_v53 = vpop.f32.mrb[192].mxu0 }
 0x4dd   :  { %24736 = vmatprep.mubr.msk.f32.mxu0 %vm5878_vm6, %v33825_v19  ;;  %25595 = vmatmul.mubr.msk.f32.gmra.mrb[42].mxu1 %vm5878_vm6, %v33828_v5  ;;  %v33852_v26 = vadd.f32 %v33066_v31, %v24479_v53  ;;  %v4660_v35 = vpop.f32.mrb[193].mxu0 }
 0x4de   :  { %25597 = vmatprep.mubr.msk.f32.mxu1 %vm5878_vm6, %v33339_v13  ;;  %v33857_v11 = vadd.f32 %v33066_v31, %v4660_v35  ;;  %v24482_v5 = vpop.f32.mrb[194].mxu0 }
 0x4df   :  { %v33862_v33 = vadd.f32 %v33066_v31, %v24482_v5  ;;  %v4670_v30 = vpop.f32.mrb[195].mxu0 }
 0x4e0   :  { %24737 = vmatmul.mubr.msk.f32.gmra.mrb[106].mxu0 %vm5878_vm6, %v33468_v43  ;;  %v33871_v35 = vadd.f32 %v33066_v31, %v4670_v30  ;;  %v24485_v19 = vpop.f32.mrb[196].mxu0 }
 0x4e1   :  { %24739 = vmatprep.mubr.msk.f32.mxu0 %vm5878_vm6, %v33483_v16  ;;  %25598 = vmatmul.mubr.msk.f32.gmra.mrb[44].mxu1 %vm5878_vm6, %v33342_v46  ;;  %v33876_v5 = vadd.f32 %v33066_v31, %v24485_v19  ;;  %v4680_v43 = vpop.f32.mrb[197].mxu0  ;;  %v38906_v19 = vld [vmem:[#allocation54_spill] sm:$0xff] }
 0x4e2   :  { %25600 = vmatprep.mubr.msk.f32.mxu1 %vm5878_vm6, %v33357_v27  ;;  %v33881_v47 = vadd.f32 %v33066_v31, %v4680_v43  ;;  %v24488_v46 = vpop.f32.mrb[198].mxu0 }
 0x4e3   :  { %v33886_v30 = vadd.f32 %v33066_v31, %v24488_v46  ;;  %v4690_v53 = vpop.f32.mrb[199].mxu0 }
 0x4e4   :  { %24740 = vmatmul.mubr.msk.f32.gmra.mrb[108].mxu0 %vm5878_vm6, %v33486_v12  ;;  %v33895_v43 = vadd.f32 %v33066_v31, %v4690_v53  ;;  %v24491_v13 = vpop.f32.mrb[200].mxu0 }
 0x4e5   :  { %24742 = vmatprep.mubr.msk.f32.mxu0 %vm5878_vm6, %v38832_v22  ;;  %25601 = vmatmul.mubr.msk.f32.gmra.mrb[46].mxu1 %vm5878_vm6, %v33360_v48  ;;  %v4706_v46 = vadd.f32 %v33066_v31, %v24491_v13  ;;  %v4700_v27 = vpop.f32.mrb[201].mxu0 }
 0x4e6   :  { %25603 = vmatprep.mubr.msk.f32.mxu1 %vm5878_vm6, %v33375_v2  ;;  %v4701_v48 = vadd.f32 %v33066_v31, %v4700_v27  ;;  %v24494_v13 = vpop.f32.mrb[202].mxu0  ;;  %v33913_v2 = vmax.f32 %v38906_v19, 0.0  ;;  %v38911_v19 = vld [vmem:[#allocation55_spill] sm:$0xff] }
 0x4e7   :  { %v4716_v18 = vadd.f32 %v33066_v31, %v24494_v13  ;;  %v4710_v27 = vpop.f32.mrb[203].mxu0 }
 0x4e8   :  { %24743 = vmatmul.mubr.msk.f32.gmra.mrb[110].mxu0 %vm5878_vm6, %v38833_v20  ;;  %v5551_v53 = vmax.f32 %v4701_v48, %v4706_v46  ;;  %38907 = vst [vmem:[#allocation54_spill] sm:$0xff] %v33913_v2  ;;  %v4711_v48 = vadd.f32 %v33066_v31, %v4710_v27  ;;  %v24497_v13 = vpop.f32.mrb[204].mxu0 }
 0x4e9   :  { %24745 = vmatprep.mubr.msk.f32.mxu0 %vm5878_vm6, %v33901_v28  ;;  %25604 = vmatmul.mubr.msk.f32.gmra.mrb[48].mxu1 %vm5878_vm6, %v33378_v41  ;;  %v38910_v28 = vmax.f32 %v33749_v39, %v33746_v44  ;;  %v4726_v39 = vadd.f32 %v33066_v31, %v24497_v13  ;;  %v4720_v44 = vpop.f32.mrb[205].mxu0  ;;  %v38983_v41 = vld [vmem:[#allocation23_spill] sm:$0xff] }
 0x4ea   :  { %25606 = vmatprep.mubr.msk.f32.mxu1 %vm5878_vm6, %v33393_v21  ;;  %v5552_v46 = vmax.f32 %v4711_v48, %v4716_v18  ;;  %v24500_v27 = vpop.f32.mrb[206].mxu0  ;;  %v38914_v48 = vmax.f32 %v33773_v61, %v33768_v32 }
 0x4eb   :  { %v33924_v8 = vmax.f32 %v38910_v28, %v5551_v53  ;;  %v38912_v28 = vmax.f32 %v33763_v24, %v33754_v37  ;;  %v4721_v53 = vadd.f32 %v33066_v31, %v4720_v44  ;;  %v4736_v37 = vadd.f32 %v33066_v31, %v24500_v27  ;;  %v4730_v24 = vpop.f32.mrb[207].mxu0 }
 0x4ec   :  { %24746 = vmatmul.mubr.msk.f32.gmra.mrb[112].mxu0 %vm5878_vm6, %v33913_v2  ;;  %v4731_v13 = vadd.f32 %v33066_v31, %v4730_v24  ;;  %v24503_v44 = vpop.f32.mrb[208].mxu0 }
 0x4ed   :  { %24748 = vmatprep.mubr.msk.f32.mxu0 %vm5878_vm6, %v38911_v19  ;;  %25607 = vmatmul.mubr.msk.f32.gmra.mrb[50].mxu1 %vm5878_vm6, %v33919_v1  ;;  %v33939_v6 = vmax.f32 %v38912_v28, %v5552_v46  ;;  %v5553_v18 = vmax.f32 %v4721_v53, %v4726_v39  ;;  %v4746_v61 = vadd.f32 %v33066_v31, %v24503_v44  ;;  %v4740_v32 = vpop.f32.mrb[209].mxu0  ;;  %v38916_v28 = vld [vmem:[#allocation65_spill] sm:$0xff]  ;;  %v38936_v1 = vld [vmem:[#allocation4_spill] sm:$0xff] }
 0x4ee   :  { %25609 = vmatprep.mubr.msk.f32.mxu1 %vm5878_vm6, %v33411_v15  ;;  %v5554_v39 = vmax.f32 %v4731_v13, %v4736_v37  ;;  %v33967_v53 = vmax.f32 %v38916_v28, 0.0  ;;  %v4741_v24 = vadd.f32 %v33066_v31, %v4740_v32  ;;  %v38920_v13 = vld [vmem:[#allocation66_spill] sm:$0xff]  ;;  %v38924_v28 = vmax.f32 %v33800_v49, %v33792_v38 }
 0x4ef   :  { %38913 = vst [vmem:[#allocation111_spill] sm:$0xff] %v33939_v6  ;;  %v33954_v46 = vmax.f32 %v38914_v48, %v5553_v18  ;;  %v38918_v18 = vmax.f32 %v33787_v57, %v33778_v7  ;;  %v24506_v48 = vpop.f32.mrb[210].mxu0  ;;  %v33982_v44 = vmax.f32 %v38920_v13, 0.0  ;;  %v38995_v6 = vld [vmem:[#allocation105_spill] sm:$0xff] }
 0x4f0   :  { %24749 = vmatmul.mubr.msk.f32.gmra.mrb[114].mxu0 %vm5878_vm6, %v38844_v0  ;;  %38917 = vst [vmem:[#allocation65_spill] sm:$0xff] %v33967_v53  ;;  %v5555_v37 = vmax.f32 %v4741_v24, %v4746_v61  ;;  %v4756_v7 = vadd.f32 %v33066_v31, %v24506_v48  ;;  %v4750_v57 = vpop.f32.mrb[211].mxu0  ;;  %v38926_v24 = vld [vmem:[#allocation67_spill] sm:$0xff] }
 0x4f1   :  { %24751 = vmatprep.mubr.msk.f32.mxu0 %vm5878_vm6, %v38847_v42  ;;  %25610 = vmatmul.mubr.msk.f32.gmra.mrb[52].mxu1 %vm5878_vm6, %v33414_v51  ;;  %38915 = vst [vmem:[#allocation112_spill] sm:$0xff] %v33954_v46  ;;  %v33972_v27 = vmax.f32 %v38918_v18, %v5554_v39  ;;  %38921 = vst [vmem:[#allocation66_spill] sm:$0xff] %v33982_v44  ;;  %v38922_v39 = vld [vmem:[#allocation40_spill] sm:$0xff]  ;;  %v4751_v61 = vadd.f32 %v33066_v31, %v4750_v57  ;;  %v24509_v13 = vpop.f32.mrb[212].mxu0  ;;  %v38989_v46 = vld [vmem:[#allocation102_spill] sm:$0xff] }
 0x4f2   :  { %25612 = vmatprep.mubr.msk.f32.mxu1 %vm5878_vm6, %v33429_v45  ;;  %v33988_v32 = vmax.f32 %v38922_v39, 0.0  ;;  %v33993_v18 = vmax.f32 %v38924_v28, %v5555_v37  ;;  %v4766_v49 = vadd.f32 %v33066_v31, %v24509_v13  ;;  %v4760_v38 = vpop.f32.mrb[213].mxu0  ;;  %v38927_v37 = vmax.f32 %v33814_v56, %v33805_v34 }
 0x4f3   :  { %38919 = vst [vmem:[#allocation113_spill] sm:$0xff] %v33972_v27  ;;  %v5556_v48 = vmax.f32 %v4751_v61, %v4756_v7  ;;  %v4761_v39 = vadd.f32 %v33066_v31, %v4760_v38  ;;  %v24512_v28 = vpop.f32.mrb[214].mxu0  ;;  %v38929_v61 = vmax.f32 %v33833_v3, %v33822_v29  ;;  %v38931_v38 = vld [vmem:[#allocation71_spill] sm:$0xff]  ;;  %v38932_v29 = vld [vmem:[#allocation49_spill] sm:$0xff]  ;;  %v38988_v27 = vld [vmem:[#allocation24_spill] sm:$0xff] }
 0x4f4   :  { %24752 = vmatmul.mubr.msk.f32.gmra.mrb[116].mxu0 %vm5878_vm6, %v38850_v10  ;;  %38923 = vst [vmem:[#allocation40_spill] sm:$0xff] %v33988_v32  ;;  %38925 = vst [vmem:[#allocation114_spill] sm:$0xff] %v33993_v18  ;;  %v4776_v34 = vadd.f32 %v33066_v31, %v24512_v28  ;;  %v4770_v56 = vpop.f32.mrb[215].mxu0  ;;  %v19874_v3 = vld [vmem:[%s38225_s3 + $0x28] sm:$0x3] }
 0x4f5   :  { %24754 = vmatprep.mubr.msk.f32.mxu0 %vm5878_vm6, %v38853_v58  ;;  %25613 = vmatmul.mubr.msk.f32.gmra.mrb[54].mxu1 %vm5878_vm6, %v33432_v17  ;;  %v34008_v57 = vmax.f32 %v38927_v37, %v5556_v48  ;;  %v5557_v7 = vmax.f32 %v4761_v39, %v4766_v49  ;;  %v4771_v13 = vadd.f32 %v33066_v31, %v4770_v56  ;;  %v24515_v37 = vpop.f32.mrb[216].mxu0  ;;  %v19873_v39 = vld [vmem:[%s38225_s3 + $0x20] sm:$0xff] }
 0x4f6   :  { %25615 = vmatprep.mubr.msk.f32.mxu1 %vm5878_vm6, %v33447_v14  ;;  %v4780_v28 = vpop.f32.mrb[217].mxu0  ;;  %v27352_v56 = vpack.c.bf16 %v19874_v3, %v19873_v39 }
 0x4f7   :  { %38928 = vst [vmem:[#allocation115_spill] sm:$0xff] %v34008_v57  ;;  %v34023_v48 = vmax.f32 %v38929_v61, %v5557_v7  ;;  %v5558_v49 = vmax.f32 %v4771_v13, %v4776_v34  ;;  %v4786_v7 = vadd.f32 %v33066_v31, %v24515_v37  ;;  %v38933_v61 = vmax.f32 %v33847_v9, %v33838_v54  ;;  %v38938_v37 = vld [vmem:[#allocation50_spill] sm:$0xff]  ;;  %v24518_v3 = vpop.f32.mrb[218].mxu0  ;;  %v38939_v54 = vld [vmem:[#allocation3_spill] sm:$0xff]  ;;  %v38986_v57 = vld [vmem:[#allocation88_spill] sm:$0xff] }
 0x4f8   :  { %24755 = vmatmul.mubr.msk.f32.gmra.mrb[118].mxu0 %vm5878_vm6, %v38856_v25  ;;  %v4781_v13 = vadd.f32 %v33066_v31, %v4780_v28  ;;  %27354 = vmatprep.subr.msk.bf16.mxu0 %vm31375_vm5, %v27352_v56  ;;  %v29192_v31 = vld [vmem:[%s38224_s2] ss:$0 sm:$0xff]  ;;  %v38940_v28 = vld [vmem:[#allocation52_spill] sm:$0xff]  ;;  %v34192_v18 = vmax.f32 %v38986_v57, 0.0 }
 0x4f9   :  { %24757 = vmatprep.mubr.msk.f32.mxu0 %vm5878_vm6, %v33967_v53  ;;  %25616 = vmatmul.mubr.msk.f32.gmra.mrb[56].mxu1 %vm5878_vm6, %v33450_v60  ;;  %38930 = vst [vmem:[#allocation116_spill] sm:$0xff] %v34023_v48  ;;  %v34044_v34 = vmax.f32 %v38933_v61, %v5558_v49  ;;  %v4796_v9 = vadd.f32 %v29192_v31, %v24518_v3  ;;  %v4790_v49 = vpop.f32.mrb[219].mxu0  ;;  %v34062_v61 = vmax.f32 %v38940_v28, 0.0  ;;  %v38982_v60 = vld [vmem:[#allocation99_spill] sm:$0xff]  ;;  %v38985_v48 = vld [vmem:[#allocation25_spill] sm:$0xff] }
 0x4fa   :  { %25618 = vmatprep.mubr.msk.f32.mxu1 %vm5878_vm6, %v33465_v50  ;;  %v38937_v50 = vmax.f32 %v38936_v1, 0.0  ;;  %v5559_v39 = vmax.f32 %v4781_v13, %v4786_v7  ;;  %v38942_v1 = vmax.f32 %v33857_v11, %v33852_v26  ;;  %v4791_v21 = vadd.f32 %v29192_v31, %v4790_v49  ;;  %v38944_v7 = vld [vmem:[#allocation51_spill] sm:$0xff]  ;;  %v38945_v13 = vld [vmem:[#allocation5_spill] sm:$0xff] }
 0x4fb   :  { %38934 = vst [vmem:[#allocation117_spill] sm:$0xff] %v34044_v34  ;;  %38941 = vst [vmem:[#allocation4_spill] sm:$0xff] %v34062_v61  ;;  %v38984_v34 = vld [vmem:[#allocation86_spill] sm:$0xff] }
 0x4fc   :  { %24758 = vmatmul.mubr.msk.f32.gmra.mrb[120].mxu0 %vm5878_vm6, %v33982_v44  ;;  %v5560_v3 = vmax.f32 %v4791_v21, %v4796_v9  ;;  %v20543_v57 = vld [vmem:[%s38225_s3 + $0xc0] sm:$0xff] }
 0x4fd   :  { %24760 = vmatprep.mubr.msk.f32.mxu0 %vm5878_vm6, %v38926_v24  ;;  %25619 = vmatmul.mubr.msk.f32.gmra.mrb[58].mxu1 %vm5878_vm6, %v33988_v32  ;;  %v38935_v32 = vld [vmem:[#allocation72_spill] sm:$0xff] }
 0x4fe   :  { %25621 = vmatprep.mubr.msk.f32.mxu1 %vm5878_vm6, %v33483_v16 }
 0x500   :  { %24761 = vmatmul.mubr.msk.f32.gmra.mrb[122].mxu0 %vm5878_vm6, %v38866_v23 }
 0x501   :  { %24763 = vmatprep.mubr.msk.f32.mxu0 %vm5878_vm6, %v38867_v52  ;;  %25622 = vmatmul.mubr.msk.f32.gmra.mrb[60].mxu1 %vm5878_vm6, %v33486_v12 }
 0x502   :  { %25624 = vmatprep.mubr.msk.f32.mxu1 %vm5878_vm6, %v38832_v22 }
 0x504   :  { %24764 = vmatmul.mubr.msk.f32.gmra.mrb[124].mxu0 %vm5878_vm6, %v38868_v36 }
 0x505   :  { %24766 = vmatprep.mubr.msk.f32.mxu0 %vm5878_vm6, %v38931_v38  ;;  %25625 = vmatmul.mubr.msk.f32.gmra.mrb[62].mxu1 %vm5878_vm6, %v38833_v20 }
 0x506   :  { %25627 = vmatprep.mubr.msk.f32.mxu1 %vm5878_vm6, %v38932_v29 }
 0x508   :  { %24767 = vmatmul.mubr.msk.f32.gmra.mrb[126].mxu0 %vm5878_vm6, %v38935_v32 }
 0x509   :  { %24773 = vmatprep.mubr.msk.f32.mxu0 %vm5878_vm6, %v38937_v50  ;;  %25628 = vmatmul.mubr.msk.f32.gmra.mrb[0].mxu1 %vm5878_vm6, %v38938_v37  ;;  %v34067_v50 = vmax.f32 %v38942_v1, %v5559_v39  ;;  %v38946_v39 = vmax.f32 %v33871_v35, %v33862_v33  ;;  %v38948_v1 = vld [vmem:[#allocation6_spill] sm:$0xff]  ;;  %v38950_v33 = vmax.f32 %v33881_v47, %v33876_v5  ;;  %v38981_v37 = vld [vmem:[#allocation85_spill] sm:$0xff] }
 0x50a   :  { %25630 = vmatprep.mubr.msk.f32.mxu1 %vm5878_vm6, %v38939_v54  ;;  %v24521_v54 = vpop.f32.mrb[220].mxu0  ;;  %v38956_v47 = vmax.f32 %v33895_v43, %v33886_v30  ;;  %v38964_v30 = vld [vmem:[#allocation87_spill] sm:$0xff] }
 0x50b   :  { %38943 = vst [vmem:[#allocation52_spill] sm:$0xff] %v34067_v50  ;;  %v4806_v11 = vadd.f32 %v29192_v31, %v24521_v54  ;;  %v4800_v26 = vpop.f32.mrb[221].mxu0  ;;  %v34082_v49 = vmax.f32 %v38946_v39, %v5560_v3  ;;  %v38953_v39 = vld [vmem:[#allocation9_spill] sm:$0xff]  ;;  %v38965_v43 = vld [vmem:[#allocation91_spill] sm:$0xff]  ;;  %v38975_v50 = vld [vmem:[#allocation96_spill] sm:$0xff] }
 0x50c   :  { %24774 = vmatmul.mubr.msk.f32.vlgmr.msra.gmra.mrb[64].mxu0 %vm5878_vm6, %v38944_v7  ;;  %v4801_v28 = vadd.f32 %v29192_v31, %v4800_v26  ;;  %v24524_v9 = vpop.f32.mrb[222].mxu0  ;;  %v38952_v26 = vld [vmem:[#allocation8_spill] sm:$0xff]  ;;  %38987 = vst [vmem:[#allocation9_spill] sm:$0xff] %v34192_v18 }
 0x50d   :  { %24776 = vmatprep.mubr.msk.f32.mxu0 %vm5878_vm6, %v38945_v13  ;;  %25631 = vmatmul.mubr.msk.f32.gmra.mrb[2].mxu1 %vm5878_vm6, %v34062_v61  ;;  %38947 = vst [vmem:[#allocation51_spill] sm:$0xff] %v34082_v49  ;;  %v38949_v61 = vld [vmem:[#allocation7_spill] sm:$0xff]  ;;  %v4810_v54 = vpop.f32.mrb[223].mxu0 }
 0x50e   :  { %25633 = vmatprep.mubr.msk.f32.mxu1 %vm5878_vm6, %v38847_v42  ;;  %27357 = vmatpush3.bf16.msk.msra.mxu0 %vm31375_vm5, %v27352_v56  ;;  %v5561_v21 = vmax.f32 %v4801_v28, %v4806_v11  ;;  %v4816_v56 = vadd.f32 %v29192_v31, %v24524_v9  ;;  %v4811_v3 = vadd.f32 %v29192_v31, %v4810_v54  ;;  %v38954_v28 = vld [vmem:[#allocation11_spill] sm:$0xff]  ;;  %v38955_v9 = vld [vmem:[#allocation61_spill] sm:$0xff]  ;;  %v38958_v31 = vld [vmem:[#allocation10_spill] sm:$0xff] }
 0x50f   :  { %v34104_v49 = vmax.f32 %v38954_v28, 0.0  ;;  %v38961_v54 = vld [vmem:[#allocation64_spill] sm:$0xff]  ;;  %v38967_v28 = vld [vmem:[#allocation74_spill] sm:$0xff] }
 0x510   :  { %24777 = vmatmul.mubr.msk.f32.gmra.mrb[66].mxu0 %vm5878_vm6, %v38948_v1  ;;  %v34095_v35 = vmax.f32 %v38950_v33, %v5561_v21  ;;  %v5562_v11 = vmax.f32 %v4811_v3, %v4816_v56  ;;  %v38959_v21 = vld [vmem:[#allocation62_spill] sm:$0xff]  ;;  %v38960_v56 = vld [vmem:[#allocation17_spill] sm:$0xff]  ;;  %v34122_v33 = vmax.f32 %v38961_v54, 0.0  ;;  %v38963_v3 = vld [vmem:[#allocation16_spill] sm:$0xff] }
 0x511   :  { %24779 = vmatprep.mubr.msk.f32.mxu0 %vm5878_vm6, %v38949_v61  ;;  %25634 = vmatmul.mubr.msk.f32.gmra.mrb[4].mxu1 %vm5878_vm6, %v38850_v10  ;;  %v38969_v54 = vld [vmem:[#allocation76_spill] sm:$0xff] }
 0x512   :  { %25636 = vmatprep.mubr.msk.f32.mxu1 %vm5878_vm6, %v38853_v58  ;;  %38951 = vst [vmem:[#allocation5_spill] sm:$0xff] %v34095_v35  ;;  %v34111_v5 = vmax.f32 %v38956_v47, %v5562_v11  ;;  %38962 = vst [vmem:[#allocation7_spill] sm:$0xff] %v34122_v33  ;;  %v38966_v11 = vld [vmem:[#allocation19_spill] sm:$0xff]  ;;  %v38968_v47 = vld [vmem:[#allocation21_spill] sm:$0xff] }
 0x513   :  { %v38971_v35 = vld [vmem:[#allocation20_spill] sm:$0xff] }
 0x514   :  { %24780 = vmatmul.mubr.msk.f32.gmra.mrb[68].mxu0 %vm5878_vm6, %v38952_v26  ;;  %38957 = vst [vmem:[#allocation6_spill] sm:$0xff] %v34111_v5  ;;  %v34157_v5 = vmax.f32 %v38969_v54, 0.0  ;;  %v38976_v54 = vld [vmem:[#allocation82_spill] sm:$0xff] }
 0x515   :  { %24782 = vmatprep.mubr.msk.f32.mxu0 %vm5878_vm6, %v38953_v39  ;;  %25637 = vmatmul.mubr.msk.f32.gmra.mrb[6].mxu1 %vm5878_vm6, %v38856_v25 }
 0x516   :  { %25639 = vmatprep.mubr.msk.f32.mxu1 %vm5878_vm6, %v38955_v9  ;;  %38970 = vst [vmem:[#allocation8_spill] sm:$0xff] %v34157_v5 }
 0x518   :  { %24783 = vmatmul.mubr.msk.f32.gmra.mrb[70].mxu0 %vm5878_vm6, %v34104_v49 }
 0x519   :  { %24785 = vmatprep.mubr.msk.f32.mxu0 %vm5878_vm6, %v38958_v31  ;;  %25640 = vmatmul.mubr.msk.f32.gmra.mrb[8].mxu1 %vm5878_vm6, %v38959_v21  ;;  %v38972_v31 = vld [vmem:[#allocation94_spill] sm:$0xff] }
 0x51a   :  { %25642 = vmatprep.mubr.msk.f32.mxu1 %vm5878_vm6, %v38960_v56  ;;  %v38974_v56 = vld [vmem:[#allocation95_spill] sm:$0xff]  ;;  %v38979_v21 = vld [vmem:[#allocation98_spill] sm:$0xff] }
 0x51c   :  { %24786 = vmatmul.mubr.msk.f32.gmra.mrb[72].mxu0 %vm5878_vm6, %v38963_v3 }
 0x51d   :  { %24788 = vmatprep.mubr.msk.f32.mxu0 %vm5878_vm6, %v38964_v30  ;;  %25643 = vmatmul.mubr.msk.f32.gmra.mrb[10].mxu1 %vm5878_vm6, %v34122_v33  ;;  %v38973_v33 = vld [vmem:[#allocation81_spill] sm:$0xff] }
 0x51e   :  { %25645 = vmatprep.mubr.msk.f32.mxu1 %vm5878_vm6, %v38867_v52 }
 0x520   :  { %24789 = vmatmul.mubr.msk.f32.gmra.mrb[74].mxu0 %vm5878_vm6, %v33176_v40 }
 0x521   :  { %24791 = vmatprep.mubr.msk.f32.mxu0 %vm5878_vm6, %v33179_v4  ;;  %25646 = vmatmul.mubr.msk.f32.gmra.mrb[12].mxu1 %vm5878_vm6, %v38868_v36 }
 0x522   :  { %25648 = vmatprep.mubr.msk.f32.mxu1 %vm5878_vm6, %v38931_v38 }
 0x524   :  { %24792 = vmatmul.mubr.msk.f32.gmra.mrb[76].mxu0 %vm5878_vm6, %v33210_v59 }
 0x525   :  { %24794 = vmatprep.mubr.msk.f32.mxu0 %vm5878_vm6, %v33216_v62  ;;  %25649 = vmatmul.mubr.msk.f32.gmra.mrb[14].mxu1 %vm5878_vm6, %v38935_v32 }
 0x526   :  { %25651 = vmatprep.mubr.msk.f32.mxu1 %vm5878_vm6, %v38873_v55 }
 0x528   :  { %24795 = vmatmul.mubr.msk.f32.gmra.mrb[78].mxu0 %vm5878_vm6, %v38965_v43 }
 0x529   :  { %24797 = vmatprep.mubr.msk.f32.mxu0 %vm5878_vm6, %v38966_v11  ;;  %25652 = vmatmul.mubr.msk.f32.gmra.mrb[16].mxu1 %vm5878_vm6, %v38967_v28  ;;  %v38978_v28 = vld [vmem:[#allocation97_spill] sm:$0xff] }
 0x52a   :  { %25654 = vmatprep.mubr.msk.f32.mxu1 %vm5878_vm6, %v38968_v47  ;;  %v38977_v47 = vld [vmem:[#allocation83_spill] sm:$0xff] }
 0x52c   :  { %24798 = vmatmul.mubr.msk.f32.gmra.mrb[80].mxu0 %vm5878_vm6, %v38971_v35 }
 0x52d   :  { %24800 = vmatprep.mubr.msk.f32.mxu0 %vm5878_vm6, %v38972_v31  ;;  %25655 = vmatmul.mubr.msk.f32.gmra.mrb[18].mxu1 %vm5878_vm6, %v34157_v5  ;;  %v38980_v5 = vld [vmem:[#allocation84_spill] sm:$0xff] }
 0x52e   :  { %25657 = vmatprep.mubr.msk.f32.mxu1 %vm5878_vm6, %v38973_v33 }
 0x530   :  { %24801 = vmatmul.mubr.msk.f32.gmra.mrb[82].mxu0 %vm5878_vm6, %v38974_v56 }
 0x531   :  { %24803 = vmatprep.mubr.msk.f32.mxu0 %vm5878_vm6, %v38975_v50  ;;  %25658 = vmatmul.mubr.msk.f32.gmra.mrb[20].mxu1 %vm5878_vm6, %v38976_v54 }
 0x532   :  { %25660 = vmatprep.mubr.msk.f32.mxu1 %vm5878_vm6, %v38977_v47 }
 0x534   :  { %24804 = vmatmul.mubr.msk.f32.gmra.mrb[84].mxu0 %vm5878_vm6, %v38978_v28 }
 0x535   :  { %24806 = vmatprep.mubr.msk.f32.mxu0 %vm5878_vm6, %v38979_v21  ;;  %25661 = vmatmul.mubr.msk.f32.gmra.mrb[22].mxu1 %vm5878_vm6, %v38980_v5  ;;  %v38996_v5 = vld [vmem:[#allocation106_spill] sm:$0xff] }
 0x536   :  { %25663 = vmatprep.mubr.msk.f32.mxu1 %vm5878_vm6, %v38981_v37  ;;  %v38990_v37 = vld [vmem:[#allocation63_spill] sm:$0xff] }
 0x538   :  { %24807 = vmatmul.mubr.msk.f32.gmra.mrb[86].mxu0 %vm5878_vm6, %v38982_v60  ;;  %v38991_v60 = vld [vmem:[#allocation103_spill] sm:$0xff] }
 0x539   :  { %24809 = vmatprep.mubr.msk.f32.mxu0 %vm5878_vm6, %v38983_v41  ;;  %25664 = vmatmul.mubr.msk.f32.gmra.mrb[24].mxu1 %vm5878_vm6, %v38984_v34  ;;  %v38992_v34 = vld [vmem:[#allocation104_spill] sm:$0xff] }
 0x53a   :  { %25666 = vmatprep.mubr.msk.f32.mxu1 %vm5878_vm6, %v38985_v48  ;;  %v20544_v48 = vld [vmem:[%s38225_s3 + $0xc8] sm:$0x3] }
 0x53c   :  { %24810 = vmatmul.mubr.msk.f32.gmra.mrb[88].mxu0 %vm5878_vm6, %v38988_v27 }
 0x53d   :  { %24812 = vmatprep.mubr.msk.f32.mxu0 %vm5878_vm6, %v38989_v46  ;;  %25667 = vmatmul.mubr.msk.f32.gmra.mrb[26].mxu1 %vm5878_vm6, %v34192_v18  ;;  %v34214_v18 = vpack.c.bf16 %v20544_v48, %v20543_v57  ;;  %v38997_v48 = vld [vmem:[#allocation107_spill] sm:$0xff] }
 0x53e   :  { %25673 = vmatprep.mubr.msk.f32.mxu1 %vm5878_vm6, %v38990_v37  ;;  %v38994_v37 = vld [vmem:[#allocation110_spill] sm:$0xff]  ;;  %v38999_v57 = vld [vmem:[#allocation31_spill] sm:$0xff] }
 0x53f   :  { %38993 = vst [vmem:[#allocation11_spill] sm:$0xff] %v34214_v18 }
 0x540   :  { %24813 = vmatmul.mubr.msk.f32.gmra.mrb[90].mxu0 %vm5878_vm6, %v38991_v60 }
 0x541   :  { %24815 = vmatprep.mubr.msk.f32.mxu0 %vm5878_vm6, %v38992_v34  ;;  %25674 = vmatmul.mubr.msk.f32.vlgmr.msra.gmra.mrb[28].mxu1 %vm5878_vm6, %v38966_v11  ;;  %v39001_v11 = vld [vmem:[#allocation75_spill] sm:$0xff] }
 0x542   :  { %27411 = vmatpush3.bf16.msk.msra.mxu1 %vm31375_vm5, %v38994_v37  ;;  %25676 = vmatprep.mubr.msk.f32.mxu1 %vm5878_vm6, %v38971_v35  ;;  %v38998_v37 = vld [vmem:[#allocation30_spill] sm:$0xff] }
 0x543   :  { %27414 = vmatprep.subr.msk.bf16.mxu1 %vm31375_vm5, %v34214_v18  ;;  %v39000_v18 = vld [vmem:[#allocation32_spill] sm:$0xff] }
 0x544   :  { %24816 = vmatmul.mubr.msk.f32.gmra.mrb[92].mxu0 %vm5878_vm6, %v38995_v6 }
 0x545   :  { %24818 = vmatprep.mubr.msk.f32.mxu0 %vm5878_vm6, %v38996_v5  ;;  %25677 = vmatmul.mubr.msk.f32.gmra.mrb[30].mxu1 %vm5878_vm6, %v38972_v31 }
 0x546   :  { %25679 = vmatprep.mubr.msk.f32.mxu1 %vm5878_vm6, %v38974_v56 }
 0x548   :  { %24819 = vmatmul.mubr.msk.f32.gmra.mrb[94].mxu0 %vm5878_vm6, %v38997_v48  ;;  %v39004_v48 = vld [vmem:[#allocation44_spill] sm:$0xff] }
 0x549   :  { %24821 = vmatprep.mubr.msk.f32.mxu0 %vm5878_vm6, %v38998_v37  ;;  %25680 = vmatmul.mubr.msk.f32.gmra.mrb[32].mxu1 %vm5878_vm6, %v38975_v50 }
 0x54a   :  { %25682 = vmatprep.mubr.msk.f32.mxu1 %vm5878_vm6, %v38978_v28 }
 0x54c   :  { %24822 = vmatmul.mubr.msk.f32.gmra.mrb[96].mxu0 %vm5878_vm6, %v38999_v57 }
 0x54d   :  { %24824 = vmatprep.mubr.msk.f32.mxu0 %vm5878_vm6, %v39000_v18  ;;  %25683 = vmatmul.mubr.msk.f32.gmra.mrb[34].mxu1 %vm5878_vm6, %v38979_v21 }
 0x54e   :  { %25685 = vmatprep.mubr.msk.f32.mxu1 %vm5878_vm6, %v39001_v11  ;;  %v39002_v11 = vld [vmem:[#allocation42_spill] sm:$0xff] }
 0x550   :  { %24825 = vmatmul.mubr.msk.f32.gmra.mrb[98].mxu0 %vm5878_vm6, %v33411_v15 }
 0x551   :  { %24827 = vmatprep.mubr.msk.f32.mxu0 %vm5878_vm6, %v33414_v51  ;;  %25686 = vmatmul.mubr.msk.f32.gmra.mrb[36].mxu1 %vm5878_vm6, %v38983_v41  ;;  %v39003_v41 = vld [vmem:[#allocation43_spill] sm:$0xff] }
 0x552   :  { %25688 = vmatprep.mubr.msk.f32.mxu1 %vm5878_vm6, %v38988_v27 }
 0x554   :  { %24828 = vmatmul.mubr.msk.f32.gmra.mrb[100].mxu0 %vm5878_vm6, %v33429_v45 }
 0x555   :  { %24830 = vmatprep.mubr.msk.f32.mxu0 %vm5878_vm6, %v33432_v17  ;;  %25689 = vmatmul.mubr.msk.f32.gmra.mrb[38].mxu1 %vm5878_vm6, %v38989_v46 }
 0x556   :  { %25691 = vmatprep.mubr.msk.f32.mxu1 %vm5878_vm6, %v38991_v60  ;;  %v39005_v60 = vld [vmem:[#allocation29_spill] sm:$0xff] }
 0x558   :  { %24831 = vmatmul.mubr.msk.f32.gmra.mrb[102].mxu0 %vm5878_vm6, %v33447_v14 }
 0x559   :  { %24833 = vmatprep.mubr.msk.f32.mxu0 %vm5878_vm6, %v39002_v11  ;;  %25692 = vmatmul.mubr.msk.f32.gmra.mrb[40].mxu1 %vm5878_vm6, %v38992_v34 }
 0x55a   :  { %25694 = vmatprep.mubr.msk.f32.mxu1 %vm5878_vm6, %v38995_v6 }
 0x55c   :  { %24834 = vmatmul.mubr.msk.f32.gmra.mrb[104].mxu0 %vm5878_vm6, %v39003_v41 }
 0x55d   :  { %24836 = vmatprep.mubr.msk.f32.mxu0 %vm5878_vm6, %v39004_v48  ;;  %25695 = vmatmul.mubr.msk.f32.gmra.mrb[42].mxu1 %vm5878_vm6, %v38996_v5 }
 0x55e   :  { %25697 = vmatprep.mubr.msk.f32.mxu1 %vm5878_vm6, %v39005_v60  ;;  %v39006_v60 = vld [vmem:[#allocation41_spill] sm:$0xff] }
 0x560   :  { %24837 = vmatmul.mubr.msk.f32.gmra.mrb[106].mxu0 %vm5878_vm6, %v33483_v16 }
 0x561   :  { %24839 = vmatprep.mubr.msk.f32.mxu0 %vm5878_vm6, %v33486_v12  ;;  %25698 = vmatmul.mubr.msk.f32.gmra.mrb[44].mxu1 %vm5878_vm6, %v38998_v37 }
 0x562   :  { %25700 = vmatprep.mubr.msk.f32.mxu1 %vm5878_vm6, %v38999_v57 }
 0x564   :  { %24840 = vmatmul.mubr.msk.f32.gmra.mrb[108].mxu0 %vm5878_vm6, %v38832_v22 }
 0x565   :  { %24842 = vmatprep.mubr.msk.f32.mxu0 %vm5878_vm6, %v38833_v20  ;;  %25701 = vmatmul.mubr.msk.f32.gmra.mrb[46].mxu1 %vm5878_vm6, %v39000_v18 }
 0x566   :  { %25703 = vmatprep.mubr.msk.f32.mxu1 %vm5878_vm6, %v33411_v15 }
 0x568   :  { %24843 = vmatmul.mubr.msk.f32.gmra.mrb[110].mxu0 %vm5878_vm6, %v38932_v29 }
 0x569   :  { %24845 = vmatprep.mubr.msk.f32.mxu0 %vm5878_vm6, %v33913_v2  ;;  %25704 = vmatmul.mubr.msk.f32.gmra.mrb[48].mxu1 %vm5878_vm6, %v33414_v51 }
 0x56a   :  { %25706 = vmatprep.mubr.msk.f32.mxu1 %vm5878_vm6, %v33429_v45 }
 0x56c   :  { %24846 = vmatmul.mubr.msk.f32.gmra.mrb[112].mxu0 %vm5878_vm6, %v38911_v19 }
 0x56d   :  { %24848 = vmatprep.mubr.msk.f32.mxu0 %vm5878_vm6, %v38844_v0  ;;  %25707 = vmatmul.mubr.msk.f32.gmra.mrb[50].mxu1 %vm5878_vm6, %v33432_v17 }
 0x56e   :  { %25709 = vmatprep.mubr.msk.f32.mxu1 %vm5878_vm6, %v39006_v60  ;;  %v39007_v60 = vld [vmem:[#allocation53_spill] sm:$0xff] }
 0x570   :  { %24849 = vmatmul.mubr.msk.f32.gmra.mrb[114].mxu0 %vm5878_vm6, %v38847_v42 }
 0x571   :  { %24851 = vmatprep.mubr.msk.f32.mxu0 %vm5878_vm6, %v38850_v10  ;;  %25710 = vmatmul.mubr.msk.f32.gmra.mrb[52].mxu1 %vm5878_vm6, %v39002_v11 }
 0x572   :  { %25712 = vmatprep.mubr.msk.f32.mxu1 %vm5878_vm6, %v39003_v41 }
 0x574   :  { %24852 = vmatmul.mubr.msk.f32.gmra.mrb[116].mxu0 %vm5878_vm6, %v38853_v58 }
 0x575   :  { %24854 = vmatprep.mubr.msk.f32.mxu0 %vm5878_vm6, %v38856_v25  ;;  %25713 = vmatmul.mubr.msk.f32.gmra.mrb[54].mxu1 %vm5878_vm6, %v39004_v48 }
 0x576   :  { %25715 = vmatprep.mubr.msk.f32.mxu1 %vm5878_vm6, %v33483_v16 }
 0x578   :  { %24855 = vmatmul.mubr.msk.f32.gmra.mrb[118].mxu0 %vm5878_vm6, %v38955_v9 }
 0x579   :  { %24857 = vmatprep.mubr.msk.f32.mxu0 %vm5878_vm6, %v33982_v44  ;;  %25716 = vmatmul.mubr.msk.f32.gmra.mrb[56].mxu1 %vm5878_vm6, %v33486_v12 }
 0x57a   :  { %25718 = vmatprep.mubr.msk.f32.mxu1 %vm5878_vm6, %v38832_v22 }
 0x57c   :  { %24858 = vmatmul.mubr.msk.f32.gmra.mrb[120].mxu0 %vm5878_vm6, %v38926_v24 }
 0x57d   :  { %24860 = vmatprep.mubr.msk.f32.mxu0 %vm5878_vm6, %v38866_v23  ;;  %25719 = vmatmul.mubr.msk.f32.gmra.mrb[58].mxu1 %vm5878_vm6, %v38833_v20 }
 0x57e   :  { %25721 = vmatprep.mubr.msk.f32.mxu1 %vm5878_vm6, %v39007_v60  ;;  %v19940_v60 = vld [vmem:[%s38225_s3 + $0x30] sm:$0xff] }
 0x580   :  { %24861 = vmatmul.mubr.msk.f32.gmra.mrb[122].mxu0 %vm5878_vm6, %v38867_v52 }
 0x581   :  { %24863 = vmatprep.mubr.msk.f32.mxu0 %vm5878_vm6, %v38868_v36  ;;  %25722 = vmatmul.mubr.msk.f32.gmra.mrb[60].mxu1 %vm5878_vm6, %v33913_v2  ;;  %v19941_v2 = vld [vmem:[%s38225_s3 + $0x38] sm:$0x3] }
 0x582   :  { %25724 = vmatprep.mubr.msk.f32.mxu1 %vm5878_vm6, %v38911_v19  ;;  %v27358_v9 = vpack.c.bf16 %v19941_v2, %v19940_v60  ;;  %v39008_v2 = vld [vmem:[#allocation12_spill] sm:$0xff] }
 0x583   :  { %v34401_v60 = vmax.f32 %v39008_v2, 0.0  ;;  %v39011_v2 = vld [vmem:[#allocation78_spill] sm:$0xff] }
 0x584   :  { %24864 = vmatmul.mubr.msk.f32.gmra.mrb[124].mxu0 %vm5878_vm6, %v38931_v38  ;;  %27360 = vmatprep.subr.msk.bf16.mxu0 %vm31375_vm5, %v27358_v9 }
 0x585   :  { %24866 = vmatprep.mubr.msk.f32.mxu0 %vm5878_vm6, %v38935_v32  ;;  %25725 = vmatmul.mubr.msk.f32.gmra.mrb[62].mxu1 %vm5878_vm6, %v38844_v0 }
 0x586   :  { %25727 = vmatprep.mubr.msk.f32.mxu1 %vm5878_vm6, %v38847_v42 }
 0x588   :  { %24867 = vmatmul.mubr.msk.f32.gmra.mrb[126].mxu0 %vm5878_vm6, %v38873_v55 }
 0x589   :  { %24873 = vmatprep.mubr.msk.f32.mxu0 %vm5878_vm6, %v38944_v7  ;;  %25728 = vmatmul.mubr.msk.f32.gmra.mrb[0].mxu1 %vm5878_vm6, %v38850_v10  ;;  %v39009_v7 = vld [vmem:[#allocation77_spill] sm:$0xff] }
 0x58a   :  { %25730 = vmatprep.mubr.msk.f32.mxu1 %vm5878_vm6, %v38853_v58 }
 0x58c   :  { %24874 = vmatmul.mubr.msk.f32.vlgmr.msra.gmra.mrb[64].mxu0 %vm5878_vm6, %v38945_v13 }
 0x58d   :  { %24876 = vmatprep.mubr.msk.f32.mxu0 %vm5878_vm6, %v38948_v1  ;;  %25731 = vmatmul.mubr.msk.f32.gmra.mrb[2].mxu1 %vm5878_vm6, %v38856_v25 }
 0x58e   :  { %25733 = vmatprep.mubr.msk.f32.mxu1 %vm5878_vm6, %v33967_v53  ;;  %27363 = vmatpush3.bf16.msk.msra.mxu0 %vm31375_vm5, %v27358_v9  ;;  %v34414_v9 = vmax.f32 %v39009_v7, 0.0  ;;  %v34425_v53 = vmax.f32 %v39011_v2, 0.0  ;;  %v39013_v7 = vld [vmem:[#allocation79_spill] sm:$0xff]  ;;  %v39014_v2 = vld [vmem:[#allocation80_spill] sm:$0xff] }
 0x590   :  { %24877 = vmatmul.mubr.msk.f32.gmra.mrb[66].mxu0 %vm5878_vm6, %v38949_v61  ;;  %39010 = vst [vmem:[#allocation64_spill] sm:$0xff] %v34414_v9  ;;  %39012 = vst [vmem:[#allocation76_spill] sm:$0xff] %v34425_v53 }
 0x591   :  { %24879 = vmatprep.mubr.msk.f32.mxu0 %vm5878_vm6, %v38952_v26  ;;  %25734 = vmatmul.mubr.msk.f32.gmra.mrb[4].mxu1 %vm5878_vm6, %v33982_v44 }
 0x592   :  { %25736 = vmatprep.mubr.msk.f32.mxu1 %vm5878_vm6, %v38926_v24 }
 0x594   :  { %24880 = vmatmul.mubr.msk.f32.gmra.mrb[68].mxu0 %vm5878_vm6, %v38953_v39 }
 0x595   :  { %24882 = vmatprep.mubr.msk.f32.mxu0 %vm5878_vm6, %v34104_v49  ;;  %25737 = vmatmul.mubr.msk.f32.gmra.mrb[6].mxu1 %vm5878_vm6, %v38866_v23 }
 0x596   :  { %25739 = vmatprep.mubr.msk.f32.mxu1 %vm5878_vm6, %v38867_v52 }
 0x598   :  { %24883 = vmatmul.mubr.msk.f32.gmra.mrb[70].mxu0 %vm5878_vm6, %v34401_v60 }
 0x599   :  { %24885 = vmatprep.mubr.msk.f32.mxu0 %vm5878_vm6, %v38963_v3  ;;  %25740 = vmatmul.mubr.msk.f32.gmra.mrb[8].mxu1 %vm5878_vm6, %v38868_v36  ;;  %v34452_v3 = vmax.f32 %v33924_v8, 0.0  ;;  %v39022_v8 = vld [vmem:[#allocation113_spill] sm:$0xff] }
 0x59a   :  { %25742 = vmatprep.mubr.msk.f32.mxu1 %vm5878_vm6, %v38931_v38 }
 0x59b   :  { %39016 = vst [vmem:[#allocation88_spill] sm:$0xff] %v34452_v3 }
 0x59c   :  { %24886 = vmatmul.mubr.msk.f32.gmra.mrb[72].mxu0 %vm5878_vm6, %v38964_v30 }
 0x59d   :  { %24888 = vmatprep.mubr.msk.f32.mxu0 %vm5878_vm6, %v33176_v40  ;;  %25743 = vmatmul.mubr.msk.f32.gmra.mrb[10].mxu1 %vm5878_vm6, %v38935_v32 }
 0x59e   :  { %25745 = vmatprep.mubr.msk.f32.mxu1 %vm5878_vm6, %v34414_v9  ;;  %v39015_v9 = vld [vmem:[#allocation92_spill] sm:$0xff] }
 0x5a0   :  { %24889 = vmatmul.mubr.msk.f32.gmra.mrb[74].mxu0 %vm5878_vm6, %v33179_v4 }
 0x5a1   :  { %24891 = vmatprep.mubr.msk.f32.mxu0 %vm5878_vm6, %v33210_v59  ;;  %25746 = vmatmul.mubr.msk.f32.gmra.mrb[12].mxu1 %vm5878_vm6, %v34425_v53 }
 0x5a2   :  { %25748 = vmatprep.mubr.msk.f32.mxu1 %vm5878_vm6, %v39013_v7 }
 0x5a4   :  { %24892 = vmatmul.mubr.msk.f32.gmra.mrb[76].mxu0 %vm5878_vm6, %v33216_v62 }
 0x5a5   :  { %24894 = vmatprep.mubr.msk.f32.mxu0 %vm5878_vm6, %v38965_v43  ;;  %25749 = vmatmul.mubr.msk.f32.gmra.mrb[14].mxu1 %vm5878_vm6, %v39014_v2  ;;  %v39020_v43 = vld [vmem:[#allocation112_spill] sm:$0xff] }
 0x5a6   :  { %25751 = vmatprep.mubr.msk.f32.mxu1 %vm5878_vm6, %v38973_v33  ;;  %v39017_v33 = vld [vmem:[#allocation84_spill] sm:$0xff] }
 0x5a8   :  { %24895 = vmatmul.mubr.msk.f32.gmra.mrb[78].mxu0 %vm5878_vm6, %v39015_v9  ;;  %v39018_v9 = vld [vmem:[#allocation111_spill] sm:$0xff] }
 0x5a9   :  { %24897 = vmatprep.mubr.msk.f32.mxu0 %vm5878_vm6, %v38971_v35  ;;  %25752 = vmatmul.mubr.msk.f32.gmra.mrb[16].mxu1 %vm5878_vm6, %v38976_v54  ;;  %v34463_v54 = vmax.f32 %v39018_v9, 0.0  ;;  %v39024_v9 = vld [vmem:[#allocation114_spill] sm:$0xff] }
 0x5aa   :  { %25754 = vmatprep.mubr.msk.f32.mxu1 %vm5878_vm6, %v38977_v47  ;;  %v34466_v47 = vmax.f32 %v39020_v43, 0.0  ;;  %v39026_v43 = vld [vmem:[#allocation99_spill] sm:$0xff] }
 0x5ab   :  { %39019 = vst [vmem:[#allocation110_spill] sm:$0xff] %v34463_v54 }
 0x5ac   :  { %24898 = vmatmul.mubr.msk.f32.gmra.mrb[80].mxu0 %vm5878_vm6, %v38972_v31  ;;  %39021 = vst [vmem:[#allocation12_spill] sm:$0xff] %v34466_v47 }
 0x5ad   :  { %24900 = vmatprep.mubr.msk.f32.mxu0 %vm5878_vm6, %v38974_v56  ;;  %25755 = vmatmul.mubr.msk.f32.gmra.mrb[18].mxu1 %vm5878_vm6, %v39017_v33  ;;  %v34480_v33 = vmax.f32 %v39024_v9, 0.0  ;;  %v39031_v9 = vld [vmem:[#allocation100_spill] sm:$0xff] }
 0x5ae   :  { %25757 = vmatprep.mubr.msk.f32.mxu1 %vm5878_vm6, %v34452_v3  ;;  %v34477_v3 = vmax.f32 %v39022_v8, 0.0  ;;  %v39029_v8 = vld [vmem:[#allocation116_spill] sm:$0xff] }
 0x5af   :  { %39025 = vst [vmem:[#allocation78_spill] sm:$0xff] %v34480_v33  ;;  %v34494_v2 = vmax.f32 %v39029_v8, 0.0  ;;  %v39035_v8 = vld [vmem:[#allocation19_spill] sm:$0xff] }
 0x5b0   :  { %24901 = vmatmul.mubr.msk.f32.gmra.mrb[82].mxu0 %vm5878_vm6, %v38975_v50  ;;  %39023 = vst [vmem:[#allocation77_spill] sm:$0xff] %v34477_v3 }
 0x5b1   :  { %24903 = vmatprep.mubr.msk.f32.mxu0 %vm5878_vm6, %v38978_v28  ;;  %25758 = vmatmul.mubr.msk.f32.gmra.mrb[20].mxu1 %vm5878_vm6, %v34463_v54  ;;  %v39027_v54 = vld [vmem:[#allocation115_spill] sm:$0xff]  ;;  %39030 = vst [vmem:[#allocation112_spill] sm:$0xff] %v34494_v2 }
 0x5b2   :  { %25760 = vmatprep.mubr.msk.f32.mxu1 %vm5878_vm6, %v34466_v47  ;;  %v34491_v47 = vmax.f32 %v39027_v54, 0.0  ;;  %v39034_v54 = vld [vmem:[#allocation103_spill] sm:$0xff] }
 0x5b4   :  { %24904 = vmatmul.mubr.msk.f32.gmra.mrb[84].mxu0 %vm5878_vm6, %v38979_v21  ;;  %39028 = vst [vmem:[#allocation111_spill] sm:$0xff] %v34491_v47 }
 0x5b5   :  { %24906 = vmatprep.mubr.msk.f32.mxu0 %vm5878_vm6, %v39026_v43  ;;  %25761 = vmatmul.mubr.msk.f32.gmra.mrb[22].mxu1 %vm5878_vm6, %v34477_v3  ;;  %v39032_v3 = vld [vmem:[#allocation117_spill] sm:$0xff] }
 0x5b6   :  { %25763 = vmatprep.mubr.msk.f32.mxu1 %vm5878_vm6, %v34480_v33  ;;  %v34505_v33 = vmax.f32 %v39032_v3, 0.0  ;;  %v20610_v3 = vld [vmem:[%s38225_s3 + $0xd0] sm:$0xff] }
 0x5b8   :  { %24907 = vmatmul.mubr.msk.f32.gmra.mrb[86].mxu0 %vm5878_vm6, %v39031_v9  ;;  %39033 = vst [vmem:[#allocation113_spill] sm:$0xff] %v34505_v33 }
 0x5b9   :  { %24909 = vmatprep.mubr.msk.f32.mxu0 %vm5878_vm6, %v38988_v27  ;;  %25764 = vmatmul.mubr.msk.f32.gmra.mrb[24].mxu1 %vm5878_vm6, %v34491_v47  ;;  %v39037_v47 = vld [vmem:[#allocation107_spill] sm:$0xff] }
 0x5ba   :  { %25766 = vmatprep.mubr.msk.f32.mxu1 %vm5878_vm6, %v34494_v2  ;;  %v20611_v2 = vld [vmem:[%s38225_s3 + $0xd8] sm:$0x3] }
 0x5bc   :  { %24910 = vmatmul.mubr.msk.f32.gmra.mrb[88].mxu0 %vm5878_vm6, %v38989_v46 }
 0x5bd   :  { %24912 = vmatprep.mubr.msk.f32.mxu0 %vm5878_vm6, %v39034_v54  ;;  %25767 = vmatmul.mubr.msk.f32.gmra.mrb[26].mxu1 %vm5878_vm6, %v34505_v33  ;;  %v34527_v33 = vpack.c.bf16 %v20611_v2, %v20610_v3  ;;  %v39038_v2 = vld [vmem:[#allocation108_spill] sm:$0xff]  ;;  %v39040_v3 = vld [vmem:[#allocation38_spill] sm:$0xff] }
 0x5be   :  { %25773 = vmatprep.mubr.msk.f32.mxu1 %vm5878_vm6, %v39035_v8  ;;  %v39036_v8 = vld [vmem:[#allocation11_spill] sm:$0xff] }
 0x5c0   :  { %24913 = vmatmul.mubr.msk.f32.gmra.mrb[90].mxu0 %vm5878_vm6, %v38992_v34 }
 0x5c1   :  { %24915 = vmatprep.mubr.msk.f32.mxu0 %vm5878_vm6, %v38995_v6  ;;  %25774 = vmatmul.mubr.msk.f32.vlgmr.msra.gmra.mrb[28].mxu1 %vm5878_vm6, %v38971_v35 }
 0x5c2   :  { %27417 = vmatpush3.bf16.msk.msra.mxu1 %vm31375_vm5, %v39036_v8  ;;  %25776 = vmatprep.mubr.msk.f32.mxu1 %vm5878_vm6, %v38972_v31  ;;  %v39039_v8 = vld [vmem:[#allocation23_spill] sm:$0xff] }
 0x5c3   :  { %27420 = vmatprep.subr.msk.bf16.mxu1 %vm31375_vm5, %v34527_v33 }
 0x5c4   :  { %24916 = vmatmul.mubr.msk.f32.gmra.mrb[92].mxu0 %vm5878_vm6, %v38996_v5 }
 0x5c5   :  { %24918 = vmatprep.mubr.msk.f32.mxu0 %vm5878_vm6, %v39037_v47  ;;  %25777 = vmatmul.mubr.msk.f32.gmra.mrb[30].mxu1 %vm5878_vm6, %v38974_v56 }
 0x5c6   :  { %25779 = vmatprep.mubr.msk.f32.mxu1 %vm5878_vm6, %v38975_v50 }
 0x5c8   :  { %24919 = vmatmul.mubr.msk.f32.gmra.mrb[94].mxu0 %vm5878_vm6, %v39038_v2 }
 0x5c9   :  { %24921 = vmatprep.mubr.msk.f32.mxu0 %vm5878_vm6, %v38999_v57  ;;  %25780 = vmatmul.mubr.msk.f32.gmra.mrb[32].mxu1 %vm5878_vm6, %v38978_v28 }
 0x5ca   :  { %25782 = vmatprep.mubr.msk.f32.mxu1 %vm5878_vm6, %v38979_v21 }
 0x5cc   :  { %24922 = vmatmul.mubr.msk.f32.gmra.mrb[96].mxu0 %vm5878_vm6, %v39000_v18 }
 0x5cd   :  { %24924 = vmatprep.mubr.msk.f32.mxu0 %vm5878_vm6, %v33411_v15  ;;  %25783 = vmatmul.mubr.msk.f32.gmra.mrb[34].mxu1 %vm5878_vm6, %v39026_v43 }
 0x5ce   :  { %25785 = vmatprep.mubr.msk.f32.mxu1 %vm5878_vm6, %v39039_v8  ;;  %v39042_v8 = vld [vmem:[#allocation61_spill] sm:$0xff] }
 0x5d0   :  { %24925 = vmatmul.mubr.msk.f32.gmra.mrb[98].mxu0 %vm5878_vm6, %v33414_v51 }
 0x5d1   :  { %24927 = vmatprep.mubr.msk.f32.mxu0 %vm5878_vm6, %v33429_v45  ;;  %25786 = vmatmul.mubr.msk.f32.gmra.mrb[36].mxu1 %vm5878_vm6, %v38988_v27 }
 0x5d2   :  { %25788 = vmatprep.mubr.msk.f32.mxu1 %vm5878_vm6, %v38989_v46 }
 0x5d4   :  { %24928 = vmatmul.mubr.msk.f32.gmra.mrb[100].mxu0 %vm5878_vm6, %v33432_v17 }
 0x5d5   :  { %24930 = vmatprep.mubr.msk.f32.mxu0 %vm5878_vm6, %v33447_v14  ;;  %25789 = vmatmul.mubr.msk.f32.gmra.mrb[38].mxu1 %vm5878_vm6, %v39034_v54 }
 0x5d6   :  { %25791 = vmatprep.mubr.msk.f32.mxu1 %vm5878_vm6, %v38992_v34 }
 0x5d8   :  { %24931 = vmatmul.mubr.msk.f32.gmra.mrb[102].mxu0 %vm5878_vm6, %v39040_v3 }
 0x5d9   :  { %24933 = vmatprep.mubr.msk.f32.mxu0 %vm5878_vm6, %v39003_v41  ;;  %25792 = vmatmul.mubr.msk.f32.gmra.mrb[40].mxu1 %vm5878_vm6, %v38995_v6 }
 0x5da   :  { %25794 = vmatprep.mubr.msk.f32.mxu1 %vm5878_vm6, %v38996_v5 }
 0x5dc   :  { %24934 = vmatmul.mubr.msk.f32.gmra.mrb[104].mxu0 %vm5878_vm6, %v39004_v48 }
 0x5dd   :  { %24936 = vmatprep.mubr.msk.f32.mxu0 %vm5878_vm6, %v33483_v16  ;;  %25795 = vmatmul.mubr.msk.f32.gmra.mrb[42].mxu1 %vm5878_vm6, %v39037_v47 }
 0x5de   :  { %25797 = vmatprep.mubr.msk.f32.mxu1 %vm5878_vm6, %v38998_v37  ;;  %v39041_v37 = vld [vmem:[#allocation50_spill] sm:$0xff] }
 0x5e0   :  { %24937 = vmatmul.mubr.msk.f32.gmra.mrb[106].mxu0 %vm5878_vm6, %v33486_v12 }
 0x5e1   :  { %24939 = vmatprep.mubr.msk.f32.mxu0 %vm5878_vm6, %v38832_v22  ;;  %25798 = vmatmul.mubr.msk.f32.gmra.mrb[44].mxu1 %vm5878_vm6, %v38999_v57 }
 0x5e2   :  { %25800 = vmatprep.mubr.msk.f32.mxu1 %vm5878_vm6, %v39000_v18 }
 0x5e4   :  { %24940 = vmatmul.mubr.msk.f32.gmra.mrb[108].mxu0 %vm5878_vm6, %v38833_v20 }
 0x5e5   :  { %24942 = vmatprep.mubr.msk.f32.mxu0 %vm5878_vm6, %v38932_v29  ;;  %25801 = vmatmul.mubr.msk.f32.gmra.mrb[46].mxu1 %vm5878_vm6, %v33411_v15 }
 0x5e6   :  { %25803 = vmatprep.mubr.msk.f32.mxu1 %vm5878_vm6, %v33414_v51 }
 0x5e8   :  { %24943 = vmatmul.mubr.msk.f32.gmra.mrb[110].mxu0 %vm5878_vm6, %v39041_v37 }
 0x5e9   :  { %24945 = vmatprep.mubr.msk.f32.mxu0 %vm5878_vm6, %v38911_v19  ;;  %25804 = vmatmul.mubr.msk.f32.gmra.mrb[48].mxu1 %vm5878_vm6, %v33429_v45 }
 0x5ea   :  { %25806 = vmatprep.mubr.msk.f32.mxu1 %vm5878_vm6, %v33432_v17 }
 0x5ec   :  { %24946 = vmatmul.mubr.msk.f32.gmra.mrb[112].mxu0 %vm5878_vm6, %v38844_v0 }
 0x5ed   :  { %24948 = vmatprep.mubr.msk.f32.mxu0 %vm5878_vm6, %v38847_v42  ;;  %25807 = vmatmul.mubr.msk.f32.gmra.mrb[50].mxu1 %vm5878_vm6, %v33447_v14 }
 0x5ee   :  { %25809 = vmatprep.mubr.msk.f32.mxu1 %vm5878_vm6, %v39002_v11  ;;  %v39043_v11 = vld [vmem:[#allocation62_spill] sm:$0xff] }
 0x5f0   :  { %24949 = vmatmul.mubr.msk.f32.gmra.mrb[114].mxu0 %vm5878_vm6, %v38850_v10 }
 0x5f1   :  { %24951 = vmatprep.mubr.msk.f32.mxu0 %vm5878_vm6, %v38853_v58  ;;  %25810 = vmatmul.mubr.msk.f32.gmra.mrb[52].mxu1 %vm5878_vm6, %v39003_v41  ;;  %v39044_v41 = vld [vmem:[#allocation54_spill] sm:$0xff] }
 0x5f2   :  { %25812 = vmatprep.mubr.msk.f32.mxu1 %vm5878_vm6, %v39004_v48 }
 0x5f4   :  { %24952 = vmatmul.mubr.msk.f32.gmra.mrb[116].mxu0 %vm5878_vm6, %v38856_v25 }
 0x5f5   :  { %24954 = vmatprep.mubr.msk.f32.mxu0 %vm5878_vm6, %v39042_v8  ;;  %25813 = vmatmul.mubr.msk.f32.gmra.mrb[54].mxu1 %vm5878_vm6, %v33483_v16 }
 0x5f6   :  { %25815 = vmatprep.mubr.msk.f32.mxu1 %vm5878_vm6, %v33486_v12 }
 0x5f8   :  { %24955 = vmatmul.mubr.msk.f32.gmra.mrb[118].mxu0 %vm5878_vm6, %v39043_v11 }
 0x5f9   :  { %24957 = vmatprep.mubr.msk.f32.mxu0 %vm5878_vm6, %v38926_v24  ;;  %25816 = vmatmul.mubr.msk.f32.gmra.mrb[56].mxu1 %vm5878_vm6, %v38832_v22 }
 0x5fa   :  { %25818 = vmatprep.mubr.msk.f32.mxu1 %vm5878_vm6, %v38833_v20 }
 0x5fc   :  { %24958 = vmatmul.mubr.msk.f32.gmra.mrb[120].mxu0 %vm5878_vm6, %v38866_v23 }
 0x5fd   :  { %24960 = vmatprep.mubr.msk.f32.mxu0 %vm5878_vm6, %v38867_v52  ;;  %25819 = vmatmul.mubr.msk.f32.gmra.mrb[58].mxu1 %vm5878_vm6, %v38932_v29 }
 0x5fe   :  { %25821 = vmatprep.mubr.msk.f32.mxu1 %vm5878_vm6, %v39044_v41  ;;  %v20007_v41 = vld [vmem:[%s38225_s3 + $0x40] sm:$0xff] }
 0x600   :  { %24961 = vmatmul.mubr.msk.f32.gmra.mrb[122].mxu0 %vm5878_vm6, %v38868_v36 }
 0x601   :  { %24963 = vmatprep.mubr.msk.f32.mxu0 %vm5878_vm6, %v38931_v38  ;;  %25822 = vmatmul.mubr.msk.f32.gmra.mrb[60].mxu1 %vm5878_vm6, %v38911_v19  ;;  %v20008_v19 = vld [vmem:[%s38225_s3 + $0x48] sm:$0x3] }
 0x602   :  { %25824 = vmatprep.mubr.msk.f32.mxu1 %vm5878_vm6, %v38844_v0  ;;  %v27364_v11 = vpack.c.bf16 %v20008_v19, %v20007_v41  ;;  %v39045_v0 = vld [vmem:[#allocation74_spill] sm:$0xff]  ;;  %v39046_v41 = vld [vmem:[#allocation13_spill] sm:$0xff] }
 0x603   :  { %v38450_v19 = vmax.f32 %v39046_v41, 0.0 }
 0x604   :  { %24964 = vmatmul.mubr.msk.f32.gmra.mrb[124].mxu0 %vm5878_vm6, %v38935_v32  ;;  %27366 = vmatprep.subr.msk.bf16.mxu0 %vm31375_vm5, %v27364_v11 }
 0x605   :  { %24966 = vmatprep.mubr.msk.f32.mxu0 %vm5878_vm6, %v38873_v55  ;;  %25825 = vmatmul.mubr.msk.f32.gmra.mrb[62].mxu1 %vm5878_vm6, %v38847_v42 }
 0x606   :  { %25827 = vmatprep.mubr.msk.f32.mxu1 %vm5878_vm6, %v38850_v10 }
 0x608   :  { %24967 = vmatmul.mubr.msk.f32.gmra.mrb[126].mxu0 %vm5878_vm6, %v39045_v0 }
 0x609   :  { %24973 = vmatprep.mubr.msk.f32.mxu0 %vm5878_vm6, %v38945_v13  ;;  %25828 = vmatmul.mubr.msk.f32.gmra.mrb[0].mxu1 %vm5878_vm6, %v38853_v58  ;;  %v39047_v13 = vld [vmem:[#allocation80_spill] sm:$0xff] }
 0x60a   :  { %25830 = vmatprep.mubr.msk.f32.mxu1 %vm5878_vm6, %v38856_v25 }
 0x60c   :  { %24974 = vmatmul.mubr.msk.f32.vlgmr.msra.gmra.mrb[64].mxu0 %vm5878_vm6, %v38948_v1 }
 0x60d   :  { %24976 = vmatprep.mubr.msk.f32.mxu0 %vm5878_vm6, %v38949_v61  ;;  %25831 = vmatmul.mubr.msk.f32.gmra.mrb[2].mxu1 %vm5878_vm6, %v39042_v8 }
 0x60e   :  { %25833 = vmatprep.mubr.msk.f32.mxu1 %vm5878_vm6, %v33982_v44  ;;  %27369 = vmatpush3.bf16.msk.msra.mxu0 %vm31375_vm5, %v27364_v11  ;;  %v39048_v11 = vld [vmem:[#allocation91_spill] sm:$0xff]  ;;  %v39050_v44 = vld [vmem:[#allocation81_spill] sm:$0xff] }
 0x610   :  { %24977 = vmatmul.mubr.msk.f32.gmra.mrb[66].mxu0 %vm5878_vm6, %v38952_v26 }
 0x611   :  { %24979 = vmatprep.mubr.msk.f32.mxu0 %vm5878_vm6, %v38953_v39  ;;  %25834 = vmatmul.mubr.msk.f32.gmra.mrb[4].mxu1 %vm5878_vm6, %v38926_v24 }
 0x612   :  { %25836 = vmatprep.mubr.msk.f32.mxu1 %vm5878_vm6, %v38866_v23 }
 0x614   :  { %24980 = vmatmul.mubr.msk.f32.gmra.mrb[68].mxu0 %vm5878_vm6, %v34104_v49 }
 0x615   :  { %24982 = vmatprep.mubr.msk.f32.mxu0 %vm5878_vm6, %v34401_v60  ;;  %25837 = vmatmul.mubr.msk.f32.gmra.mrb[6].mxu1 %vm5878_vm6, %v38867_v52 }
 0x616   :  { %25839 = vmatprep.mubr.msk.f32.mxu1 %vm5878_vm6, %v38868_v36 }
 0x618   :  { %24983 = vmatmul.mubr.msk.f32.gmra.mrb[70].mxu0 %vm5878_vm6, %v38450_v19  ;;  %v39049_v19 = vld [vmem:[#allocation92_spill] sm:$0xff] }
 0x619   :  { %24985 = vmatprep.mubr.msk.f32.mxu0 %vm5878_vm6, %v38964_v30  ;;  %25840 = vmatmul.mubr.msk.f32.gmra.mrb[8].mxu1 %vm5878_vm6, %v38931_v38  ;;  %v39052_v30 = vld [vmem:[#allocation93_spill] sm:$0xff] }
 0x61a   :  { %25842 = vmatprep.mubr.msk.f32.mxu1 %vm5878_vm6, %v38935_v32 }
 0x61c   :  { %24986 = vmatmul.mubr.msk.f32.gmra.mrb[72].mxu0 %vm5878_vm6, %v33176_v40 }
 0x61d   :  { %24988 = vmatprep.mubr.msk.f32.mxu0 %vm5878_vm6, %v33179_v4  ;;  %25843 = vmatmul.mubr.msk.f32.gmra.mrb[10].mxu1 %vm5878_vm6, %v38873_v55 }
 0x61e   :  { %25845 = vmatprep.mubr.msk.f32.mxu1 %vm5878_vm6, %v34425_v53  ;;  %v39051_v53 = vld [vmem:[#allocation82_spill] sm:$0xff] }
 0x620   :  { %24989 = vmatmul.mubr.msk.f32.gmra.mrb[74].mxu0 %vm5878_vm6, %v33210_v59 }
 0x621   :  { %24991 = vmatprep.mubr.msk.f32.mxu0 %vm5878_vm6, %v33216_v62  ;;  %25846 = vmatmul.mubr.msk.f32.gmra.mrb[12].mxu1 %vm5878_vm6, %v39013_v7  ;;  %v39053_v62 = vld [vmem:[#allocation83_spill] sm:$0xff] }
 0x622   :  { %25848 = vmatprep.mubr.msk.f32.mxu1 %vm5878_vm6, %v39047_v13  ;;  %v39054_v13 = vld [vmem:[#allocation84_spill] sm:$0xff] }
 0x624   :  { %24992 = vmatmul.mubr.msk.f32.gmra.mrb[76].mxu0 %vm5878_vm6, %v39048_v11 }
 0x625   :  { %24994 = vmatprep.mubr.msk.f32.mxu0 %vm5878_vm6, %v39049_v19  ;;  %25849 = vmatmul.mubr.msk.f32.gmra.mrb[14].mxu1 %vm5878_vm6, %v39050_v44  ;;  %v39055_v19 = vld [vmem:[#allocation85_spill] sm:$0xff]  ;;  %v39064_v44 = vld [vmem:[#allocation52_spill] sm:$0xff] }
 0x626   :  { %25851 = vmatprep.mubr.msk.f32.mxu1 %vm5878_vm6, %v39051_v53  ;;  %v39056_v53 = vld [vmem:[#allocation110_spill] sm:$0xff]  ;;  %v34790_v11 = vmax.f32 %v39064_v44, 0.0 }
 0x627   :  { %v20677_v44 = vld [vmem:[%s38225_s3 + $0xe0] sm:$0xff] }
 0x628   :  { %24995 = vmatmul.mubr.msk.f32.gmra.mrb[78].mxu0 %vm5878_vm6, %v39052_v30  ;;  %v39061_v30 = vld [vmem:[#allocation101_spill] sm:$0xff]  ;;  %39065 = vst [vmem:[#allocation114_spill] sm:$0xff] %v34790_v11 }
 0x629   :  { %24997 = vmatprep.mubr.msk.f32.mxu0 %vm5878_vm6, %v38972_v31  ;;  %25852 = vmatmul.mubr.msk.f32.gmra.mrb[16].mxu1 %vm5878_vm6, %v39053_v62  ;;  %v39057_v62 = vld [vmem:[#allocation12_spill] sm:$0xff] }
 0x62a   :  { %25854 = vmatprep.mubr.msk.f32.mxu1 %vm5878_vm6, %v39054_v13  ;;  %v39058_v13 = vld [vmem:[#allocation77_spill] sm:$0xff] }
 0x62c   :  { %24998 = vmatmul.mubr.msk.f32.gmra.mrb[80].mxu0 %vm5878_vm6, %v38974_v56 }
 0x62d   :  { %25000 = vmatprep.mubr.msk.f32.mxu0 %vm5878_vm6, %v38975_v50  ;;  %25855 = vmatmul.mubr.msk.f32.gmra.mrb[18].mxu1 %vm5878_vm6, %v39055_v19  ;;  %v39059_v19 = vld [vmem:[#allocation78_spill] sm:$0xff] }
 0x62e   :  { %25857 = vmatprep.mubr.msk.f32.mxu1 %vm5878_vm6, %v39056_v53  ;;  %v39060_v53 = vld [vmem:[#allocation111_spill] sm:$0xff] }
 0x630   :  { %25001 = vmatmul.mubr.msk.f32.gmra.mrb[82].mxu0 %vm5878_vm6, %v38978_v28 }
 0x631   :  { %25003 = vmatprep.mubr.msk.f32.mxu0 %vm5878_vm6, %v38979_v21  ;;  %25858 = vmatmul.mubr.msk.f32.gmra.mrb[20].mxu1 %vm5878_vm6, %v39057_v62  ;;  %v39062_v62 = vld [vmem:[#allocation112_spill] sm:$0xff] }
 0x632   :  { %25860 = vmatprep.mubr.msk.f32.mxu1 %vm5878_vm6, %v39058_v13  ;;  %v39063_v13 = vld [vmem:[#allocation113_spill] sm:$0xff] }
 0x634   :  { %25004 = vmatmul.mubr.msk.f32.gmra.mrb[84].mxu0 %vm5878_vm6, %v39026_v43 }
 0x635   :  { %25006 = vmatprep.mubr.msk.f32.mxu0 %vm5878_vm6, %v39031_v9  ;;  %25861 = vmatmul.mubr.msk.f32.gmra.mrb[22].mxu1 %vm5878_vm6, %v39059_v19 }
 0x636   :  { %25863 = vmatprep.mubr.msk.f32.mxu1 %vm5878_vm6, %v39060_v53 }
 0x638   :  { %25007 = vmatmul.mubr.msk.f32.gmra.mrb[86].mxu0 %vm5878_vm6, %v39061_v30 }
 0x639   :  { %25009 = vmatprep.mubr.msk.f32.mxu0 %vm5878_vm6, %v38989_v46  ;;  %25864 = vmatmul.mubr.msk.f32.gmra.mrb[24].mxu1 %vm5878_vm6, %v39062_v62 }
 0x63a   :  { %25866 = vmatprep.mubr.msk.f32.mxu1 %vm5878_vm6, %v39063_v13  ;;  %v20678_v13 = vld [vmem:[%s38225_s3 + $0xe8] sm:$0x3] }
 0x63c   :  { %25010 = vmatmul.mubr.msk.f32.gmra.mrb[88].mxu0 %vm5878_vm6, %v39034_v54 }
 0x63d   :  { %25012 = vmatprep.mubr.msk.f32.mxu0 %vm5878_vm6, %v38992_v34  ;;  %25867 = vmatmul.mubr.msk.f32.gmra.mrb[26].mxu1 %vm5878_vm6, %v34790_v11  ;;  %v34812_v11 = vpack.c.bf16 %v20678_v13, %v20677_v44  ;;  %v39067_v13 = vld [vmem:[#allocation39_spill] sm:$0xff] }
 0x63e   :  { %25873 = vmatprep.mubr.msk.f32.mxu1 %vm5878_vm6, %v38971_v35  ;;  %v39068_v44 = vld [vmem:[#allocation3_spill] sm:$0xff]  ;;  %v39071_v35 = vld [vmem:[#allocation62_spill] sm:$0xff] }
 0x640   :  { %25013 = vmatmul.mubr.msk.f32.gmra.mrb[90].mxu0 %vm5878_vm6, %v38995_v6 }
 0x641   :  { %25015 = vmatprep.mubr.msk.f32.mxu0 %vm5878_vm6, %v38996_v5  ;;  %25874 = vmatmul.mubr.msk.f32.vlgmr.msra.gmra.mrb[28].mxu1 %vm5878_vm6, %v38972_v31 }
 0x642   :  { %27423 = vmatpush3.bf16.msk.msra.mxu1 %vm31375_vm5, %v34527_v33  ;;  %25876 = vmatprep.mubr.msk.f32.mxu1 %vm5878_vm6, %v38974_v56  ;;  %v39066_v33 = vld [vmem:[#allocation109_spill] sm:$0xff] }
 0x643   :  { %27426 = vmatprep.subr.msk.bf16.mxu1 %vm31375_vm5, %v34812_v11 }
 0x644   :  { %25016 = vmatmul.mubr.msk.f32.gmra.mrb[92].mxu0 %vm5878_vm6, %v39037_v47 }
 0x645   :  { %25018 = vmatprep.mubr.msk.f32.mxu0 %vm5878_vm6, %v39038_v2  ;;  %25877 = vmatmul.mubr.msk.f32.gmra.mrb[30].mxu1 %vm5878_vm6, %v38975_v50 }
 0x646   :  { %25879 = vmatprep.mubr.msk.f32.mxu1 %vm5878_vm6, %v38978_v28 }
 0x648   :  { %25019 = vmatmul.mubr.msk.f32.gmra.mrb[94].mxu0 %vm5878_vm6, %v39066_v33 }
 0x649   :  { %25021 = vmatprep.mubr.msk.f32.mxu0 %vm5878_vm6, %v39000_v18  ;;  %25880 = vmatmul.mubr.msk.f32.gmra.mrb[32].mxu1 %vm5878_vm6, %v38979_v21 }
 0x64a   :  { %25882 = vmatprep.mubr.msk.f32.mxu1 %vm5878_vm6, %v39026_v43 }
 0x64c   :  { %25022 = vmatmul.mubr.msk.f32.gmra.mrb[96].mxu0 %vm5878_vm6, %v33411_v15 }
 0x64d   :  { %25024 = vmatprep.mubr.msk.f32.mxu0 %vm5878_vm6, %v33414_v51  ;;  %25883 = vmatmul.mubr.msk.f32.gmra.mrb[34].mxu1 %vm5878_vm6, %v39031_v9 }
 0x64e   :  { %25885 = vmatprep.mubr.msk.f32.mxu1 %vm5878_vm6, %v38988_v27  ;;  %v39070_v27 = vld [vmem:[#allocation43_spill] sm:$0xff] }
 0x650   :  { %25025 = vmatmul.mubr.msk.f32.gmra.mrb[98].mxu0 %vm5878_vm6, %v33429_v45 }
 0x651   :  { %25027 = vmatprep.mubr.msk.f32.mxu0 %vm5878_vm6, %v33432_v17  ;;  %25886 = vmatmul.mubr.msk.f32.gmra.mrb[36].mxu1 %vm5878_vm6, %v38989_v46 }
 0x652   :  { %25888 = vmatprep.mubr.msk.f32.mxu1 %vm5878_vm6, %v39034_v54 }
 0x654   :  { %25028 = vmatmul.mubr.msk.f32.gmra.mrb[100].mxu0 %vm5878_vm6, %v33447_v14 }
 0x655   :  { %25030 = vmatprep.mubr.msk.f32.mxu0 %vm5878_vm6, %v39040_v3  ;;  %25889 = vmatmul.mubr.msk.f32.gmra.mrb[38].mxu1 %vm5878_vm6, %v38992_v34 }
 0x656   :  { %25891 = vmatprep.mubr.msk.f32.mxu1 %vm5878_vm6, %v38995_v6 }
 0x658   :  { %25031 = vmatmul.mubr.msk.f32.gmra.mrb[102].mxu0 %vm5878_vm6, %v39067_v13 }
 0x659   :  { %25033 = vmatprep.mubr.msk.f32.mxu0 %vm5878_vm6, %v39004_v48  ;;  %25892 = vmatmul.mubr.msk.f32.gmra.mrb[40].mxu1 %vm5878_vm6, %v38996_v5 }
 0x65a   :  { %25894 = vmatprep.mubr.msk.f32.mxu1 %vm5878_vm6, %v39037_v47 }
 0x65c   :  { %25034 = vmatmul.mubr.msk.f32.gmra.mrb[104].mxu0 %vm5878_vm6, %v33483_v16 }
 0x65d   :  { %25036 = vmatprep.mubr.msk.f32.mxu0 %vm5878_vm6, %v33486_v12  ;;  %25895 = vmatmul.mubr.msk.f32.gmra.mrb[42].mxu1 %vm5878_vm6, %v39038_v2 }
 0x65e   :  { %25897 = vmatprep.mubr.msk.f32.mxu1 %vm5878_vm6, %v38999_v57  ;;  %v39069_v57 = vld [vmem:[#allocation56_spill] sm:$0xff] }
 0x660   :  { %25037 = vmatmul.mubr.msk.f32.gmra.mrb[106].mxu0 %vm5878_vm6, %v38832_v22 }
 0x661   :  { %25039 = vmatprep.mubr.msk.f32.mxu0 %vm5878_vm6, %v38833_v20  ;;  %25898 = vmatmul.mubr.msk.f32.gmra.mrb[44].mxu1 %vm5878_vm6, %v39000_v18 }
 0x662   :  { %25900 = vmatprep.mubr.msk.f32.mxu1 %vm5878_vm6, %v33411_v15 }
 0x664   :  { %25040 = vmatmul.mubr.msk.f32.gmra.mrb[108].mxu0 %vm5878_vm6, %v38932_v29 }
 0x665   :  { %25042 = vmatprep.mubr.msk.f32.mxu0 %vm5878_vm6, %v39041_v37  ;;  %25901 = vmatmul.mubr.msk.f32.gmra.mrb[46].mxu1 %vm5878_vm6, %v33414_v51 }
 0x666   :  { %25903 = vmatprep.mubr.msk.f32.mxu1 %vm5878_vm6, %v33429_v45 }
 0x668   :  { %25043 = vmatmul.mubr.msk.f32.gmra.mrb[110].mxu0 %vm5878_vm6, %v39068_v44 }
 0x669   :  { %25045 = vmatprep.mubr.msk.f32.mxu0 %vm5878_vm6, %v39069_v57  ;;  %25904 = vmatmul.mubr.msk.f32.gmra.mrb[48].mxu1 %vm5878_vm6, %v33432_v17 }
 0x66a   :  { %25906 = vmatprep.mubr.msk.f32.mxu1 %vm5878_vm6, %v33447_v14 }
 0x66c   :  { %25046 = vmatmul.mubr.msk.f32.gmra.mrb[112].mxu0 %vm5878_vm6, %v38847_v42 }
 0x66d   :  { %25048 = vmatprep.mubr.msk.f32.mxu0 %vm5878_vm6, %v38850_v10  ;;  %25907 = vmatmul.mubr.msk.f32.gmra.mrb[50].mxu1 %vm5878_vm6, %v39040_v3 }
 0x66e   :  { %25909 = vmatprep.mubr.msk.f32.mxu1 %vm5878_vm6, %v39070_v27  ;;  %v39072_v27 = vld [vmem:[#allocation17_spill] sm:$0xff] }
 0x670   :  { %25049 = vmatmul.mubr.msk.f32.gmra.mrb[114].mxu0 %vm5878_vm6, %v38853_v58 }
 0x671   :  { %25051 = vmatprep.mubr.msk.f32.mxu0 %vm5878_vm6, %v38856_v25  ;;  %25910 = vmatmul.mubr.msk.f32.gmra.mrb[52].mxu1 %vm5878_vm6, %v39004_v48  ;;  %v39073_v48 = vld [vmem:[#allocation55_spill] sm:$0xff] }
 0x672   :  { %25912 = vmatprep.mubr.msk.f32.mxu1 %vm5878_vm6, %v33483_v16 }
 0x674   :  { %25052 = vmatmul.mubr.msk.f32.gmra.mrb[116].mxu0 %vm5878_vm6, %v39042_v8 }
 0x675   :  { %25054 = vmatprep.mubr.msk.f32.mxu0 %vm5878_vm6, %v39071_v35  ;;  %25913 = vmatmul.mubr.msk.f32.gmra.mrb[54].mxu1 %vm5878_vm6, %v33486_v12 }
 0x676   :  { %25915 = vmatprep.mubr.msk.f32.mxu1 %vm5878_vm6, %v38832_v22 }
 0x678   :  { %25055 = vmatmul.mubr.msk.f32.gmra.mrb[118].mxu0 %vm5878_vm6, %v39072_v27 }
 0x679   :  { %25057 = vmatprep.mubr.msk.f32.mxu0 %vm5878_vm6, %v38866_v23  ;;  %25916 = vmatmul.mubr.msk.f32.gmra.mrb[56].mxu1 %vm5878_vm6, %v38833_v20 }
 0x67a   :  { %25918 = vmatprep.mubr.msk.f32.mxu1 %vm5878_vm6, %v38932_v29 }
 0x67c   :  { %25058 = vmatmul.mubr.msk.f32.gmra.mrb[120].mxu0 %vm5878_vm6, %v38867_v52 }
 0x67d   :  { %25060 = vmatprep.mubr.msk.f32.mxu0 %vm5878_vm6, %v38868_v36  ;;  %25919 = vmatmul.mubr.msk.f32.gmra.mrb[58].mxu1 %vm5878_vm6, %v39041_v37 }
 0x67e   :  { %25921 = vmatprep.mubr.msk.f32.mxu1 %vm5878_vm6, %v39073_v48  ;;  %v20074_v48 = vld [vmem:[%s38225_s3 + $0x50] sm:$0xff] }
 0x680   :  { %25061 = vmatmul.mubr.msk.f32.gmra.mrb[122].mxu0 %vm5878_vm6, %v38931_v38 }
 0x681   :  { %25063 = vmatprep.mubr.msk.f32.mxu0 %vm5878_vm6, %v38935_v32  ;;  %25922 = vmatmul.mubr.msk.f32.gmra.mrb[60].mxu1 %vm5878_vm6, %v39069_v57  ;;  %v20075_v57 = vld [vmem:[%s38225_s3 + $0x58] sm:$0x3] }
 0x682   :  { %25924 = vmatprep.mubr.msk.f32.mxu1 %vm5878_vm6, %v38847_v42  ;;  %v27370_v27 = vpack.c.bf16 %v20075_v57, %v20074_v48  ;;  %v39074_v42 = vld [vmem:[#allocation21_spill] sm:$0xff]  ;;  %v39081_v57 = vld [vmem:[#allocation92_spill] sm:$0xff] }
 0x683   :  { %v39080_v48 = vld [vmem:[#allocation81_spill] sm:$0xff] }
 0x684   :  { %25064 = vmatmul.mubr.msk.f32.gmra.mrb[124].mxu0 %vm5878_vm6, %v38873_v55  ;;  %27372 = vmatprep.subr.msk.bf16.mxu0 %vm31375_vm5, %v27370_v27 }
 0x685   :  { %25066 = vmatprep.mubr.msk.f32.mxu0 %vm5878_vm6, %v39045_v0  ;;  %25925 = vmatmul.mubr.msk.f32.gmra.mrb[62].mxu1 %vm5878_vm6, %v38850_v10 }
 0x686   :  { %25927 = vmatprep.mubr.msk.f32.mxu1 %vm5878_vm6, %v38853_v58 }
 0x688   :  { %25067 = vmatmul.mubr.msk.f32.gmra.mrb[126].mxu0 %vm5878_vm6, %v39074_v42 }
 0x689   :  { %25073 = vmatprep.mubr.msk.f32.mxu0 %vm5878_vm6, %v38948_v1  ;;  %25928 = vmatmul.mubr.msk.f32.gmra.mrb[0].mxu1 %vm5878_vm6, %v38856_v25 }
 0x68a   :  { %25930 = vmatprep.mubr.msk.f32.mxu1 %vm5878_vm6, %v39042_v8 }
 0x68c   :  { %25074 = vmatmul.mubr.msk.f32.vlgmr.msra.gmra.mrb[64].mxu0 %vm5878_vm6, %v38949_v61  ;;  %v39075_v61 = vmax.f32 %v39046_v41, 0.0  ;;  %v39083_v41 = vld [vmem:[#allocation82_spill] sm:$0xff] }
 0x68d   :  { %25076 = vmatprep.mubr.msk.f32.mxu0 %vm5878_vm6, %v38952_v26  ;;  %25931 = vmatmul.mubr.msk.f32.gmra.mrb[2].mxu1 %vm5878_vm6, %v39071_v35  ;;  %v39078_v26 = vld [vmem:[#allocation91_spill] sm:$0xff] }
 0x68e   :  { %25933 = vmatprep.mubr.msk.f32.mxu1 %vm5878_vm6, %v38926_v24  ;;  %27375 = vmatpush3.bf16.msk.msra.mxu0 %vm31375_vm5, %v27370_v27  ;;  %v39076_v27 = vld [vmem:[#allocation14_spill] sm:$0xff] }
 0x68f   :  { %v5742_v1 = vmax.f32 %v39076_v27, 0.0  ;;  %v39085_v27 = vld [vmem:[#allocation18_spill] sm:$0xff] }
 0x690   :  { %25077 = vmatmul.mubr.msk.f32.gmra.mrb[66].mxu0 %vm5878_vm6, %v38953_v39  ;;  %v39079_v39 = vld [vmem:[#allocation80_spill] sm:$0xff]  ;;  %v39094_v24 = vld [vmem:[#allocation114_spill] sm:$0xff] }
 0x691   :  { %25079 = vmatprep.mubr.msk.f32.mxu0 %vm5878_vm6, %v34104_v49  ;;  %25934 = vmatmul.mubr.msk.f32.gmra.mrb[4].mxu1 %vm5878_vm6, %v38866_v23  ;;  %v39077_v49 = vld [vmem:[#allocation90_spill] sm:$0xff] }
 0x692   :  { %25936 = vmatprep.mubr.msk.f32.mxu1 %vm5878_vm6, %v38867_v52 }
 0x694   :  { %25080 = vmatmul.mubr.msk.f32.gmra.mrb[68].mxu0 %vm5878_vm6, %v34401_v60  ;;  %v39082_v60 = vld [vmem:[#allocation93_spill] sm:$0xff] }
 0x695   :  { %25082 = vmatprep.mubr.msk.f32.mxu0 %vm5878_vm6, %v39075_v61  ;;  %25937 = vmatmul.mubr.msk.f32.gmra.mrb[6].mxu1 %vm5878_vm6, %v38868_v36  ;;  %v39084_v61 = vld [vmem:[#allocation83_spill] sm:$0xff] }
 0x696   :  { %25939 = vmatprep.mubr.msk.f32.mxu1 %vm5878_vm6, %v38931_v38 }
 0x698   :  { %25083 = vmatmul.mubr.msk.f32.gmra.mrb[70].mxu0 %vm5878_vm6, %v5742_v1  ;;  %v39086_v1 = vmax.f32 %v39085_v27, 0.0  ;;  %v39090_v27 = vld [vmem:[#allocation12_spill] sm:$0xff] }
 0x699   :  { %25085 = vmatprep.mubr.msk.f32.mxu0 %vm5878_vm6, %v33176_v40  ;;  %25940 = vmatmul.mubr.msk.f32.gmra.mrb[8].mxu1 %vm5878_vm6, %v38935_v32 }
 0x69a   :  { %25942 = vmatprep.mubr.msk.f32.mxu1 %vm5878_vm6, %v38873_v55 }
 0x69c   :  { %25086 = vmatmul.mubr.msk.f32.gmra.mrb[72].mxu0 %vm5878_vm6, %v33179_v4 }
 0x69d   :  { %25088 = vmatprep.mubr.msk.f32.mxu0 %vm5878_vm6, %v33210_v59  ;;  %25943 = vmatmul.mubr.msk.f32.gmra.mrb[10].mxu1 %vm5878_vm6, %v39045_v0 }
 0x69e   :  { %25945 = vmatprep.mubr.msk.f32.mxu1 %vm5878_vm6, %v39013_v7  ;;  %v39093_v7 = vld [vmem:[#allocation113_spill] sm:$0xff] }
 0x6a0   :  { %25089 = vmatmul.mubr.msk.f32.gmra.mrb[74].mxu0 %vm5878_vm6, %v39077_v49 }
 0x6a1   :  { %25091 = vmatprep.mubr.msk.f32.mxu0 %vm5878_vm6, %v39078_v26  ;;  %25946 = vmatmul.mubr.msk.f32.gmra.mrb[12].mxu1 %vm5878_vm6, %v39079_v39  ;;  %v39087_v26 = vld [vmem:[#allocation84_spill] sm:$0xff] }
 0x6a2   :  { %25948 = vmatprep.mubr.msk.f32.mxu1 %vm5878_vm6, %v39080_v48 }
 0x6a4   :  { %25092 = vmatmul.mubr.msk.f32.gmra.mrb[76].mxu0 %vm5878_vm6, %v39081_v57  ;;  %v39088_v57 = vld [vmem:[#allocation85_spill] sm:$0xff] }
 0x6a5   :  { %25094 = vmatprep.mubr.msk.f32.mxu0 %vm5878_vm6, %v39082_v60  ;;  %25949 = vmatmul.mubr.msk.f32.gmra.mrb[14].mxu1 %vm5878_vm6, %v39083_v41  ;;  %v39089_v60 = vld [vmem:[#allocation86_spill] sm:$0xff] }
 0x6a6   :  { %25951 = vmatprep.mubr.msk.f32.mxu1 %vm5878_vm6, %v39084_v61 }
 0x6a8   :  { %25095 = vmatmul.mubr.msk.f32.gmra.mrb[78].mxu0 %vm5878_vm6, %v39086_v1  ;;  %v39091_v1 = vld [vmem:[#allocation77_spill] sm:$0xff] }
 0x6a9   :  { %25097 = vmatprep.mubr.msk.f32.mxu0 %vm5878_vm6, %v38974_v56  ;;  %25952 = vmatmul.mubr.msk.f32.gmra.mrb[16].mxu1 %vm5878_vm6, %v39087_v26 }
 0x6aa   :  { %25954 = vmatprep.mubr.msk.f32.mxu1 %vm5878_vm6, %v39088_v57 }
 0x6ac   :  { %25098 = vmatmul.mubr.msk.f32.gmra.mrb[80].mxu0 %vm5878_vm6, %v38975_v50 }
 0x6ad   :  { %25100 = vmatprep.mubr.msk.f32.mxu0 %vm5878_vm6, %v38978_v28  ;;  %25955 = vmatmul.mubr.msk.f32.gmra.mrb[18].mxu1 %vm5878_vm6, %v39089_v60 }
 0x6ae   :  { %25957 = vmatprep.mubr.msk.f32.mxu1 %vm5878_vm6, %v39090_v27  ;;  %v39092_v27 = vld [vmem:[#allocation22_spill] sm:$0xff] }
 0x6b0   :  { %25101 = vmatmul.mubr.msk.f32.gmra.mrb[82].mxu0 %vm5878_vm6, %v38979_v21 }
 0x6b1   :  { %25103 = vmatprep.mubr.msk.f32.mxu0 %vm5878_vm6, %v39026_v43  ;;  %25958 = vmatmul.mubr.msk.f32.gmra.mrb[20].mxu1 %vm5878_vm6, %v39091_v1 }
 0x6b2   :  { %25960 = vmatprep.mubr.msk.f32.mxu1 %vm5878_vm6, %v39059_v19  ;;  %v39095_v19 = vld [vmem:[#allocation51_spill] sm:$0xff] }
 0x6b3   :  { %v35075_v1 = vmax.f32 %v39095_v19, 0.0  ;;  %v20744_v19 = vld [vmem:[%s38225_s3 + $0xf0] sm:$0xff] }
 0x6b4   :  { %25104 = vmatmul.mubr.msk.f32.gmra.mrb[84].mxu0 %vm5878_vm6, %v39031_v9 }
 0x6b5   :  { %25106 = vmatprep.mubr.msk.f32.mxu0 %vm5878_vm6, %v39061_v30  ;;  %25961 = vmatmul.mubr.msk.f32.gmra.mrb[22].mxu1 %vm5878_vm6, %v39060_v53  ;;  %39096 = vst [vmem:[#allocation115_spill] sm:$0xff] %v35075_v1 }
 0x6b6   :  { %25963 = vmatprep.mubr.msk.f32.mxu1 %vm5878_vm6, %v39062_v62 }
 0x6b8   :  { %25107 = vmatmul.mubr.msk.f32.gmra.mrb[86].mxu0 %vm5878_vm6, %v39092_v27  ;;  %v20745_v27 = vld [vmem:[%s38225_s3 + $0xf8] sm:$0x3] }
 0x6b9   :  { %25109 = vmatprep.mubr.msk.f32.mxu0 %vm5878_vm6, %v39034_v54  ;;  %25964 = vmatmul.mubr.msk.f32.gmra.mrb[24].mxu1 %vm5878_vm6, %v39093_v7 }
 0x6ba   :  { %25966 = vmatprep.mubr.msk.f32.mxu1 %vm5878_vm6, %v39094_v24 }
 0x6bc   :  { %25110 = vmatmul.mubr.msk.f32.gmra.mrb[88].mxu0 %vm5878_vm6, %v38992_v34 }
 0x6bd   :  { %25112 = vmatprep.mubr.msk.f32.mxu0 %vm5878_vm6, %v38995_v6  ;;  %25967 = vmatmul.mubr.msk.f32.gmra.mrb[26].mxu1 %vm5878_vm6, %v35075_v1  ;;  %v35097_v1 = vpack.c.bf16 %v20745_v27, %v20744_v19  ;;  %v39098_v27 = vld [vmem:[#allocation40_spill] sm:$0xff] }
 0x6be   :  { %25973 = vmatprep.mubr.msk.f32.mxu1 %vm5878_vm6, %v38972_v31  ;;  %v39099_v19 = vld [vmem:[#allocation4_spill] sm:$0xff] }
 0x6c0   :  { %25113 = vmatmul.mubr.msk.f32.gmra.mrb[90].mxu0 %vm5878_vm6, %v38996_v5 }
 0x6c1   :  { %25115 = vmatprep.mubr.msk.f32.mxu0 %vm5878_vm6, %v39037_v47  ;;  %25974 = vmatmul.mubr.msk.f32.vlgmr.msra.gmra.mrb[28].mxu1 %vm5878_vm6, %v38974_v56 }
 0x6c2   :  { %27429 = vmatpush3.bf16.msk.msra.mxu1 %vm31375_vm5, %v34812_v11  ;;  %25976 = vmatprep.mubr.msk.f32.mxu1 %vm5878_vm6, %v38975_v50  ;;  %v39097_v11 = vld [vmem:[#allocation26_spill] sm:$0xff] }
 0x6c3   :  { %27432 = vmatprep.subr.msk.bf16.mxu1 %vm31375_vm5, %v35097_v1 }
 0x6c4   :  { %25116 = vmatmul.mubr.msk.f32.gmra.mrb[92].mxu0 %vm5878_vm6, %v39038_v2 }
 0x6c5   :  { %25118 = vmatprep.mubr.msk.f32.mxu0 %vm5878_vm6, %v39066_v33  ;;  %25977 = vmatmul.mubr.msk.f32.gmra.mrb[30].mxu1 %vm5878_vm6, %v38978_v28 }
 0x6c6   :  { %25979 = vmatprep.mubr.msk.f32.mxu1 %vm5878_vm6, %v38979_v21 }
 0x6c8   :  { %25119 = vmatmul.mubr.msk.f32.gmra.mrb[94].mxu0 %vm5878_vm6, %v39097_v11  ;;  %v39101_v11 = vld [vmem:[#allocation44_spill] sm:$0xff] }
 0x6c9   :  { %25121 = vmatprep.mubr.msk.f32.mxu0 %vm5878_vm6, %v33411_v15  ;;  %25980 = vmatmul.mubr.msk.f32.gmra.mrb[32].mxu1 %vm5878_vm6, %v39026_v43 }
 0x6ca   :  { %25982 = vmatprep.mubr.msk.f32.mxu1 %vm5878_vm6, %v39031_v9 }
 0x6cc   :  { %25122 = vmatmul.mubr.msk.f32.gmra.mrb[96].mxu0 %vm5878_vm6, %v33414_v51 }
 0x6cd   :  { %25124 = vmatprep.mubr.msk.f32.mxu0 %vm5878_vm6, %v33429_v45  ;;  %25983 = vmatmul.mubr.msk.f32.gmra.mrb[34].mxu1 %vm5878_vm6, %v39061_v30 }
 0x6ce   :  { %25985 = vmatprep.mubr.msk.f32.mxu1 %vm5878_vm6, %v38989_v46 }
 0x6d0   :  { %25125 = vmatmul.mubr.msk.f32.gmra.mrb[98].mxu0 %vm5878_vm6, %v33432_v17 }
 0x6d1   :  { %25127 = vmatprep.mubr.msk.f32.mxu0 %vm5878_vm6, %v33447_v14  ;;  %25986 = vmatmul.mubr.msk.f32.gmra.mrb[36].mxu1 %vm5878_vm6, %v39034_v54 }
 0x6d2   :  { %25988 = vmatprep.mubr.msk.f32.mxu1 %vm5878_vm6, %v38992_v34 }
 0x6d4   :  { %25128 = vmatmul.mubr.msk.f32.gmra.mrb[100].mxu0 %vm5878_vm6, %v39040_v3 }
 0x6d5   :  { %25130 = vmatprep.mubr.msk.f32.mxu0 %vm5878_vm6, %v39067_v13  ;;  %25989 = vmatmul.mubr.msk.f32.gmra.mrb[38].mxu1 %vm5878_vm6, %v38995_v6 }
 0x6d6   :  { %25991 = vmatprep.mubr.msk.f32.mxu1 %vm5878_vm6, %v38996_v5 }
 0x6d8   :  { %25131 = vmatmul.mubr.msk.f32.gmra.mrb[102].mxu0 %vm5878_vm6, %v39098_v27  ;;  %v39100_v27 = vld [vmem:[#allocation57_spill] sm:$0xff] }
 0x6d9   :  { %25133 = vmatprep.mubr.msk.f32.mxu0 %vm5878_vm6, %v33483_v16  ;;  %25992 = vmatmul.mubr.msk.f32.gmra.mrb[40].mxu1 %vm5878_vm6, %v39037_v47 }
 0x6da   :  { %25994 = vmatprep.mubr.msk.f32.mxu1 %vm5878_vm6, %v39038_v2 }
 0x6dc   :  { %25134 = vmatmul.mubr.msk.f32.gmra.mrb[104].mxu0 %vm5878_vm6, %v33486_v12 }
 0x6dd   :  { %25136 = vmatprep.mubr.msk.f32.mxu0 %vm5878_vm6, %v38832_v22  ;;  %25995 = vmatmul.mubr.msk.f32.gmra.mrb[42].mxu1 %vm5878_vm6, %v39066_v33 }
 0x6de   :  { %25997 = vmatprep.mubr.msk.f32.mxu1 %vm5878_vm6, %v39000_v18 }
 0x6e0   :  { %25137 = vmatmul.mubr.msk.f32.gmra.mrb[106].mxu0 %vm5878_vm6, %v38833_v20 }
 0x6e1   :  { %25139 = vmatprep.mubr.msk.f32.mxu0 %vm5878_vm6, %v38932_v29  ;;  %25998 = vmatmul.mubr.msk.f32.gmra.mrb[44].mxu1 %vm5878_vm6, %v33411_v15 }
 0x6e2   :  { %26000 = vmatprep.mubr.msk.f32.mxu1 %vm5878_vm6, %v33414_v51 }
 0x6e4   :  { %25140 = vmatmul.mubr.msk.f32.gmra.mrb[108].mxu0 %vm5878_vm6, %v39041_v37 }
 0x6e5   :  { %25142 = vmatprep.mubr.msk.f32.mxu0 %vm5878_vm6, %v39068_v44  ;;  %26001 = vmatmul.mubr.msk.f32.gmra.mrb[46].mxu1 %vm5878_vm6, %v33429_v45 }
 0x6e6   :  { %26003 = vmatprep.mubr.msk.f32.mxu1 %vm5878_vm6, %v33432_v17 }
 0x6e8   :  { %25143 = vmatmul.mubr.msk.f32.gmra.mrb[110].mxu0 %vm5878_vm6, %v39099_v19  ;;  %v39102_v19 = vld [vmem:[#allocation17_spill] sm:$0xff] }
 0x6e9   :  { %25145 = vmatprep.mubr.msk.f32.mxu0 %vm5878_vm6, %v39100_v27  ;;  %26004 = vmatmul.mubr.msk.f32.gmra.mrb[48].mxu1 %vm5878_vm6, %v33447_v14  ;;  %v39106_v14 = vld [vmem:[#allocation15_spill] sm:$0xff] }
 0x6ea   :  { %26006 = vmatprep.mubr.msk.f32.mxu1 %vm5878_vm6, %v39040_v3  ;;  %v39104_v3 = vld [vmem:[#allocation56_spill] sm:$0xff] }
 0x6ec   :  { %25146 = vmatmul.mubr.msk.f32.gmra.mrb[112].mxu0 %vm5878_vm6, %v38850_v10 }
 0x6ed   :  { %25148 = vmatprep.mubr.msk.f32.mxu0 %vm5878_vm6, %v38853_v58  ;;  %26007 = vmatmul.mubr.msk.f32.gmra.mrb[50].mxu1 %vm5878_vm6, %v39067_v13  ;;  %v39103_v13 = vld [vmem:[#allocation7_spill] sm:$0xff] }
 0x6ee   :  { %26009 = vmatprep.mubr.msk.f32.mxu1 %vm5878_vm6, %v39101_v11 }
 0x6f0   :  { %25149 = vmatmul.mubr.msk.f32.gmra.mrb[114].mxu0 %vm5878_vm6, %v38856_v25 }
 0x6f1   :  { %25151 = vmatprep.mubr.msk.f32.mxu0 %vm5878_vm6, %v39042_v8  ;;  %26010 = vmatmul.mubr.msk.f32.gmra.mrb[52].mxu1 %vm5878_vm6, %v33483_v16 }
 0x6f2   :  { %26012 = vmatprep.mubr.msk.f32.mxu1 %vm5878_vm6, %v33486_v12 }
 0x6f4   :  { %25152 = vmatmul.mubr.msk.f32.gmra.mrb[116].mxu0 %vm5878_vm6, %v39071_v35 }
 0x6f5   :  { %25154 = vmatprep.mubr.msk.f32.mxu0 %vm5878_vm6, %v39102_v19  ;;  %26013 = vmatmul.mubr.msk.f32.gmra.mrb[54].mxu1 %vm5878_vm6, %v38832_v22 }
 0x6f6   :  { %26015 = vmatprep.mubr.msk.f32.mxu1 %vm5878_vm6, %v38833_v20 }
 0x6f8   :  { %25155 = vmatmul.mubr.msk.f32.gmra.mrb[118].mxu0 %vm5878_vm6, %v39103_v13  ;;  %v20141_v13 = vld [vmem:[%s38225_s3 + $0x60] sm:$0xff] }
 0x6f9   :  { %25157 = vmatprep.mubr.msk.f32.mxu0 %vm5878_vm6, %v38867_v52  ;;  %26016 = vmatmul.mubr.msk.f32.gmra.mrb[56].mxu1 %vm5878_vm6, %v38932_v29  ;;  %v39105_v29 = vld [vmem:[#allocation8_spill] sm:$0xff] }
 0x6fa   :  { %26018 = vmatprep.mubr.msk.f32.mxu1 %vm5878_vm6, %v39041_v37 }
 0x6fc   :  { %25158 = vmatmul.mubr.msk.f32.gmra.mrb[120].mxu0 %vm5878_vm6, %v38868_v36 }
 0x6fd   :  { %25160 = vmatprep.mubr.msk.f32.mxu0 %vm5878_vm6, %v38931_v38  ;;  %26019 = vmatmul.mubr.msk.f32.gmra.mrb[58].mxu1 %vm5878_vm6, %v39068_v44  ;;  %v20142_v44 = vld [vmem:[%s38225_s3 + $0x68] sm:$0x3] }
 0x6fe   :  { %26021 = vmatprep.mubr.msk.f32.mxu1 %vm5878_vm6, %v39104_v3  ;;  %v27376_v37 = vpack.c.bf16 %v20142_v44, %v20141_v13  ;;  %v39109_v13 = vld [vmem:[#allocation16_spill] sm:$0xff]  ;;  %v39113_v44 = vld [vmem:[#allocation19_spill] sm:$0xff] }
 0x700   :  { %25161 = vmatmul.mubr.msk.f32.gmra.mrb[122].mxu0 %vm5878_vm6, %v38935_v32  ;;  %27378 = vmatprep.subr.msk.bf16.mxu0 %vm31375_vm5, %v27376_v37 }
 0x701   :  { %25163 = vmatprep.mubr.msk.f32.mxu0 %vm5878_vm6, %v38873_v55  ;;  %26022 = vmatmul.mubr.msk.f32.gmra.mrb[60].mxu1 %vm5878_vm6, %v39100_v27 }
 0x702   :  { %26024 = vmatprep.mubr.msk.f32.mxu1 %vm5878_vm6, %v38850_v10  ;;  %v39108_v10 = vld [vmem:[#allocation10_spill] sm:$0xff] }
 0x704   :  { %25164 = vmatmul.mubr.msk.f32.gmra.mrb[124].mxu0 %vm5878_vm6, %v39045_v0 }
 0x705   :  { %25166 = vmatprep.mubr.msk.f32.mxu0 %vm5878_vm6, %v39074_v42  ;;  %26025 = vmatmul.mubr.msk.f32.gmra.mrb[62].mxu1 %vm5878_vm6, %v38853_v58  ;;  %v39107_v58 = vmax.f32 %v39106_v14, 0.0  ;;  %v39110_v14 = vld [vmem:[#allocation28_spill] sm:$0xff] }
 0x706   :  { %26027 = vmatprep.mubr.msk.f32.mxu1 %vm5878_vm6, %v38856_v25 }
 0x708   :  { %25167 = vmatmul.mubr.msk.f32.gmra.mrb[126].mxu0 %vm5878_vm6, %v39105_v29  ;;  %v39114_v29 = vld [vmem:[#allocation20_spill] sm:$0xff] }
 0x709   :  { %25173 = vmatprep.mubr.msk.f32.mxu0 %vm5878_vm6, %v39107_v58  ;;  %26028 = vmatmul.mubr.msk.f32.gmra.mrb[0].mxu1 %vm5878_vm6, %v39042_v8  ;;  %v39111_v58 = vld [vmem:[#allocation87_spill] sm:$0xff] }
 0x70a   :  { %26030 = vmatprep.mubr.msk.f32.mxu1 %vm5878_vm6, %v39071_v35 }
 0x70c   :  { %25174 = vmatmul.mubr.msk.f32.vlgmr.msra.gmra.mrb[64].mxu0 %vm5878_vm6, %v39108_v10 }
 0x70d   :  { %25176 = vmatprep.mubr.msk.f32.mxu0 %vm5878_vm6, %v39109_v13  ;;  %26031 = vmatmul.mubr.msk.f32.gmra.mrb[2].mxu1 %vm5878_vm6, %v39102_v19 }
 0x70e   :  { %26033 = vmatprep.mubr.msk.f32.mxu1 %vm5878_vm6, %v38866_v23  ;;  %27381 = vmatpush3.bf16.msk.msra.mxu0 %vm31375_vm5, %v27376_v37  ;;  %v39112_v37 = vld [vmem:[#allocation63_spill] sm:$0xff] }
 0x70f   :  { %27384 = vmatprep.subr.msk.bf16.mxu0 %vm31375_vm5, %v39110_v14 }
 0x710   :  { %25177 = vmatmul.mubr.msk.f32.gmra.mrb[66].mxu0 %vm5878_vm6, %v39111_v58 }
 0x711   :  { %25179 = vmatprep.mubr.msk.f32.mxu0 %vm5878_vm6, %v33176_v40  ;;  %26034 = vmatmul.mubr.msk.f32.gmra.mrb[4].mxu1 %vm5878_vm6, %v38867_v52 }
 0x712   :  { %26036 = vmatprep.mubr.msk.f32.mxu1 %vm5878_vm6, %v38868_v36 }
 0x714   :  { %25180 = vmatmul.mubr.msk.f32.gmra.mrb[68].mxu0 %vm5878_vm6, %v33179_v4 }
 0x715   :  { %25182 = vmatprep.mubr.msk.f32.mxu0 %vm5878_vm6, %v33210_v59  ;;  %26037 = vmatmul.mubr.msk.f32.gmra.mrb[6].mxu1 %vm5878_vm6, %v38931_v38 }
 0x716   :  { %26039 = vmatprep.mubr.msk.f32.mxu1 %vm5878_vm6, %v38935_v32 }
 0x718   :  { %25183 = vmatmul.mubr.msk.f32.gmra.mrb[70].mxu0 %vm5878_vm6, %v39077_v49 }
 0x719   :  { %25185 = vmatprep.mubr.msk.f32.mxu0 %vm5878_vm6, %v39112_v37  ;;  %26040 = vmatmul.mubr.msk.f32.gmra.mrb[8].mxu1 %vm5878_vm6, %v38873_v55  ;;  %v39115_v37 = vld [vmem:[#allocation75_spill] sm:$0xff] }
 0x71a   :  { %26042 = vmatprep.mubr.msk.f32.mxu1 %vm5878_vm6, %v39045_v0  ;;  %v39119_v0 = vld [vmem:[#allocation77_spill] sm:$0xff] }
 0x71c   :  { %25186 = vmatmul.mubr.msk.f32.gmra.mrb[72].mxu0 %vm5878_vm6, %v39113_v44 }
 0x71d   :  { %25188 = vmatprep.mubr.msk.f32.mxu0 %vm5878_vm6, %v39114_v29  ;;  %26043 = vmatmul.mubr.msk.f32.gmra.mrb[10].mxu1 %vm5878_vm6, %v39074_v42  ;;  %v39117_v29 = vld [vmem:[#allocation24_spill] sm:$0xff]  ;;  %v39118_v42 = vld [vmem:[#allocation25_spill] sm:$0xff] }
 0x71e   :  { %26045 = vmatprep.mubr.msk.f32.mxu1 %vm5878_vm6, %v39079_v39 }
 0x720   :  { %25189 = vmatmul.mubr.msk.f32.gmra.mrb[74].mxu0 %vm5878_vm6, %v38972_v31  ;;  %v39116_v31 = vld [vmem:[#allocation23_spill] sm:$0xff] }
 0x721   :  { %25191 = vmatprep.mubr.msk.f32.mxu0 %vm5878_vm6, %v38974_v56  ;;  %26046 = vmatmul.mubr.msk.f32.gmra.mrb[12].mxu1 %vm5878_vm6, %v39080_v48 }
 0x722   :  { %26048 = vmatprep.mubr.msk.f32.mxu1 %vm5878_vm6, %v39083_v41 }
 0x724   :  { %25192 = vmatmul.mubr.msk.f32.gmra.mrb[76].mxu0 %vm5878_vm6, %v38975_v50 }
 0x725   :  { %25194 = vmatprep.mubr.msk.f32.mxu0 %vm5878_vm6, %v38978_v28  ;;  %26049 = vmatmul.mubr.msk.f32.gmra.mrb[14].mxu1 %vm5878_vm6, %v39084_v61 }
 0x726   :  { %26051 = vmatprep.mubr.msk.f32.mxu1 %vm5878_vm6, %v39087_v26 }
 0x728   :  { %25195 = vmatmul.mubr.msk.f32.gmra.mrb[78].mxu0 %vm5878_vm6, %v38979_v21 }
 0x729   :  { %25197 = vmatprep.mubr.msk.f32.mxu0 %vm5878_vm6, %v39115_v37  ;;  %26052 = vmatmul.mubr.msk.f32.gmra.mrb[16].mxu1 %vm5878_vm6, %v39088_v57  ;;  %v39120_v37 = vld [vmem:[#allocation78_spill] sm:$0xff] }
 0x72a   :  { %26054 = vmatprep.mubr.msk.f32.mxu1 %vm5878_vm6, %v39089_v60 }
 0x72c   :  { %25198 = vmatmul.mubr.msk.f32.gmra.mrb[80].mxu0 %vm5878_vm6, %v39116_v31  ;;  %v39133_v31 = vld [vmem:[#allocation54_spill] sm:$0xff] }
 0x72d   :  { %25200 = vmatprep.mubr.msk.f32.mxu0 %vm5878_vm6, %v39117_v29  ;;  %26055 = vmatmul.mubr.msk.f32.gmra.mrb[18].mxu1 %vm5878_vm6, %v39118_v42  ;;  %v39125_v29 = vld [vmem:[#allocation30_spill] sm:$0xff]  ;;  %v39132_v42 = vld [vmem:[#allocation53_spill] sm:$0xff] }
 0x72e   :  { %26057 = vmatprep.mubr.msk.f32.mxu1 %vm5878_vm6, %v39119_v0  ;;  %v39121_v0 = vld [vmem:[#allocation29_spill] sm:$0xff] }
 0x730   :  { %25201 = vmatmul.mubr.msk.f32.gmra.mrb[82].mxu0 %vm5878_vm6, %v38989_v46 }
 0x731   :  { %25203 = vmatprep.mubr.msk.f32.mxu0 %vm5878_vm6, %v39034_v54  ;;  %26058 = vmatmul.mubr.msk.f32.gmra.mrb[20].mxu1 %vm5878_vm6, %v39120_v37  ;;  %v39123_v37 = vld [vmem:[#allocation5_spill] sm:$0xff] }
 0x732   :  { %26060 = vmatprep.mubr.msk.f32.mxu1 %vm5878_vm6, %v39060_v53  ;;  %v39122_v53 = vld [vmem:[#allocation115_spill] sm:$0xff]  ;;  %v35362_v46 = vmax.f32 %v39123_v37, 0.0 }
 0x733   :  { %v20811_v37 = vld [vmem:[%s38225_s3 + $0x100] sm:$0xff] }
 0x734   :  { %25204 = vmatmul.mubr.msk.f32.gmra.mrb[84].mxu0 %vm5878_vm6, %v38992_v34  ;;  %39124 = vst [vmem:[#allocation116_spill] sm:$0xff] %v35362_v46 }
 0x735   :  { %25206 = vmatprep.mubr.msk.f32.mxu0 %vm5878_vm6, %v38995_v6  ;;  %26061 = vmatmul.mubr.msk.f32.gmra.mrb[22].mxu1 %vm5878_vm6, %v39062_v62  ;;  %v39126_v62 = vld [vmem:[#allocation31_spill] sm:$0xff] }
 0x736   :  { %26063 = vmatprep.mubr.msk.f32.mxu1 %vm5878_vm6, %v39093_v7 }
 0x738   :  { %25207 = vmatmul.mubr.msk.f32.gmra.mrb[86].mxu0 %vm5878_vm6, %v38996_v5 }
 0x739   :  { %25209 = vmatprep.mubr.msk.f32.mxu0 %vm5878_vm6, %v39121_v0  ;;  %26064 = vmatmul.mubr.msk.f32.gmra.mrb[24].mxu1 %vm5878_vm6, %v39094_v24  ;;  %v20812_v0 = vld [vmem:[%s38225_s3 + $0x108] sm:$0x3] }
 0x73a   :  { %26066 = vmatprep.mubr.msk.f32.mxu1 %vm5878_vm6, %v39122_v53 }
 0x73c   :  { %25210 = vmatmul.mubr.msk.f32.gmra.mrb[88].mxu0 %vm5878_vm6, %v39125_v29 }
 0x73d   :  { %25212 = vmatprep.mubr.msk.f32.mxu0 %vm5878_vm6, %v39126_v62  ;;  %26067 = vmatmul.mubr.msk.f32.gmra.mrb[26].mxu1 %vm5878_vm6, %v35362_v46  ;;  %v35384_v62 = vpack.c.bf16 %v20812_v0, %v20811_v37  ;;  %v39128_v0 = vld [vmem:[#allocation41_spill] sm:$0xff]  ;;  %v39130_v37 = vld [vmem:[#allocation43_spill] sm:$0xff] }
 0x73e   :  { %26073 = vmatprep.mubr.msk.f32.mxu1 %vm5878_vm6, %v38974_v56 }
 0x73f   :  { %39127 = vst [vmem:[#allocation117_spill] sm:$0xff] %v35384_v62 }
 0x740   :  { %25213 = vmatmul.mubr.msk.f32.gmra.mrb[90].mxu0 %vm5878_vm6, %v39000_v18  ;;  %v24527_v18 = vpop.f32.mrb[224].mxu0 }
 0x741   :  { %25215 = vmatprep.mubr.msk.f32.mxu0 %vm5878_vm6, %v33411_v15  ;;  %26074 = vmatmul.mubr.msk.f32.vlgmr.msra.gmra.mrb[28].mxu1 %vm5878_vm6, %v38975_v50  ;;  %v39138_v50 = vld [vmem:[#allocation59_spill] sm:$0xff] }
 0x742   :  { %27435 = vmatpush3.bf16.msk.msra.mxu1 %vm31375_vm5, %v35097_v1  ;;  %26076 = vmatprep.mubr.msk.f32.mxu1 %vm5878_vm6, %v38978_v28  ;;  %v39129_v1 = vld [vmem:[#allocation42_spill] sm:$0xff] }
 0x743   :  { %27438 = vmatprep.subr.msk.bf16.mxu1 %vm31375_vm5, %v35384_v62  ;;  %v39131_v62 = vld [vmem:[#allocation22_spill] sm:$0xff] }
 0x744   :  { %25216 = vmatmul.mubr.msk.f32.gmra.mrb[92].mxu0 %vm5878_vm6, %v33414_v51  ;;  %v39136_v28 = vld [vmem:[#allocation58_spill] sm:$0xff] }
 0x745   :  { %25218 = vmatprep.mubr.msk.f32.mxu0 %vm5878_vm6, %v33429_v45  ;;  %26077 = vmatmul.mubr.msk.f32.gmra.mrb[30].mxu1 %vm5878_vm6, %v38979_v21 }
 0x746   :  { %26079 = vmatprep.mubr.msk.f32.mxu1 %vm5878_vm6, %v39026_v43  ;;  %v39134_v43 = vld [vmem:[#allocation55_spill] sm:$0xff] }
 0x748   :  { %25219 = vmatmul.mubr.msk.f32.gmra.mrb[94].mxu0 %vm5878_vm6, %v33432_v17 }
 0x749   :  { %25221 = vmatprep.mubr.msk.f32.mxu0 %vm5878_vm6, %v39128_v0  ;;  %26080 = vmatmul.mubr.msk.f32.gmra.mrb[32].mxu1 %vm5878_vm6, %v39031_v9  ;;  %v35421_v9 = vld [vmem:[%s38224_s2] ss:$0 sm:$0xff]  ;;  %v4820_v0 = vpop.f32.mrb[225].mxu0 }
 0x74a   :  { %26082 = vmatprep.mubr.msk.f32.mxu1 %vm5878_vm6, %v39061_v30  ;;  %v35424_v30 = vadd.f32 %v35421_v9, %v24527_v18 }
 0x74c   :  { %25222 = vmatmul.mubr.msk.f32.gmra.mrb[96].mxu0 %vm5878_vm6, %v39129_v1  ;;  %v35427_v1 = vadd.f32 %v35421_v9, %v4820_v0 }
 0x74d   :  { %25224 = vmatprep.mubr.msk.f32.mxu0 %vm5878_vm6, %v39130_v37  ;;  %26083 = vmatmul.mubr.msk.f32.gmra.mrb[34].mxu1 %vm5878_vm6, %v39131_v62  ;;  %v24530_v37 = vpop.f32.mrb[226].mxu0 }
 0x74e   :  { %26085 = vmatprep.mubr.msk.f32.mxu1 %vm5878_vm6, %v39034_v54  ;;  %v35432_v62 = vadd.f32 %v35421_v9, %v24530_v37  ;;  %v4830_v46 = vpop.f32.mrb[227].mxu0 }
 0x74f   :  { %v35441_v0 = vadd.f32 %v35421_v9, %v4830_v46  ;;  %v24533_v53 = vpop.f32.mrb[228].mxu0 }
 0x750   :  { %25225 = vmatmul.mubr.msk.f32.gmra.mrb[98].mxu0 %vm5878_vm6, %v39101_v11  ;;  %v35446_v37 = vadd.f32 %v35421_v9, %v24533_v53  ;;  %v4840_v11 = vpop.f32.mrb[229].mxu0 }
 0x751   :  { %25227 = vmatprep.mubr.msk.f32.mxu0 %vm5878_vm6, %v33483_v16  ;;  %26086 = vmatmul.mubr.msk.f32.gmra.mrb[36].mxu1 %vm5878_vm6, %v38992_v34  ;;  %v35451_v24 = vadd.f32 %v35421_v9, %v4840_v11  ;;  %v24536_v7 = vpop.f32.mrb[230].mxu0 }
 0x752   :  { %26088 = vmatprep.mubr.msk.f32.mxu1 %vm5878_vm6, %v38995_v6  ;;  %v35456_v46 = vadd.f32 %v35421_v9, %v24536_v7  ;;  %v4850_v18 = vpop.f32.mrb[231].mxu0 }
 0x753   :  { %v35465_v11 = vadd.f32 %v35421_v9, %v4850_v18  ;;  %v24539_v29 = vpop.f32.mrb[232].mxu0 }
 0x754   :  { %25228 = vmatmul.mubr.msk.f32.gmra.mrb[100].mxu0 %vm5878_vm6, %v33486_v12  ;;  %v35470_v7 = vadd.f32 %v35421_v9, %v24539_v29  ;;  %v4860_v6 = vpop.f32.mrb[233].mxu0 }
 0x755   :  { %25230 = vmatprep.mubr.msk.f32.mxu0 %vm5878_vm6, %v38832_v22  ;;  %26089 = vmatmul.mubr.msk.f32.gmra.mrb[38].mxu1 %vm5878_vm6, %v38996_v5  ;;  %v35475_v54 = vadd.f32 %v35421_v9, %v4860_v6  ;;  %v24542_v5 = vpop.f32.mrb[234].mxu0 }
 0x756   :  { %26091 = vmatprep.mubr.msk.f32.mxu1 %vm5878_vm6, %v39037_v47  ;;  %v35480_v18 = vadd.f32 %v35421_v9, %v24542_v5  ;;  %v4870_v53 = vpop.f32.mrb[235].mxu0 }
 0x757   :  { %v35489_v6 = vadd.f32 %v35421_v9, %v4870_v53  ;;  %v24545_v34 = vpop.f32.mrb[236].mxu0 }
 0x758   :  { %25231 = vmatmul.mubr.msk.f32.gmra.mrb[102].mxu0 %vm5878_vm6, %v38833_v20  ;;  %v35494_v5 = vadd.f32 %v35421_v9, %v24545_v34  ;;  %v4880_v47 = vpop.f32.mrb[237].mxu0  ;;  %v39135_v34 = vld [vmem:[#allocation26_spill] sm:$0xff] }
 0x759   :  { %25233 = vmatprep.mubr.msk.f32.mxu0 %vm5878_vm6, %v39132_v42  ;;  %26092 = vmatmul.mubr.msk.f32.gmra.mrb[40].mxu1 %vm5878_vm6, %v39038_v2  ;;  %v35499_v60 = vadd.f32 %v35421_v9, %v4880_v47  ;;  %v24548_v2 = vpop.f32.mrb[238].mxu0 }
 0x75a   :  { %26094 = vmatprep.mubr.msk.f32.mxu1 %vm5878_vm6, %v39066_v33  ;;  %v35504_v53 = vadd.f32 %v35421_v9, %v24548_v2  ;;  %v4890_v29 = vpop.f32.mrb[239].mxu0 }
 0x75b   :  { %v35513_v47 = vadd.f32 %v35421_v9, %v4890_v29  ;;  %v24551_v33 = vpop.f32.mrb[240].mxu0 }
 0x75c   :  { %25234 = vmatmul.mubr.msk.f32.gmra.mrb[104].mxu0 %vm5878_vm6, %v39133_v31  ;;  %v35518_v2 = vadd.f32 %v35421_v9, %v24551_v33  ;;  %v4900_v31 = vpop.f32.mrb[241].mxu0 }
 0x75d   :  { %25236 = vmatprep.mubr.msk.f32.mxu0 %vm5878_vm6, %v39134_v43  ;;  %26095 = vmatmul.mubr.msk.f32.gmra.mrb[42].mxu1 %vm5878_vm6, %v39135_v34  ;;  %v35523_v57 = vadd.f32 %v35421_v9, %v4900_v31  ;;  %v24554_v34 = vpop.f32.mrb[242].mxu0 }
 0x75e   :  { %26097 = vmatprep.mubr.msk.f32.mxu1 %vm5878_vm6, %v33411_v15  ;;  %v35528_v29 = vadd.f32 %v35421_v9, %v24554_v34  ;;  %v4910_v42 = vpop.f32.mrb[243].mxu0 }
 0x75f   :  { %v35537_v31 = vadd.f32 %v35421_v9, %v4910_v42  ;;  %v24557_v43 = vpop.f32.mrb[244].mxu0 }
 0x760   :  { %25237 = vmatmul.mubr.msk.f32.gmra.mrb[106].mxu0 %vm5878_vm6, %v39104_v3  ;;  %v35542_v34 = vadd.f32 %v35421_v9, %v24557_v43  ;;  %v4920_v3 = vpop.f32.mrb[245].mxu0 }
 0x761   :  { %25239 = vmatprep.mubr.msk.f32.mxu0 %vm5878_vm6, %v39100_v27  ;;  %26098 = vmatmul.mubr.msk.f32.gmra.mrb[44].mxu1 %vm5878_vm6, %v33414_v51  ;;  %v35547_v21 = vadd.f32 %v35421_v9, %v4920_v3  ;;  %v24560_v51 = vpop.f32.mrb[246].mxu0 }
 0x762   :  { %26100 = vmatprep.mubr.msk.f32.mxu1 %vm5878_vm6, %v33429_v45  ;;  %v35552_v42 = vadd.f32 %v35421_v9, %v24560_v51  ;;  %v4930_v33 = vpop.f32.mrb[247].mxu0  ;;  %v39140_v45 = vld [vmem:[#allocation37_spill] sm:$0xff] }
 0x763   :  { %v35561_v3 = vadd.f32 %v35421_v9, %v4930_v33  ;;  %v24563_v15 = vpop.f32.mrb[248].mxu0  ;;  %v39142_v33 = vld [vmem:[#allocation38_spill] sm:$0xff] }
 0x764   :  { %25240 = vmatmul.mubr.msk.f32.gmra.mrb[108].mxu0 %vm5878_vm6, %v39136_v28  ;;  %39137 = vst [vmem:[#allocation11_spill] sm:$0xff] %v35552_v42  ;;  %v4946_v51 = vadd.f32 %v35421_v9, %v24563_v15  ;;  %v4940_v56 = vpop.f32.mrb[249].mxu0 }
 0x765   :  { %25242 = vmatprep.mubr.msk.f32.mxu0 %vm5878_vm6, %v39138_v50  ;;  %26101 = vmatmul.mubr.msk.f32.gmra.mrb[46].mxu1 %vm5878_vm6, %v33432_v17  ;;  %39139 = vst [vmem:[#allocation13_spill] sm:$0xff] %v35561_v3  ;;  %v4941_v55 = vadd.f32 %v35421_v9, %v4940_v56  ;;  %v39141_v17 = vld [vmem:[#allocation65_spill] sm:$0xff]  ;;  %v24566_v49 = vpop.f32.mrb[250].mxu0  ;;  %v39144_v56 = vmax.f32 %v35427_v1, %v35424_v30  ;;  %v39146_v3 = vld [vmem:[#allocation66_spill] sm:$0xff] }
 0x766   :  { %26103 = vmatprep.mubr.msk.f32.mxu1 %vm5878_vm6, %v39140_v45  ;;  %v39143_v45 = vld [vmem:[#allocation39_spill] sm:$0xff]  ;;  %v4956_v15 = vadd.f32 %v35421_v9, %v24566_v49  ;;  %v4950_v59 = vpop.f32.mrb[251].mxu0 }
 0x767   :  { %v5563_v43 = vmax.f32 %v4941_v55, %v4946_v51  ;;  %v4951_v42 = vadd.f32 %v35421_v9, %v4950_v59  ;;  %v39148_v55 = vld [vmem:[#allocation40_spill] sm:$0xff]  ;;  %v39149_v59 = vmax.f32 %v35441_v0, %v35432_v62  ;;  %v39151_v0 = vmax.f32 %v35451_v24, %v35446_v37 }
 0x768   :  { %25243 = vmatmul.mubr.msk.f32.gmra.mrb[110].mxu0 %vm5878_vm6, %v38856_v25 }
 0x769   :  { %25245 = vmatprep.mubr.msk.f32.mxu0 %vm5878_vm6, %v39141_v17  ;;  %26104 = vmatmul.mubr.msk.f32.gmra.mrb[48].mxu1 %vm5878_vm6, %v39142_v33  ;;  %v35581_v44 = vmax.f32 %v39144_v56, %v5563_v43  ;;  %v39147_v17 = vld [vmem:[#allocation67_spill] sm:$0xff]  ;;  %v5564_v51 = vmax.f32 %v4951_v42, %v4956_v15 }
 0x76a   :  { %26106 = vmatprep.mubr.msk.f32.mxu1 %vm5878_vm6, %v39143_v45  ;;  %v24569_v45 = vpop.f32.mrb[252].mxu0  ;;  %v39162_v33 = vld [vmem:[#allocation79_spill] sm:$0xff] }
 0x76b   :  { %39145 = vst [vmem:[#allocation101_spill] sm:$0xff] %v35581_v44  ;;  %v4966_v49 = vadd.f32 %v35421_v9, %v24569_v45  ;;  %v4960_v1 = vpop.f32.mrb[253].mxu0  ;;  %v35596_v30 = vmax.f32 %v39149_v59, %v5564_v51  ;;  %v39153_v59 = vld [vmem:[#allocation49_spill] sm:$0xff]  ;;  %v39226_v44 = vld [vmem:[#allocation36_spill] sm:$0xff] }
 0x76c   :  { %25246 = vmatmul.mubr.msk.f32.gmra.mrb[112].mxu0 %vm5878_vm6, %v39146_v3  ;;  %v4961_v43 = vadd.f32 %v35421_v9, %v4960_v1  ;;  %v24572_v15 = vpop.f32.mrb[254].mxu0 }
 0x76d   :  { %25248 = vmatprep.mubr.msk.f32.mxu0 %vm5878_vm6, %v39147_v17  ;;  %26107 = vmatmul.mubr.msk.f32.gmra.mrb[50].mxu1 %vm5878_vm6, %v39148_v55  ;;  %39150 = vst [vmem:[#allocation52_spill] sm:$0xff] %v35596_v30  ;;  %v4976_v45 = vadd.f32 %v35421_v9, %v24572_v15  ;;  %v4970_v62 = vpop.f32.mrb[255].mxu0  ;;  %v39161_v55 = vld [vmem:[#allocation76_spill] sm:$0xff] }
 0x76e   :  { %26109 = vmatprep.mubr.msk.f32.mxu1 %vm5878_vm6, %v33483_v16  ;;  %v5565_v42 = vmax.f32 %v4961_v43, %v4966_v49  ;;  %v4971_v51 = vadd.f32 %v35421_v9, %v4970_v62  ;;  %v24575_v1 = vpop.f32.mrb[0].mxu0  ;;  %v39154_v43 = vmax.f32 %v35465_v11, %v35456_v46  ;;  %v39156_v62 = vld [vmem:[#allocation64_spill] sm:$0xff] }
 0x76f   :  { %v4986_v24 = vadd.f32 %v35421_v9, %v24575_v1  ;;  %v4980_v37 = vpop.f32.mrb[1].mxu0  ;;  %v39158_v1 = vld [vmem:[#allocation3_spill] sm:$0xff]  ;;  %v39219_v30 = vld [vmem:[#allocation32_spill] sm:$0xff] }
 0x770   :  { %25249 = vmatmul.mubr.msk.f32.gmra.mrb[114].mxu0 %vm5878_vm6, %v38866_v23  ;;  %v35611_v56 = vmax.f32 %v39151_v0, %v5565_v42  ;;  %v5566_v49 = vmax.f32 %v4971_v51, %v4976_v45  ;;  %v4981_v15 = vadd.f32 %v35421_v9, %v4980_v37  ;;  %v39157_v45 = vld [vmem:[#allocation50_spill] sm:$0xff]  ;;  %v24578_v51 = vpop.f32.mrb[2].mxu0 }
 0x771   :  { %25251 = vmatprep.mubr.msk.f32.mxu0 %vm5878_vm6, %v38867_v52  ;;  %26110 = vmatmul.mubr.msk.f32.gmra.mrb[52].mxu1 %vm5878_vm6, %v33486_v12  ;;  %v4996_v46 = vadd.f32 %v35421_v9, %v24578_v51  ;;  %v4990_v11 = vpop.f32.mrb[3].mxu0 }
 0x772   :  { %26112 = vmatprep.mubr.msk.f32.mxu1 %vm5878_vm6, %v38832_v22  ;;  %39152 = vst [vmem:[#allocation14_spill] sm:$0xff] %v35611_v56  ;;  %v35626_v42 = vmax.f32 %v39154_v43, %v5566_v49  ;;  %v5567_v0 = vmax.f32 %v4981_v15, %v4986_v24  ;;  %v39159_v49 = vmax.f32 %v35475_v54, %v35470_v7  ;;  %v39163_v24 = vld [vmem:[#allocation4_spill] sm:$0xff]  ;;  %v39218_v56 = vld [vmem:[#allocation31_spill] sm:$0xff] }
 0x773   :  { %v4991_v43 = vadd.f32 %v35421_v9, %v4990_v11 }
 0x774   :  { %25252 = vmatmul.mubr.msk.f32.gmra.mrb[116].mxu0 %vm5878_vm6, %v38868_v36  ;;  %39155 = vst [vmem:[#allocation81_spill] sm:$0xff] %v35626_v42  ;;  %v35641_v37 = vmax.f32 %v39159_v49, %v5567_v0  ;;  %v39164_v0 = vmax.f32 %v35489_v6, %v35480_v18 }
 0x775   :  { %25254 = vmatprep.mubr.msk.f32.mxu0 %vm5878_vm6, %v38931_v38  ;;  %26113 = vmatmul.mubr.msk.f32.gmra.mrb[54].mxu1 %vm5878_vm6, %v38833_v20  ;;  %v5568_v15 = vmax.f32 %v4991_v43, %v4996_v46 }
 0x776   :  { %26115 = vmatprep.mubr.msk.f32.mxu1 %vm5878_vm6, %v39153_v59  ;;  %39160 = vst [vmem:[#allocation93_spill] sm:$0xff] %v35641_v37  ;;  %v39216_v37 = vld [vmem:[#allocation6_spill] sm:$0xff] }
 0x777   :  { %v35656_v51 = vmax.f32 %v39164_v0, %v5568_v15  ;;  %v39168_v0 = vmax.f32 %v35513_v47, %v35504_v53  ;;  %v35823_v42 = vmax.f32 %v39216_v37, 0.0  ;;  %v20878_v37 = vld [vmem:[%s38225_s3 + $0x110] sm:$0xff] }
 0x778   :  { %25255 = vmatmul.mubr.msk.f32.gmra.mrb[118].mxu0 %vm5878_vm6, %v38935_v32 }
 0x779   :  { %25257 = vmatprep.mubr.msk.f32.mxu0 %vm5878_vm6, %v39156_v62  ;;  %26116 = vmatmul.mubr.msk.f32.gmra.mrb[56].mxu1 %vm5878_vm6, %v39157_v45  ;;  %39165 = vst [vmem:[#allocation82_spill] sm:$0xff] %v35656_v51  ;;  %v39211_v45 = vld [vmem:[#allocation114_spill] sm:$0xff]  ;;  %v39215_v51 = vld [vmem:[#allocation116_spill] sm:$0xff]  ;;  %39217 = vst [vmem:[#allocation16_spill] sm:$0xff] %v35823_v42 }
 0x77a   :  { %26118 = vmatprep.mubr.msk.f32.mxu1 %vm5878_vm6, %v39158_v1  ;;  %v24581_v1 = vpop.f32.mrb[4].mxu0 }
 0x77b   :  { %v5006_v54 = vadd.f32 %v35421_v9, %v24581_v1  ;;  %v5000_v7 = vpop.f32.mrb[5].mxu0  ;;  %v39166_v1 = vmax.f32 %v35499_v60, %v35494_v5 }
 0x77c   :  { %25258 = vmatmul.mubr.msk.f32.gmra.mrb[120].mxu0 %vm5878_vm6, %v39161_v55  ;;  %v5001_v11 = vadd.f32 %v35421_v9, %v5000_v7  ;;  %v24584_v49 = vpop.f32.mrb[6].mxu0 }
 0x77d   :  { %25260 = vmatprep.mubr.msk.f32.mxu0 %vm5878_vm6, %v39162_v33  ;;  %26119 = vmatmul.mubr.msk.f32.gmra.mrb[58].mxu1 %vm5878_vm6, %v39163_v24  ;;  %v5016_v18 = vadd.f32 %v35421_v9, %v24584_v49  ;;  %v5010_v6 = vpop.f32.mrb[7].mxu0  ;;  %v39201_v24 = vld [vmem:[#allocation102_spill] sm:$0xff] }
 0x77e   :  { %26121 = vmatprep.mubr.msk.f32.mxu1 %vm5878_vm6, %v39100_v27  ;;  %v5569_v46 = vmax.f32 %v5001_v11, %v5006_v54  ;;  %v5011_v15 = vadd.f32 %v35421_v9, %v5010_v6  ;;  %v24587_v7 = vpop.f32.mrb[8].mxu0  ;;  %v39170_v6 = vmax.f32 %v35523_v57, %v35518_v2 }
 0x77f   :  { %v5026_v60 = vadd.f32 %v35421_v9, %v24587_v7  ;;  %v5020_v5 = vpop.f32.mrb[9].mxu0 }
 0x780   :  { %25261 = vmatmul.mubr.msk.f32.gmra.mrb[122].mxu0 %vm5878_vm6, %v39079_v39  ;;  %v35671_v43 = vmax.f32 %v39166_v1, %v5569_v46  ;;  %v5570_v54 = vmax.f32 %v5011_v15, %v5016_v18  ;;  %v5021_v46 = vadd.f32 %v35421_v9, %v5020_v5  ;;  %v24590_v18 = vpop.f32.mrb[10].mxu0 }
 0x781   :  { %25263 = vmatprep.mubr.msk.f32.mxu0 %vm5878_vm6, %v39080_v48  ;;  %26122 = vmatmul.mubr.msk.f32.gmra.mrb[60].mxu1 %vm5878_vm6, %v39136_v28  ;;  %v5036_v53 = vadd.f32 %v35421_v9, %v24590_v18  ;;  %v5030_v47 = vpop.f32.mrb[11].mxu0 }
 0x782   :  { %26124 = vmatprep.mubr.msk.f32.mxu1 %vm5878_vm6, %v39138_v50  ;;  %39167 = vst [vmem:[#allocation83_spill] sm:$0xff] %v35671_v43  ;;  %v35686_v11 = vmax.f32 %v39168_v0, %v5570_v54  ;;  %v5571_v49 = vmax.f32 %v5021_v46, %v5026_v60  ;;  %v5031_v15 = vadd.f32 %v35421_v9, %v5030_v47  ;;  %v24593_v7 = vpop.f32.mrb[12].mxu0  ;;  %v39177_v47 = vld [vmem:[#allocation89_spill] sm:$0xff]  ;;  %v39214_v43 = vld [vmem:[#allocation115_spill] sm:$0xff] }
 0x783   :  { %v5046_v57 = vadd.f32 %v35421_v9, %v24593_v7  ;;  %v5040_v2 = vpop.f32.mrb[13].mxu0  ;;  %v39173_v60 = vmax.f32 %v35537_v31, %v35528_v29  ;;  %v39180_v7 = vld [vmem:[#allocation13_spill] sm:$0xff] }
 0x784   :  { %25264 = vmatmul.mubr.msk.f32.gmra.mrb[124].mxu0 %vm5878_vm6, %v39083_v41  ;;  %39169 = vst [vmem:[#allocation18_spill] sm:$0xff] %v35686_v11  ;;  %v35701_v1 = vmax.f32 %v39170_v6, %v5571_v49  ;;  %v5572_v54 = vmax.f32 %v5031_v15, %v5036_v53  ;;  %v5041_v0 = vadd.f32 %v35421_v9, %v5040_v2  ;;  %v24596_v46 = vpop.f32.mrb[14].mxu0  ;;  %v39178_v6 = vld [vmem:[#allocation90_spill] sm:$0xff]  ;;  %v39184_v2 = vld [vmem:[#allocation91_spill] sm:$0xff] }
 0x785   :  { %25266 = vmatprep.mubr.msk.f32.mxu0 %vm5878_vm6, %v39084_v61  ;;  %26125 = vmatmul.mubr.msk.f32.gmra.mrb[62].mxu1 %vm5878_vm6, %v38856_v25  ;;  %v5056_v29 = vadd.f32 %v35421_v9, %v24596_v46  ;;  %v5050_v31 = vpop.f32.mrb[15].mxu0  ;;  %v39175_v49 = vmax.f32 %v35547_v21, %v35542_v34  ;;  %v39188_v46 = vld [vmem:[#allocation20_spill] sm:$0xff]  ;;  %v39213_v11 = vld [vmem:[#allocation30_spill] sm:$0xff] }
 0x786   :  { %26127 = vmatprep.mubr.msk.f32.mxu1 %vm5878_vm6, %v39042_v8  ;;  %39171 = vst [vmem:[#allocation84_spill] sm:$0xff] %v35701_v1  ;;  %v35719_v5 = vmax.f32 %v39173_v60, %v5572_v54  ;;  %v5051_v53 = vadd.f32 %v35421_v9, %v5050_v31  ;;  %v39179_v54 = vld [vmem:[#allocation73_spill] sm:$0xff]  ;;  %v39185_v60 = vld [vmem:[#allocation19_spill] sm:$0xff]  ;;  %v39190_v31 = vld [vmem:[#allocation8_spill] sm:$0xff] }
 0x787   :  { %v39212_v1 = vld [vmem:[#allocation107_spill] sm:$0xff] }
 0x788   :  { %25267 = vmatmul.mubr.msk.f32.gmra.mrb[126].mxu0 %vm5878_vm6, %v39087_v26  ;;  %39174 = vst [vmem:[#allocation51_spill] sm:$0xff] %v35719_v5  ;;  %v5574_v15 = vmax.f32 %v5051_v53, %v5056_v29  ;;  %v39189_v29 = vld [vmem:[#allocation94_spill] sm:$0xff]  ;;  %v39192_v53 = vld [vmem:[#allocation96_spill] sm:$0xff] }
 0x789   :  { %25273 = vmatprep.mubr.msk.f32.mxu0 %vm5878_vm6, %v39108_v10  ;;  %26128 = vmatmul.mubr.msk.f32.gmra.mrb[0].mxu1 %vm5878_vm6, %v39071_v35  ;;  %v39172_v10 = vld [vmem:[#allocation7_spill] sm:$0xff]  ;;  %v39205_v5 = vld [vmem:[#allocation104_spill] sm:$0xff]  ;;  %v39209_v35 = vld [vmem:[#allocation106_spill] sm:$0xff] }
 0x78a   :  { %26130 = vmatprep.mubr.msk.f32.mxu1 %vm5878_vm6, %v39102_v19  ;;  %v39204_v19 = vld [vmem:[#allocation103_spill] sm:$0xff] }
 0x78c   :  { %25274 = vmatmul.mubr.msk.f32.vlgmr.msra.gmra.mrb[64].mxu0 %vm5878_vm6, %v39109_v13 }
 0x78d   :  { %25276 = vmatprep.mubr.msk.f32.mxu0 %vm5878_vm6, %v39111_v58  ;;  %26131 = vmatmul.mubr.msk.f32.gmra.mrb[2].mxu1 %vm5878_vm6, %v39172_v10  ;;  %v39200_v10 = vld [vmem:[#allocation24_spill] sm:$0xff] }
 0x78e   :  { %26133 = vmatprep.mubr.msk.f32.mxu1 %vm5878_vm6, %v38867_v52  ;;  %27387 = vmatpush3.bf16.msk.msra.mxu0 %vm31375_vm5, %v39110_v14  ;;  %v5573_v14 = vmax.f32 %v5041_v0, %v5046_v57  ;;  %v39181_v57 = vld [vmem:[#allocation11_spill] sm:$0xff]  ;;  %v39186_v0 = vld [vmem:[#allocation74_spill] sm:$0xff] }
 0x78f   :  { %v39182_v21 = vmax.f32 %v39180_v7, %v39181_v57  ;;  %v39194_v7 = vld [vmem:[#allocation98_spill] sm:$0xff]  ;;  %v39195_v57 = vld [vmem:[#allocation85_spill] sm:$0xff] }
 0x790   :  { %25277 = vmatmul.mubr.msk.f32.gmra.mrb[66].mxu0 %vm5878_vm6, %v33176_v40  ;;  %v35734_v18 = vmax.f32 %v39175_v49, %v5573_v14  ;;  %v39187_v14 = vld [vmem:[#allocation21_spill] sm:$0xff]  ;;  %v39191_v49 = vld [vmem:[#allocation95_spill] sm:$0xff] }
 0x791   :  { %25279 = vmatprep.mubr.msk.f32.mxu0 %vm5878_vm6, %v33179_v4  ;;  %26134 = vmatmul.mubr.msk.f32.gmra.mrb[4].mxu1 %vm5878_vm6, %v38868_v36  ;;  %v35748_v34 = vmax.f32 %v39182_v21, %v5574_v15  ;;  %v39193_v15 = vld [vmem:[#allocation97_spill] sm:$0xff]  ;;  %v39196_v21 = vld [vmem:[#allocation99_spill] sm:$0xff] }
 0x792   :  { %26136 = vmatprep.mubr.msk.f32.mxu1 %vm5878_vm6, %v38931_v38  ;;  %39176 = vst [vmem:[#allocation15_spill] sm:$0xff] %v35734_v18  ;;  %v39202_v18 = vld [vmem:[#allocation9_spill] sm:$0xff] }
 0x793   :  { %39183 = vst [vmem:[#allocation10_spill] sm:$0xff] %v35748_v34  ;;  %v39198_v34 = vld [vmem:[#allocation86_spill] sm:$0xff] }
 0x794   :  { %25280 = vmatmul.mubr.msk.f32.gmra.mrb[68].mxu0 %vm5878_vm6, %v39177_v47 }
 0x795   :  { %25282 = vmatprep.mubr.msk.f32.mxu0 %vm5878_vm6, %v39178_v6  ;;  %26137 = vmatmul.mubr.msk.f32.gmra.mrb[6].mxu1 %vm5878_vm6, %v38935_v32 }
 0x796   :  { %26139 = vmatprep.mubr.msk.f32.mxu1 %vm5878_vm6, %v39179_v54 }
 0x798   :  { %25283 = vmatmul.mubr.msk.f32.gmra.mrb[70].mxu0 %vm5878_vm6, %v39184_v2 }
 0x799   :  { %25285 = vmatprep.mubr.msk.f32.mxu0 %vm5878_vm6, %v39185_v60  ;;  %26140 = vmatmul.mubr.msk.f32.gmra.mrb[8].mxu1 %vm5878_vm6, %v39186_v0  ;;  %v39197_v60 = vld [vmem:[#allocation23_spill] sm:$0xff]  ;;  %v39208_v0 = vld [vmem:[#allocation105_spill] sm:$0xff] }
 0x79a   :  { %26142 = vmatprep.mubr.msk.f32.mxu1 %vm5878_vm6, %v39187_v14  ;;  %v39203_v14 = vld [vmem:[#allocation78_spill] sm:$0xff] }
 0x79c   :  { %25286 = vmatmul.mubr.msk.f32.gmra.mrb[72].mxu0 %vm5878_vm6, %v39188_v46 }
 0x79d   :  { %25288 = vmatprep.mubr.msk.f32.mxu0 %vm5878_vm6, %v39189_v29  ;;  %26143 = vmatmul.mubr.msk.f32.gmra.mrb[10].mxu1 %vm5878_vm6, %v39190_v31  ;;  %v39199_v31 = vld [vmem:[#allocation25_spill] sm:$0xff] }
 0x79e   :  { %26145 = vmatprep.mubr.msk.f32.mxu1 %vm5878_vm6, %v39080_v48 }
 0x7a0   :  { %25289 = vmatmul.mubr.msk.f32.gmra.mrb[74].mxu0 %vm5878_vm6, %v39191_v49 }
 0x7a1   :  { %25291 = vmatprep.mubr.msk.f32.mxu0 %vm5878_vm6, %v39192_v53  ;;  %26146 = vmatmul.mubr.msk.f32.gmra.mrb[12].mxu1 %vm5878_vm6, %v39083_v41 }
 0x7a2   :  { %26148 = vmatprep.mubr.msk.f32.mxu1 %vm5878_vm6, %v39084_v61 }
 0x7a4   :  { %25292 = vmatmul.mubr.msk.f32.gmra.mrb[76].mxu0 %vm5878_vm6, %v39193_v15 }
 0x7a5   :  { %25294 = vmatprep.mubr.msk.f32.mxu0 %vm5878_vm6, %v39194_v7  ;;  %26149 = vmatmul.mubr.msk.f32.gmra.mrb[14].mxu1 %vm5878_vm6, %v39087_v26 }
 0x7a6   :  { %26151 = vmatprep.mubr.msk.f32.mxu1 %vm5878_vm6, %v39195_v57 }
 0x7a8   :  { %25295 = vmatmul.mubr.msk.f32.gmra.mrb[78].mxu0 %vm5878_vm6, %v39196_v21 }
 0x7a9   :  { %25297 = vmatprep.mubr.msk.f32.mxu0 %vm5878_vm6, %v39197_v60  ;;  %26152 = vmatmul.mubr.msk.f32.gmra.mrb[16].mxu1 %vm5878_vm6, %v39198_v34  ;;  %v39206_v34 = vld [vmem:[#allocation111_spill] sm:$0xff] }
 0x7aa   :  { %26154 = vmatprep.mubr.msk.f32.mxu1 %vm5878_vm6, %v39199_v31  ;;  %v39207_v31 = vld [vmem:[#allocation112_spill] sm:$0xff] }
 0x7ac   :  { %25298 = vmatmul.mubr.msk.f32.gmra.mrb[80].mxu0 %vm5878_vm6, %v39200_v10 }
 0x7ad   :  { %25300 = vmatprep.mubr.msk.f32.mxu0 %vm5878_vm6, %v39201_v24  ;;  %26155 = vmatmul.mubr.msk.f32.gmra.mrb[18].mxu1 %vm5878_vm6, %v39202_v18  ;;  %v39210_v18 = vld [vmem:[#allocation113_spill] sm:$0xff] }
 0x7ae   :  { %26157 = vmatprep.mubr.msk.f32.mxu1 %vm5878_vm6, %v39203_v14 }
 0x7b0   :  { %25301 = vmatmul.mubr.msk.f32.gmra.mrb[82].mxu0 %vm5878_vm6, %v39204_v19 }
 0x7b1   :  { %25303 = vmatprep.mubr.msk.f32.mxu0 %vm5878_vm6, %v39205_v5  ;;  %26158 = vmatmul.mubr.msk.f32.gmra.mrb[20].mxu1 %vm5878_vm6, %v39206_v34 }
 0x7b2   :  { %26160 = vmatprep.mubr.msk.f32.mxu1 %vm5878_vm6, %v39207_v31 }
 0x7b4   :  { %25304 = vmatmul.mubr.msk.f32.gmra.mrb[84].mxu0 %vm5878_vm6, %v39208_v0 }
 0x7b5   :  { %25306 = vmatprep.mubr.msk.f32.mxu0 %vm5878_vm6, %v39209_v35  ;;  %26161 = vmatmul.mubr.msk.f32.gmra.mrb[22].mxu1 %vm5878_vm6, %v39210_v18  ;;  %v39225_v18 = vld [vmem:[#allocation35_spill] sm:$0xff] }
 0x7b6   :  { %26163 = vmatprep.mubr.msk.f32.mxu1 %vm5878_vm6, %v39211_v45  ;;  %v39220_v45 = vld [vmem:[#allocation75_spill] sm:$0xff] }
 0x7b8   :  { %25307 = vmatmul.mubr.msk.f32.gmra.mrb[86].mxu0 %vm5878_vm6, %v39212_v1  ;;  %v39221_v1 = vld [vmem:[#allocation33_spill] sm:$0xff] }
 0x7b9   :  { %25309 = vmatprep.mubr.msk.f32.mxu0 %vm5878_vm6, %v39213_v11  ;;  %26164 = vmatmul.mubr.msk.f32.gmra.mrb[24].mxu1 %vm5878_vm6, %v39214_v43  ;;  %v39222_v43 = vld [vmem:[#allocation34_spill] sm:$0xff] }
 0x7ba   :  { %26166 = vmatprep.mubr.msk.f32.mxu1 %vm5878_vm6, %v39215_v51  ;;  %v20879_v51 = vld [vmem:[%s38225_s3 + $0x118] sm:$0x3] }
 0x7bc   :  { %25310 = vmatmul.mubr.msk.f32.gmra.mrb[88].mxu0 %vm5878_vm6, %v39218_v56 }
 0x7bd   :  { %25312 = vmatprep.mubr.msk.f32.mxu0 %vm5878_vm6, %v39219_v30  ;;  %26167 = vmatmul.mubr.msk.f32.gmra.mrb[26].mxu1 %vm5878_vm6, %v35823_v42  ;;  %v35845_v42 = vpack.c.bf16 %v20879_v51, %v20878_v37  ;;  %v39227_v51 = vld [vmem:[#allocation37_spill] sm:$0xff]  ;;  %v39228_v37 = vld [vmem:[#allocation42_spill] sm:$0xff] }
 0x7be   :  { %26173 = vmatprep.mubr.msk.f32.mxu1 %vm5878_vm6, %v39220_v45  ;;  %v39224_v45 = vld [vmem:[#allocation117_spill] sm:$0xff] }
 0x7bf   :  { %39223 = vst [vmem:[#allocation28_spill] sm:$0xff] %v35845_v42 }
 0x7c0   :  { %25313 = vmatmul.mubr.msk.f32.gmra.mrb[90].mxu0 %vm5878_vm6, %v39221_v1 }
 0x7c1   :  { %25315 = vmatprep.mubr.msk.f32.mxu0 %vm5878_vm6, %v39222_v43  ;;  %26174 = vmatmul.mubr.msk.f32.vlgmr.msra.gmra.mrb[28].mxu1 %vm5878_vm6, %v39197_v60  ;;  %v39235_v60 = vld [vmem:[#allocation41_spill] sm:$0xff] }
 0x7c2   :  { %27441 = vmatpush3.bf16.msk.msra.mxu1 %vm31375_vm5, %v39224_v45  ;;  %26176 = vmatprep.mubr.msk.f32.mxu1 %vm5878_vm6, %v39200_v10  ;;  %v39229_v45 = vld [vmem:[#allocation43_spill] sm:$0xff] }
 0x7c3   :  { %27444 = vmatprep.subr.msk.bf16.mxu1 %vm31375_vm5, %v35845_v42  ;;  %v39231_v42 = vld [vmem:[#allocation29_spill] sm:$0xff] }
 0x7c4   :  { %25316 = vmatmul.mubr.msk.f32.gmra.mrb[92].mxu0 %vm5878_vm6, %v39225_v18 }
 0x7c5   :  { %25318 = vmatprep.mubr.msk.f32.mxu0 %vm5878_vm6, %v39226_v44  ;;  %26177 = vmatmul.mubr.msk.f32.gmra.mrb[30].mxu1 %vm5878_vm6, %v39201_v24 }
 0x7c6   :  { %26179 = vmatprep.mubr.msk.f32.mxu1 %vm5878_vm6, %v39204_v19 }
 0x7c8   :  { %25319 = vmatmul.mubr.msk.f32.gmra.mrb[94].mxu0 %vm5878_vm6, %v39227_v51  ;;  %v39234_v51 = vld [vmem:[#allocation56_spill] sm:$0xff] }
 0x7c9   :  { %25321 = vmatprep.mubr.msk.f32.mxu0 %vm5878_vm6, %v39228_v37  ;;  %26180 = vmatmul.mubr.msk.f32.gmra.mrb[32].mxu1 %vm5878_vm6, %v39205_v5 }
 0x7ca   :  { %26182 = vmatprep.mubr.msk.f32.mxu1 %vm5878_vm6, %v39208_v0 }
 0x7cc   :  { %25322 = vmatmul.mubr.msk.f32.gmra.mrb[96].mxu0 %vm5878_vm6, %v39229_v45 }
 0x7cd   :  { %25324 = vmatprep.mubr.msk.f32.mxu0 %vm5878_vm6, %v39230_v63  ;;  %26183 = vmatmul.mubr.msk.f32.gmra.mrb[34].mxu1 %vm5878_vm6, %v39209_v35 }
 0x7ce   :  { %26185 = vmatprep.mubr.msk.f32.mxu1 %vm5878_vm6, %v39231_v42  ;;  %v39232_v42 = vld [vmem:[#allocation54_spill] sm:$0xff] }
 0x7d0   :  { %25325 = vmatmul.mubr.msk.f32.gmra.mrb[98].mxu0 %vm5878_vm6, %v33483_v16 }
 0x7d1   :  { %25327 = vmatprep.mubr.msk.f32.mxu0 %vm5878_vm6, %v33486_v12  ;;  %26186 = vmatmul.mubr.msk.f32.gmra.mrb[36].mxu1 %vm5878_vm6, %v39213_v11  ;;  %v39233_v11 = vld [vmem:[#allocation55_spill] sm:$0xff] }
 0x7d2   :  { %26188 = vmatprep.mubr.msk.f32.mxu1 %vm5878_vm6, %v39218_v56 }
 0x7d4   :  { %25328 = vmatmul.mubr.msk.f32.gmra.mrb[100].mxu0 %vm5878_vm6, %v38832_v22 }
 0x7d5   :  { %25330 = vmatprep.mubr.msk.f32.mxu0 %vm5878_vm6, %v38833_v20  ;;  %26189 = vmatmul.mubr.msk.f32.gmra.mrb[38].mxu1 %vm5878_vm6, %v39219_v30 }
 0x7d6   :  { %26191 = vmatprep.mubr.msk.f32.mxu1 %vm5878_vm6, %v39221_v1 }
 0x7d8   :  { %25331 = vmatmul.mubr.msk.f32.gmra.mrb[102].mxu0 %vm5878_vm6, %v39153_v59 }
 0x7d9   :  { %25333 = vmatprep.mubr.msk.f32.mxu0 %vm5878_vm6, %v39232_v42  ;;  %26192 = vmatmul.mubr.msk.f32.gmra.mrb[40].mxu1 %vm5878_vm6, %v39222_v43 }
 0x7da   :  { %26194 = vmatprep.mubr.msk.f32.mxu1 %vm5878_vm6, %v39225_v18 }
 0x7dc   :  { %25334 = vmatmul.mubr.msk.f32.gmra.mrb[104].mxu0 %vm5878_vm6, %v39233_v11 }
 0x7dd   :  { %25336 = vmatprep.mubr.msk.f32.mxu0 %vm5878_vm6, %v39234_v51  ;;  %26195 = vmatmul.mubr.msk.f32.gmra.mrb[42].mxu1 %vm5878_vm6, %v39226_v44 }
 0x7de   :  { %26197 = vmatprep.mubr.msk.f32.mxu1 %vm5878_vm6, %v39235_v60  ;;  %v39236_v60 = vld [vmem:[#allocation53_spill] sm:$0xff] }
 0x7e0   :  { %25337 = vmatmul.mubr.msk.f32.gmra.mrb[106].mxu0 %vm5878_vm6, %v39100_v27 }
 0x7e1   :  { %25339 = vmatprep.mubr.msk.f32.mxu0 %vm5878_vm6, %v39136_v28  ;;  %26198 = vmatmul.mubr.msk.f32.gmra.mrb[44].mxu1 %vm5878_vm6, %v39228_v37 }
 0x7e2   :  { %26200 = vmatprep.mubr.msk.f32.mxu1 %vm5878_vm6, %v39229_v45 }
 0x7e4   :  { %25340 = vmatmul.mubr.msk.f32.gmra.mrb[108].mxu0 %vm5878_vm6, %v39138_v50 }
 0x7e5   :  { %25342 = vmatprep.mubr.msk.f32.mxu0 %vm5878_vm6, %v38856_v25  ;;  %26201 = vmatmul.mubr.msk.f32.gmra.mrb[46].mxu1 %vm5878_vm6, %v39230_v63 }
 0x7e6   :  { %26203 = vmatprep.mubr.msk.f32.mxu1 %vm5878_vm6, %v33483_v16 }
 0x7e8   :  { %25343 = vmatmul.mubr.msk.f32.gmra.mrb[110].mxu0 %vm5878_vm6, %v39042_v8 }
 0x7e9   :  { %25345 = vmatprep.mubr.msk.f32.mxu0 %vm5878_vm6, %v39146_v3  ;;  %26204 = vmatmul.mubr.msk.f32.gmra.mrb[48].mxu1 %vm5878_vm6, %v33486_v12 }
 0x7ea   :  { %26206 = vmatprep.mubr.msk.f32.mxu1 %vm5878_vm6, %v38832_v22 }
 0x7ec   :  { %25346 = vmatmul.mubr.msk.f32.gmra.mrb[112].mxu0 %vm5878_vm6, %v39147_v17 }
 0x7ed   :  { %25348 = vmatprep.mubr.msk.f32.mxu0 %vm5878_vm6, %v38866_v23  ;;  %26207 = vmatmul.mubr.msk.f32.gmra.mrb[50].mxu1 %vm5878_vm6, %v38833_v20 }
 0x7ee   :  { %26209 = vmatprep.mubr.msk.f32.mxu1 %vm5878_vm6, %v39236_v60  ;;  %v24599_v60 = vpop.f32.mrb[16].mxu0 }
 0x7ef   :  { %v35960_v8 = vadd.f32 %v35421_v9, %v24599_v60  ;;  %v39237_v60 = vld [vmem:[#allocation65_spill] sm:$0xff] }
 0x7f0   :  { %25349 = vmatmul.mubr.msk.f32.gmra.mrb[114].mxu0 %vm5878_vm6, %v38867_v52 }
 0x7f1   :  { %25351 = vmatprep.mubr.msk.f32.mxu0 %vm5878_vm6, %v38868_v36  ;;  %26210 = vmatmul.mubr.msk.f32.gmra.mrb[52].mxu1 %vm5878_vm6, %v39232_v42  ;;  %v5060_v42 = vpop.f32.mrb[17].mxu0 }
 0x7f2   :  { %26212 = vmatprep.mubr.msk.f32.mxu1 %vm5878_vm6, %v39233_v11  ;;  %v35965_v11 = vadd.f32 %v35421_v9, %v5060_v42  ;;  %v24602_v59 = vpop.f32.mrb[18].mxu0 }
 0x7f4   :  { %25352 = vmatmul.mubr.msk.f32.gmra.mrb[116].mxu0 %vm5878_vm6, %v38931_v38 }
 0x7f5   :  { %25354 = vmatprep.mubr.msk.f32.mxu0 %vm5878_vm6, %v38935_v32  ;;  %26213 = vmatmul.mubr.msk.f32.gmra.mrb[54].mxu1 %vm5878_vm6, %v39234_v51  ;;  %v5070_v51 = vpop.f32.mrb[19].mxu0 }
 0x7f6   :  { %26215 = vmatprep.mubr.msk.f32.mxu1 %vm5878_vm6, %v39100_v27  ;;  %v35972_v27 = vadd.f32 %v35421_v9, %v24602_v59  ;;  %v35979_v42 = vadd.f32 %v35421_v9, %v5070_v51 }
 0x7f8   :  { %25355 = vmatmul.mubr.msk.f32.gmra.mrb[118].mxu0 %vm5878_vm6, %v39179_v54  ;;  %v24605_v54 = vpop.f32.mrb[20].mxu0 }
 0x7f9   :  { %25357 = vmatprep.mubr.msk.f32.mxu0 %vm5878_vm6, %v39161_v55  ;;  %26216 = vmatmul.mubr.msk.f32.gmra.mrb[56].mxu1 %vm5878_vm6, %v39136_v28  ;;  %v35982_v20 = vadd.f32 %v35421_v9, %v24605_v54  ;;  %v5080_v22 = vpop.f32.mrb[21].mxu0 }
 0x7fa   :  { %26218 = vmatprep.mubr.msk.f32.mxu1 %vm5878_vm6, %v39138_v50  ;;  %v35989_v28 = vadd.f32 %v35421_v9, %v5080_v22  ;;  %v24608_v50 = vpop.f32.mrb[22].mxu0 }
 0x7fb   :  { %v35996_v54 = vadd.f32 %v35421_v9, %v24608_v50  ;;  %v5090_v51 = vpop.f32.mrb[23].mxu0 }
 0x7fc   :  { %25358 = vmatmul.mubr.msk.f32.gmra.mrb[120].mxu0 %vm5878_vm6, %v39162_v33  ;;  %v36003_v22 = vadd.f32 %v35421_v9, %v5090_v51  ;;  %v24611_v37 = vpop.f32.mrb[24].mxu0 }
 0x7fd   :  { %25360 = vmatprep.mubr.msk.f32.mxu0 %vm5878_vm6, %v39079_v39  ;;  %26219 = vmatmul.mubr.msk.f32.gmra.mrb[58].mxu1 %vm5878_vm6, %v38856_v25  ;;  %v36006_v12 = vadd.f32 %v35421_v9, %v24611_v37  ;;  %v5100_v16 = vpop.f32.mrb[25].mxu0 }
 0x7fe   :  { %26221 = vmatprep.mubr.msk.f32.mxu1 %vm5878_vm6, %v39237_v60  ;;  %v36013_v25 = vadd.f32 %v35421_v9, %v5100_v16  ;;  %v24614_v60 = vpop.f32.mrb[26].mxu0 }
 0x7ff   :  { %v36020_v37 = vadd.f32 %v35421_v9, %v24614_v60  ;;  %v5110_v51 = vpop.f32.mrb[27].mxu0 }
 0x800   :  { %25361 = vmatmul.mubr.msk.f32.gmra.mrb[122].mxu0 %vm5878_vm6, %v39080_v48  ;;  %v36027_v16 = vadd.f32 %v35421_v9, %v5110_v51  ;;  %v24617_v59 = vpop.f32.mrb[28].mxu0 }
 0x801   :  { %25363 = vmatprep.mubr.msk.f32.mxu0 %vm5878_vm6, %v39083_v41  ;;  %26222 = vmatmul.mubr.msk.f32.gmra.mrb[60].mxu1 %vm5878_vm6, %v39146_v3  ;;  %v36030_v63 = vadd.f32 %v35421_v9, %v24617_v59  ;;  %v5120_v45 = vpop.f32.mrb[29].mxu0 }
 0x802   :  { %26224 = vmatprep.mubr.msk.f32.mxu1 %vm5878_vm6, %v39147_v17  ;;  %v36037_v3 = vadd.f32 %v35421_v9, %v5120_v45  ;;  %v24620_v17 = vpop.f32.mrb[30].mxu0 }
 0x803   :  { %v36044_v59 = vadd.f32 %v35421_v9, %v24620_v17  ;;  %v5130_v51 = vpop.f32.mrb[31].mxu0 }
 0x804   :  { %25364 = vmatmul.mubr.msk.f32.gmra.mrb[124].mxu0 %vm5878_vm6, %v39084_v61  ;;  %v36051_v45 = vadd.f32 %v35421_v9, %v5130_v51  ;;  %v24623_v50 = vpop.f32.mrb[32].mxu0 }
 0x805   :  { %25366 = vmatprep.mubr.msk.f32.mxu0 %vm5878_vm6, %v39087_v26  ;;  %26225 = vmatmul.mubr.msk.f32.gmra.mrb[62].mxu1 %vm5878_vm6, %v38866_v23  ;;  %v36054_v44 = vadd.f32 %v35421_v9, %v24623_v50  ;;  %v5140_v18 = vpop.f32.mrb[33].mxu0 }
 0x806   :  { %26227 = vmatprep.mubr.msk.f32.mxu1 %vm5878_vm6, %v38867_v52  ;;  %v36061_v23 = vadd.f32 %v35421_v9, %v5140_v18  ;;  %v24626_v52 = vpop.f32.mrb[34].mxu0 }
 0x807   :  { %v36068_v50 = vadd.f32 %v35421_v9, %v24626_v52  ;;  %v5150_v51 = vpop.f32.mrb[35].mxu0 }
 0x808   :  { %25367 = vmatmul.mubr.msk.f32.gmra.mrb[126].mxu0 %vm5878_vm6, %v39195_v57  ;;  %v36075_v18 = vadd.f32 %v35421_v9, %v5150_v51  ;;  %v24629_v60 = vpop.f32.mrb[36].mxu0 }
 0x809   :  { %25373 = vmatprep.mubr.msk.f32.mxu0 %vm5878_vm6, %v39109_v13  ;;  %26228 = vmatmul.mubr.msk.f32.gmra.mrb[0].mxu1 %vm5878_vm6, %v38868_v36  ;;  %v36078_v57 = vadd.f32 %v35421_v9, %v24629_v60  ;;  %v5160_v13 = vpop.f32.mrb[37].mxu0 }
 0x80a   :  { %26230 = vmatprep.mubr.msk.f32.mxu1 %vm5878_vm6, %v38931_v38  ;;  %v36085_v36 = vadd.f32 %v35421_v9, %v5160_v13  ;;  %v24632_v38 = vpop.f32.mrb[38].mxu0 }
 0x80b   :  { %v36092_v60 = vadd.f32 %v35421_v9, %v24632_v38  ;;  %v5170_v51 = vpop.f32.mrb[39].mxu0 }
 0x80c   :  { %25374 = vmatmul.mubr.msk.f32.vlgmr.msra.gmra.mrb[64].mxu0 %vm5878_vm6, %v39111_v58  ;;  %v36099_v13 = vadd.f32 %v35421_v9, %v5170_v51  ;;  %v24635_v52 = vpop.f32.mrb[40].mxu0 }
 0x80d   :  { %25376 = vmatprep.mubr.msk.f32.mxu0 %vm5878_vm6, %v33176_v40  ;;  %26231 = vmatmul.mubr.msk.f32.gmra.mrb[2].mxu1 %vm5878_vm6, %v38935_v32  ;;  %v5186_v17 = vadd.f32 %v35421_v9, %v24635_v52  ;;  %v5180_v40 = vpop.f32.mrb[41].mxu0 }
 0x80e   :  { %26233 = vmatprep.mubr.msk.f32.mxu1 %vm5878_vm6, %v39156_v62  ;;  %v5181_v32 = vadd.f32 %v35421_v9, %v5180_v40  ;;  %v24638_v43 = vpop.f32.mrb[42].mxu0 }
 0x80f   :  { %v5196_v51 = vadd.f32 %v35421_v9, %v24638_v43  ;;  %v5190_v58 = vpop.f32.mrb[43].mxu0 }
 0x810   :  { %25377 = vmatmul.mubr.msk.f32.gmra.mrb[66].mxu0 %vm5878_vm6, %v33179_v4  ;;  %v5575_v52 = vmax.f32 %v5181_v32, %v5186_v17  ;;  %v5191_v4 = vadd.f32 %v35421_v9, %v5190_v58  ;;  %v24641_v62 = vpop.f32.mrb[44].mxu0 }
 0x811   :  { %25379 = vmatprep.mubr.msk.f32.mxu0 %vm5878_vm6, %v39177_v47  ;;  %26234 = vmatmul.mubr.msk.f32.gmra.mrb[4].mxu1 %vm5878_vm6, %v39161_v55  ;;  %v5206_v38 = vadd.f32 %v35421_v9, %v24641_v62  ;;  %v5200_v40 = vpop.f32.mrb[45].mxu0  ;;  %v39238_v47 = vmax.f32 %v35965_v11, %v35960_v8  ;;  %v39240_v8 = vmax.f32 %v35979_v42, %v35972_v27 }
 0x812   :  { %26236 = vmatprep.mubr.msk.f32.mxu1 %vm5878_vm6, %v39162_v33  ;;  %v5576_v43 = vmax.f32 %v5191_v4, %v5196_v51  ;;  %v5201_v1 = vadd.f32 %v35421_v9, %v5200_v40  ;;  %v24644_v30 = vpop.f32.mrb[46].mxu0 }
 0x813   :  { %v36121_v55 = vmax.f32 %v39238_v47, %v5575_v52  ;;  %v5216_v32 = vadd.f32 %v35421_v9, %v24644_v30  ;;  %v5210_v62 = vpop.f32.mrb[47].mxu0  ;;  %v39242_v52 = vld [vmem:[#allocation92_spill] sm:$0xff]  ;;  %v39243_v30 = vmax.f32 %v35989_v28, %v35982_v20  ;;  %v39245_v20 = vmax.f32 %v36003_v22, %v35996_v54 }
 0x814   :  { %25380 = vmatmul.mubr.msk.f32.gmra.mrb[68].mxu0 %vm5878_vm6, %v39178_v6  ;;  %v36134_v11 = vmax.f32 %v39240_v8, %v5576_v43  ;;  %v5577_v6 = vmax.f32 %v5201_v1, %v5206_v38  ;;  %v5211_v17 = vadd.f32 %v35421_v9, %v5210_v62  ;;  %v24647_v58 = vpop.f32.mrb[48].mxu0  ;;  %v39247_v8 = vmax.f32 %v36013_v25, %v36006_v12 }
 0x815   :  { %39239 = vst [vmem:[#allocation87_spill] sm:$0xff] %v36121_v55  ;;  %25382 = vmatprep.mubr.msk.f32.mxu0 %vm5878_vm6, %v39184_v2  ;;  %26237 = vmatmul.mubr.msk.f32.gmra.mrb[6].mxu1 %vm5878_vm6, %v39079_v39  ;;  %v5226_v2 = vadd.f32 %v35421_v9, %v24647_v58  ;;  %v5220_v51 = vpop.f32.mrb[49].mxu0  ;;  %v39250_v12 = vmax.f32 %v36027_v16, %v36020_v37  ;;  %v39318_v55 = vld [vmem:[#allocation72_spill] sm:$0xff] }
 0x816   :  { %26239 = vmatprep.mubr.msk.f32.mxu1 %vm5878_vm6, %v39080_v48  ;;  %39241 = vst [vmem:[#allocation63_spill] sm:$0xff] %v36134_v11  ;;  %v36143_v4 = vmax.f32 %v39243_v30, %v5577_v6  ;;  %v5578_v40 = vmax.f32 %v5211_v17, %v5216_v32  ;;  %v5221_v27 = vadd.f32 %v35421_v9, %v5220_v51  ;;  %v24650_v42 = vpop.f32.mrb[50].mxu0  ;;  %v39249_v51 = vld [vmem:[#allocation88_spill] sm:$0xff]  ;;  %v39317_v11 = vld [vmem:[#allocation71_spill] sm:$0xff] }
 0x817   :  { %v5236_v1 = vadd.f32 %v35421_v9, %v24650_v42  ;;  %v5230_v38 = vpop.f32.mrb[51].mxu0 }
 0x818   :  { %25383 = vmatmul.mubr.msk.f32.gmra.mrb[70].mxu0 %vm5878_vm6, %v39242_v52  ;;  %39244 = vst [vmem:[#allocation5_spill] sm:$0xff] %v36143_v4  ;;  %v36156_v28 = vmax.f32 %v39245_v20, %v5578_v40  ;;  %v5579_v47 = vmax.f32 %v5221_v27, %v5226_v2  ;;  %v5231_v43 = vadd.f32 %v35421_v9, %v5230_v38  ;;  %v24653_v32 = vpop.f32.mrb[52].mxu0  ;;  %v39254_v38 = vld [vmem:[#allocation110_spill] sm:$0xff] }
 0x819   :  { %25385 = vmatprep.mubr.msk.f32.mxu0 %vm5878_vm6, %v39188_v46  ;;  %26240 = vmatmul.mubr.msk.f32.gmra.mrb[8].mxu1 %vm5878_vm6, %v39083_v41  ;;  %v5246_v46 = vadd.f32 %v35421_v9, %v24653_v32  ;;  %v5240_v62 = vpop.f32.mrb[53].mxu0  ;;  %v39252_v27 = vmax.f32 %v36037_v3, %v36030_v63  ;;  %v39256_v63 = vmax.f32 %v36051_v45, %v36044_v59  ;;  %v39316_v4 = vld [vmem:[#allocation70_spill] sm:$0xff] }
 0x81a   :  { %26242 = vmatprep.mubr.msk.f32.mxu1 %vm5878_vm6, %v39084_v61  ;;  %39246 = vst [vmem:[#allocation22_spill] sm:$0xff] %v36156_v28  ;;  %v36165_v6 = vmax.f32 %v39247_v8, %v5579_v47  ;;  %v5580_v17 = vmax.f32 %v5231_v43, %v5236_v1  ;;  %v5241_v54 = vadd.f32 %v35421_v9, %v5240_v62  ;;  %v24656_v22 = vpop.f32.mrb[54].mxu0  ;;  %v39255_v43 = vld [vmem:[#allocation12_spill] sm:$0xff]  ;;  %v39315_v28 = vld [vmem:[#allocation69_spill] sm:$0xff] }
 0x81b   :  { %v5256_v58 = vadd.f32 %v35421_v9, %v24656_v22  ;;  %v5250_v2 = vpop.f32.mrb[55].mxu0  ;;  %v39258_v8 = vmax.f32 %v36061_v23, %v36054_v44  ;;  %v39260_v22 = vld [vmem:[#allocation77_spill] sm:$0xff]  ;;  %v39261_v23 = vmax.f32 %v36075_v18, %v36068_v50 }
 0x81c   :  { %25386 = vmatmul.mubr.msk.f32.gmra.mrb[72].mxu0 %vm5878_vm6, %v39189_v29  ;;  %39248 = vst [vmem:[#allocation89_spill] sm:$0xff] %v36165_v6  ;;  %v36178_v25 = vmax.f32 %v39250_v12, %v5580_v17  ;;  %v5581_v29 = vmax.f32 %v5241_v54, %v5246_v46  ;;  %v5251_v52 = vadd.f32 %v35421_v9, %v5250_v2  ;;  %v24659_v30 = vpop.f32.mrb[56].mxu0  ;;  %v39268_v18 = vld [vmem:[#allocation101_spill] sm:$0xff]  ;;  %v39314_v6 = vld [vmem:[#allocation68_spill] sm:$0xff] }
 0x81d   :  { %25388 = vmatprep.mubr.msk.f32.mxu0 %vm5878_vm6, %v39191_v49  ;;  %26243 = vmatmul.mubr.msk.f32.gmra.mrb[10].mxu1 %vm5878_vm6, %v39087_v26  ;;  %v5266_v49 = vadd.f32 %v35421_v9, %v24659_v30  ;;  %v5260_v40 = vpop.f32.mrb[57].mxu0 }
 0x81e   :  { %26245 = vmatprep.mubr.msk.f32.mxu1 %vm5878_vm6, %v39249_v51  ;;  %39251 = vst [vmem:[#allocation90_spill] sm:$0xff] %v36178_v25  ;;  %v36187_v42 = vmax.f32 %v39252_v27, %v5581_v29  ;;  %v5582_v1 = vmax.f32 %v5251_v52, %v5256_v58  ;;  %v5261_v37 = vadd.f32 %v35421_v9, %v5260_v40  ;;  %v24662_v16 = vpop.f32.mrb[58].mxu0  ;;  %v39263_v29 = vld [vmem:[#allocation100_spill] sm:$0xff]  ;;  %v39274_v27 = vld [vmem:[#allocation81_spill] sm:$0xff]  ;;  %v39313_v25 = vld [vmem:[#allocation67_spill] sm:$0xff] }
 0x81f   :  { %v5276_v20 = vadd.f32 %v35421_v9, %v24662_v16  ;;  %v5270_v47 = vpop.f32.mrb[59].mxu0  ;;  %v39320_v51 = vld [vmem:[#allocation76_spill] sm:$0xff] }
 0x820   :  { %25389 = vmatmul.mubr.msk.f32.gmra.mrb[74].mxu0 %vm5878_vm6, %v39192_v53  ;;  %39253 = vst [vmem:[#allocation13_spill] sm:$0xff] %v36187_v42  ;;  %v36200_v3 = vmax.f32 %v39256_v63, %v5582_v1  ;;  %v5583_v53 = vmax.f32 %v5261_v37, %v5266_v49  ;;  %v5271_v32 = vadd.f32 %v35421_v9, %v5270_v47  ;;  %v24665_v46 = vpop.f32.mrb[60].mxu0  ;;  %v38568_v49 = vmax.f32 %v39268_v18, 0.0  ;;  %v39276_v37 = vld [vmem:[#allocation93_spill] sm:$0xff]  ;;  %v39278_v47 = vld [vmem:[#allocation82_spill] sm:$0xff] }
 0x821   :  { %25391 = vmatprep.mubr.msk.f32.mxu0 %vm5878_vm6, %v39193_v15  ;;  %26246 = vmatmul.mubr.msk.f32.gmra.mrb[12].mxu1 %vm5878_vm6, %v39254_v38  ;;  %v5286_v15 = vadd.f32 %v35421_v9, %v24665_v46  ;;  %v5280_v62 = vpop.f32.mrb[61].mxu0  ;;  %v36268_v1 = vmax.f32 %v39274_v27, 0.0  ;;  %v36271_v16 = vmax.f32 %v39276_v37, 0.0  ;;  %v36282_v63 = vmax.f32 %v39278_v47, 0.0  ;;  %v39282_v46 = vld [vmem:[#allocation108_spill] sm:$0xff]  ;;  %v39297_v27 = vld [vmem:[#allocation45_spill] sm:$0xff] }
 0x822   :  { %26248 = vmatprep.mubr.msk.f32.mxu1 %vm5878_vm6, %v39255_v43  ;;  %39257 = vst [vmem:[#allocation11_spill] sm:$0xff] %v36200_v3  ;;  %v36209_v17 = vmax.f32 %v39258_v8, %v5583_v53  ;;  %v5584_v54 = vmax.f32 %v5271_v32, %v5276_v20  ;;  %v5281_v59 = vadd.f32 %v35421_v9, %v5280_v62  ;;  %v24668_v45 = vpop.f32.mrb[62].mxu0  ;;  %v39277_v20 = vld [vmem:[#allocation107_spill] sm:$0xff]  ;;  %v39285_v8 = vld [vmem:[#allocation32_spill] sm:$0xff]  ;;  %v39298_v37 = vld [vmem:[#allocation30_spill] sm:$0xff] }
 0x823   :  { %v5296_v58 = vadd.f32 %v35421_v9, %v24668_v45  ;;  %v5290_v2 = vpop.f32.mrb[63].mxu0  ;;  %39275 = vst [vmem:[#allocation97_spill] sm:$0xff] %v36268_v1  ;;  %39279 = vst [vmem:[#allocation98_spill] sm:$0xff] %v36282_v63  ;;  %v39280_v53 = vld [vmem:[#allocation83_spill] sm:$0xff]  ;;  %v39288_v45 = vld [vmem:[#allocation34_spill] sm:$0xff] }
 0x824   :  { %25392 = vmatmul.mubr.msk.f32.gmra.mrb[76].mxu0 %vm5878_vm6, %v39194_v7  ;;  %39259 = vst [vmem:[#allocation91_spill] sm:$0xff] %v36209_v17  ;;  %v36222_v44 = vmax.f32 %v39261_v23, %v5584_v54  ;;  %v5585_v7 = vmax.f32 %v5281_v59, %v5286_v15  ;;  %v5291_v12 = vadd.f32 %v35421_v9, %v5290_v2  ;;  %v36285_v32 = vmax.f32 %v39280_v53, 0.0  ;;  %v39283_v15 = vld [vmem:[#allocation18_spill] sm:$0xff]  ;;  %v39286_v54 = vld [vmem:[#allocation33_spill] sm:$0xff]  ;;  %v39287_v59 = vld [vmem:[#allocation23_spill] sm:$0xff] }
 0x825   :  { %25394 = vmatprep.mubr.msk.f32.mxu0 %vm5878_vm6, %v39196_v21  ;;  %26249 = vmatmul.mubr.msk.f32.gmra.mrb[14].mxu1 %vm5878_vm6, %v39260_v22  ;;  %v39264_v21 = vmax.f32 %v36085_v36, %v36078_v57  ;;  %v39266_v9 = vmax.f32 %v36099_v13, %v36092_v60  ;;  %v39269_v36 = vld [vmem:[#allocation113_spill] sm:$0xff]  ;;  %v39270_v57 = vld [vmem:[#allocation52_spill] sm:$0xff]  ;;  %v39272_v60 = vld [vmem:[#allocation14_spill] sm:$0xff]  ;;  %v36296_v62 = vmax.f32 %v39283_v15, 0.0 }
 0x826   :  { %26251 = vmatprep.mubr.msk.f32.mxu1 %vm5878_vm6, %v39203_v14  ;;  %39262 = vst [vmem:[#allocation19_spill] sm:$0xff] %v36222_v44  ;;  %v5586_v30 = vmax.f32 %v5291_v12, %v5296_v58  ;;  %v36254_v40 = vmax.f32 %v39270_v57, 0.0  ;;  %v36257_v13 = vmax.f32 %v39272_v60, 0.0  ;;  %39281 = vst [vmem:[#allocation99_spill] sm:$0xff] %v36285_v32  ;;  %v39289_v58 = vld [vmem:[#allocation35_spill] sm:$0xff]  ;;  %v39296_v60 = vld [vmem:[#allocation44_spill] sm:$0xff] }
 0x827   :  { %v36230_v52 = vmax.f32 %v39264_v21, %v5585_v7  ;;  %39284 = vst [vmem:[#allocation24_spill] sm:$0xff] %v36296_v62  ;;  %v20945_v2 = vld [vmem:[%s38225_s3 + $0x120] sm:$0xff]  ;;  %v20946_v23 = vld [vmem:[%s38225_s3 + $0x128] sm:$0x3]  ;;  %v39311_v3 = vld [vmem:[#allocation61_spill] sm:$0xff] }
 0x828   :  { %25395 = vmatmul.mubr.msk.f32.gmra.mrb[78].mxu0 %vm5878_vm6, %v39263_v29  ;;  %v36241_v50 = vmax.f32 %v39266_v9, %v5586_v30  ;;  %39271 = vst [vmem:[#allocation95_spill] sm:$0xff] %v36254_v40  ;;  %39273 = vst [vmem:[#allocation96_spill] sm:$0xff] %v36257_v13  ;;  %v39290_v7 = vld [vmem:[#allocation28_spill] sm:$0xff]  ;;  %v36323_v29 = vpack.c.bf16 %v20946_v23, %v20945_v2  ;;  %v39293_v30 = vld [vmem:[#allocation37_spill] sm:$0xff] }
 0x829   :  { %39265 = vst [vmem:[#allocation20_spill] sm:$0xff] %v36230_v52  ;;  %25397 = vmatprep.mubr.msk.f32.mxu0 %vm5878_vm6, %v39200_v10  ;;  %26252 = vmatmul.mubr.msk.f32.gmra.mrb[16].mxu1 %vm5878_vm6, %v39206_v34  ;;  %v39292_v21 = vld [vmem:[#allocation36_spill] sm:$0xff]  ;;  %v39294_v9 = vld [vmem:[#allocation38_spill] sm:$0xff]  ;;  %v39295_v57 = vld [vmem:[#allocation43_spill] sm:$0xff] }
 0x82a   :  { %26254 = vmatprep.mubr.msk.f32.mxu1 %vm5878_vm6, %v39207_v31  ;;  %39267 = vst [vmem:[#allocation94_spill] sm:$0xff] %v36241_v50  ;;  %v39299_v47 = vld [vmem:[#allocation46_spill] sm:$0xff]  ;;  %v39301_v15 = vld [vmem:[#allocation47_spill] sm:$0xff]  ;;  %v39303_v2 = vld [vmem:[#allocation49_spill] sm:$0xff] }
 0x82b   :  { %v39300_v53 = vld [vmem:[#allocation42_spill] sm:$0xff]  ;;  %v39307_v50 = vld [vmem:[#allocation57_spill] sm:$0xff]  ;;  %v39309_v44 = vld [vmem:[#allocation59_spill] sm:$0xff] }
 0x82c   :  { %25398 = vmatmul.mubr.msk.f32.gmra.mrb[80].mxu0 %vm5878_vm6, %v39201_v24  ;;  %v39304_v23 = vld [vmem:[#allocation54_spill] sm:$0xff]  ;;  %v39310_v17 = vld [vmem:[#allocation60_spill] sm:$0xff]  ;;  %v39319_v18 = vld [vmem:[#allocation73_spill] sm:$0xff] }
 0x82d   :  { %25400 = vmatprep.mubr.msk.f32.mxu0 %vm5878_vm6, %v39204_v19  ;;  %26255 = vmatmul.mubr.msk.f32.gmra.mrb[18].mxu1 %vm5878_vm6, %v39269_v36  ;;  %v39308_v52 = vld [vmem:[#allocation58_spill] sm:$0xff]  ;;  %v39467_v12 = vld [vmem:[#allocation3_spill] sm:$0xff] }
 0x82e   :  { %26257 = vmatprep.mubr.msk.f32.mxu1 %vm5878_vm6, %v38568_v49  ;;  %v39306_v49 = vld [vmem:[#allocation56_spill] sm:$0xff]  ;;  %v39312_v42 = vld [vmem:[#allocation66_spill] sm:$0xff] }
 0x830   :  { %25401 = vmatmul.mubr.msk.f32.gmra.mrb[82].mxu0 %vm5878_vm6, %v39205_v5 }
 0x831   :  { %25403 = vmatprep.mubr.msk.f32.mxu0 %vm5878_vm6, %v39208_v0  ;;  %26258 = vmatmul.mubr.msk.f32.gmra.mrb[20].mxu1 %vm5878_vm6, %v36254_v40 }
 0x832   :  { %26260 = vmatprep.mubr.msk.f32.mxu1 %vm5878_vm6, %v36257_v13 }
 0x834   :  { %25404 = vmatmul.mubr.msk.f32.gmra.mrb[84].mxu0 %vm5878_vm6, %v39209_v35 }
 0x835   :  { %25406 = vmatprep.mubr.msk.f32.mxu0 %vm5878_vm6, %v39277_v20  ;;  %26261 = vmatmul.mubr.msk.f32.gmra.mrb[22].mxu1 %vm5878_vm6, %v36268_v1 }
 0x836   :  { %26263 = vmatprep.mubr.msk.f32.mxu1 %vm5878_vm6, %v36271_v16 }
 0x838   :  { %25407 = vmatmul.mubr.msk.f32.gmra.mrb[86].mxu0 %vm5878_vm6, %v39282_v46 }
 0x839   :  { %25409 = vmatprep.mubr.msk.f32.mxu0 %vm5878_vm6, %v39218_v56  ;;  %26264 = vmatmul.mubr.msk.f32.gmra.mrb[24].mxu1 %vm5878_vm6, %v36282_v63 }
 0x83a   :  { %26266 = vmatprep.mubr.msk.f32.mxu1 %vm5878_vm6, %v36285_v32 }
 0x83c   :  { %25410 = vmatmul.mubr.msk.f32.gmra.mrb[88].mxu0 %vm5878_vm6, %v39285_v8 }
 0x83d   :  { %25412 = vmatprep.mubr.msk.f32.mxu0 %vm5878_vm6, %v39286_v54  ;;  %26267 = vmatmul.mubr.msk.f32.gmra.mrb[26].mxu1 %vm5878_vm6, %v36296_v62 }
 0x83e   :  { %26273 = vmatprep.mubr.msk.f32.mxu1 %vm5878_vm6, %v39287_v59  ;;  %v39302_v59 = vld [vmem:[#allocation48_spill] sm:$0xff] }
 0x840   :  { %25413 = vmatmul.mubr.msk.f32.gmra.mrb[90].mxu0 %vm5878_vm6, %v39288_v45 }
 0x841   :  { %25415 = vmatprep.mubr.msk.f32.mxu0 %vm5878_vm6, %v39289_v58  ;;  %26274 = vmatmul.mubr.msk.f32.vlgmr.msra.gmra.mrb[28].mxu1 %vm5878_vm6, %v39200_v10 }
 0x842   :  { %27447 = vmatpush3.bf16.msk.msra.mxu1 %vm31375_vm5, %v39290_v7  ;;  %26276 = vmatprep.mubr.msk.f32.mxu1 %vm5878_vm6, %v39201_v24  ;;  %v39305_v7 = vld [vmem:[#allocation55_spill] sm:$0xff] }
 0x843   :  { %27450 = vmatprep.subr.msk.bf16.mxu1 %vm31375_vm5, %v36323_v29 }
 0x844   :  { %25416 = vmatmul.mubr.msk.f32.gmra.mrb[92].mxu0 %vm5878_vm6, %v39292_v21 }
 0x845   :  { %25418 = vmatprep.mubr.msk.f32.mxu0 %vm5878_vm6, %v39293_v30  ;;  %26277 = vmatmul.mubr.msk.f32.gmra.mrb[30].mxu1 %vm5878_vm6, %v39204_v19 }
 0x846   :  { %26279 = vmatprep.mubr.msk.f32.mxu1 %vm5878_vm6, %v39205_v5 }
 0x848   :  { %25419 = vmatmul.mubr.msk.f32.gmra.mrb[94].mxu0 %vm5878_vm6, %v39294_v9 }
 0x849   :  { %25421 = vmatprep.mubr.msk.f32.mxu0 %vm5878_vm6, %v39295_v57  ;;  %26280 = vmatmul.mubr.msk.f32.gmra.mrb[32].mxu1 %vm5878_vm6, %v39208_v0 }
 0x84a   :  { %26282 = vmatprep.mubr.msk.f32.mxu1 %vm5878_vm6, %v39209_v35 }
 0x84c   :  { %25422 = vmatmul.mubr.msk.f32.gmra.mrb[96].mxu0 %vm5878_vm6, %v39296_v60 }
 0x84d   :  { %25424 = vmatprep.mubr.msk.f32.mxu0 %vm5878_vm6, %v39297_v27  ;;  %26283 = vmatmul.mubr.msk.f32.gmra.mrb[34].mxu1 %vm5878_vm6, %v39277_v20 }
 0x84e   :  { %26285 = vmatprep.mubr.msk.f32.mxu1 %vm5878_vm6, %v39298_v37  ;;  %v39326_v37 = vld [vmem:[#allocation114_spill] sm:$0xff] }
 0x850   :  { %25425 = vmatmul.mubr.msk.f32.gmra.mrb[98].mxu0 %vm5878_vm6, %v39299_v47 }
 0x851   :  { %26286 = vmatmul.mubr.msk.f32.gmra.mrb[36].mxu1 %vm5878_vm6, %v39218_v56 }
 0x852   :  { %26288 = vmatprep.mubr.msk.f32.mxu1 %vm5878_vm6, %v39285_v8 }
 0x855   :  { %26289 = vmatmul.mubr.msk.f32.gmra.mrb[38].mxu1 %vm5878_vm6, %v39286_v54 }
 0x856   :  { %26291 = vmatprep.mubr.msk.f32.mxu1 %vm5878_vm6, %v39288_v45 }
 0x859   :  { %26292 = vmatmul.mubr.msk.f32.gmra.mrb[40].mxu1 %vm5878_vm6, %v39289_v58 }
 0x85a   :  { %26294 = vmatprep.mubr.msk.f32.mxu1 %vm5878_vm6, %v39292_v21 }
 0x85d   :  { %26295 = vmatmul.mubr.msk.f32.gmra.mrb[42].mxu1 %vm5878_vm6, %v39293_v30 }
 0x85e   :  { %26297 = vmatprep.mubr.msk.f32.mxu1 %vm5878_vm6, %v39300_v53 }
 0x861   :  { %26298 = vmatmul.mubr.msk.f32.gmra.mrb[44].mxu1 %vm5878_vm6, %v39295_v57 }
 0x862   :  { %26300 = vmatprep.mubr.msk.f32.mxu1 %vm5878_vm6, %v39296_v60 }
 0x865   :  { %26301 = vmatmul.mubr.msk.f32.gmra.mrb[46].mxu1 %vm5878_vm6, %v39297_v27 }
 0x866   :  { %26303 = vmatprep.mubr.msk.f32.mxu1 %vm5878_vm6, %v39299_v47 }
 0x869   :  { %26304 = vmatmul.mubr.msk.f32.gmra.mrb[48].mxu1 %vm5878_vm6, %v39301_v15 }
 0x86a   :  { %26306 = vmatprep.mubr.msk.f32.mxu1 %vm5878_vm6, %v39302_v59 }
 0x86d   :  { %26307 = vmatmul.mubr.msk.f32.gmra.mrb[50].mxu1 %vm5878_vm6, %v39303_v2 }
 0x86e   :  { %26309 = vmatprep.mubr.msk.f32.mxu1 %vm5878_vm6, %v39304_v23 }
 0x871   :  { %26310 = vmatmul.mubr.msk.f32.gmra.mrb[52].mxu1 %vm5878_vm6, %v39305_v7 }
 0x872   :  { %26312 = vmatprep.mubr.msk.f32.mxu1 %vm5878_vm6, %v39306_v49 }
 0x875   :  { %26313 = vmatmul.mubr.msk.f32.gmra.mrb[54].mxu1 %vm5878_vm6, %v39307_v50 }
 0x876   :  { %26315 = vmatprep.mubr.msk.f32.mxu1 %vm5878_vm6, %v39308_v52 }
 0x879   :  { %26316 = vmatmul.mubr.msk.f32.gmra.mrb[56].mxu1 %vm5878_vm6, %v39309_v44 }
 0x87a   :  { %26318 = vmatprep.mubr.msk.f32.mxu1 %vm5878_vm6, %v39310_v17 }
 0x87d   :  { %26319 = vmatmul.mubr.msk.f32.gmra.mrb[58].mxu1 %vm5878_vm6, %v39311_v3 }
 0x87e   :  { %26321 = vmatprep.mubr.msk.f32.mxu1 %vm5878_vm6, %v39312_v42  ;;  %v39321_v42 = vld [vmem:[#allocation85_spill] sm:$0xff] }
 0x881   :  { %26322 = vmatmul.mubr.msk.f32.gmra.mrb[60].mxu1 %vm5878_vm6, %v39313_v25 }
 0x882   :  { %26324 = vmatprep.mubr.msk.f32.mxu1 %vm5878_vm6, %v39314_v6 }
 0x885   :  { %26325 = vmatmul.mubr.msk.f32.gmra.mrb[62].mxu1 %vm5878_vm6, %v39315_v28 }
 0x886   :  { %26327 = vmatprep.mubr.msk.f32.mxu1 %vm5878_vm6, %v39316_v4 }
 0x889   :  { %26328 = vmatmul.mubr.msk.f32.gmra.mrb[0].mxu1 %vm5878_vm6, %v39317_v11 }
 0x88a   :  { %26330 = vmatprep.mubr.msk.f32.mxu1 %vm5878_vm6, %v39318_v55 }
 0x88d   :  { %26331 = vmatmul.mubr.msk.f32.gmra.mrb[2].mxu1 %vm5878_vm6, %v39319_v18 }
 0x88e   :  { %26333 = vmatprep.mubr.msk.f32.mxu1 %vm5878_vm6, %v39320_v51 }
 0x891   :  { %26334 = vmatmul.mubr.msk.f32.gmra.mrb[4].mxu1 %vm5878_vm6, %v39162_v33 }
 0x892   :  { %26336 = vmatprep.mubr.msk.f32.mxu1 %vm5878_vm6, %v39079_v39 }
 0x895   :  { %26337 = vmatmul.mubr.msk.f32.gmra.mrb[6].mxu1 %vm5878_vm6, %v39080_v48 }
 0x896   :  { %26339 = vmatprep.mubr.msk.f32.mxu1 %vm5878_vm6, %v39083_v41 }
 0x899   :  { %26340 = vmatmul.mubr.msk.f32.gmra.mrb[8].mxu1 %vm5878_vm6, %v39084_v61 }
 0x89a   :  { %26342 = vmatprep.mubr.msk.f32.mxu1 %vm5878_vm6, %v39087_v26 }
 0x89d   :  { %26343 = vmatmul.mubr.msk.f32.gmra.mrb[10].mxu1 %vm5878_vm6, %v39321_v42 }
 0x89e   :  { %26345 = vmatprep.mubr.msk.f32.mxu1 %vm5878_vm6, %v39254_v38 }
 0x8a1   :  { %26346 = vmatmul.mubr.msk.f32.gmra.mrb[12].mxu1 %vm5878_vm6, %v39255_v43 }
 0x8a2   :  { %26348 = vmatprep.mubr.msk.f32.mxu1 %vm5878_vm6, %v39260_v22 }
 0x8a5   :  { %26349 = vmatmul.mubr.msk.f32.gmra.mrb[14].mxu1 %vm5878_vm6, %v39203_v14 }
 0x8a6   :  { %26351 = vmatprep.mubr.msk.f32.mxu1 %vm5878_vm6, %v39206_v34 }
 0x8a7   :  { %v36442_v51 = vpop.f32.mrb[100].mxu0 }
 0x8a8   :  { %39322 = vst [vmem:[#allocation102_spill] sm:$0xff] %v36442_v51  ;;  %v36444_v23 = vpop.f32.mrb[101].mxu0 }
 0x8a9   :  { %39323 = vst [vmem:[#allocation78_spill] sm:$0xff] %v36444_v23  ;;  %26352 = vmatmul.mubr.msk.f32.gmra.mrb[16].mxu1 %vm5878_vm6, %v39207_v31 }
 0x8aa   :  { %26354 = vmatprep.mubr.msk.f32.mxu1 %vm5878_vm6, %v39269_v36 }
 0x8ab   :  { %v36450_v38 = vpop.f32.mrb[102].mxu0 }
 0x8ac   :  { %39324 = vst [vmem:[#allocation103_spill] sm:$0xff] %v36450_v38  ;;  %v36452_v53 = vpop.f32.mrb[103].mxu0 }
 0x8ad   :  { %39325 = vst [vmem:[#allocation104_spill] sm:$0xff] %v36452_v53  ;;  %26355 = vmatmul.mubr.msk.f32.gmra.mrb[18].mxu1 %vm5878_vm6, %v39326_v37 }
 0x8ae   :  { %26357 = vmatprep.mubr.msk.f32.mxu1 %vm5878_vm6, %v36254_v40 }
 0x8af   :  { %v36458_v34 = vpop.f32.mrb[104].mxu0 }
 0x8b0   :  { %39327 = vst [vmem:[#allocation112_spill] sm:$0xff] %v36458_v34  ;;  %v36460_v51 = vpop.f32.mrb[105].mxu0 }
 0x8b1   :  { %39328 = vst [vmem:[#allocation105_spill] sm:$0xff] %v36460_v51  ;;  %26358 = vmatmul.mubr.msk.f32.gmra.mrb[20].mxu1 %vm5878_vm6, %v36257_v13  ;;  %v39333_v51 = vld [vmem:[#allocation84_spill] sm:$0xff] }
 0x8b2   :  { %26360 = vmatprep.mubr.msk.f32.mxu1 %vm5878_vm6, %v36268_v1 }
 0x8b3   :  { %v36466_v23 = vpop.f32.mrb[106].mxu0 }
 0x8b4   :  { %39329 = vst [vmem:[#allocation106_spill] sm:$0xff] %v36466_v23  ;;  %v36468_v38 = vpop.f32.mrb[107].mxu0  ;;  %v36483_v23 = vmax.f32 %v39333_v51, 0.0 }
 0x8b5   :  { %39330 = vst [vmem:[#allocation6_spill] sm:$0xff] %v36468_v38  ;;  %26361 = vmatmul.mubr.msk.f32.gmra.mrb[22].mxu1 %vm5878_vm6, %v36271_v16 }
 0x8b6   :  { %26363 = vmatprep.mubr.msk.f32.mxu1 %vm5878_vm6, %v36282_v63  ;;  %39334 = vst [vmem:[#allocation117_spill] sm:$0xff] %v36483_v23 }
 0x8b7   :  { %v36474_v53 = vpop.f32.mrb[108].mxu0 }
 0x8b8   :  { %39331 = vst [vmem:[#allocation31_spill] sm:$0xff] %v36474_v53  ;;  %v36476_v34 = vpop.f32.mrb[109].mxu0  ;;  %v21013_v53 = vld [vmem:[%s38225_s3 + $0x138] sm:$0x3] }
 0x8b9   :  { %39332 = vst [vmem:[#allocation75_spill] sm:$0xff] %v36476_v34  ;;  %26364 = vmatmul.mubr.msk.f32.gmra.mrb[24].mxu1 %vm5878_vm6, %v36285_v32  ;;  %v21012_v34 = vld [vmem:[%s38225_s3 + $0x130] sm:$0xff] }
 0x8ba   :  { %26366 = vmatprep.mubr.msk.f32.mxu1 %vm5878_vm6, %v36296_v62  ;;  %v36501_v62 = vpack.c.bf16 %v21013_v53, %v21012_v34 }
 0x8bb   :  { %v36485_v38 = vpop.f32.mrb[110].mxu0 }
 0x8bc   :  { %39335 = vst [vmem:[#allocation92_spill] sm:$0xff] %v36485_v38  ;;  %v36487_v40 = vpop.f32.mrb[111].mxu0 }
 0x8bd   :  { %39336 = vst [vmem:[#allocation100_spill] sm:$0xff] %v36487_v40  ;;  %26367 = vmatmul.mubr.msk.f32.gmra.mrb[26].mxu1 %vm5878_vm6, %v36483_v23 }
 0x8be   :  { %26373 = vmatprep.mubr.msk.f32.mxu1 %vm5878_vm6, %v39200_v10 }
 0x8bf   :  { %v36499_v51 = vpop.f32.mrb[112].mxu0 }
 0x8c0   :  { %39337 = vst [vmem:[#allocation113_spill] sm:$0xff] %v36499_v51  ;;  %v36503_v38 = vpop.f32.mrb[113].mxu0 }
 0x8c1   :  { %39338 = vst [vmem:[#allocation52_spill] sm:$0xff] %v36503_v38  ;;  %26374 = vmatmul.mubr.msk.f32.vlgmr.msra.gmra.mrb[28].mxu1 %vm5878_vm6, %v39201_v24 }
 0x8c2   :  { %27453 = vmatpush3.bf16.msk.msra.mxu1 %vm31375_vm5, %v36323_v29  ;;  %26376 = vmatprep.mubr.msk.f32.mxu1 %vm5878_vm6, %v39204_v19 }
 0x8c3   :  { %v36512_v10 = vpop.f32.mrb[114].mxu0  ;;  %27456 = vmatprep.subr.msk.bf16.mxu1 %vm31375_vm5, %v36501_v62 }
 0x8c4   :  { %39339 = vst [vmem:[#allocation14_spill] sm:$0xff] %v36512_v10  ;;  %v36517_v34 = vpop.f32.mrb[115].mxu0 }
 0x8c5   :  { %39340 = vst [vmem:[#allocation81_spill] sm:$0xff] %v36517_v34  ;;  %26377 = vmatmul.mubr.msk.f32.gmra.mrb[30].mxu1 %vm5878_vm6, %v39205_v5 }
 0x8c6   :  { %26379 = vmatprep.mubr.msk.f32.mxu1 %vm5878_vm6, %v39208_v0 }
 0x8c7   :  { %v36523_v53 = vpop.f32.mrb[116].mxu0 }
 0x8c8   :  { %39341 = vst [vmem:[#allocation93_spill] sm:$0xff] %v36523_v53  ;;  %v36525_v29 = vpop.f32.mrb[117].mxu0 }
 0x8c9   :  { %39342 = vst [vmem:[#allocation107_spill] sm:$0xff] %v36525_v29  ;;  %26380 = vmatmul.mubr.msk.f32.gmra.mrb[32].mxu1 %vm5878_vm6, %v39209_v35 }
 0x8ca   :  { %26382 = vmatprep.mubr.msk.f32.mxu1 %vm5878_vm6, %v39277_v20 }
 0x8cb   :  { %v36531_v10 = vpop.f32.mrb[118].mxu0 }
 0x8cc   :  { %39343 = vst [vmem:[#allocation82_spill] sm:$0xff] %v36531_v10  ;;  %v36533_v38 = vpop.f32.mrb[119].mxu0 }
 0x8cd   :  { %39344 = vst [vmem:[#allocation83_spill] sm:$0xff] %v36533_v38  ;;  %26383 = vmatmul.mubr.msk.f32.gmra.mrb[34].mxu1 %vm5878_vm6, %v39282_v46 }
 0x8ce   :  { %26385 = vmatprep.mubr.msk.f32.mxu1 %vm5878_vm6, %v39218_v56 }
 0x8cf   :  { %v36539_v34 = vpop.f32.mrb[120].mxu0 }
 0x8d0   :  { %39345 = vst [vmem:[#allocation108_spill] sm:$0xff] %v36539_v34  ;;  %v36541_v53 = vpop.f32.mrb[121].mxu0 }
 0x8d1   :  { %39346 = vst [vmem:[#allocation18_spill] sm:$0xff] %v36541_v53  ;;  %26386 = vmatmul.mubr.msk.f32.gmra.mrb[36].mxu1 %vm5878_vm6, %v39285_v8 }
 0x8d2   :  { %26388 = vmatprep.mubr.msk.f32.mxu1 %vm5878_vm6, %v39286_v54 }
 0x8d3   :  { %v36547_v29 = vpop.f32.mrb[122].mxu0 }
 0x8d4   :  { %39347 = vst [vmem:[#allocation32_spill] sm:$0xff] %v36547_v29  ;;  %v36549_v10 = vpop.f32.mrb[123].mxu0 }
 0x8d5   :  { %39348 = vst [vmem:[#allocation33_spill] sm:$0xff] %v36549_v10  ;;  %26389 = vmatmul.mubr.msk.f32.gmra.mrb[38].mxu1 %vm5878_vm6, %v39288_v45 }
 0x8d6   :  { %26391 = vmatprep.mubr.msk.f32.mxu1 %vm5878_vm6, %v39289_v58 }
 0x8d7   :  { %v36555_v38 = vpop.f32.mrb[124].mxu0 }
 0x8d8   :  { %39349 = vst [vmem:[#allocation23_spill] sm:$0xff] %v36555_v38  ;;  %v36557_v34 = vpop.f32.mrb[125].mxu0 }
 0x8d9   :  { %39350 = vst [vmem:[#allocation34_spill] sm:$0xff] %v36557_v34  ;;  %26392 = vmatmul.mubr.msk.f32.gmra.mrb[40].mxu1 %vm5878_vm6, %v39292_v21 }
 0x8da   :  { %26394 = vmatprep.mubr.msk.f32.mxu1 %vm5878_vm6, %v39293_v30 }
 0x8db   :  { %v36563_v53 = vpop.f32.mrb[126].mxu0 }
 0x8dc   :  { %39351 = vst [vmem:[#allocation35_spill] sm:$0xff] %v36563_v53  ;;  %v36565_v29 = vpop.f32.mrb[127].mxu0 }
 0x8dd   :  { %39352 = vst [vmem:[#allocation28_spill] sm:$0xff] %v36565_v29  ;;  %26395 = vmatmul.mubr.msk.f32.gmra.mrb[42].mxu1 %vm5878_vm6, %v39294_v9 }
 0x8de   :  { %26397 = vmatprep.mubr.msk.f32.mxu1 %vm5878_vm6, %v39295_v57 }
 0x8df   :  { %v36571_v10 = vpop.f32.mrb[64].mxu0 }
 0x8e0   :  { %39353 = vst [vmem:[#allocation27_spill] sm:$0xff] %v36571_v10  ;;  %v36573_v38 = vpop.f32.mrb[65].mxu0 }
 0x8e1   :  { %39354 = vst [vmem:[#allocation36_spill] sm:$0xff] %v36573_v38  ;;  %26398 = vmatmul.mubr.msk.f32.gmra.mrb[44].mxu1 %vm5878_vm6, %v39296_v60 }
 0x8e2   :  { %26400 = vmatprep.mubr.msk.f32.mxu1 %vm5878_vm6, %v39297_v27 }
 0x8e3   :  { %v36579_v34 = vpop.f32.mrb[66].mxu0 }
 0x8e4   :  { %39355 = vst [vmem:[#allocation37_spill] sm:$0xff] %v36579_v34  ;;  %v36581_v53 = vpop.f32.mrb[67].mxu0 }
 0x8e5   :  { %39356 = vst [vmem:[#allocation45_spill] sm:$0xff] %v36581_v53  ;;  %26401 = vmatmul.mubr.msk.f32.gmra.mrb[46].mxu1 %vm5878_vm6, %v39299_v47  ;;  %v39361_v53 = vld [vmem:[#allocation50_spill] sm:$0xff] }
 0x8e6   :  { %26403 = vmatprep.mubr.msk.f32.mxu1 %vm5878_vm6, %v39301_v15 }
 0x8e7   :  { %v36587_v29 = vpop.f32.mrb[68].mxu0 }
 0x8e8   :  { %39357 = vst [vmem:[#allocation46_spill] sm:$0xff] %v36587_v29  ;;  %v36589_v51 = vpop.f32.mrb[69].mxu0 }
 0x8e9   :  { %39358 = vst [vmem:[#allocation47_spill] sm:$0xff] %v36589_v51  ;;  %26404 = vmatmul.mubr.msk.f32.gmra.mrb[48].mxu1 %vm5878_vm6, %v39302_v59 }
 0x8ea   :  { %26406 = vmatprep.mubr.msk.f32.mxu1 %vm5878_vm6, %v39303_v2 }
 0x8eb   :  { %v36595_v40 = vpop.f32.mrb[70].mxu0 }
 0x8ec   :  { %39359 = vst [vmem:[#allocation48_spill] sm:$0xff] %v36595_v40  ;;  %v36597_v34 = vpop.f32.mrb[71].mxu0 }
 0x8ed   :  { %39360 = vst [vmem:[#allocation49_spill] sm:$0xff] %v36597_v34  ;;  %26407 = vmatmul.mubr.msk.f32.gmra.mrb[50].mxu1 %vm5878_vm6, %v39361_v53 }
 0x8ee   :  { %26409 = vmatprep.mubr.msk.f32.mxu1 %vm5878_vm6, %v39305_v7 }
 0x8ef   :  { %v36603_v38 = vpop.f32.mrb[72].mxu0 }
 0x8f0   :  { %39362 = vst [vmem:[#allocation57_spill] sm:$0xff] %v36603_v38  ;;  %v36605_v29 = vpop.f32.mrb[73].mxu0 }
 0x8f1   :  { %39363 = vst [vmem:[#allocation58_spill] sm:$0xff] %v36605_v29  ;;  %26410 = vmatmul.mubr.msk.f32.gmra.mrb[52].mxu1 %vm5878_vm6, %v39306_v49 }
 0x8f2   :  { %26412 = vmatprep.mubr.msk.f32.mxu1 %vm5878_vm6, %v39307_v50 }
 0x8f3   :  { %v36611_v51 = vpop.f32.mrb[74].mxu0 }
 0x8f4   :  { %39364 = vst [vmem:[#allocation59_spill] sm:$0xff] %v36611_v51  ;;  %v36613_v40 = vpop.f32.mrb[75].mxu0 }
 0x8f5   :  { %39365 = vst [vmem:[#allocation60_spill] sm:$0xff] %v36613_v40  ;;  %26413 = vmatmul.mubr.msk.f32.gmra.mrb[54].mxu1 %vm5878_vm6, %v39308_v52  ;;  %v39370_v40 = vld [vmem:[#allocation62_spill] sm:$0xff] }
 0x8f6   :  { %26415 = vmatprep.mubr.msk.f32.mxu1 %vm5878_vm6, %v39309_v44 }
 0x8f7   :  { %v36619_v34 = vpop.f32.mrb[76].mxu0 }
 0x8f8   :  { %39366 = vst [vmem:[#allocation61_spill] sm:$0xff] %v36619_v34  ;;  %v36621_v38 = vpop.f32.mrb[77].mxu0 }
 0x8f9   :  { %39367 = vst [vmem:[#allocation69_spill] sm:$0xff] %v36621_v38  ;;  %26416 = vmatmul.mubr.msk.f32.gmra.mrb[56].mxu1 %vm5878_vm6, %v39310_v17 }
 0x8fa   :  { %26418 = vmatprep.mubr.msk.f32.mxu1 %vm5878_vm6, %v39311_v3 }
 0x8fb   :  { %v36627_v29 = vpop.f32.mrb[78].mxu0 }
 0x8fc   :  { %39368 = vst [vmem:[#allocation70_spill] sm:$0xff] %v36627_v29  ;;  %v36629_v51 = vpop.f32.mrb[79].mxu0 }
 0x8fd   :  { %39369 = vst [vmem:[#allocation71_spill] sm:$0xff] %v36629_v51  ;;  %26419 = vmatmul.mubr.msk.f32.gmra.mrb[58].mxu1 %vm5878_vm6, %v39370_v40 }
 0x8fe   :  { %26421 = vmatprep.mubr.msk.f32.mxu1 %vm5878_vm6, %v39313_v25 }
 0x8ff   :  { %v36635_v10 = vpop.f32.mrb[80].mxu0 }
 0x900   :  { %39371 = vst [vmem:[#allocation72_spill] sm:$0xff] %v36635_v10  ;;  %v36637_v34 = vpop.f32.mrb[81].mxu0 }
 0x901   :  { %39372 = vst [vmem:[#allocation73_spill] sm:$0xff] %v36637_v34  ;;  %26422 = vmatmul.mubr.msk.f32.gmra.mrb[60].mxu1 %vm5878_vm6, %v39314_v6 }
 0x902   :  { %26424 = vmatprep.mubr.msk.f32.mxu1 %vm5878_vm6, %v39315_v28 }
 0x903   :  { %v36643_v38 = vpop.f32.mrb[82].mxu0 }
 0x904   :  { %39373 = vst [vmem:[#allocation85_spill] sm:$0xff] %v36643_v38  ;;  %v36645_v29 = vpop.f32.mrb[83].mxu0 }
 0x905   :  { %39374 = vst [vmem:[#allocation114_spill] sm:$0xff] %v36645_v29  ;;  %26425 = vmatmul.mubr.msk.f32.gmra.mrb[62].mxu1 %vm5878_vm6, %v39316_v4  ;;  %v39379_v29 = vld [vmem:[#allocation74_spill] sm:$0xff] }
 0x906   :  { %26427 = vmatprep.mubr.msk.f32.mxu1 %vm5878_vm6, %v39317_v11 }
 0x907   :  { %v36651_v51 = vpop.f32.mrb[84].mxu0 }
 0x908   :  { %39375 = vst [vmem:[#allocation84_spill] sm:$0xff] %v36651_v51  ;;  %v36653_v10 = vpop.f32.mrb[85].mxu0 }
 0x909   :  { %39376 = vst [vmem:[#allocation118_spill] sm:$0xff] %v36653_v10  ;;  %26428 = vmatmul.mubr.msk.f32.gmra.mrb[0].mxu1 %vm5878_vm6, %v39318_v55 }
 0x90a   :  { %26430 = vmatprep.mubr.msk.f32.mxu1 %vm5878_vm6, %v39319_v18 }
 0x90b   :  { %v36659_v34 = vpop.f32.mrb[86].mxu0 }
 0x90c   :  { %39377 = vst [vmem:[#allocation119_spill] sm:$0xff] %v36659_v34  ;;  %v36661_v38 = vpop.f32.mrb[87].mxu0 }
 0x90d   :  { %39378 = vst [vmem:[#allocation120_spill] sm:$0xff] %v36661_v38  ;;  %26431 = vmatmul.mubr.msk.f32.gmra.mrb[2].mxu1 %vm5878_vm6, %v39379_v29 }
 0x90e   :  { %26433 = vmatprep.mubr.msk.f32.mxu1 %vm5878_vm6, %v39162_v33 }
 0x90f   :  { %v36667_v25 = vpop.f32.mrb[88].mxu0 }
 0x910   :  { %39380 = vst [vmem:[#allocation121_spill] sm:$0xff] %v36667_v25  ;;  %v36669_v51 = vpop.f32.mrb[89].mxu0 }
 0x911   :  { %39381 = vst [vmem:[#allocation122_spill] sm:$0xff] %v36669_v51  ;;  %26434 = vmatmul.mubr.msk.f32.gmra.mrb[4].mxu1 %vm5878_vm6, %v39079_v39 }
 0x912   :  { %26436 = vmatprep.mubr.msk.f32.mxu1 %vm5878_vm6, %v39080_v48 }
 0x913   :  { %v36675_v10 = vpop.f32.mrb[90].mxu0 }
 0x914   :  { %39382 = vst [vmem:[#allocation123_spill] sm:$0xff] %v36675_v10  ;;  %v36677_v34 = vpop.f32.mrb[91].mxu0 }
 0x915   :  { %39383 = vst [vmem:[#allocation124_spill] sm:$0xff] %v36677_v34  ;;  %26437 = vmatmul.mubr.msk.f32.gmra.mrb[6].mxu1 %vm5878_vm6, %v39083_v41  ;;  %v39388_v34 = vld [vmem:[#allocation86_spill] sm:$0xff] }
 0x916   :  { %26439 = vmatprep.mubr.msk.f32.mxu1 %vm5878_vm6, %v39084_v61 }
 0x917   :  { %v36683_v38 = vpop.f32.mrb[92].mxu0 }
 0x918   :  { %39384 = vst [vmem:[#allocation125_spill] sm:$0xff] %v36683_v38  ;;  %v36685_v25 = vpop.f32.mrb[93].mxu0 }
 0x919   :  { %39385 = vst [vmem:[#allocation126_spill] sm:$0xff] %v36685_v25  ;;  %26440 = vmatmul.mubr.msk.f32.gmra.mrb[8].mxu1 %vm5878_vm6, %v39087_v26 }
 0x91a   :  { %26442 = vmatprep.mubr.msk.f32.mxu1 %vm5878_vm6, %v39321_v42 }
 0x91b   :  { %v36691_v51 = vpop.f32.mrb[94].mxu0 }
 0x91c   :  { %39386 = vst [vmem:[#allocation127_spill] sm:$0xff] %v36691_v51  ;;  %v36693_v10 = vpop.f32.mrb[95].mxu0 }
 0x91d   :  { %39387 = vst [vmem:[#allocation128_spill] sm:$0xff] %v36693_v10  ;;  %26443 = vmatmul.mubr.msk.f32.gmra.mrb[10].mxu1 %vm5878_vm6, %v39388_v34  ;;  %v39393_v10 = vld [vmem:[#allocation111_spill] sm:$0xff] }
 0x91e   :  { %26445 = vmatprep.mubr.msk.f32.mxu1 %vm5878_vm6, %v39255_v43  ;;  %v21080_v43 = vld [vmem:[%s38225_s3 + $0x148] sm:$0x3] }
 0x91f   :  { %v36699_v33 = vpop.f32.mrb[96].mxu0 }
 0x920   :  { %39389 = vst [vmem:[#allocation129_spill] sm:$0xff] %v36699_v33  ;;  %v36701_v38 = vpop.f32.mrb[97].mxu0 }
 0x921   :  { %39390 = vst [vmem:[#allocation130_spill] sm:$0xff] %v36701_v38  ;;  %26446 = vmatmul.mubr.msk.f32.gmra.mrb[12].mxu1 %vm5878_vm6, %v39260_v22  ;;  %v39394_v38 = vld [vmem:[#allocation115_spill] sm:$0xff] }
 0x922   :  { %26448 = vmatprep.mubr.msk.f32.mxu1 %vm5878_vm6, %v39203_v14 }
 0x923   :  { %v36707_v25 = vpop.f32.mrb[98].mxu0 }
 0x924   :  { %39391 = vst [vmem:[#allocation131_spill] sm:$0xff] %v36707_v25  ;;  %v36709_v51 = vpop.f32.mrb[99].mxu0  ;;  %v39396_v25 = vld [vmem:[#allocation51_spill] sm:$0xff] }
 0x925   :  { %39392 = vst [vmem:[#allocation132_spill] sm:$0xff] %v36709_v51  ;;  %26449 = vmatmul.mubr.msk.f32.gmra.mrb[14].mxu1 %vm5878_vm6, %v39393_v10  ;;  %v39395_v51 = vld [vmem:[#allocation24_spill] sm:$0xff]  ;;  %v36736_v33 = vmax.f32 %v39396_v25, 0.0  ;;  %v39399_v25 = vld [vmem:[#allocation39_spill] sm:$0xff] }
 0x926   :  { %26451 = vmatprep.mubr.msk.f32.mxu1 %vm5878_vm6, %v39207_v31 }
 0x927   :  { %39397 = vst [vmem:[#allocation111_spill] sm:$0xff] %v36736_v33 }
 0x929   :  { %26452 = vmatmul.mubr.msk.f32.gmra.mrb[16].mxu1 %vm5878_vm6, %v39269_v36 }
 0x92a   :  { %26454 = vmatprep.mubr.msk.f32.mxu1 %vm5878_vm6, %v39326_v37 }
 0x92d   :  { %26455 = vmatmul.mubr.msk.f32.gmra.mrb[18].mxu1 %vm5878_vm6, %v39394_v38 }
 0x92e   :  { %26457 = vmatprep.mubr.msk.f32.mxu1 %vm5878_vm6, %v36257_v13  ;;  %v21079_v13 = vld [vmem:[%s38225_s3 + $0x140] sm:$0xff] }
 0x92f   :  { %v36748_v7 = vpack.c.bf16 %v21080_v43, %v21079_v13  ;;  %v39400_v43 = vld [vmem:[#allocation3_spill] sm:$0xff]  ;;  %v39401_v13 = vld [vmem:[#allocation17_spill] sm:$0xff] }
 0x931   :  { %26458 = vmatmul.mubr.msk.f32.gmra.mrb[20].mxu1 %vm5878_vm6, %v36268_v1 }
 0x932   :  { %26460 = vmatprep.mubr.msk.f32.mxu1 %vm5878_vm6, %v36271_v16 }
 0x935   :  { %26461 = vmatmul.mubr.msk.f32.gmra.mrb[22].mxu1 %vm5878_vm6, %v36282_v63 }
 0x936   :  { %26463 = vmatprep.mubr.msk.f32.mxu1 %vm5878_vm6, %v36285_v32 }
 0x939   :  { %26464 = vmatmul.mubr.msk.f32.gmra.mrb[24].mxu1 %vm5878_vm6, %v39395_v51 }
 0x93a   :  { %26466 = vmatprep.mubr.msk.f32.mxu1 %vm5878_vm6, %v36483_v23 }
 0x93d   :  { %26467 = vmatmul.mubr.msk.f32.gmra.mrb[26].mxu1 %vm5878_vm6, %v36736_v33 }
 0x93e   :  { %26473 = vmatprep.mubr.msk.f32.mxu1 %vm5878_vm6, %v39201_v24  ;;  %v39398_v24 = vld [vmem:[#allocation109_spill] sm:$0xff] }
 0x941   :  { %26474 = vmatmul.mubr.msk.f32.vlgmr.msra.gmra.mrb[28].mxu1 %vm5878_vm6, %v39204_v19 }
 0x942   :  { %27459 = vmatpush3.bf16.msk.msra.mxu1 %vm31375_vm5, %v36501_v62  ;;  %26476 = vmatprep.mubr.msk.f32.mxu1 %vm5878_vm6, %v39205_v5  ;;  %v39402_v62 = vld [vmem:[#allocation21_spill] sm:$0xff] }
 0x943   :  { %27462 = vmatprep.subr.msk.bf16.mxu1 %vm31375_vm5, %v36748_v7 }
 0x945   :  { %26477 = vmatmul.mubr.msk.f32.gmra.mrb[30].mxu1 %vm5878_vm6, %v39208_v0 }
 0x946   :  { %26479 = vmatprep.mubr.msk.f32.mxu1 %vm5878_vm6, %v39209_v35 }
 0x949   :  { %26480 = vmatmul.mubr.msk.f32.gmra.mrb[32].mxu1 %vm5878_vm6, %v39277_v20 }
 0x94a   :  { %26482 = vmatprep.mubr.msk.f32.mxu1 %vm5878_vm6, %v39282_v46 }
 0x94d   :  { %26483 = vmatmul.mubr.msk.f32.gmra.mrb[34].mxu1 %vm5878_vm6, %v39398_v24 }
 0x94e   :  { %26485 = vmatprep.mubr.msk.f32.mxu1 %vm5878_vm6, %v39285_v8 }
 0x951   :  { %26486 = vmatmul.mubr.msk.f32.gmra.mrb[36].mxu1 %vm5878_vm6, %v39286_v54 }
 0x952   :  { %26488 = vmatprep.mubr.msk.f32.mxu1 %vm5878_vm6, %v39288_v45 }
 0x955   :  { %26489 = vmatmul.mubr.msk.f32.gmra.mrb[38].mxu1 %vm5878_vm6, %v39289_v58 }
 0x956   :  { %26491 = vmatprep.mubr.msk.f32.mxu1 %vm5878_vm6, %v39292_v21 }
 0x959   :  { %26492 = vmatmul.mubr.msk.f32.gmra.mrb[40].mxu1 %vm5878_vm6, %v39293_v30 }
 0x95a   :  { %26494 = vmatprep.mubr.msk.f32.mxu1 %vm5878_vm6, %v39294_v9 }
 0x95d   :  { %26495 = vmatmul.mubr.msk.f32.gmra.mrb[42].mxu1 %vm5878_vm6, %v39399_v25 }
 0x95e   :  { %26497 = vmatprep.mubr.msk.f32.mxu1 %vm5878_vm6, %v39296_v60  ;;  %v21147_v60 = vld [vmem:[%s38225_s3 + $0x158] sm:$0x3] }
 0x961   :  { %26498 = vmatmul.mubr.msk.f32.gmra.mrb[44].mxu1 %vm5878_vm6, %v39297_v27 }
 0x962   :  { %26500 = vmatprep.mubr.msk.f32.mxu1 %vm5878_vm6, %v39299_v47 }
 0x965   :  { %26501 = vmatmul.mubr.msk.f32.gmra.mrb[46].mxu1 %vm5878_vm6, %v39301_v15 }
 0x966   :  { %26503 = vmatprep.mubr.msk.f32.mxu1 %vm5878_vm6, %v39302_v59 }
 0x969   :  { %26504 = vmatmul.mubr.msk.f32.gmra.mrb[48].mxu1 %vm5878_vm6, %v39303_v2 }
 0x96a   :  { %26506 = vmatprep.mubr.msk.f32.mxu1 %vm5878_vm6, %v39361_v53 }
 0x96d   :  { %26507 = vmatmul.mubr.msk.f32.gmra.mrb[50].mxu1 %vm5878_vm6, %v39400_v43 }
 0x96e   :  { %26509 = vmatprep.mubr.msk.f32.mxu1 %vm5878_vm6, %v39306_v49  ;;  %v21146_v49 = vld [vmem:[%s38225_s3 + $0x150] sm:$0xff] }
 0x96f   :  { %v36893_v57 = vpack.c.bf16 %v21147_v60, %v21146_v49  ;;  %v39412_v49 = vld [vmem:[#allocation9_spill] sm:$0xff] }
 0x971   :  { %26510 = vmatmul.mubr.msk.f32.gmra.mrb[52].mxu1 %vm5878_vm6, %v39307_v50 }
 0x972   :  { %26512 = vmatprep.mubr.msk.f32.mxu1 %vm5878_vm6, %v39308_v52 }
 0x975   :  { %26513 = vmatmul.mubr.msk.f32.gmra.mrb[54].mxu1 %vm5878_vm6, %v39309_v44 }
 0x976   :  { %26515 = vmatprep.mubr.msk.f32.mxu1 %vm5878_vm6, %v39310_v17 }
 0x979   :  { %26516 = vmatmul.mubr.msk.f32.gmra.mrb[56].mxu1 %vm5878_vm6, %v39311_v3 }
 0x97a   :  { %26518 = vmatprep.mubr.msk.f32.mxu1 %vm5878_vm6, %v39370_v40 }
 0x97d   :  { %26519 = vmatmul.mubr.msk.f32.gmra.mrb[58].mxu1 %vm5878_vm6, %v39401_v13 }
 0x97e   :  { %26521 = vmatprep.mubr.msk.f32.mxu1 %vm5878_vm6, %v39314_v6  ;;  %v39403_v6 = vld [vmem:[#allocation25_spill] sm:$0xff] }
 0x981   :  { %26522 = vmatmul.mubr.msk.f32.gmra.mrb[60].mxu1 %vm5878_vm6, %v39315_v28 }
 0x982   :  { %26524 = vmatprep.mubr.msk.f32.mxu1 %vm5878_vm6, %v39316_v4 }
 0x985   :  { %26525 = vmatmul.mubr.msk.f32.gmra.mrb[62].mxu1 %vm5878_vm6, %v39317_v11 }
 0x986   :  { %26527 = vmatprep.mubr.msk.f32.mxu1 %vm5878_vm6, %v39318_v55 }
 0x989   :  { %26528 = vmatmul.mubr.msk.f32.gmra.mrb[0].mxu1 %vm5878_vm6, %v39319_v18 }
 0x98a   :  { %26530 = vmatprep.mubr.msk.f32.mxu1 %vm5878_vm6, %v39379_v29 }
 0x98d   :  { %26531 = vmatmul.mubr.msk.f32.gmra.mrb[2].mxu1 %vm5878_vm6, %v39402_v62 }
 0x98e   :  { %26533 = vmatprep.mubr.msk.f32.mxu1 %vm5878_vm6, %v39079_v39  ;;  %v39404_v39 = vld [vmem:[#allocation116_spill] sm:$0xff] }
 0x991   :  { %26534 = vmatmul.mubr.msk.f32.gmra.mrb[4].mxu1 %vm5878_vm6, %v39080_v48 }
 0x992   :  { %26536 = vmatprep.mubr.msk.f32.mxu1 %vm5878_vm6, %v39083_v41 }
 0x995   :  { %26537 = vmatmul.mubr.msk.f32.gmra.mrb[6].mxu1 %vm5878_vm6, %v39084_v61 }
 0x996   :  { %26539 = vmatprep.mubr.msk.f32.mxu1 %vm5878_vm6, %v39087_v26 }
 0x999   :  { %26540 = vmatmul.mubr.msk.f32.gmra.mrb[8].mxu1 %vm5878_vm6, %v39321_v42 }
 0x99a   :  { %26542 = vmatprep.mubr.msk.f32.mxu1 %vm5878_vm6, %v39388_v34 }
 0x99d   :  { %26543 = vmatmul.mubr.msk.f32.gmra.mrb[10].mxu1 %vm5878_vm6, %v39403_v6 }
 0x99e   :  { %26545 = vmatprep.mubr.msk.f32.mxu1 %vm5878_vm6, %v39260_v22  ;;  %v39405_v22 = vld [vmem:[#allocation15_spill] sm:$0xff] }
 0x9a1   :  { %26546 = vmatmul.mubr.msk.f32.gmra.mrb[12].mxu1 %vm5878_vm6, %v39203_v14 }
 0x9a2   :  { %26548 = vmatprep.mubr.msk.f32.mxu1 %vm5878_vm6, %v39393_v10 }
 0x9a5   :  { %26549 = vmatmul.mubr.msk.f32.gmra.mrb[14].mxu1 %vm5878_vm6, %v39207_v31 }
 0x9a6   :  { %26551 = vmatprep.mubr.msk.f32.mxu1 %vm5878_vm6, %v39269_v36 }
 0x9a9   :  { %26552 = vmatmul.mubr.msk.f32.gmra.mrb[16].mxu1 %vm5878_vm6, %v39326_v37 }
 0x9aa   :  { %26554 = vmatprep.mubr.msk.f32.mxu1 %vm5878_vm6, %v39394_v38 }
 0x9ad   :  { %26555 = vmatmul.mubr.msk.f32.gmra.mrb[18].mxu1 %vm5878_vm6, %v39404_v39 }
 0x9ae   :  { %26557 = vmatprep.mubr.msk.f32.mxu1 %vm5878_vm6, %v36268_v1  ;;  %v36881_v1 = vmax.f32 %v39405_v22, 0.0  ;;  %v39411_v22 = vld [vmem:[#allocation8_spill] sm:$0xff] }
 0x9b0   :  { %39406 = vst [vmem:[#allocation24_spill] sm:$0xff] %v36881_v1 }
 0x9b1   :  { %26558 = vmatmul.mubr.msk.f32.gmra.mrb[20].mxu1 %vm5878_vm6, %v36271_v16 }
 0x9b2   :  { %26560 = vmatprep.mubr.msk.f32.mxu1 %vm5878_vm6, %v36282_v63 }
 0x9b5   :  { %26561 = vmatmul.mubr.msk.f32.gmra.mrb[22].mxu1 %vm5878_vm6, %v36285_v32 }
 0x9b6   :  { %26563 = vmatprep.mubr.msk.f32.mxu1 %vm5878_vm6, %v39395_v51 }
 0x9b9   :  { %26564 = vmatmul.mubr.msk.f32.gmra.mrb[24].mxu1 %vm5878_vm6, %v36483_v23 }
 0x9ba   :  { %26566 = vmatprep.mubr.msk.f32.mxu1 %vm5878_vm6, %v36736_v33 }
 0x9bd   :  { %26567 = vmatmul.mubr.msk.f32.gmra.mrb[26].mxu1 %vm5878_vm6, %v36881_v1 }
 0x9be   :  { %26573 = vmatprep.mubr.msk.f32.mxu1 %vm5878_vm6, %v39204_v19  ;;  %v39407_v19 = vld [vmem:[#allocation26_spill] sm:$0xff] }
 0x9c1   :  { %26574 = vmatmul.mubr.msk.f32.vlgmr.msra.gmra.mrb[28].mxu1 %vm5878_vm6, %v39205_v5  ;;  %v39409_v5 = vld [vmem:[#allocation4_spill] sm:$0xff] }
 0x9c2   :  { %27465 = vmatpush3.bf16.msk.msra.mxu1 %vm31375_vm5, %v36748_v7  ;;  %26576 = vmatprep.mubr.msk.f32.mxu1 %vm5878_vm6, %v39208_v0  ;;  %v39410_v0 = vld [vmem:[#allocation7_spill] sm:$0xff]  ;;  %v39415_v7 = vld [vmem:[#allocation29_spill] sm:$0xff] }
 0x9c3   :  { %27468 = vmatprep.subr.msk.bf16.mxu1 %vm31375_vm5, %v36893_v57 }
 0x9c5   :  { %26577 = vmatmul.mubr.msk.f32.gmra.mrb[30].mxu1 %vm5878_vm6, %v39209_v35  ;;  %v39408_v35 = vld [vmem:[#allocation40_spill] sm:$0xff] }
 0x9c6   :  { %26579 = vmatprep.mubr.msk.f32.mxu1 %vm5878_vm6, %v39277_v20  ;;  %v39413_v20 = vld [vmem:[#allocation16_spill] sm:$0xff] }
 0x9c9   :  { %26580 = vmatmul.mubr.msk.f32.gmra.mrb[32].mxu1 %vm5878_vm6, %v39282_v46  ;;  %v39414_v46 = vld [vmem:[#allocation10_spill] sm:$0xff] }
 0x9ca   :  { %26582 = vmatprep.mubr.msk.f32.mxu1 %vm5878_vm6, %v39398_v24  ;;  %v38592_v60 = vmax.f32 %v39414_v46, 0.0  ;;  %v21213_v24 = vld [vmem:[%s38225_s3 + $0x160] sm:$0xff] }
 0x9cb   :  { %v39423_v46 = vld [vmem:[#allocation55_spill] sm:$0xff] }
 0x9cd   :  { %26583 = vmatmul.mubr.msk.f32.gmra.mrb[34].mxu1 %vm5878_vm6, %v39407_v19  ;;  %v21214_v19 = vld [vmem:[%s38225_s3 + $0x168] sm:$0x3] }
 0x9ce   :  { %26585 = vmatprep.mubr.msk.f32.mxu1 %vm5878_vm6, %v39286_v54 }
 0x9d1   :  { %26586 = vmatmul.mubr.msk.f32.gmra.mrb[36].mxu1 %vm5878_vm6, %v39288_v45 }
 0x9d2   :  { %26588 = vmatprep.mubr.msk.f32.mxu1 %vm5878_vm6, %v39289_v58 }
 0x9d5   :  { %26589 = vmatmul.mubr.msk.f32.gmra.mrb[38].mxu1 %vm5878_vm6, %v39292_v21 }
 0x9d6   :  { %26591 = vmatprep.mubr.msk.f32.mxu1 %vm5878_vm6, %v39293_v30 }
 0x9d9   :  { %26592 = vmatmul.mubr.msk.f32.gmra.mrb[40].mxu1 %vm5878_vm6, %v39294_v9 }
 0x9da   :  { %26594 = vmatprep.mubr.msk.f32.mxu1 %vm5878_vm6, %v39399_v25 }
 0x9dd   :  { %26595 = vmatmul.mubr.msk.f32.gmra.mrb[42].mxu1 %vm5878_vm6, %v39408_v35  ;;  %v39428_v35 = vld [vmem:[#allocation68_spill] sm:$0xff] }
 0x9de   :  { %26597 = vmatprep.mubr.msk.f32.mxu1 %vm5878_vm6, %v39297_v27 }
 0x9e1   :  { %26598 = vmatmul.mubr.msk.f32.gmra.mrb[44].mxu1 %vm5878_vm6, %v39299_v47 }
 0x9e2   :  { %26600 = vmatprep.mubr.msk.f32.mxu1 %vm5878_vm6, %v39301_v15 }
 0x9e5   :  { %26601 = vmatmul.mubr.msk.f32.gmra.mrb[46].mxu1 %vm5878_vm6, %v39302_v59 }
 0x9e6   :  { %26603 = vmatprep.mubr.msk.f32.mxu1 %vm5878_vm6, %v39303_v2 }
 0x9e9   :  { %26604 = vmatmul.mubr.msk.f32.gmra.mrb[48].mxu1 %vm5878_vm6, %v39361_v53  ;;  %v39444_v53 = vld [vmem:[#allocation5_spill] sm:$0xff] }
 0x9ea   :  { %26606 = vmatprep.mubr.msk.f32.mxu1 %vm5878_vm6, %v39400_v43  ;;  %v39436_v43 = vld [vmem:[#allocation77_spill] sm:$0xff]  ;;  %v37160_v9 = vmax.f32 %v39444_v53, 0.0  ;;  %v39447_v53 = vld [vmem:[#allocation90_spill] sm:$0xff] }
 0x9ed   :  { %26607 = vmatmul.mubr.msk.f32.gmra.mrb[50].mxu1 %vm5878_vm6, %v39409_v5  ;;  %v39427_v5 = vld [vmem:[#allocation67_spill] sm:$0xff] }
 0x9ee   :  { %26609 = vmatprep.mubr.msk.f32.mxu1 %vm5878_vm6, %v39307_v50 }
 0x9f1   :  { %26610 = vmatmul.mubr.msk.f32.gmra.mrb[52].mxu1 %vm5878_vm6, %v39308_v52 }
 0x9f2   :  { %26612 = vmatprep.mubr.msk.f32.mxu1 %vm5878_vm6, %v39309_v44 }
 0x9f5   :  { %26613 = vmatmul.mubr.msk.f32.gmra.mrb[54].mxu1 %vm5878_vm6, %v39310_v17 }
 0x9f6   :  { %26615 = vmatprep.mubr.msk.f32.mxu1 %vm5878_vm6, %v39311_v3 }
 0x9f9   :  { %26616 = vmatmul.mubr.msk.f32.gmra.mrb[56].mxu1 %vm5878_vm6, %v39370_v40 }
 0x9fa   :  { %26618 = vmatprep.mubr.msk.f32.mxu1 %vm5878_vm6, %v39401_v13  ;;  %v39435_v13 = vld [vmem:[#allocation12_spill] sm:$0xff] }
 0x9fd   :  { %26619 = vmatmul.mubr.msk.f32.gmra.mrb[58].mxu1 %vm5878_vm6, %v39410_v0  ;;  %v39426_v0 = vld [vmem:[#allocation66_spill] sm:$0xff] }
 0x9fe   :  { %26621 = vmatprep.mubr.msk.f32.mxu1 %vm5878_vm6, %v39315_v28 }
 0xa01   :  { %26622 = vmatmul.mubr.msk.f32.gmra.mrb[60].mxu1 %vm5878_vm6, %v39316_v4 }
 0xa02   :  { %26624 = vmatprep.mubr.msk.f32.mxu1 %vm5878_vm6, %v39317_v11 }
 0xa05   :  { %26625 = vmatmul.mubr.msk.f32.gmra.mrb[62].mxu1 %vm5878_vm6, %v39318_v55 }
 0xa06   :  { %26627 = vmatprep.mubr.msk.f32.mxu1 %vm5878_vm6, %v39319_v18 }
 0xa09   :  { %26628 = vmatmul.mubr.msk.f32.gmra.mrb[0].mxu1 %vm5878_vm6, %v39379_v29  ;;  %v39443_v29 = vld [vmem:[#allocation63_spill] sm:$0xff] }
 0xa0a   :  { %26630 = vmatprep.mubr.msk.f32.mxu1 %vm5878_vm6, %v39402_v62  ;;  %v39434_v62 = vld [vmem:[#allocation110_spill] sm:$0xff]  ;;  %v38617_v40 = vmax.f32 %v39443_v29, 0.0  ;;  %v39449_v29 = vld [vmem:[#allocation13_spill] sm:$0xff] }
 0xa0d   :  { %26631 = vmatmul.mubr.msk.f32.gmra.mrb[2].mxu1 %vm5878_vm6, %v39411_v22  ;;  %v39424_v22 = vld [vmem:[#allocation56_spill] sm:$0xff] }
 0xa0e   :  { %26633 = vmatprep.mubr.msk.f32.mxu1 %vm5878_vm6, %v39080_v48 }
 0xa11   :  { %26634 = vmatmul.mubr.msk.f32.gmra.mrb[4].mxu1 %vm5878_vm6, %v39083_v41 }
 0xa12   :  { %26636 = vmatprep.mubr.msk.f32.mxu1 %vm5878_vm6, %v39084_v61 }
 0xa15   :  { %26637 = vmatmul.mubr.msk.f32.gmra.mrb[6].mxu1 %vm5878_vm6, %v39087_v26 }
 0xa16   :  { %26639 = vmatprep.mubr.msk.f32.mxu1 %vm5878_vm6, %v39321_v42 }
 0xa19   :  { %26640 = vmatmul.mubr.msk.f32.gmra.mrb[8].mxu1 %vm5878_vm6, %v39388_v34  ;;  %v39441_v34 = vld [vmem:[#allocation97_spill] sm:$0xff] }
 0xa1a   :  { %26642 = vmatprep.mubr.msk.f32.mxu1 %vm5878_vm6, %v39403_v6  ;;  %v39432_v6 = vld [vmem:[#allocation80_spill] sm:$0xff] }
 0xa1d   :  { %26643 = vmatmul.mubr.msk.f32.gmra.mrb[10].mxu1 %vm5878_vm6, %v39412_v49  ;;  %v39416_v49 = vld [vmem:[#allocation30_spill] sm:$0xff] }
 0xa1e   :  { %26645 = vmatprep.mubr.msk.f32.mxu1 %vm5878_vm6, %v39203_v14 }
 0xa21   :  { %26646 = vmatmul.mubr.msk.f32.gmra.mrb[12].mxu1 %vm5878_vm6, %v39393_v10 }
 0xa22   :  { %26648 = vmatprep.mubr.msk.f32.mxu1 %vm5878_vm6, %v39207_v31 }
 0xa25   :  { %26649 = vmatmul.mubr.msk.f32.gmra.mrb[14].mxu1 %vm5878_vm6, %v39269_v36 }
 0xa26   :  { %26651 = vmatprep.mubr.msk.f32.mxu1 %vm5878_vm6, %v39326_v37 }
 0xa29   :  { %26652 = vmatmul.mubr.msk.f32.gmra.mrb[16].mxu1 %vm5878_vm6, %v39394_v38  ;;  %v39440_v38 = vld [vmem:[#allocation96_spill] sm:$0xff] }
 0xa2a   :  { %26654 = vmatprep.mubr.msk.f32.mxu1 %vm5878_vm6, %v39404_v39  ;;  %v39431_v39 = vld [vmem:[#allocation79_spill] sm:$0xff] }
 0xa2d   :  { %26655 = vmatmul.mubr.msk.f32.gmra.mrb[18].mxu1 %vm5878_vm6, %v39413_v20  ;;  %v37037_v20 = vpack.c.bf16 %v21214_v19, %v21213_v24  ;;  %v39419_v24 = vld [vmem:[#allocation43_spill] sm:$0xff]  ;;  %v39420_v19 = vld [vmem:[#allocation44_spill] sm:$0xff] }
 0xa2e   :  { %26657 = vmatprep.mubr.msk.f32.mxu1 %vm5878_vm6, %v36271_v16 }
 0xa31   :  { %26658 = vmatmul.mubr.msk.f32.gmra.mrb[20].mxu1 %vm5878_vm6, %v36282_v63 }
 0xa32   :  { %26660 = vmatprep.mubr.msk.f32.mxu1 %vm5878_vm6, %v36285_v32 }
 0xa35   :  { %26661 = vmatmul.mubr.msk.f32.gmra.mrb[22].mxu1 %vm5878_vm6, %v39395_v51 }
 0xa36   :  { %26663 = vmatprep.mubr.msk.f32.mxu1 %vm5878_vm6, %v36483_v23  ;;  %v39445_v23 = vld [vmem:[#allocation22_spill] sm:$0xff] }
 0xa39   :  { %26664 = vmatmul.mubr.msk.f32.gmra.mrb[24].mxu1 %vm5878_vm6, %v36736_v33  ;;  %v39439_v33 = vld [vmem:[#allocation95_spill] sm:$0xff] }
 0xa3a   :  { %26666 = vmatprep.mubr.msk.f32.mxu1 %vm5878_vm6, %v36881_v1  ;;  %v39430_v1 = vld [vmem:[#allocation76_spill] sm:$0xff] }
 0xa3d   :  { %26667 = vmatmul.mubr.msk.f32.gmra.mrb[26].mxu1 %vm5878_vm6, %v38592_v60  ;;  %v39422_v60 = vld [vmem:[#allocation54_spill] sm:$0xff] }
 0xa3e   :  { %26673 = vmatprep.mubr.msk.f32.mxu1 %vm5878_vm6, %v39415_v7  ;;  %v39418_v7 = vld [vmem:[#allocation42_spill] sm:$0xff] }
 0xa41   :  { %26674 = vmatmul.mubr.msk.f32.vlgmr.msra.gmra.mrb[28].mxu1 %vm5878_vm6, %v39416_v49 }
 0xa42   :  { %27471 = vmatpush3.bf16.msk.msra.mxu1 %vm31375_vm5, %v36893_v57  ;;  %26676 = vmatprep.mubr.msk.f32.mxu1 %vm5878_vm6, %v39218_v56  ;;  %v39417_v57 = vld [vmem:[#allocation41_spill] sm:$0xff] }
 0xa43   :  { %27474 = vmatprep.subr.msk.bf16.mxu1 %vm31375_vm5, %v37037_v20 }
 0xa45   :  { %26677 = vmatmul.mubr.msk.f32.gmra.mrb[30].mxu1 %vm5878_vm6, %v39285_v8 }
 0xa46   :  { %26679 = vmatprep.mubr.msk.f32.mxu1 %vm5878_vm6, %v39286_v54 }
 0xa49   :  { %26680 = vmatmul.mubr.msk.f32.gmra.mrb[32].mxu1 %vm5878_vm6, %v39288_v45 }
 0xa4a   :  { %26682 = vmatprep.mubr.msk.f32.mxu1 %vm5878_vm6, %v39289_v58 }
 0xa4d   :  { %26683 = vmatmul.mubr.msk.f32.gmra.mrb[34].mxu1 %vm5878_vm6, %v39292_v21 }
 0xa4e   :  { %26685 = vmatprep.mubr.msk.f32.mxu1 %vm5878_vm6, %v39417_v57  ;;  %v39421_v57 = vld [vmem:[#allocation53_spill] sm:$0xff] }
 0xa51   :  { %26686 = vmatmul.mubr.msk.f32.gmra.mrb[36].mxu1 %vm5878_vm6, %v39418_v7 }
 0xa52   :  { %26688 = vmatprep.mubr.msk.f32.mxu1 %vm5878_vm6, %v39419_v24 }
 0xa55   :  { %26689 = vmatmul.mubr.msk.f32.gmra.mrb[38].mxu1 %vm5878_vm6, %v39420_v19 }
 0xa56   :  { %26691 = vmatprep.mubr.msk.f32.mxu1 %vm5878_vm6, %v39297_v27 }
 0xa59   :  { %26692 = vmatmul.mubr.msk.f32.gmra.mrb[40].mxu1 %vm5878_vm6, %v39299_v47 }
 0xa5a   :  { %26694 = vmatprep.mubr.msk.f32.mxu1 %vm5878_vm6, %v39301_v15 }
 0xa5d   :  { %26695 = vmatmul.mubr.msk.f32.gmra.mrb[42].mxu1 %vm5878_vm6, %v39302_v59 }
 0xa5e   :  { %26697 = vmatprep.mubr.msk.f32.mxu1 %vm5878_vm6, %v39421_v57  ;;  %v39425_v57 = vld [vmem:[#allocation65_spill] sm:$0xff] }
 0xa61   :  { %26698 = vmatmul.mubr.msk.f32.gmra.mrb[44].mxu1 %vm5878_vm6, %v39422_v60 }
 0xa62   :  { %26700 = vmatprep.mubr.msk.f32.mxu1 %vm5878_vm6, %v39423_v46 }
 0xa65   :  { %26701 = vmatmul.mubr.msk.f32.gmra.mrb[46].mxu1 %vm5878_vm6, %v39424_v22 }
 0xa66   :  { %26703 = vmatprep.mubr.msk.f32.mxu1 %vm5878_vm6, %v39307_v50 }
 0xa69   :  { %26704 = vmatmul.mubr.msk.f32.gmra.mrb[48].mxu1 %vm5878_vm6, %v39308_v52 }
 0xa6a   :  { %26706 = vmatprep.mubr.msk.f32.mxu1 %vm5878_vm6, %v39309_v44 }
 0xa6d   :  { %26707 = vmatmul.mubr.msk.f32.gmra.mrb[50].mxu1 %vm5878_vm6, %v39310_v17 }
 0xa6e   :  { %26709 = vmatprep.mubr.msk.f32.mxu1 %vm5878_vm6, %v39425_v57  ;;  %v39429_v57 = vld [vmem:[#allocation64_spill] sm:$0xff] }
 0xa71   :  { %26710 = vmatmul.mubr.msk.f32.gmra.mrb[52].mxu1 %vm5878_vm6, %v39426_v0 }
 0xa72   :  { %26712 = vmatprep.mubr.msk.f32.mxu1 %vm5878_vm6, %v39427_v5 }
 0xa75   :  { %26713 = vmatmul.mubr.msk.f32.gmra.mrb[54].mxu1 %vm5878_vm6, %v39428_v35 }
 0xa76   :  { %26715 = vmatprep.mubr.msk.f32.mxu1 %vm5878_vm6, %v39315_v28 }
 0xa79   :  { %26716 = vmatmul.mubr.msk.f32.gmra.mrb[56].mxu1 %vm5878_vm6, %v39316_v4 }
 0xa7a   :  { %26718 = vmatprep.mubr.msk.f32.mxu1 %vm5878_vm6, %v39317_v11 }
 0xa7d   :  { %26719 = vmatmul.mubr.msk.f32.gmra.mrb[58].mxu1 %vm5878_vm6, %v39318_v55 }
 0xa7e   :  { %26721 = vmatprep.mubr.msk.f32.mxu1 %vm5878_vm6, %v39429_v57  ;;  %v39433_v57 = vld [vmem:[#allocation88_spill] sm:$0xff] }
 0xa81   :  { %26722 = vmatmul.mubr.msk.f32.gmra.mrb[60].mxu1 %vm5878_vm6, %v39430_v1 }
 0xa82   :  { %26724 = vmatprep.mubr.msk.f32.mxu1 %vm5878_vm6, %v39431_v39 }
 0xa85   :  { %26725 = vmatmul.mubr.msk.f32.gmra.mrb[62].mxu1 %vm5878_vm6, %v39432_v6 }
 0xa86   :  { %26727 = vmatprep.mubr.msk.f32.mxu1 %vm5878_vm6, %v39080_v48 }
 0xa89   :  { %26728 = vmatmul.mubr.msk.f32.gmra.mrb[0].mxu1 %vm5878_vm6, %v39083_v41 }
 0xa8a   :  { %26730 = vmatprep.mubr.msk.f32.mxu1 %vm5878_vm6, %v39084_v61 }
 0xa8d   :  { %26731 = vmatmul.mubr.msk.f32.gmra.mrb[2].mxu1 %vm5878_vm6, %v39087_v26 }
 0xa8e   :  { %26733 = vmatprep.mubr.msk.f32.mxu1 %vm5878_vm6, %v39433_v57  ;;  %v39437_v57 = vld [vmem:[#allocation101_spill] sm:$0xff] }
 0xa8f   :  { %v39438_v25 = vmax.f32 %v39437_v57, 0.0  ;;  %v39442_v57 = vld [vmem:[#allocation87_spill] sm:$0xff] }
 0xa91   :  { %26734 = vmatmul.mubr.msk.f32.gmra.mrb[4].mxu1 %vm5878_vm6, %v39434_v62 }
 0xa92   :  { %26736 = vmatprep.mubr.msk.f32.mxu1 %vm5878_vm6, %v39435_v13 }
 0xa95   :  { %26737 = vmatmul.mubr.msk.f32.gmra.mrb[6].mxu1 %vm5878_vm6, %v39436_v43 }
 0xa96   :  { %26739 = vmatprep.mubr.msk.f32.mxu1 %vm5878_vm6, %v39203_v14 }
 0xa99   :  { %26740 = vmatmul.mubr.msk.f32.gmra.mrb[8].mxu1 %vm5878_vm6, %v39393_v10 }
 0xa9a   :  { %26742 = vmatprep.mubr.msk.f32.mxu1 %vm5878_vm6, %v39207_v31 }
 0xa9d   :  { %26743 = vmatmul.mubr.msk.f32.gmra.mrb[10].mxu1 %vm5878_vm6, %v39269_v36 }
 0xa9e   :  { %26745 = vmatprep.mubr.msk.f32.mxu1 %vm5878_vm6, %v39438_v25  ;;  %v5863_v25 = vmax.f32 %v39442_v57, 0.0  ;;  %v39446_v57 = vld [vmem:[#allocation89_spill] sm:$0xff] }
 0xaa1   :  { %26746 = vmatmul.mubr.msk.f32.gmra.mrb[12].mxu1 %vm5878_vm6, %v39439_v33 }
 0xaa2   :  { %26748 = vmatprep.mubr.msk.f32.mxu1 %vm5878_vm6, %v39440_v38 }
 0xaa5   :  { %26749 = vmatmul.mubr.msk.f32.gmra.mrb[14].mxu1 %vm5878_vm6, %v39441_v34 }
 0xaa6   :  { %26751 = vmatprep.mubr.msk.f32.mxu1 %vm5878_vm6, %v36271_v16 }
 0xaa9   :  { %26752 = vmatmul.mubr.msk.f32.gmra.mrb[16].mxu1 %vm5878_vm6, %v36282_v63  ;;  %v37171_v63 = vmax.f32 %v39446_v57, 0.0 }
 0xaaa   :  { %26754 = vmatprep.mubr.msk.f32.mxu1 %vm5878_vm6, %v36285_v32  ;;  %v37168_v32 = vmax.f32 %v39445_v23, 0.0  ;;  %v39450_v23 = vld [vmem:[#allocation11_spill] sm:$0xff] }
 0xaab   :  { %v37188_v57 = vmax.f32 %v39450_v23, 0.0  ;;  %v21347_v23 = vld [vmem:[%s38225_s3 + $0x180] sm:$0xff] }
 0xaad   :  { %26755 = vmatmul.mubr.msk.f32.gmra.mrb[18].mxu1 %vm5878_vm6, %v39395_v51 }
 0xaae   :  { %26757 = vmatprep.mubr.msk.f32.mxu1 %vm5878_vm6, %v5863_v25  ;;  %v37178_v25 = vmax.f32 %v39447_v53, 0.0  ;;  %v21281_v53 = vld [vmem:[%s38225_s3 + $0x178] sm:$0x3] }
 0xab0   :  { %39448 = vst [vmem:[#allocation51_spill] sm:$0xff] %v37178_v25 }
 0xab1   :  { %26758 = vmatmul.mubr.msk.f32.gmra.mrb[20].mxu1 %vm5878_vm6, %v38617_v40  ;;  %v37181_v40 = vmax.f32 %v39449_v29, 0.0  ;;  %v21280_v29 = vld [vmem:[%s38225_s3 + $0x170] sm:$0xff] }
 0xab2   :  { %26760 = vmatprep.mubr.msk.f32.mxu1 %vm5878_vm6, %v37160_v9 }
 0xab5   :  { %26761 = vmatmul.mubr.msk.f32.gmra.mrb[22].mxu1 %vm5878_vm6, %v37168_v32 }
 0xab6   :  { %26763 = vmatprep.mubr.msk.f32.mxu1 %vm5878_vm6, %v37171_v63 }
 0xab9   :  { %26764 = vmatmul.mubr.msk.f32.gmra.mrb[24].mxu1 %vm5878_vm6, %v37178_v25  ;;  %v37200_v25 = vpack.c.bf16 %v21281_v53, %v21280_v29  ;;  %v21348_v29 = vld [vmem:[%s38225_s3 + $0x188] sm:$0x3] }
 0xaba   :  { %26766 = vmatprep.mubr.msk.f32.mxu1 %vm5878_vm6, %v37181_v40  ;;  %v37346_v53 = vpack.c.bf16 %v21348_v29, %v21347_v23  ;;  %v17757_v29 = vld [vmem:[%s38226_s5 + $0x10] sm:$0xf] }
 0xabd   :  { %26767 = vmatmul.mubr.msk.f32.gmra.mrb[26].mxu1 %vm5878_vm6, %v37188_v57 }
 0xabe   :  { %26773 = vmatprep.mubr.msk.f32.mxu1 %vm5878_vm6, %v39416_v49 }
 0xac1   :  { %26774 = vmatmul.mubr.msk.f32.vlgmr.msra.gmra.mrb[28].mxu1 %vm5878_vm6, %v39218_v56 }
 0xac2   :  { %27477 = vmatpush3.bf16.msk.msra.mxu1 %vm31375_vm5, %v37037_v20  ;;  %26776 = vmatprep.mubr.msk.f32.mxu1 %vm5878_vm6, %v39285_v8  ;;  %v39456_v20 = vld [vmem:[#allocation51_spill] sm:$0xff] }
 0xac3   :  { %27480 = vmatprep.subr.msk.bf16.mxu1 %vm31375_vm5, %v37200_v25 }
 0xac5   :  { %26777 = vmatmul.mubr.msk.f32.gmra.mrb[30].mxu1 %vm5878_vm6, %v39286_v54 }
 0xac6   :  { %26779 = vmatprep.mubr.msk.f32.mxu1 %vm5878_vm6, %v39288_v45 }
 0xac9   :  { %26780 = vmatmul.mubr.msk.f32.gmra.mrb[32].mxu1 %vm5878_vm6, %v39289_v58 }
 0xaca   :  { %26782 = vmatprep.mubr.msk.f32.mxu1 %vm5878_vm6, %v39292_v21 }
 0xacd   :  { %26783 = vmatmul.mubr.msk.f32.gmra.mrb[34].mxu1 %vm5878_vm6, %v39293_v30 }
 0xace   :  { %26785 = vmatprep.mubr.msk.f32.mxu1 %vm5878_vm6, %v39418_v7 }
 0xad1   :  { %26786 = vmatmul.mubr.msk.f32.gmra.mrb[36].mxu1 %vm5878_vm6, %v39419_v24 }
 0xad2   :  { %26788 = vmatprep.mubr.msk.f32.mxu1 %vm5878_vm6, %v39420_v19 }
 0xad5   :  { %26789 = vmatmul.mubr.msk.f32.gmra.mrb[38].mxu1 %vm5878_vm6, %v39297_v27 }
 0xad6   :  { %26791 = vmatprep.mubr.msk.f32.mxu1 %vm5878_vm6, %v39299_v47 }
 0xad9   :  { %26792 = vmatmul.mubr.msk.f32.gmra.mrb[40].mxu1 %vm5878_vm6, %v39301_v15 }
 0xada   :  { %26794 = vmatprep.mubr.msk.f32.mxu1 %vm5878_vm6, %v39302_v59 }
 0xadd   :  { %26795 = vmatmul.mubr.msk.f32.gmra.mrb[42].mxu1 %vm5878_vm6, %v39303_v2 }
 0xade   :  { %26797 = vmatprep.mubr.msk.f32.mxu1 %vm5878_vm6, %v39422_v60  ;;  %v39457_v60 = vld [vmem:[#allocation91_spill] sm:$0xff] }
 0xadf   :  { %v37334_v7 = vmax.f32 %v39457_v60, 0.0  ;;  %v17756_v60 = vld [vmem:[%s38226_s5 + $0x8] sm:$0xff] }
 0xae1   :  { %26798 = vmatmul.mubr.msk.f32.gmra.mrb[44].mxu1 %vm5878_vm6, %v39423_v46 }
 0xae2   :  { %26800 = vmatprep.mubr.msk.f32.mxu1 %vm5878_vm6, %v39424_v22 }
 0xae5   :  { %26801 = vmatmul.mubr.msk.f32.gmra.mrb[46].mxu1 %vm5878_vm6, %v39307_v50 }
 0xae6   :  { %26803 = vmatprep.mubr.msk.f32.mxu1 %vm5878_vm6, %v39308_v52 }
 0xae9   :  { %26804 = vmatmul.mubr.msk.f32.gmra.mrb[48].mxu1 %vm5878_vm6, %v39309_v44 }
 0xaea   :  { %26806 = vmatprep.mubr.msk.f32.mxu1 %vm5878_vm6, %v39310_v17 }
 0xaed   :  { %26807 = vmatmul.mubr.msk.f32.gmra.mrb[50].mxu1 %vm5878_vm6, %v39311_v3 }
 0xaee   :  { %26809 = vmatprep.mubr.msk.f32.mxu1 %vm5878_vm6, %v39426_v0  ;;  %v39453_v0 = vld [vmem:[#allocation117_spill] sm:$0xff] }
 0xaf1   :  { %26810 = vmatmul.mubr.msk.f32.gmra.mrb[52].mxu1 %vm5878_vm6, %v39427_v5 }
 0xaf2   :  { %26812 = vmatprep.mubr.msk.f32.mxu1 %vm5878_vm6, %v39428_v35 }
 0xaf5   :  { %26813 = vmatmul.mubr.msk.f32.gmra.mrb[54].mxu1 %vm5878_vm6, %v39315_v28 }
 0xaf6   :  { %26815 = vmatprep.mubr.msk.f32.mxu1 %vm5878_vm6, %v39316_v4 }
 0xaf9   :  { %26816 = vmatmul.mubr.msk.f32.gmra.mrb[56].mxu1 %vm5878_vm6, %v39317_v11 }
 0xafa   :  { %26818 = vmatprep.mubr.msk.f32.mxu1 %vm5878_vm6, %v39318_v55 }
 0xafd   :  { %26819 = vmatmul.mubr.msk.f32.gmra.mrb[58].mxu1 %vm5878_vm6, %v39319_v18 }
 0xafe   :  { %26821 = vmatprep.mubr.msk.f32.mxu1 %vm5878_vm6, %v39430_v1  ;;  %v39451_v1 = vld [vmem:[#allocation98_spill] sm:$0xff] }
 0xb01   :  { %26822 = vmatmul.mubr.msk.f32.gmra.mrb[60].mxu1 %vm5878_vm6, %v39431_v39 }
 0xb02   :  { %26824 = vmatprep.mubr.msk.f32.mxu1 %vm5878_vm6, %v39432_v6 }
 0xb05   :  { %26825 = vmatmul.mubr.msk.f32.gmra.mrb[62].mxu1 %vm5878_vm6, %v39080_v48 }
 0xb06   :  { %26827 = vmatprep.mubr.msk.f32.mxu1 %vm5878_vm6, %v39083_v41 }
 0xb09   :  { %26828 = vmatmul.mubr.msk.f32.gmra.mrb[0].mxu1 %vm5878_vm6, %v39084_v61 }
 0xb0a   :  { %26830 = vmatprep.mubr.msk.f32.mxu1 %vm5878_vm6, %v39087_v26 }
 0xb0d   :  { %26831 = vmatmul.mubr.msk.f32.gmra.mrb[2].mxu1 %vm5878_vm6, %v39321_v42 }
 0xb0e   :  { %26833 = vmatprep.mubr.msk.f32.mxu1 %vm5878_vm6, %v39434_v62  ;;  %v39452_v62 = vld [vmem:[#allocation99_spill] sm:$0xff] }
 0xb11   :  { %26834 = vmatmul.mubr.msk.f32.gmra.mrb[4].mxu1 %vm5878_vm6, %v39435_v13 }
 0xb12   :  { %26836 = vmatprep.mubr.msk.f32.mxu1 %vm5878_vm6, %v39436_v43 }
 0xb15   :  { %26837 = vmatmul.mubr.msk.f32.gmra.mrb[6].mxu1 %vm5878_vm6, %v39203_v14 }
 0xb16   :  { %26839 = vmatprep.mubr.msk.f32.mxu1 %vm5878_vm6, %v39393_v10 }
 0xb19   :  { %26840 = vmatmul.mubr.msk.f32.gmra.mrb[8].mxu1 %vm5878_vm6, %v39207_v31 }
 0xb1a   :  { %26842 = vmatprep.mubr.msk.f32.mxu1 %vm5878_vm6, %v39269_v36 }
 0xb1d   :  { %26843 = vmatmul.mubr.msk.f32.gmra.mrb[10].mxu1 %vm5878_vm6, %v39326_v37 }
 0xb1e   :  { %26845 = vmatprep.mubr.msk.f32.mxu1 %vm5878_vm6, %v39439_v33  ;;  %v39454_v33 = vld [vmem:[#allocation63_spill] sm:$0xff] }
 0xb1f   :  { %v39455_v49 = vmax.f32 %v39454_v33, 0.0  ;;  %v29195_v33 = vmov 0.0|0.0  }
 0xb20   :  { %27490 = vmatprep.subr.bf16.mxu0 %v29195_v33 }
 0xb21   :  { %26846 = vmatmul.mubr.msk.f32.gmra.mrb[12].mxu1 %vm5878_vm6, %v39440_v38 }
 0xb22   :  { %26848 = vmatprep.mubr.msk.f32.mxu1 %vm5878_vm6, %v39441_v34 }
 0xb25   :  { %26849 = vmatmul.mubr.msk.f32.gmra.mrb[14].mxu1 %vm5878_vm6, %v36271_v16 }
 0xb26   :  { %26851 = vmatprep.mubr.msk.f32.mxu1 %vm5878_vm6, %v39451_v1 }
 0xb29   :  { %26852 = vmatmul.mubr.msk.f32.gmra.mrb[16].mxu1 %vm5878_vm6, %v39452_v62 }
 0xb2a   :  { %26854 = vmatprep.mubr.msk.f32.mxu1 %vm5878_vm6, %v39395_v51 }
 0xb2d   :  { %26855 = vmatmul.mubr.msk.f32.gmra.mrb[18].mxu1 %vm5878_vm6, %v39453_v0 }
 0xb2e   :  { %26857 = vmatprep.mubr.msk.f32.mxu1 %vm5878_vm6, %v39455_v49  ;;  %v17755_v49 = vld [vmem:[%s38226_s5] sm:$0xff] }
 0xb2f   :  { %v27491_v23 = vpack.c.bf16 %v17756_v60, %v17755_v49 }
 0xb31   :  { %26858 = vmatmul.mubr.msk.f32.gmra.mrb[20].mxu1 %vm5878_vm6, %v37160_v9  ;;  %27492 = vmatpush3.bf16.msra.mxu0 %v27491_v23 }
 0xb32   :  { %26860 = vmatprep.mubr.msk.f32.mxu1 %vm5878_vm6, %v37168_v32 }
 0xb35   :  { %26861 = vmatmul.mubr.msk.f32.gmra.mrb[22].mxu1 %vm5878_vm6, %v37171_v63 }
 0xb36   :  { %26863 = vmatprep.mubr.msk.f32.mxu1 %vm5878_vm6, %v39456_v20 }
 0xb39   :  { %26864 = vmatmul.mubr.msk.f32.gmra.mrb[24].mxu1 %vm5878_vm6, %v37181_v40 }
 0xb3a   :  { %26866 = vmatprep.mubr.msk.f32.mxu1 %vm5878_vm6, %v37188_v57 }
 0xb3d   :  { %26867 = vmatmul.mubr.msk.f32.gmra.mrb[26].mxu1 %vm5878_vm6, %v37334_v7 }
 0xb3e   :  { %26873 = vmatprep.mubr.msk.f32.mxu1 %vm5878_vm6, %v39218_v56  ;;  %v39458_v56 = vld [vmem:[#allocation38_spill] sm:$0xff] }
 0xb41   :  { %26874 = vmatmul.mubr.msk.f32.vlgmr.msra.gmra.mrb[28].mxu1 %vm5878_vm6, %v39285_v8 }
 0xb42   :  { %27483 = vmatpush3.bf16.msk.msra.mxu1 %vm31375_vm5, %v37200_v25  ;;  %26876 = vmatprep.mubr.msk.f32.mxu1 %vm5878_vm6, %v39286_v54  ;;  %v39459_v25 = vld [vmem:[#allocation50_spill] sm:$0xff] }
 0xb43   :  { %27486 = vmatprep.subr.msk.bf16.mxu1 %vm31375_vm5, %v37346_v53 }
 0xb45   :  { %26877 = vmatmul.mubr.msk.f32.gmra.mrb[30].mxu1 %vm5878_vm6, %v39288_v45 }
 0xb46   :  { %26879 = vmatprep.mubr.msk.f32.mxu1 %vm5878_vm6, %v39289_v58 }
 0xb49   :  { %26880 = vmatmul.mubr.msk.f32.gmra.mrb[32].mxu1 %vm5878_vm6, %v39292_v21 }
 0xb4a   :  { %26882 = vmatprep.mubr.msk.f32.mxu1 %vm5878_vm6, %v39293_v30 }
 0xb4d   :  { %26883 = vmatmul.mubr.msk.f32.gmra.mrb[34].mxu1 %vm5878_vm6, %v39458_v56 }
 0xb4e   :  { %26885 = vmatprep.mubr.msk.f32.mxu1 %vm5878_vm6, %v39419_v24  ;;  %v39460_v24 = vld [vmem:[#allocation62_spill] sm:$0xff] }
 0xb51   :  { %26886 = vmatmul.mubr.msk.f32.gmra.mrb[36].mxu1 %vm5878_vm6, %v39420_v19 }
 0xb52   :  { %26888 = vmatprep.mubr.msk.f32.mxu1 %vm5878_vm6, %v39297_v27 }
 0xb55   :  { %26889 = vmatmul.mubr.msk.f32.gmra.mrb[38].mxu1 %vm5878_vm6, %v39299_v47 }
 0xb56   :  { %26891 = vmatprep.mubr.msk.f32.mxu1 %vm5878_vm6, %v39301_v15 }
 0xb59   :  { %26892 = vmatmul.mubr.msk.f32.gmra.mrb[40].mxu1 %vm5878_vm6, %v39302_v59 }
 0xb5a   :  { %26894 = vmatprep.mubr.msk.f32.mxu1 %vm5878_vm6, %v39303_v2 }
 0xb5d   :  { %26895 = vmatmul.mubr.msk.f32.gmra.mrb[42].mxu1 %vm5878_vm6, %v39459_v25 }
 0xb5e   :  { %26897 = vmatprep.mubr.msk.f32.mxu1 %vm5878_vm6, %v39423_v46  ;;  %v39461_v46 = vld [vmem:[#allocation74_spill] sm:$0xff] }
 0xb61   :  { %26898 = vmatmul.mubr.msk.f32.gmra.mrb[44].mxu1 %vm5878_vm6, %v39424_v22 }
 0xb62   :  { %26900 = vmatprep.mubr.msk.f32.mxu1 %vm5878_vm6, %v39307_v50 }
 0xb65   :  { %26901 = vmatmul.mubr.msk.f32.gmra.mrb[46].mxu1 %vm5878_vm6, %v39308_v52 }
 0xb66   :  { %26903 = vmatprep.mubr.msk.f32.mxu1 %vm5878_vm6, %v39309_v44 }
 0xb69   :  { %26904 = vmatmul.mubr.msk.f32.gmra.mrb[48].mxu1 %vm5878_vm6, %v39310_v17 }
 0xb6a   :  { %26906 = vmatprep.mubr.msk.f32.mxu1 %vm5878_vm6, %v39311_v3 }
 0xb6d   :  { %26907 = vmatmul.mubr.msk.f32.gmra.mrb[50].mxu1 %vm5878_vm6, %v39460_v24 }
 0xb6e   :  { %26909 = vmatprep.mubr.msk.f32.mxu1 %vm5878_vm6, %v39427_v5  ;;  %v39462_v5 = vld [vmem:[#allocation86_spill] sm:$0xff] }
 0xb71   :  { %26910 = vmatmul.mubr.msk.f32.gmra.mrb[52].mxu1 %vm5878_vm6, %v39428_v35 }
 0xb72   :  { %26912 = vmatprep.mubr.msk.f32.mxu1 %vm5878_vm6, %v39315_v28 }
 0xb75   :  { %26913 = vmatmul.mubr.msk.f32.gmra.mrb[54].mxu1 %vm5878_vm6, %v39316_v4 }
 0xb76   :  { %26915 = vmatprep.mubr.msk.f32.mxu1 %vm5878_vm6, %v39317_v11 }
 0xb79   :  { %26916 = vmatmul.mubr.msk.f32.gmra.mrb[56].mxu1 %vm5878_vm6, %v39318_v55 }
 0xb7a   :  { %26918 = vmatprep.mubr.msk.f32.mxu1 %vm5878_vm6, %v39319_v18 }
 0xb7d   :  { %26919 = vmatmul.mubr.msk.f32.gmra.mrb[58].mxu1 %vm5878_vm6, %v39461_v46 }
 0xb7e   :  { %26921 = vmatprep.mubr.msk.f32.mxu1 %vm5878_vm6, %v39431_v39  ;;  %v39463_v39 = vld [vmem:[#allocation115_spill] sm:$0xff] }
 0xb81   :  { %26922 = vmatmul.mubr.msk.f32.gmra.mrb[60].mxu1 %vm5878_vm6, %v39432_v6 }
 0xb82   :  { %26924 = vmatprep.mubr.msk.f32.mxu1 %vm5878_vm6, %v39080_v48 }
 0xb85   :  { %26925 = vmatmul.mubr.msk.f32.gmra.mrb[62].mxu1 %vm5878_vm6, %v39083_v41 }
 0xb86   :  { %26927 = vmatprep.mubr.msk.f32.mxu1 %vm5878_vm6, %v39084_v61 }
 0xb89   :  { %26928 = vmatmul.mubr.msk.f32.gmra.mrb[0].mxu1 %vm5878_vm6, %v39087_v26 }
 0xb8a   :  { %26930 = vmatprep.mubr.msk.f32.mxu1 %vm5878_vm6, %v39321_v42 }
 0xb8d   :  { %26931 = vmatmul.mubr.msk.f32.gmra.mrb[2].mxu1 %vm5878_vm6, %v39462_v5 }
 0xb8e   :  { %26933 = vmatprep.mubr.msk.f32.mxu1 %vm5878_vm6, %v39435_v13  ;;  %v39464_v13 = vld [vmem:[#allocation111_spill] sm:$0xff] }
 0xb91   :  { %26934 = vmatmul.mubr.msk.f32.gmra.mrb[4].mxu1 %vm5878_vm6, %v39436_v43 }
 0xb92   :  { %26936 = vmatprep.mubr.msk.f32.mxu1 %vm5878_vm6, %v39203_v14 }
 0xb95   :  { %26937 = vmatmul.mubr.msk.f32.gmra.mrb[6].mxu1 %vm5878_vm6, %v39393_v10 }
 0xb96   :  { %26939 = vmatprep.mubr.msk.f32.mxu1 %vm5878_vm6, %v39207_v31 }
 0xb99   :  { %26940 = vmatmul.mubr.msk.f32.gmra.mrb[8].mxu1 %vm5878_vm6, %v39269_v36 }
 0xb9a   :  { %26942 = vmatprep.mubr.msk.f32.mxu1 %vm5878_vm6, %v39326_v37 }
 0xb9d   :  { %26943 = vmatmul.mubr.msk.f32.gmra.mrb[10].mxu1 %vm5878_vm6, %v39463_v39 }
 0xb9e   :  { %26945 = vmatprep.mubr.msk.f32.mxu1 %vm5878_vm6, %v39440_v38  ;;  %v39465_v38 = vld [vmem:[#allocation19_spill] sm:$0xff] }
 0xba1   :  { %26946 = vmatmul.mubr.msk.f32.gmra.mrb[12].mxu1 %vm5878_vm6, %v39441_v34 }
 0xba2   :  { %26948 = vmatprep.mubr.msk.f32.mxu1 %vm5878_vm6, %v36271_v16 }
 0xba5   :  { %26949 = vmatmul.mubr.msk.f32.gmra.mrb[14].mxu1 %vm5878_vm6, %v39451_v1 }
 0xba6   :  { %26951 = vmatprep.mubr.msk.f32.mxu1 %vm5878_vm6, %v39452_v62 }
 0xba9   :  { %26952 = vmatmul.mubr.msk.f32.gmra.mrb[16].mxu1 %vm5878_vm6, %v39395_v51 }
 0xbaa   :  { %26954 = vmatprep.mubr.msk.f32.mxu1 %vm5878_vm6, %v39453_v0 }
 0xbad   :  { %26955 = vmatmul.mubr.msk.f32.gmra.mrb[18].mxu1 %vm5878_vm6, %v39464_v13 }
 0xbae   :  { %26957 = vmatprep.mubr.msk.f32.mxu1 %vm5878_vm6, %v37160_v9  ;;  %v37479_v9 = vmax.f32 %v39465_v38, 0.0 }
 0xbb1   :  { %26958 = vmatmul.mubr.msk.f32.gmra.mrb[20].mxu1 %vm5878_vm6, %v37168_v32 }
 0xbb2   :  { %26960 = vmatprep.mubr.msk.f32.mxu1 %vm5878_vm6, %v37171_v63 }
 0xbb5   :  { %26961 = vmatmul.mubr.msk.f32.gmra.mrb[22].mxu1 %vm5878_vm6, %v39456_v20 }
 0xbb6   :  { %26963 = vmatprep.mubr.msk.f32.mxu1 %vm5878_vm6, %v37181_v40 }
 0xbb9   :  { %26964 = vmatmul.mubr.msk.f32.gmra.mrb[24].mxu1 %vm5878_vm6, %v37188_v57 }
 0xbba   :  { %26966 = vmatprep.mubr.msk.f32.mxu1 %vm5878_vm6, %v37334_v7 }
 0xbbd   :  { %26967 = vmatmul.mubr.msk.f32.gmra.mrb[26].mxu1 %vm5878_vm6, %v37479_v9 }
 0xbbe   :  { %26973 = vmatprep.mubr.msk.f32.mxu1 %vm5878_vm6, %v39285_v8  ;;  %v39466_v8 = vld [vmem:[#allocation39_spill] sm:$0xff] }
 0xbc1   :  { %26974 = vmatmul.mubr.msk.f32.vlgmr.msra.gmra.mrb[28].mxu1 %vm5878_vm6, %v39286_v54 }
 0xbc2   :  { %27489 = vmatpush3.bf16.msk.msra.mxu1 %vm31375_vm5, %v37346_v53  ;;  %26976 = vmatprep.mubr.msk.f32.mxu1 %vm5878_vm6, %v39288_v45  ;;  %v39490_v53 = vld [vmem:[#allocation49_spill] sm:$0xff] }
 0xbc5   :  { %26977 = vmatmul.mubr.msk.f32.gmra.mrb[30].mxu1 %vm5878_vm6, %v39289_v58 }
 0xbc6   :  { %26979 = vmatprep.mubr.msk.f32.mxu1 %vm5878_vm6, %v39292_v21 }
 0xbc9   :  { %26980 = vmatmul.mubr.msk.f32.gmra.mrb[32].mxu1 %vm5878_vm6, %v39293_v30 }
 0xbca   :  { %26982 = vmatprep.mubr.msk.f32.mxu1 %vm5878_vm6, %v39458_v56 }
 0xbcd   :  { %26983 = vmatmul.mubr.msk.f32.gmra.mrb[34].mxu1 %vm5878_vm6, %v39466_v8 }
 0xbce   :  { %26985 = vmatprep.mubr.msk.f32.mxu1 %vm5878_vm6, %v39420_v19  ;;  %v39468_v19 = vld [vmem:[#allocation17_spill] sm:$0xff] }
 0xbd1   :  { %26986 = vmatmul.mubr.msk.f32.gmra.mrb[36].mxu1 %vm5878_vm6, %v39297_v27 }
 0xbd2   :  { %26988 = vmatprep.mubr.msk.f32.mxu1 %vm5878_vm6, %v39299_v47 }
 0xbd5   :  { %26989 = vmatmul.mubr.msk.f32.gmra.mrb[38].mxu1 %vm5878_vm6, %v39301_v15 }
 0xbd6   :  { %26991 = vmatprep.mubr.msk.f32.mxu1 %vm5878_vm6, %v39302_v59 }
 0xbd9   :  { %26992 = vmatmul.mubr.msk.f32.gmra.mrb[40].mxu1 %vm5878_vm6, %v39303_v2 }
 0xbda   :  { %26994 = vmatprep.mubr.msk.f32.mxu1 %vm5878_vm6, %v39459_v25 }
 0xbdd   :  { %26995 = vmatmul.mubr.msk.f32.gmra.mrb[42].mxu1 %vm5878_vm6, %v39467_v12 }
 0xbde   :  { %26997 = vmatprep.mubr.msk.f32.mxu1 %vm5878_vm6, %v39424_v22  ;;  %v39469_v22 = vld [vmem:[#allocation21_spill] sm:$0xff] }
 0xbe1   :  { %26998 = vmatmul.mubr.msk.f32.gmra.mrb[44].mxu1 %vm5878_vm6, %v39307_v50 }
 0xbe2   :  { %27000 = vmatprep.mubr.msk.f32.mxu1 %vm5878_vm6, %v39308_v52 }
 0xbe5   :  { %27001 = vmatmul.mubr.msk.f32.gmra.mrb[46].mxu1 %vm5878_vm6, %v39309_v44 }
 0xbe6   :  { %27003 = vmatprep.mubr.msk.f32.mxu1 %vm5878_vm6, %v39310_v17 }
 0xbe9   :  { %27004 = vmatmul.mubr.msk.f32.gmra.mrb[48].mxu1 %vm5878_vm6, %v39311_v3 }
 0xbea   :  { %27006 = vmatprep.mubr.msk.f32.mxu1 %vm5878_vm6, %v39460_v24 }
 0xbed   :  { %27007 = vmatmul.mubr.msk.f32.gmra.mrb[50].mxu1 %vm5878_vm6, %v39468_v19 }
 0xbee   :  { %27009 = vmatprep.mubr.msk.f32.mxu1 %vm5878_vm6, %v39428_v35  ;;  %v39470_v35 = vld [vmem:[#allocation25_spill] sm:$0xff] }
 0xbf1   :  { %27010 = vmatmul.mubr.msk.f32.gmra.mrb[52].mxu1 %vm5878_vm6, %v39315_v28 }
 0xbf2   :  { %27012 = vmatprep.mubr.msk.f32.mxu1 %vm5878_vm6, %v39316_v4 }
 0xbf5   :  { %27013 = vmatmul.mubr.msk.f32.gmra.mrb[54].mxu1 %vm5878_vm6, %v39317_v11 }
 0xbf6   :  { %27015 = vmatprep.mubr.msk.f32.mxu1 %vm5878_vm6, %v39318_v55 }
 0xbf9   :  { %27016 = vmatmul.mubr.msk.f32.gmra.mrb[56].mxu1 %vm5878_vm6, %v39319_v18 }
 0xbfa   :  { %27018 = vmatprep.mubr.msk.f32.mxu1 %vm5878_vm6, %v39461_v46 }
 0xbfd   :  { %27019 = vmatmul.mubr.msk.f32.gmra.mrb[58].mxu1 %vm5878_vm6, %v39469_v22 }
 0xbfe   :  { %27021 = vmatprep.mubr.msk.f32.mxu1 %vm5878_vm6, %v39432_v6  ;;  %v39471_v6 = vld [vmem:[#allocation116_spill] sm:$0xff] }
 0xc01   :  { %27022 = vmatmul.mubr.msk.f32.gmra.mrb[60].mxu1 %vm5878_vm6, %v39080_v48 }
 0xc02   :  { %27024 = vmatprep.mubr.msk.f32.mxu1 %vm5878_vm6, %v39083_v41 }
 0xc05   :  { %27025 = vmatmul.mubr.msk.f32.gmra.mrb[62].mxu1 %vm5878_vm6, %v39084_v61 }
 0xc06   :  { %27027 = vmatprep.mubr.msk.f32.mxu1 %vm5878_vm6, %v39087_v26 }
 0xc09   :  { %27028 = vmatmul.mubr.msk.f32.gmra.mrb[0].mxu1 %vm5878_vm6, %v39321_v42 }
 0xc0a   :  { %27030 = vmatprep.mubr.msk.f32.mxu1 %vm5878_vm6, %v39462_v5 }
 0xc0d   :  { %27031 = vmatmul.mubr.msk.f32.gmra.mrb[2].mxu1 %vm5878_vm6, %v39470_v35 }
 0xc0e   :  { %27033 = vmatprep.mubr.msk.f32.mxu1 %vm5878_vm6, %v39436_v43  ;;  %v39472_v43 = vld [vmem:[#allocation24_spill] sm:$0xff] }
 0xc11   :  { %27034 = vmatmul.mubr.msk.f32.gmra.mrb[4].mxu1 %vm5878_vm6, %v39203_v14 }
 0xc12   :  { %27036 = vmatprep.mubr.msk.f32.mxu1 %vm5878_vm6, %v39393_v10 }
 0xc15   :  { %27037 = vmatmul.mubr.msk.f32.gmra.mrb[6].mxu1 %vm5878_vm6, %v39207_v31 }
 0xc16   :  { %27039 = vmatprep.mubr.msk.f32.mxu1 %vm5878_vm6, %v39269_v36 }
 0xc19   :  { %27040 = vmatmul.mubr.msk.f32.gmra.mrb[8].mxu1 %vm5878_vm6, %v39326_v37 }
 0xc1a   :  { %27042 = vmatprep.mubr.msk.f32.mxu1 %vm5878_vm6, %v39463_v39 }
 0xc1d   :  { %27043 = vmatmul.mubr.msk.f32.gmra.mrb[10].mxu1 %vm5878_vm6, %v39471_v6 }
 0xc1e   :  { %27045 = vmatprep.mubr.msk.f32.mxu1 %vm5878_vm6, %v39441_v34  ;;  %v39473_v34 = vld [vmem:[#allocation20_spill] sm:$0xff] }
 0xc21   :  { %27046 = vmatmul.mubr.msk.f32.gmra.mrb[12].mxu1 %vm5878_vm6, %v36271_v16 }
 0xc22   :  { %27048 = vmatprep.mubr.msk.f32.mxu1 %vm5878_vm6, %v39451_v1 }
 0xc25   :  { %27049 = vmatmul.mubr.msk.f32.gmra.mrb[14].mxu1 %vm5878_vm6, %v39452_v62 }
 0xc26   :  { %27051 = vmatprep.mubr.msk.f32.mxu1 %vm5878_vm6, %v39395_v51 }
 0xc29   :  { %27052 = vmatmul.mubr.msk.f32.gmra.mrb[16].mxu1 %vm5878_vm6, %v39453_v0 }
 0xc2a   :  { %27054 = vmatprep.mubr.msk.f32.mxu1 %vm5878_vm6, %v39464_v13 }
 0xc2d   :  { %27055 = vmatmul.mubr.msk.f32.gmra.mrb[18].mxu1 %vm5878_vm6, %v39472_v43 }
 0xc2e   :  { %27057 = vmatprep.mubr.msk.f32.mxu1 %vm5878_vm6, %v37168_v32  ;;  %v5873_v32 = vmax.f32 %v39473_v34, 0.0 }
 0xc31   :  { %27058 = vmatmul.mubr.msk.f32.gmra.mrb[20].mxu1 %vm5878_vm6, %v37171_v63 }
 0xc32   :  { %27060 = vmatprep.mubr.msk.f32.mxu1 %vm5878_vm6, %v39456_v20 }
 0xc35   :  { %27061 = vmatmul.mubr.msk.f32.gmra.mrb[22].mxu1 %vm5878_vm6, %v37181_v40 }
 0xc36   :  { %27063 = vmatprep.mubr.msk.f32.mxu1 %vm5878_vm6, %v37188_v57 }
 0xc39   :  { %27064 = vmatmul.mubr.msk.f32.gmra.mrb[24].mxu1 %vm5878_vm6, %v37334_v7 }
 0xc3a   :  { %27066 = vmatprep.mubr.msk.f32.mxu1 %vm5878_vm6, %v37479_v9 }
 0xc3d   :  { %27067 = vmatmul.mubr.msk.f32.gmra.mrb[26].mxu1 %vm5878_vm6, %v5873_v32 }
 0xc3e   :  { %27073 = vmatprep.mubr.msk.f32.mxu1 %vm5878_vm6, %v39286_v54  ;;  %v29196_v54 = vmov 0.0  }
 0xc3f   :  { %27173 = vmatprep.subr.mxu0 %v29196_v54  ;;  %27175 = vmatprep.mubr.msk.f32.mxu0 %vm29197_vm8, %v29196_v54 }
 0xc40   :  { %27174 = vmatpush3.msk.msra.mxu0 %vm17762_vm7, %v17757_v29  ;;  %v21417_v29 = vld [vmem:[%s38226_s5 + $0x18] sm:$0xff] }
 0xc41   :  { %27074 = vmatmul.mubr.msk.f32.vlgmr.msra.gmra.mrb[28].mxu1 %vm5878_vm6, %v39288_v45  ;;  %27493 = vmatprep.subr.bf16.mxu0 %v29195_v33  ;;  %v39474_v45 = vld [vmem:[#allocation40_spill] sm:$0xff] }
 0xc42   :  { %27076 = vmatprep.mubr.msk.f32.mxu1 %vm5878_vm6, %v39289_v58  ;;  %v39475_v58 = vld [vmem:[#allocation4_spill] sm:$0xff] }
 0xc45   :  { %27077 = vmatmul.mubr.msk.f32.gmra.mrb[30].mxu1 %vm5878_vm6, %v39292_v21  ;;  %v39476_v21 = vld [vmem:[#allocation7_spill] sm:$0xff] }
 0xc46   :  { %27079 = vmatprep.mubr.msk.f32.mxu1 %vm5878_vm6, %v39293_v30 }
 0xc49   :  { %27080 = vmatmul.mubr.msk.f32.gmra.mrb[32].mxu1 %vm5878_vm6, %v39458_v56 }
 0xc4a   :  { %27082 = vmatprep.mubr.msk.f32.mxu1 %vm5878_vm6, %v39466_v8 }
 0xc4d   :  { %27083 = vmatmul.mubr.msk.f32.gmra.mrb[34].mxu1 %vm5878_vm6, %v39474_v45  ;;  %v21418_v45 = vld [vmem:[%s38226_s5 + $0x20] sm:$0xff] }
 0xc4e   :  { %27085 = vmatprep.mubr.msk.f32.mxu1 %vm5878_vm6, %v39297_v27 }
 0xc51   :  { %27086 = vmatmul.mubr.msk.f32.gmra.mrb[36].mxu1 %vm5878_vm6, %v39299_v47 }
 0xc52   :  { %27088 = vmatprep.mubr.msk.f32.mxu1 %vm5878_vm6, %v39301_v15  ;;  %v39487_v15 = vld [vmem:[#allocation46_spill] sm:$0xff] }
 0xc55   :  { %27089 = vmatmul.mubr.msk.f32.gmra.mrb[38].mxu1 %vm5878_vm6, %v39302_v59 }
 0xc56   :  { %27091 = vmatprep.mubr.msk.f32.mxu1 %vm5878_vm6, %v39303_v2  ;;  %v39488_v2 = vld [vmem:[#allocation47_spill] sm:$0xff] }
 0xc59   :  { %27092 = vmatmul.mubr.msk.f32.gmra.mrb[40].mxu1 %vm5878_vm6, %v39459_v25 }
 0xc5a   :  { %27094 = vmatprep.mubr.msk.f32.mxu1 %vm5878_vm6, %v39467_v12 }
 0xc5d   :  { %27095 = vmatmul.mubr.msk.f32.gmra.mrb[42].mxu1 %vm5878_vm6, %v39475_v58 }
 0xc5e   :  { %27097 = vmatprep.mubr.msk.f32.mxu1 %vm5878_vm6, %v39307_v50 }
 0xc61   :  { %27098 = vmatmul.mubr.msk.f32.gmra.mrb[44].mxu1 %vm5878_vm6, %v39308_v52 }
 0xc62   :  { %27100 = vmatprep.mubr.msk.f32.mxu1 %vm5878_vm6, %v39309_v44 }
 0xc65   :  { %27101 = vmatmul.mubr.msk.f32.gmra.mrb[46].mxu1 %vm5878_vm6, %v39310_v17 }
 0xc66   :  { %27103 = vmatprep.mubr.msk.f32.mxu1 %vm5878_vm6, %v39311_v3  ;;  %v39477_v3 = vld [vmem:[#allocation8_spill] sm:$0xff] }
 0xc69   :  { %27104 = vmatmul.mubr.msk.f32.gmra.mrb[48].mxu1 %vm5878_vm6, %v39460_v24 }
 0xc6a   :  { %27106 = vmatprep.mubr.msk.f32.mxu1 %vm5878_vm6, %v39468_v19 }
 0xc6d   :  { %27107 = vmatmul.mubr.msk.f32.gmra.mrb[50].mxu1 %vm5878_vm6, %v39476_v21 }
 0xc6e   :  { %27109 = vmatprep.mubr.msk.f32.mxu1 %vm5878_vm6, %v39315_v28  ;;  %v39484_v28 = vld [vmem:[#allocation36_spill] sm:$0xff] }
 0xc71   :  { %27110 = vmatmul.mubr.msk.f32.gmra.mrb[52].mxu1 %vm5878_vm6, %v39316_v4 }
 0xc72   :  { %27112 = vmatprep.mubr.msk.f32.mxu1 %vm5878_vm6, %v39317_v11  ;;  %v39483_v11 = vld [vmem:[#allocation27_spill] sm:$0xff] }
 0xc75   :  { %27113 = vmatmul.mubr.msk.f32.gmra.mrb[54].mxu1 %vm5878_vm6, %v39318_v55  ;;  %v39478_v55 = vld [vmem:[#allocation9_spill] sm:$0xff] }
 0xc76   :  { %27115 = vmatprep.mubr.msk.f32.mxu1 %vm5878_vm6, %v39319_v18  ;;  %v39485_v18 = vld [vmem:[#allocation37_spill] sm:$0xff] }
 0xc79   :  { %27116 = vmatmul.mubr.msk.f32.gmra.mrb[56].mxu1 %vm5878_vm6, %v39461_v46 }
 0xc7a   :  { %27118 = vmatprep.mubr.msk.f32.mxu1 %vm5878_vm6, %v39469_v22 }
 0xc7d   :  { %27119 = vmatmul.mubr.msk.f32.gmra.mrb[58].mxu1 %vm5878_vm6, %v39477_v3 }
 0xc7e   :  { %27121 = vmatprep.mubr.msk.f32.mxu1 %vm5878_vm6, %v39080_v48  ;;  %v39480_v48 = vld [vmem:[#allocation10_spill] sm:$0xff] }
 0xc81   :  { %27122 = vmatmul.mubr.msk.f32.gmra.mrb[60].mxu1 %vm5878_vm6, %v39083_v41  ;;  %v39481_v41 = vmax.f32 %v39480_v48, 0.0 }
 0xc82   :  { %27124 = vmatprep.mubr.msk.f32.mxu1 %vm5878_vm6, %v39084_v61  ;;  %v39482_v61 = vld [vmem:[#allocation94_spill] sm:$0xff] }
 0xc85   :  { %27125 = vmatmul.mubr.msk.f32.gmra.mrb[62].mxu1 %vm5878_vm6, %v39087_v26  ;;  %v39479_v26 = vld [vmem:[#allocation16_spill] sm:$0xff] }
 0xc86   :  { %27127 = vmatprep.mubr.msk.f32.mxu1 %vm5878_vm6, %v39321_v42 }
 0xc89   :  { %27128 = vmatmul.mubr.msk.f32.gmra.mrb[0].mxu1 %vm5878_vm6, %v39462_v5 }
 0xc8a   :  { %27130 = vmatprep.mubr.msk.f32.mxu1 %vm5878_vm6, %v39470_v35 }
 0xc8d   :  { %27131 = vmatmul.mubr.msk.f32.gmra.mrb[2].mxu1 %vm5878_vm6, %v39478_v55 }
 0xc8e   :  { %27133 = vmatprep.mubr.msk.f32.mxu1 %vm5878_vm6, %v39203_v14  ;;  %v5874_v14 = vmax.f32 %v39482_v61, 0.0  ;;  %v39496_v61 = vld [vmem:[#allocation69_spill] sm:$0xff] }
 0xc91   :  { %27134 = vmatmul.mubr.msk.f32.gmra.mrb[4].mxu1 %vm5878_vm6, %v39393_v10 }
 0xc92   :  { %27136 = vmatprep.mubr.msk.f32.mxu1 %vm5878_vm6, %v39207_v31  ;;  %v37764_v31 = vld [vmem:[%s38227_s4] ss:$0 sm:$0xff] }
 0xc93   :  { %v27549_v4 = vadd.f32 %v39483_v11, %v37764_v31  ;;  %v27551_v42 = vadd.f32 %v37764_v31, %v39484_v28  ;;  %v27557_v59 = vadd.f32 %v39487_v15, %v37764_v31  ;;  %v27563_v56 = vadd.f32 %v37764_v31, %v39490_v53 }
 0xc95   :  { %27137 = vmatmul.mubr.msk.f32.gmra.mrb[6].mxu1 %vm5878_vm6, %v39269_v36  ;;  %v27553_v36 = vadd.f32 %v39485_v18, %v37764_v31 }
 0xc96   :  { %27139 = vmatprep.mubr.msk.f32.mxu1 %vm5878_vm6, %v39326_v37 }
 0xc99   :  { %27140 = vmatmul.mubr.msk.f32.gmra.mrb[8].mxu1 %vm5878_vm6, %v39463_v39 }
 0xc9a   :  { %27142 = vmatprep.mubr.msk.f32.mxu1 %vm5878_vm6, %v39471_v6 }
 0xc9d   :  { %27143 = vmatmul.mubr.msk.f32.gmra.mrb[10].mxu1 %vm5878_vm6, %v39479_v26  ;;  %v39495_v26 = vld [vmem:[#allocation61_spill] sm:$0xff] }
 0xc9e   :  { %27145 = vmatprep.mubr.msk.f32.mxu1 %vm5878_vm6, %v36271_v16  ;;  %v27573_v48 = vadd.f32 %v39495_v26, %v37764_v31 }
 0xca1   :  { %27146 = vmatmul.mubr.msk.f32.gmra.mrb[12].mxu1 %vm5878_vm6, %v39451_v1 }
 0xca2   :  { %27148 = vmatprep.mubr.msk.f32.mxu1 %vm5878_vm6, %v39452_v62 }
 0xca5   :  { %27149 = vmatmul.mubr.msk.f32.gmra.mrb[14].mxu1 %vm5878_vm6, %v39395_v51  ;;  %v27559_v51 = vadd.f32 %v37764_v31, %v39488_v2 }
 0xca6   :  { %27151 = vmatprep.mubr.msk.f32.mxu1 %vm5878_vm6, %v39453_v0 }
 0xca9   :  { %27152 = vmatmul.mubr.msk.f32.gmra.mrb[16].mxu1 %vm5878_vm6, %v39464_v13  ;;  %v39491_v13 = vld [vmem:[#allocation57_spill] sm:$0xff] }
 0xcaa   :  { %27154 = vmatprep.mubr.msk.f32.mxu1 %vm5878_vm6, %v39472_v43  ;;  %v27565_v38 = vadd.f32 %v39491_v13, %v37764_v31  ;;  %v39493_v43 = vld [vmem:[#allocation59_spill] sm:$0xff] }
 0xcab   :  { %v27569_v34 = vadd.f32 %v39493_v43, %v37764_v31  ;;  %v39503_v43 = vld [vmem:[#allocation84_spill] sm:$0xff] }
 0xcad   :  { %27155 = vmatmul.mubr.msk.f32.gmra.mrb[18].mxu1 %vm5878_vm6, %v39481_v41  ;;  %v27494_v41 = vpack.c.bf16 %v21418_v45, %v21417_v29 }
 0xcae   :  { %27157 = vmatprep.mubr.msk.f32.mxu1 %vm5878_vm6, %v37171_v63 }
 0xcb1   :  { %27158 = vmatmul.mubr.msk.f32.gmra.mrb[20].mxu1 %vm5878_vm6, %v39456_v20  ;;  %v39489_v20 = vld [vmem:[#allocation48_spill] sm:$0xff] }
 0xcb2   :  { %27160 = vmatprep.mubr.msk.f32.mxu1 %vm5878_vm6, %v37181_v40  ;;  %v39486_v40 = vld [vmem:[#allocation45_spill] sm:$0xff] }
 0xcb3   :  { %v27555_v16 = vadd.f32 %v37764_v31, %v39486_v40 }
 0xcb5   :  { %27161 = vmatmul.mubr.msk.f32.gmra.mrb[22].mxu1 %vm5878_vm6, %v37188_v57 }
 0xcb6   :  { %27163 = vmatprep.mubr.msk.f32.mxu1 %vm5878_vm6, %v37334_v7  ;;  %v27561_v7 = vadd.f32 %v39489_v20, %v37764_v31 }
 0xcb9   :  { %27164 = vmatmul.mubr.msk.f32.gmra.mrb[24].mxu1 %vm5878_vm6, %v37479_v9  ;;  %v39492_v9 = vld [vmem:[#allocation58_spill] sm:$0xff] }
 0xcba   :  { %27166 = vmatprep.mubr.msk.f32.mxu1 %vm5878_vm6, %v5873_v32  ;;  %v27567_v8 = vadd.f32 %v37764_v31, %v39492_v9  ;;  %v39494_v32 = vld [vmem:[#allocation60_spill] sm:$0xff] }
 0xcbb   :  { %v27571_v49 = vadd.f32 %v37764_v31, %v39494_v32 }
 0xcbd   :  { %27167 = vmatmul.mubr.msk.f32.gmra.mrb[26].mxu1 %vm5878_vm6, %v5874_v14  ;;  %v27575_v14 = vadd.f32 %v37764_v31, %v39496_v61 }
 0xd14   :  { %v27075_v17 = vpop.f32.mrb[28].mxu1 }
 0xd15   :  { %v27550_v44 = vadd.f32 %v27549_v4, %v27075_v17  ;;  %v17307_v52 = vpop.f32.mrb[29].mxu1 }
 0xd16   :  { %v27552_v50 = vadd.f32 %v27551_v42, %v17307_v52 }
 0xd18   :  { %v17690_v63 = vmax.f32 %v27552_v50, %v27550_v44  ;;  %v27078_v30 = vpop.f32.mrb[30].mxu1  ;;  %v39497_v50 = vld [vmem:[#allocation70_spill] sm:$0xff] }
 0xd19   :  { %v27554_v27 = vadd.f32 %v27553_v36, %v27078_v30  ;;  %v17317_v37 = vpop.f32.mrb[31].mxu1  ;;  %v27577_v18 = vadd.f32 %v39497_v50, %v37764_v31  ;;  %v39498_v36 = vld [vmem:[#allocation71_spill] sm:$0xff] }
 0xd1a   :  { %v27556_v47 = vadd.f32 %v27555_v16, %v17317_v37  ;;  %v27579_v40 = vadd.f32 %v37764_v31, %v39498_v36  ;;  %v21419_v30 = vld [vmem:[%s38226_s5 + $0x28] sm:$0xf]  ;;  %v21423_v37 = vld [vmem:[%s38226_s5 + $0x38] sm:$0xff] }
 0xd1b   :  { %v39508_v36 = vld [vmem:[#allocation122_spill] sm:$0xff] }
 0xd1c   :  { %v17691_v10 = vmax.f32 %v27556_v47, %v27554_v27  ;;  %v27081_v57 = vpop.f32.mrb[32].mxu1  ;;  %v21422_v27 = vld [vmem:[%s38226_s5 + $0x30] sm:$0xff] }
 0xd1d   :  { %v27558_v1 = vadd.f32 %v27557_v59, %v27081_v57  ;;  %v17327_v62 = vpop.f32.mrb[33].mxu1  ;;  %v27497_v57 = vpack.c.bf16 %v21423_v37, %v21422_v27 }
 0xd1e   :  { %v27560_v0 = vadd.f32 %v27559_v51, %v17327_v62  ;;  %v39499_v51 = vld [vmem:[#allocation72_spill] sm:$0xff] }
 0xd20   :  { %v17692_v25 = vmax.f32 %v27560_v0, %v27558_v1  ;;  %v27084_v24 = vpop.f32.mrb[34].mxu1  ;;  %v39500_v1 = vld [vmem:[#allocation73_spill] sm:$0xff] }
 0xd21   :  { %v27562_v46 = vadd.f32 %v27561_v7, %v27084_v24  ;;  %v17337_v5 = vpop.f32.mrb[35].mxu1  ;;  %v27583_v62 = vadd.f32 %v37764_v31, %v39500_v1  ;;  %v21434_v1 = vld [vmem:[%s38226_s5 + $0x70] sm:$0xf] }
 0xd22   :  { %v27564_v39 = vadd.f32 %v27563_v56, %v17337_v5 }
 0xd24   :  { %v17693_v12 = vmax.f32 %v27564_v39, %v27562_v46  ;;  %v27087_v19 = vpop.f32.mrb[36].mxu1  ;;  %v39501_v46 = vld [vmem:[#allocation85_spill] sm:$0xff]  ;;  %v39502_v39 = vld [vmem:[#allocation114_spill] sm:$0xff] }
 0xd25   :  { %v27566_v22 = vadd.f32 %v27565_v38, %v27087_v19  ;;  %v17347_v35 = vpop.f32.mrb[37].mxu1  ;;  %v27585_v5 = vadd.f32 %v39501_v46, %v37764_v31  ;;  %v27587_v13 = vadd.f32 %v37764_v31, %v39502_v39  ;;  %v21428_v19 = vld [vmem:[%s38226_s5 + $0x50] sm:$0xff] }
 0xd26   :  { %v27568_v6 = vadd.f32 %v27567_v8, %v17347_v35  ;;  %v21424_v8 = vld [vmem:[%s38226_s5 + $0x40] sm:$0xf] }
 0xd28   :  { %v17706_v60 = vmax.f32 %v27568_v6, %v27566_v22  ;;  %v27090_v23 = vpop.f32.mrb[38].mxu1 }
 0xd29   :  { %v27570_v58 = vadd.f32 %v27569_v34, %v27090_v23  ;;  %v17357_v21 = vpop.f32.mrb[39].mxu1  ;;  %v27589_v34 = vadd.f32 %v39503_v43, %v37764_v31  ;;  %v39514_v43 = vld [vmem:[#allocation128_spill] sm:$0xff] }
 0xd2a   :  { %v17722_v3 = vmax.f32 %v17690_v63, %v17706_v60  ;;  %v27572_v55 = vadd.f32 %v27571_v49, %v17357_v21  ;;  %v39504_v49 = vld [vmem:[#allocation118_spill] sm:$0xff] }
 0xd2b   :  { %v27591_v60 = vadd.f32 %v37764_v31, %v39504_v49 }
 0xd2c   :  { %v17738_v11 = vmax.f32 %v17722_v3, 0.0  ;;  %v17707_v4 = vmax.f32 %v27572_v55, %v27570_v58  ;;  %v27093_v28 = vpop.f32.mrb[40].mxu1  ;;  %v39505_v55 = vld [vmem:[#allocation119_spill] sm:$0xff] }
 0xd2d   :  { %v27574_v42 = vadd.f32 %v27573_v48, %v27093_v28  ;;  %v17367_v17 = vpop.f32.mrb[41].mxu1  ;;  %v27593_v26 = vadd.f32 %v39505_v55, %v37764_v31  ;;  %v39506_v48 = vld [vmem:[#allocation120_spill] sm:$0xff]  ;;  %v39515_v55 = vld [vmem:[#allocation129_spill] sm:$0xff] }
 0xd2e   :  { %v17723_v44 = vmax.f32 %v17691_v10, %v17707_v4  ;;  %v27576_v52 = vadd.f32 %v27575_v14, %v17367_v17  ;;  %27176 = vmatmul.mubr.msk.f32.vlgmr.msra.gmra.mrb[128].mxu0 %vm17758_vm9, %v17738_v11  ;;  %v27581_v10 = vadd.f32 %v39499_v51, %v37764_v31  ;;  %v21429_v11 = vld [vmem:[%s38226_s5 + $0x58] sm:$0xf]  ;;  %v21432_v4 = vld [vmem:[%s38226_s5 + $0x60] sm:$0xff]  ;;  %v21433_v28 = vld [vmem:[%s38226_s5 + $0x68] sm:$0xff] }
 0xd2f   :  { %27495 = vmatpush3.bf16.msra.mxu0 %v27494_v41  ;;  %27184 = vmatprep.mubr.msk.f32.mxu0 %vm29197_vm8, %v29196_v54  ;;  %v27595_v41 = vadd.f32 %v37764_v31, %v39506_v48 }
 0xd30   :  { %v17708_v16 = vmax.f32 %v27576_v52, %v27574_v42  ;;  %v27096_v63 = vpop.f32.mrb[42].mxu1  ;;  %27182 = vmatprep.subr.mxu0 %v29196_v54  ;;  %v17739_v0 = vmax.f32 %v17723_v44, 0.0  ;;  %v39507_v52 = vld [vmem:[#allocation121_spill] sm:$0xff] }
 0xd31   :  { %v27578_v47 = vadd.f32 %v27577_v18, %v27096_v63  ;;  %v17377_v15 = vpop.f32.mrb[43].mxu1  ;;  %v27597_v50 = vadd.f32 %v39507_v52, %v37764_v31  ;;  %v27503_v18 = vpack.c.bf16 %v21433_v28, %v21432_v4  ;;  %v39517_v52 = vld [vmem:[#allocation131_spill] sm:$0xff] }
 0xd32   :  { %v17724_v59 = vmax.f32 %v17692_v25, %v17708_v16  ;;  %v27580_v2 = vadd.f32 %v27579_v40, %v17377_v15  ;;  %v27599_v40 = vadd.f32 %v37764_v31, %v39508_v36  ;;  %v39509_v15 = vld [vmem:[#allocation123_spill] sm:$0xff] }
 0xd33   :  { %27183 = vmatpush3.msk.msra.mxu0 %vm17762_vm7, %v21419_v30 }
 0xd34   :  { %v17709_v20 = vmax.f32 %v27580_v2, %v27578_v47  ;;  %v27099_v7 = vpop.f32.mrb[44].mxu1  ;;  %27496 = vmatprep.subr.bf16.mxu0 %v29195_v33  ;;  %v17740_v23 = vmax.f32 %v17724_v59, 0.0  ;;  %v27601_v59 = vadd.f32 %v39509_v15, %v37764_v31  ;;  %v39510_v2 = vld [vmem:[#allocation124_spill] sm:$0xff] }
 0xd35   :  { %v37823_v53 = vadd.f32 %v27581_v10, %v27099_v7  ;;  %v17387_v56 = vpop.f32.mrb[45].mxu1  ;;  %v27603_v51 = vadd.f32 %v37764_v31, %v39510_v2 }
 0xd36   :  { %v17725_v24 = vmax.f32 %v17693_v12, %v17709_v20  ;;  %v37825_v25 = vadd.f32 %v27583_v62, %v17387_v56  ;;  %27185 = vmatmul.mubr.msk.f32.vlgmr.msra.gmra.mrb[128].mxu0 %vm17758_vm9, %v17739_v0  ;;  %v21427_v12 = vld [vmem:[%s38226_s5 + $0x48] sm:$0xff]  ;;  %v21437_v62 = vld [vmem:[%s38226_s5 + $0x78] sm:$0xff]  ;;  %v21438_v0 = vld [vmem:[%s38226_s5 + $0x80] sm:$0xff] }
 0xd37   :  { %27498 = vmatpush3.bf16.msra.mxu0 %v27497_v57  ;;  %27193 = vmatprep.mubr.msk.f32.mxu0 %vm29197_vm8, %v29196_v54  ;;  %v27500_v32 = vpack.c.bf16 %v21428_v19, %v21427_v12  ;;  %v27506_v46 = vpack.c.bf16 %v21438_v0, %v21437_v62 }
 0xd38   :  { %v17694_v38 = vmax.f32 %v37825_v25, %v37823_v53  ;;  %v27102_v9 = vpop.f32.mrb[46].mxu1  ;;  %27191 = vmatprep.subr.mxu0 %v29196_v54  ;;  %v17741_v16 = vmax.f32 %v17725_v24, 0.0  ;;  %v39511_v24 = vld [vmem:[#allocation125_spill] sm:$0xff] }
 0xd39   :  { %v37846_v22 = vadd.f32 %v27585_v5, %v27102_v9  ;;  %v17397_v35 = vpop.f32.mrb[47].mxu1  ;;  %v27605_v25 = vadd.f32 %v39511_v24, %v37764_v31  ;;  %v39512_v5 = vld [vmem:[#allocation126_spill] sm:$0xff] }
 0xd3a   :  { %v37848_v6 = vadd.f32 %v27587_v13, %v17397_v35  ;;  %v27607_v39 = vadd.f32 %v37764_v31, %v39512_v5 }
 0xd3b   :  { %27192 = vmatpush3.msk.msra.mxu0 %vm17762_vm7, %v21424_v8 }
 0xd3c   :  { %v17695_v29 = vmax.f32 %v37848_v6, %v37846_v22  ;;  %v27105_v45 = vpop.f32.mrb[48].mxu1  ;;  %27499 = vmatprep.subr.bf16.mxu0 %v29195_v33 }
 0xd3d   :  { %v37858_v58 = vadd.f32 %v27589_v34, %v27105_v45  ;;  %v17407_v21 = vpop.f32.mrb[49].mxu1  ;;  %v27611_v34 = vadd.f32 %v37764_v31, %v39514_v43  ;;  %v39524_v43 = vld [vmem:[#allocation105_spill] sm:$0xff] }
 0xd3e   :  { %v37860_v3 = vadd.f32 %v27591_v60, %v17407_v21  ;;  %27194 = vmatmul.mubr.msk.f32.vlgmr.msra.gmra.mrb[128].mxu0 %vm17758_vm9, %v17740_v23  ;;  %v21439_v60 = vld [vmem:[%s38226_s5 + $0x88] sm:$0xf]  ;;  %v21442_v23 = vld [vmem:[%s38226_s5 + $0x90] sm:$0xff] }
 0xd3f   :  { %27501 = vmatpush3.bf16.msra.mxu0 %v27500_v32  ;;  %27202 = vmatprep.mubr.msk.f32.mxu0 %vm29197_vm8, %v29196_v54 }
 0xd40   :  { %v17696_v61 = vmax.f32 %v37860_v3, %v37858_v58  ;;  %v27108_v14 = vpop.f32.mrb[50].mxu1  ;;  %27200 = vmatprep.subr.mxu0 %v29196_v54 }
 0xd41   :  { %v37881_v42 = vadd.f32 %v27593_v26, %v27108_v14  ;;  %v17417_v17 = vpop.f32.mrb[51].mxu1  ;;  %v27613_v26 = vadd.f32 %v39515_v55, %v37764_v31 }
 0xd42   :  { %v37883_v44 = vadd.f32 %v27595_v41, %v17417_v17  ;;  %v39516_v41 = vld [vmem:[#allocation130_spill] sm:$0xff] }
 0xd43   :  { %27201 = vmatpush3.msk.msra.mxu0 %vm17762_vm7, %v21429_v11  ;;  %v27615_v14 = vadd.f32 %v37764_v31, %v39516_v41  ;;  %v21454_v41 = vld [vmem:[%s38226_s5 + $0xd0] sm:$0xf] }
 0xd44   :  { %v17697_v63 = vmax.f32 %v37883_v44, %v37881_v42  ;;  %v27111_v30 = vpop.f32.mrb[52].mxu1  ;;  %27502 = vmatprep.subr.bf16.mxu0 %v29195_v33 }
 0xd45   :  { %v27598_v27 = vadd.f32 %v27597_v50, %v27111_v30  ;;  %v17427_v37 = vpop.f32.mrb[53].mxu1  ;;  %v27617_v50 = vadd.f32 %v39517_v52, %v37764_v31  ;;  %v21447_v30 = vld [vmem:[%s38226_s5 + $0xa8] sm:$0xff] }
 0xd46   :  { %v27600_v47 = vadd.f32 %v27599_v40, %v17427_v37  ;;  %27203 = vmatmul.mubr.msk.f32.vlgmr.msra.gmra.mrb[128].mxu0 %vm17758_vm9, %v17741_v16 }
 0xd47   :  { %27504 = vmatpush3.bf16.msra.mxu0 %v27503_v18  ;;  %27211 = vmatprep.mubr.msk.f32.mxu0 %vm29197_vm8, %v29196_v54  ;;  %v39518_v18 = vld [vmem:[#allocation132_spill] sm:$0xff] }
 0xd48   :  { %v17710_v10 = vmax.f32 %v27600_v47, %v27598_v27  ;;  %v27114_v57 = vpop.f32.mrb[54].mxu1  ;;  %27209 = vmatprep.subr.mxu0 %v29196_v54  ;;  %v27619_v36 = vadd.f32 %v37764_v31, %v39518_v18  ;;  %v21448_v27 = vld [vmem:[%s38226_s5 + $0xb0] sm:$0xff] }
 0xd49   :  { %v27602_v20 = vadd.f32 %v27601_v59, %v27114_v57  ;;  %v17437_v7 = vpop.f32.mrb[55].mxu1  ;;  %v39519_v59 = vld [vmem:[#allocation102_spill] sm:$0xff] }
 0xd4a   :  { %v17726_v53 = vmax.f32 %v17694_v38, %v17710_v10  ;;  %v27604_v56 = vadd.f32 %v27603_v51, %v17437_v7  ;;  %v39513_v38 = vld [vmem:[#allocation127_spill] sm:$0xff]  ;;  %v27621_v2 = vadd.f32 %v39519_v59, %v37764_v31  ;;  %v27512_v51 = vpack.c.bf16 %v21448_v27, %v21447_v30  ;;  %v39520_v10 = vld [vmem:[#allocation78_spill] sm:$0xff]  ;;  %v39530_v59 = vld [vmem:[#allocation100_spill] sm:$0xff] }
 0xd4b   :  { %27210 = vmatpush3.msk.msra.mxu0 %vm17762_vm7, %v21434_v1  ;;  %v27609_v6 = vadd.f32 %v39513_v38, %v37764_v31  ;;  %v27623_v57 = vadd.f32 %v37764_v31, %v39520_v10 }
 0xd4c   :  { %v17742_v13 = vmax.f32 %v17726_v53, 0.0  ;;  %v17711_v9 = vmax.f32 %v27604_v56, %v27602_v20  ;;  %v27117_v8 = vpop.f32.mrb[56].mxu1  ;;  %27505 = vmatprep.subr.bf16.mxu0 %v29195_v33  ;;  %v39521_v56 = vld [vmem:[#allocation103_spill] sm:$0xff] }
 0xd4d   :  { %v27606_v12 = vadd.f32 %v27605_v25, %v27117_v8  ;;  %v17447_v19 = vpop.f32.mrb[57].mxu1  ;;  %v27625_v24 = vadd.f32 %v39521_v56, %v37764_v31  ;;  %v39522_v25 = vld [vmem:[#allocation104_spill] sm:$0xff]  ;;  %v39531_v56 = vld [vmem:[#allocation113_spill] sm:$0xff] }
 0xd4e   :  { %v17727_v22 = vmax.f32 %v17695_v29, %v17711_v9  ;;  %v27608_v35 = vadd.f32 %v27607_v39, %v17447_v19  ;;  %27212 = vmatmul.mubr.msk.f32.vlgmr.msra.gmra.mrb[128].mxu0 %vm17758_vm9, %v17742_v13  ;;  %v21443_v29 = vld [vmem:[%s38226_s5 + $0x98] sm:$0xff]  ;;  %v21452_v9 = vld [vmem:[%s38226_s5 + $0xc0] sm:$0xff]  ;;  %v21453_v8 = vld [vmem:[%s38226_s5 + $0xc8] sm:$0xff] }
 0xd4f   :  { %27507 = vmatpush3.bf16.msra.mxu0 %v27506_v46  ;;  %27220 = vmatprep.mubr.msk.f32.mxu0 %vm29197_vm8, %v29196_v54  ;;  %v27509_v48 = vpack.c.bf16 %v21443_v29, %v21442_v23  ;;  %v27627_v46 = vadd.f32 %v37764_v31, %v39522_v25  ;;  %v21449_v13 = vld [vmem:[%s38226_s5 + $0xb8] sm:$0xf] }
 0xd50   :  { %v17712_v32 = vmax.f32 %v27608_v35, %v27606_v12  ;;  %v27120_v49 = vpop.f32.mrb[58].mxu1  ;;  %27218 = vmatprep.subr.mxu0 %v29196_v54  ;;  %v17743_v11 = vmax.f32 %v17727_v22, 0.0  ;;  %v39523_v35 = vld [vmem:[#allocation112_spill] sm:$0xff] }
 0xd51   :  { %v27610_v45 = vadd.f32 %v27609_v6, %v27120_v49  ;;  %v17457_v58 = vpop.f32.mrb[59].mxu1  ;;  %v27629_v38 = vadd.f32 %v39523_v35, %v37764_v31  ;;  %v27515_v6 = vpack.c.bf16 %v21453_v8, %v21452_v9  ;;  %v39533_v35 = vld [vmem:[#allocation14_spill] sm:$0xff] }
 0xd52   :  { %v17728_v21 = vmax.f32 %v17696_v61, %v17712_v32  ;;  %v27612_v3 = vadd.f32 %v27611_v34, %v17457_v58  ;;  %v27631_v34 = vadd.f32 %v37764_v31, %v39524_v43  ;;  %v39525_v58 = vld [vmem:[#allocation106_spill] sm:$0xff] }
 0xd53   :  { %27219 = vmatpush3.msk.msra.mxu0 %vm17762_vm7, %v21439_v60 }
 0xd54   :  { %v17713_v4 = vmax.f32 %v27612_v3, %v27610_v45  ;;  %v27123_v28 = vpop.f32.mrb[60].mxu1  ;;  %27508 = vmatprep.subr.bf16.mxu0 %v29195_v33  ;;  %v17744_v1 = vmax.f32 %v17728_v21, 0.0  ;;  %v27633_v21 = vadd.f32 %v39525_v58, %v37764_v31  ;;  %v39526_v3 = vld [vmem:[#allocation6_spill] sm:$0xff] }
 0xd55   :  { %v37939_v42 = vadd.f32 %v27613_v26, %v27123_v28  ;;  %v17467_v17 = vpop.f32.mrb[61].mxu1  ;;  %v27635_v55 = vadd.f32 %v37764_v31, %v39526_v3 }
 0xd56   :  { %v17729_v44 = vmax.f32 %v17697_v63, %v17713_v4  ;;  %v37941_v61 = vadd.f32 %v27615_v14, %v17467_v17  ;;  %27221 = vmatmul.mubr.msk.f32.vlgmr.msra.gmra.mrb[128].mxu0 %vm17758_vm9, %v17743_v11  ;;  %v21444_v63 = vld [vmem:[%s38226_s5 + $0xa0] sm:$0xf]  ;;  %v21457_v14 = vld [vmem:[%s38226_s5 + $0xd8] sm:$0xff] }
 0xd57   :  { %27510 = vmatpush3.bf16.msra.mxu0 %v27509_v48  ;;  %27229 = vmatprep.mubr.msk.f32.mxu0 %vm29197_vm8, %v29196_v54  ;;  %v21458_v11 = vld [vmem:[%s38226_s5 + $0xe0] sm:$0xff] }
 0xd58   :  { %v17698_v40 = vmax.f32 %v37941_v61, %v37939_v42  ;;  %v27126_v16 = vpop.f32.mrb[62].mxu1  ;;  %27227 = vmatprep.subr.mxu0 %v29196_v54  ;;  %v17745_v32 = vmax.f32 %v17729_v44, 0.0  ;;  %v39527_v44 = vld [vmem:[#allocation31_spill] sm:$0xff]  ;;  %v27518_v52 = vpack.c.bf16 %v21458_v11, %v21457_v14 }
 0xd59   :  { %v37962_v37 = vadd.f32 %v27617_v50, %v27126_v16  ;;  %v17477_v47 = vpop.f32.mrb[63].mxu1  ;;  %v27637_v61 = vadd.f32 %v39527_v44, %v37764_v31  ;;  %v39528_v50 = vld [vmem:[#allocation75_spill] sm:$0xff] }
 0xd5a   :  { %v37964_v15 = vadd.f32 %v27619_v36, %v17477_v47  ;;  %v27639_v18 = vadd.f32 %v37764_v31, %v39528_v50 }
 0xd5b   :  { %27228 = vmatpush3.msk.msra.mxu0 %vm17762_vm7, %v21444_v63 }
 0xd5c   :  { %v17699_v62 = vmax.f32 %v37964_v15, %v37962_v37  ;;  %v27129_v0 = vpop.f32.mrb[0].mxu1  ;;  %27511 = vmatprep.subr.bf16.mxu0 %v29195_v33 }
 0xd5d   :  { %v37974_v20 = vadd.f32 %v27621_v2, %v27129_v0  ;;  %v17487_v7 = vpop.f32.mrb[1].mxu1  ;;  %v27643_v2 = vadd.f32 %v37764_v31, %v39530_v59  ;;  %v39540_v59 = vld [vmem:[#allocation18_spill] sm:$0xff] }
 0xd5e   :  { %v37976_v53 = vadd.f32 %v27623_v57, %v17487_v7  ;;  %27230 = vmatmul.mubr.msk.f32.vlgmr.msra.gmra.mrb[128].mxu0 %vm17758_vm9, %v17744_v1  ;;  %v21459_v57 = vld [vmem:[%s38226_s5 + $0xe8] sm:$0xf]  ;;  %v21462_v1 = vld [vmem:[%s38226_s5 + $0xf0] sm:$0xff] }
 0xd5f   :  { %27513 = vmatpush3.bf16.msra.mxu0 %v27512_v51  ;;  %27238 = vmatprep.mubr.msk.f32.mxu0 %vm29197_vm8, %v29196_v54 }
 0xd60   :  { %v17700_v5 = vmax.f32 %v37976_v53, %v37974_v20  ;;  %v27132_v39 = vpop.f32.mrb[2].mxu1  ;;  %27236 = vmatprep.subr.mxu0 %v29196_v54 }
 0xd61   :  { %v37997_v12 = vadd.f32 %v27625_v24, %v27132_v39  ;;  %v17497_v19 = vpop.f32.mrb[3].mxu1  ;;  %v27645_v24 = vadd.f32 %v39531_v56, %v37764_v31 }
 0xd62   :  { %v37999_v22 = vadd.f32 %v27627_v46, %v17497_v19  ;;  %v39532_v46 = vld [vmem:[#allocation52_spill] sm:$0xff] }
 0xd63   :  { %27237 = vmatpush3.msk.msra.mxu0 %vm17762_vm7, %v21449_v13  ;;  %v27647_v39 = vadd.f32 %v37764_v31, %v39532_v46  ;;  %v21474_v46 = vld [vmem:[%s38226_s5 + $0x130] sm:$0xf] }
 0xd64   :  { %v17701_v49 = vmax.f32 %v37999_v22, %v37997_v12  ;;  %v27135_v60 = vpop.f32.mrb[4].mxu1  ;;  %27514 = vmatprep.subr.bf16.mxu0 %v29195_v33 }
 0xd65   :  { %v27630_v23 = vadd.f32 %v27629_v38, %v27135_v60  ;;  %v17507_v29 = vpop.f32.mrb[5].mxu1  ;;  %v27649_v38 = vadd.f32 %v39533_v35, %v37764_v31  ;;  %v21467_v60 = vld [vmem:[%s38226_s5 + $0x108] sm:$0xff] }
 0xd66   :  { %v27632_v45 = vadd.f32 %v27631_v34, %v17507_v29  ;;  %27239 = vmatmul.mubr.msk.f32.vlgmr.msra.gmra.mrb[128].mxu0 %vm17758_vm9, %v17745_v32 }
 0xd67   :  { %27516 = vmatpush3.bf16.msra.mxu0 %v27515_v6  ;;  %27247 = vmatprep.mubr.msk.f32.mxu0 %vm29197_vm8, %v29196_v54  ;;  %v39534_v6 = vld [vmem:[#allocation81_spill] sm:$0xff] }
 0xd68   :  { %v17714_v26 = vmax.f32 %v27632_v45, %v27630_v23  ;;  %v27138_v48 = vpop.f32.mrb[6].mxu1  ;;  %27245 = vmatprep.subr.mxu0 %v29196_v54  ;;  %v27651_v43 = vadd.f32 %v37764_v31, %v39534_v6  ;;  %v21468_v23 = vld [vmem:[%s38226_s5 + $0x110] sm:$0xff] }
 0xd69   :  { %v27634_v4 = vadd.f32 %v27633_v21, %v27138_v48  ;;  %v17517_v28 = vpop.f32.mrb[7].mxu1  ;;  %v39535_v21 = vld [vmem:[#allocation93_spill] sm:$0xff] }
 0xd6a   :  { %v17730_v42 = vmax.f32 %v17698_v40, %v17714_v26  ;;  %v27636_v17 = vadd.f32 %v27635_v55, %v17517_v28  ;;  %v39529_v40 = vld [vmem:[#allocation92_spill] sm:$0xff]  ;;  %v27653_v3 = vadd.f32 %v39535_v21, %v37764_v31  ;;  %v27524_v55 = vpack.c.bf16 %v21468_v23, %v21467_v60  ;;  %v39536_v26 = vld [vmem:[#allocation107_spill] sm:$0xff] }
 0xd6b   :  { %27246 = vmatpush3.msk.msra.mxu0 %vm17762_vm7, %v21454_v41  ;;  %v27641_v15 = vadd.f32 %v39529_v40, %v37764_v31  ;;  %v27655_v48 = vadd.f32 %v37764_v31, %v39536_v26  ;;  %v39546_v21 = vld [vmem:[#allocation28_spill] sm:$0xff] }
 0xd6c   :  { %v17746_v36 = vmax.f32 %v17730_v42, 0.0  ;;  %v17715_v16 = vmax.f32 %v27636_v17, %v27634_v4  ;;  %v27141_v63 = vpop.f32.mrb[8].mxu1  ;;  %27517 = vmatprep.subr.bf16.mxu0 %v29195_v33  ;;  %v39537_v17 = vld [vmem:[#allocation82_spill] sm:$0xff] }
 0xd6d   :  { %v27638_v30 = vadd.f32 %v27637_v61, %v27141_v63  ;;  %v17527_v27 = vpop.f32.mrb[9].mxu1  ;;  %v27657_v44 = vadd.f32 %v39537_v17, %v37764_v31  ;;  %v39538_v61 = vld [vmem:[#allocation83_spill] sm:$0xff] }
 0xd6e   :  { %v17731_v37 = vmax.f32 %v17699_v62, %v17715_v16  ;;  %v27640_v47 = vadd.f32 %v27639_v18, %v17527_v27  ;;  %27248 = vmatmul.mubr.msk.f32.vlgmr.msra.gmra.mrb[128].mxu0 %vm17758_vm9, %v17746_v36  ;;  %v21463_v62 = vld [vmem:[%s38226_s5 + $0xf8] sm:$0xff]  ;;  %v21472_v16 = vld [vmem:[%s38226_s5 + $0x120] sm:$0xff]  ;;  %v21473_v63 = vld [vmem:[%s38226_s5 + $0x128] sm:$0xff] }
 0xd6f   :  { %27519 = vmatpush3.bf16.msra.mxu0 %v27518_v52  ;;  %27256 = vmatprep.mubr.msk.f32.mxu0 %vm29197_vm8, %v29196_v54  ;;  %v27521_v25 = vpack.c.bf16 %v21463_v62, %v21462_v1  ;;  %v27659_v52 = vadd.f32 %v37764_v31, %v39538_v61  ;;  %v21469_v36 = vld [vmem:[%s38226_s5 + $0x118] sm:$0xf] }
 0xd70   :  { %v17716_v51 = vmax.f32 %v27640_v47, %v27638_v30  ;;  %v27144_v10 = vpop.f32.mrb[10].mxu1  ;;  %27254 = vmatprep.subr.mxu0 %v29196_v54  ;;  %v17747_v13 = vmax.f32 %v17731_v37, 0.0  ;;  %v39539_v47 = vld [vmem:[#allocation108_spill] sm:$0xff] }
 0xd71   :  { %v27642_v0 = vadd.f32 %v27641_v15, %v27144_v10  ;;  %v17537_v20 = vpop.f32.mrb[11].mxu1  ;;  %v27661_v40 = vadd.f32 %v39539_v47, %v37764_v31  ;;  %v27527_v15 = vpack.c.bf16 %v21473_v63, %v21472_v16  ;;  %v21489_v63 = vld [vmem:[%s38226_s5 + $0x178] sm:$0xf] }
 0xd72   :  { %v17732_v7 = vmax.f32 %v17700_v5, %v17716_v51  ;;  %v27644_v53 = vadd.f32 %v27643_v2, %v17537_v20  ;;  %v27663_v2 = vadd.f32 %v37764_v31, %v39540_v59  ;;  %v39541_v20 = vld [vmem:[#allocation32_spill] sm:$0xff] }
 0xd73   :  { %27255 = vmatpush3.msk.msra.mxu0 %vm17762_vm7, %v21459_v57 }
 0xd74   :  { %v17717_v9 = vmax.f32 %v27644_v53, %v27642_v0  ;;  %v27147_v8 = vpop.f32.mrb[12].mxu1  ;;  %27520 = vmatprep.subr.bf16.mxu0 %v29195_v33  ;;  %v17748_v41 = vmax.f32 %v17732_v7, 0.0  ;;  %v27665_v7 = vadd.f32 %v39541_v20, %v37764_v31  ;;  %v39542_v53 = vld [vmem:[#allocation33_spill] sm:$0xff] }
 0xd75   :  { %v38055_v12 = vadd.f32 %v27645_v24, %v27147_v8  ;;  %v17547_v19 = vpop.f32.mrb[13].mxu1  ;;  %v27667_v56 = vadd.f32 %v37764_v31, %v39542_v53 }
 0xd76   :  { %v17733_v22 = vmax.f32 %v17701_v49, %v17717_v9  ;;  %v38057_v5 = vadd.f32 %v27647_v39, %v17547_v19  ;;  %27257 = vmatmul.mubr.msk.f32.vlgmr.msra.gmra.mrb[128].mxu0 %vm17758_vm9, %v17747_v13  ;;  %v21464_v49 = vld [vmem:[%s38226_s5 + $0x100] sm:$0xf]  ;;  %v21477_v39 = vld [vmem:[%s38226_s5 + $0x138] sm:$0xff] }
 0xd77   :  { %27522 = vmatpush3.bf16.msra.mxu0 %v27521_v25  ;;  %27265 = vmatprep.mubr.msk.f32.mxu0 %vm29197_vm8, %v29196_v54  ;;  %v21478_v13 = vld [vmem:[%s38226_s5 + $0x140] sm:$0xff] }
 0xd78   :  { %v17702_v34 = vmax.f32 %v38057_v5, %v38055_v12  ;;  %v27150_v32 = vpop.f32.mrb[14].mxu1  ;;  %27263 = vmatprep.subr.mxu0 %v29196_v54  ;;  %v17749_v51 = vmax.f32 %v17733_v22, 0.0  ;;  %v39543_v22 = vld [vmem:[#allocation23_spill] sm:$0xff]  ;;  %v27530_v35 = vpack.c.bf16 %v21478_v13, %v21477_v39 }
 0xd79   :  { %v38078_v29 = vadd.f32 %v27649_v38, %v27150_v32  ;;  %v17557_v45 = vpop.f32.mrb[15].mxu1  ;;  %v27669_v5 = vadd.f32 %v39543_v22, %v37764_v31  ;;  %v39544_v38 = vld [vmem:[#allocation34_spill] sm:$0xff] }
 0xd7a   :  { %v38080_v58 = vadd.f32 %v27651_v43, %v17557_v45  ;;  %v27671_v6 = vadd.f32 %v37764_v31, %v39544_v38 }
 0xd7b   :  { %27264 = vmatpush3.msk.msra.mxu0 %vm17762_vm7, %v21464_v49 }
 0xd7c   :  { %v17703_v14 = vmax.f32 %v38080_v58, %v38078_v29  ;;  %v27153_v11 = vpop.f32.mrb[16].mxu1  ;;  %27523 = vmatprep.subr.bf16.mxu0 %v29195_v33 }
 0xd7d   :  { %v38090_v4 = vadd.f32 %v27653_v3, %v27153_v11  ;;  %v17567_v28 = vpop.f32.mrb[17].mxu1  ;;  %v27675_v3 = vadd.f32 %v37764_v31, %v39546_v21 }
 0xd7e   :  { %v38092_v42 = vadd.f32 %v27655_v48, %v17567_v28  ;;  %27266 = vmatmul.mubr.msk.f32.vlgmr.msra.gmra.mrb[128].mxu0 %vm17758_vm9, %v17748_v41  ;;  %v21479_v48 = vld [vmem:[%s38226_s5 + $0x148] sm:$0xf]  ;;  %v21482_v41 = vld [vmem:[%s38226_s5 + $0x150] sm:$0xff] }
 0xd7f   :  { %27525 = vmatpush3.bf16.msra.mxu0 %v27524_v55  ;;  %27274 = vmatprep.mubr.msk.f32.mxu0 %vm29197_vm8, %v29196_v54 }
 0xd80   :  { %v17704_v50 = vmax.f32 %v38092_v42, %v38090_v4  ;;  %v27156_v18 = vpop.f32.mrb[18].mxu1  ;;  %27272 = vmatprep.subr.mxu0 %v29196_v54 }
 0xd81   :  { %v27658_v30 = vadd.f32 %v27657_v44, %v27156_v18  ;;  %v17577_v27 = vpop.f32.mrb[19].mxu1  ;;  %v21488_v18 = vld [vmem:[%s38226_s5 + $0x170] sm:$0xff] }
 0xd82   :  { %v27660_v37 = vadd.f32 %v27659_v52, %v17577_v27  ;;  %v21484_v52 = vld [vmem:[%s38226_s5 + $0x160] sm:$0xf]  ;;  %v19060_v27 = vld [vmem:[%s38228_s7 + $0x8] sm:$0xff] }
 0xd83   :  { %27273 = vmatpush3.msk.msra.mxu0 %vm17762_vm7, %v21469_v36 }
 0xd84   :  { %v17705_v10 = vmax.f32 %v27660_v37, %v27658_v30  ;;  %v27159_v57 = vpop.f32.mrb[20].mxu1  ;;  %27526 = vmatprep.subr.bf16.mxu0 %v29195_v33  ;;  %v19059_v30 = vld [vmem:[%s38228_s7] sm:$0xff] }
 0xd85   :  { %v27662_v1 = vadd.f32 %v27661_v40, %v27159_v57  ;;  %v17587_v62 = vpop.f32.mrb[21].mxu1  ;;  %v27539_v37 = vpack.c.bf16 %v19060_v27, %v19059_v30  ;;  %v19061_v40 = vld [vmem:[%s38228_s7 + $0x10] sm:$0xff] }
 0xd86   :  { %v27664_v0 = vadd.f32 %v27663_v2, %v17587_v62  ;;  %27275 = vmatmul.mubr.msk.f32.vlgmr.msra.gmra.mrb[128].mxu0 %vm17758_vm9, %v17749_v51  ;;  %v19063_v2 = vld [vmem:[%s38228_s7 + $0x20] sm:$0xff]  ;;  %v19064_v51 = vld [vmem:[%s38228_s7 + $0x28] sm:$0xff]  ;;  %v19065_v57 = vld [vmem:[%s38228_s7 + $0x30] sm:$0x3] }
 0xd87   :  { %27528 = vmatpush3.bf16.msra.mxu0 %v27527_v15  ;;  %27283 = vmatprep.mubr.msk.f32.mxu0 %vm29197_vm8, %v29196_v54  ;;  %v19062_v15 = vld [vmem:[%s38228_s7 + $0x18] sm:$0xff] }
 0xd88   :  { %v17718_v24 = vmax.f32 %v27664_v0, %v27662_v1  ;;  %v27162_v25 = vpop.f32.mrb[22].mxu1  ;;  %27281 = vmatprep.subr.mxu0 %v29196_v54  ;;  %v27542_v59 = vpack.c.bf16 %v19062_v15, %v19061_v40  ;;  %v21416_v1 = vld [vmem:[%s38230_s6] ss:$0 sm:$0xff] }
 0xd89   :  { %v27666_v9 = vadd.f32 %v27665_v7, %v27162_v25  ;;  %v17597_v8 = vpop.f32.mrb[23].mxu1 }
 0xd8a   :  { %v17734_v12 = vmax.f32 %v17702_v34, %v17718_v24  ;;  %v27668_v19 = vadd.f32 %v27667_v56, %v17597_v8  ;;  %v39545_v34 = vld [vmem:[#allocation35_spill] sm:$0xff] }
 0xd8b   :  { %27282 = vmatpush3.msk.msra.mxu0 %vm17762_vm7, %v21474_v46  ;;  %v27673_v58 = vadd.f32 %v39545_v34, %v37764_v31 }
 0xd8c   :  { %v17750_v43 = vmax.f32 %v17734_v12, 0.0  ;;  %v17719_v32 = vmax.f32 %v27668_v19, %v27666_v9  ;;  %v27165_v49 = vpop.f32.mrb[24].mxu1  ;;  %27529 = vmatprep.subr.bf16.mxu0 %v29195_v33 }
 0xd8d   :  { %v27670_v60 = vadd.f32 %v27669_v5, %v27165_v49  ;;  %v17607_v23 = vpop.f32.mrb[25].mxu1 }
 0xd8e   :  { %v17735_v29 = vmax.f32 %v17703_v14, %v17719_v32  ;;  %v27672_v45 = vadd.f32 %v27671_v6, %v17607_v23  ;;  %27284 = vmatmul.mubr.msk.f32.vlgmr.msra.gmra.mrb[128].mxu0 %vm17758_vm9, %v17750_v43  ;;  %v21483_v14 = vld [vmem:[%s38226_s5 + $0x158] sm:$0xff] }
 0xd8f   :  { %27531 = vmatpush3.bf16.msra.mxu0 %v27530_v35  ;;  %27292 = vmatprep.mubr.msk.f32.mxu0 %vm29197_vm8, %v29196_v54  ;;  %v27533_v42 = vpack.c.bf16 %v21483_v14, %v21482_v41 }
 0xd90   :  { %v17720_v55 = vmax.f32 %v27672_v45, %v27670_v60  ;;  %v27168_v26 = vpop.f32.mrb[26].mxu1  ;;  %27290 = vmatprep.subr.mxu0 %v29196_v54  ;;  %v17751_v17 = vmax.f32 %v17735_v29, 0.0 }
 0xd91   :  { %v27674_v11 = vadd.f32 %v27673_v58, %v27168_v26  ;;  %v17617_v4 = vpop.f32.mrb[27].mxu1 }
 0xd92   :  { %v17736_v28 = vmax.f32 %v17704_v50, %v17720_v55  ;;  %v27676_v31 = vadd.f32 %v27675_v3, %v17617_v4  ;;  %v21487_v50 = vld [vmem:[%s38226_s5 + $0x168] sm:$0xff] }
 0xd93   :  { %27291 = vmatpush3.msk.msra.mxu0 %vm17762_vm7, %v21479_v48  ;;  %v27536_v36 = vpack.c.bf16 %v21488_v18, %v21487_v50 }
 0xd94   :  { %v17721_v44 = vmax.f32 %v27676_v31, %v27674_v11  ;;  %27532 = vmatprep.subr.bf16.mxu0 %v29195_v33  ;;  %v17752_v16 = vmax.f32 %v17736_v28, 0.0 }
 0xd96   :  { %v17737_v61 = vmax.f32 %v17705_v10, %v17721_v44  ;;  %27293 = vmatmul.mubr.msk.f32.vlgmr.msra.gmra.mrb[128].mxu0 %vm17758_vm9, %v17751_v17  ;;  %v27545_v10 = vpack.c.bf16 %v19064_v51, %v19063_v2 }
 0xd97   :  { %27534 = vmatpush3.bf16.msra.mxu0 %v27533_v42  ;;  %27301 = vmatprep.mubr.msk.f32.mxu0 %vm29197_vm8, %v29196_v54 }
 0xd98   :  { %27299 = vmatprep.subr.mxu0 %v29196_v54  ;;  %v17753_v47 = vmax.f32 %v17737_v61, 0.0 }
 0xd9b   :  { %27300 = vmatpush3.msk.msra.mxu0 %vm17762_vm7, %v21484_v52 }
 0xd9c   :  { %27535 = vmatprep.subr.bf16.mxu0 %v29195_v33 }
 0xd9e   :  { %27302 = vmatmul.mubr.msk.f32.vlgmr.msra.gmra.mrb[128].mxu0 %vm17758_vm9, %v17752_v16 }
 0xd9f   :  { %27537 = vmatpush3.bf16.msra.mxu0 %v27536_v36  ;;  %27310 = vmatprep.mubr.msk.f32.mxu0 %vm29197_vm8, %v29196_v54 }
 0xda0   :  { %27308 = vmatprep.subr.mxu0 %v29196_v54 }
 0xda3   :  { %27309 = vmatpush3.msk.msra.mxu0 %vm17762_vm7, %v21489_v63 }
 0xda4   :  { %27538 = vmatprep.subr.bf16.mxu0 %v29195_v33 }
 0xda6   :  { %27311 = vmatmul.mubr.msk.f32.vlgmr.msra.gmra.mrb[128].mxu0 %vm17758_vm9, %v17753_v47 }
 0xda7   :  { %27540 = vmatpush3.bf16.msra.mxu0 %v27539_v37  ;;  %27327 = vmatprep.mubr.msk.f32.mxu0 %vm29197_vm8, %v29196_v54 }
 0xda8   :  { %27541 = vmatprep.subr.bf16.mxu0 %v29195_v33 }
 0xdab   :  { %27543 = vmatpush3.bf16.msra.mxu0 %v27542_v59 }
 0xdac   :  { %27544 = vmatprep.subr.bf16.mxu0 %v29195_v33  ;;  %v14_v33 = vstv %s38229_s8 }
 0xdad   :  { %15 = vst [vmem:[#allocation2] sm:$0x1] %v14_v33 }
 0xdaf   :  { %27546 = vmatpush3.bf16.msra.mxu0 %v27545_v10 }
 0xdb0   :  { %27325 = vmatprep.subr.mxu0 %v29196_v54 }
 0xdb3   :  { %27326 = vmatpush3.msk.msra.mxu0 %vm6071_vm4, %v19065_v57 }
 0xdb4   :  { %v21492_v7 = vld [vmem:[#allocation2] ss:$0 sm:$0xff] }
 0xe79   :  { %v19053_v62 = vpop.f32.mrb[128].mxu0 }
 0xe7a   :  { %v27677_v0 = vadd.f32 %v21416_v1, %v19053_v62  ;;  %v27312_v20 = vpop.f32.mrb[129].mxu0 }
 0xe7c   :  { %v19058_v54 = vmax.f32 %v27677_v0, 0.0 }
 0xe7e   :  { %27328 = vmatmul.mubr.msk.f32.vlgmr.msra.gmra.mrb[130].mxu0 %vm19073_vm10, %v19058_v54 }
 0xf51   :  { %v19146_v53 = vpop.f32.mrb[130].mxu0 }
 0xf52   :  { %v19147_v56 = vadd.f32 %v21492_v7, %v19146_v53  ;;  %v27329_v24 = vpop.f32.mrb[131].mxu0 }
 0xf54   :  { %v19150_v25 = vsub.f32 0.0, %v19147_v56 }
 0xf56   :  { %v19151_v46 = vmul.f32 1.442695, %v19150_v25 }
 0xf58   :  { %29184 = vpow2.f32 %v19151_v46 }
 0xf62   :  { %v29185_v39 = vpop.eup %29184 }
 0xf63   :  { %v19153_v13 = vadd.f32 1.0, %v29185_v39 }
 0xf65   :  { %29186 = vrcp.f32 %v19153_v13 }
 0xf6f   :  { %v29187_v9 = vpop.eup %29186 }
 0xf70   :  { %19157 = vst.msk [vmem:[%s38231_s9] sm:$0xff] %vm19156_vm11, %v29187_v9 }

</bundles_post_ra>
